<compile_context>
chip_gen: v6e
topology: v6e:2x2x1
jax: 0.10.0
libtpu: 0.0.40
codegen_flags: <defaults>
</compile_context>

<pallas_src>
import math

import jax
import jax.numpy as jnp
from jax.experimental import pallas as pl
from jax.experimental.pallas import tpu as pltpu


def _round_up(x, m):
    return (x + m - 1) // m * m


def _gelu(x):
    # TODO(synk): PyTorch nn.GELU() defaults to the exact erf form; the tanh
    # approximation is used here for guaranteed Mosaic lowering (tanh -> EUP).
    c = math.sqrt(2.0 / math.pi)
    return 0.5 * x * (1.0 + jnp.tanh(c * (x + 0.044715 * x * x * x)))


def bert_embedder_kernel(txt_ref, img_ref,
                         w1t_ref, b1t_ref, w2t_ref, b2t_ref,
                         w1i_ref, b1i_ref, w2i_ref, b2i_ref,
                         we_img_ref, we_txt_ref, be_ref,
                         o_ref):
    """One grid step processes a (Rt, ...) slab of fused rows.

    txt_ref : (Rt, 768)   DistilBERT features
    img_ref : (Rt, 512)   ResNet features
    w*_ref  : full weights, resident in VMEM ([in, out] layout)
    b*_ref  : (1, out)
    o_ref   : (Rt, Dout_padded)   lane-dense (multiple of 128)
    """
    txt = txt_ref[...]
    img = img_ref[...]

    # --- feed_forward_distillBert: Linear -> GELU -> Linear (dropout = id) ---
    ht = jnp.dot(txt, w1t_ref[...], preferred_element_type=jnp.float32) + b1t_ref[0]
    ht = _gelu(ht)
    t = jnp.dot(ht, w2t_ref[...], preferred_element_type=jnp.float32) + b2t_ref[0]

    # --- feed_forward_resNet: Linear -> GELU -> Linear (dropout = id) ---
    hi = jnp.dot(img, w1i_ref[...], preferred_element_type=jnp.float32) + b1i_ref[0]
    hi = _gelu(hi)
    i = jnp.dot(hi, w2i_ref[...], preferred_element_type=jnp.float32) + b2i_ref[0]

    # --- normalize_hypersphere: x / ||x||_2 per row (rsqrt -> EUP slot) ---
    t = t * jax.lax.rsqrt(jnp.sum(t * t, axis=-1, keepdims=True))
    i = i * jax.lax.rsqrt(jnp.sum(i * i, axis=-1, keepdims=True))

    # --- final embedding: concat([img_n, txt_n], -1) @ We + be, implemented
    #     as a split matmul so no concatenation is materialized. ---
    out = (jnp.dot(i, we_img_ref[...], preferred_element_type=jnp.float32)
           + jnp.dot(t, we_txt_ref[...], preferred_element_type=jnp.float32)
           + be_ref[0])
    o_ref[...] = out.astype(o_ref.dtype)


def bert_embedder_head(descs_emb, imgs_emb, params, *, row_tile=256):
    """descs_emb: (B, N, 768); imgs_emb: (B, N, 512). Returns (B, N, dim_inp)."""
    B, N, Dt = descs_emb.shape
    _, _, Di = imgs_emb.shape

    w1t, b1t, w2t, b2t = params["w1t"], params["b1t"], params["w2t"], params["b2t"]
    w1i, b1i, w2i, b2i = params["w1i"], params["b1i"], params["w2i"], params["b2i"]
    we, be = params["we"], params["be"]

    H = w1t.shape[1]        # hidden width (1024)
    Dj = w2t.shape[1]       # joint half width (256)
    Dout = we.shape[1]      # dim_inp

    # Flatten (B, N) -> rows; batch many rows per grid step.
    R = B * N
    txt = descs_emb.reshape(R, Dt)
    img = imgs_emb.reshape(R, Di)

    Rt = min(row_tile, _round_up(R, 8))       # sublane-aligned row tile
    Rp = _round_up(R, Rt)
    if Rp != R:
        txt = jnp.pad(txt, ((0, Rp - R), (0, 0)))
        img = jnp.pad(img, ((0, Rp - R), (0, 0)))

    # Lane-dense output: pad dim_inp up to a multiple of 128 (stripped below).
    Dop = _round_up(Dout, 128)
    we_p = jnp.pad(we, ((0, 0), (0, Dop - Dout)))
    be_p = jnp.pad(be, ((0, Dop - Dout),)).reshape(1, Dop)

    # Split the final weight along its input dim: rows [0:Dj] see the image
    # half of the concat, rows [Dj:2*Dj] the text half.
    we_img = we_p[:Dj]
    we_txt = we_p[Dj:]

    b1t2, b2t2 = b1t.reshape(1, H), b2t.reshape(1, Dj)
    b1i2, b2i2 = b1i.reshape(1, H), b2i.reshape(1, Dj)

    def const(shape):
        return pl.BlockSpec(shape, lambda r: (0, 0))

    out = pl.pallas_call(
        bert_embedder_kernel,
        out_shape=jax.ShapeDtypeStruct((Rp, Dop), descs_emb.dtype),
        grid_spec=pltpu.PrefetchScalarGridSpec(
            num_scalar_prefetch=0,
            grid=(Rp // Rt,),
            in_specs=[
                pl.BlockSpec((Rt, Dt), lambda r: (r, 0)),   # text rows
                pl.BlockSpec((Rt, Di), lambda r: (r, 0)),   # image rows
                const((Dt, H)), const((1, H)),              # text MLP layer 1
                const((H, Dj)), const((1, Dj)),             # text MLP layer 2
                const((Di, H)), const((1, H)),              # image MLP layer 1
                const((H, Dj)), const((1, Dj)),             # image MLP layer 2
                const((Dj, Dop)), const((Dj, Dop)),         # split final weight
                const((1, Dop)),                            # final bias
            ],
            out_specs=pl.BlockSpec((Rt, Dop), lambda r: (r, 0)),
        ),
        compiler_params=pltpu.CompilerParams(
            dimension_semantics=("parallel",),
            vmem_limit_bytes=48 * 1024 * 1024),
    )(txt, img, w1t, b1t2, w2t, b2t2, w1i, b1i2, w2i, b2i2,
      we_img, we_txt, be_p)

    return out[:R, :Dout].reshape(B, N, Dout)


def bert_embedder_ref(descs_emb, imgs_emb, p):
    """Pure-JAX reference mirroring the PyTorch forward (dropout = identity)."""
    with jax.default_matmul_precision("highest"):
        t = _gelu(descs_emb @ p["w1t"] + p["b1t"]) @ p["w2t"] + p["b2t"]
        i = _gelu(imgs_emb @ p["w1i"] + p["b1i"]) @ p["w2i"] + p["b2i"]
        t = t / jnp.linalg.norm(t, axis=-1, keepdims=True)
        i = i / jnp.linalg.norm(i, axis=-1, keepdims=True)
        emb = jnp.concatenate([i, t], axis=-1)
        return emb @ p["we"] + p["be"]


if __name__ == "__main__":
    # Small shapes consistent with the module: batch=2, n_items=3 (6 fused
    # item embeddings, matching the docstring's "(6, 128)"), text feat 768,
    # image feat 512, hidden 1024, joint 256, dim_inp=128.
    B, N = 2, 3
    D_TXT, D_IMG = 768, 512
    HID, D_JOINT = 1024, 256
    DIM_INP = 128

    key = jax.random.PRNGKey(0)
    ks = jax.random.split(key, 12)

    # Stand-ins for the (frozen / pretrained) backbone feature outputs.
    descs_emb = jax.random.normal(ks[0], (B, N, D_TXT), dtype=jnp.float32)
    imgs_emb = jax.random.normal(ks[1], (B, N, D_IMG), dtype=jnp.float32)

    def linear_init(kw, kb, fan_in, fan_out):
        bound = 1.0 / math.sqrt(fan_in)
        w = jax.random.uniform(kw, (fan_in, fan_out), jnp.float32, -bound, bound)
        b = jax.random.uniform(kb, (fan_out,), jnp.float32, -bound, bound)
        return w, b

    w1t, b1t = linear_init(ks[2], ks[3], D_TXT, HID)
    w2t, b2t = linear_init(ks[4], ks[5], HID, D_JOINT)
    w1i, b1i = linear_init(ks[6], ks[7], D_IMG, HID)
    w2i, b2i = linear_init(ks[8], ks[9], HID, D_JOINT)
    we, be = linear_init(ks[10], ks[11], 2 * D_JOINT, DIM_INP)

    params = dict(w1t=w1t, b1t=b1t, w2t=w2t, b2t=b2t,
                  w1i=w1i, b1i=b1i, w2i=w2i, b2i=b2i,
                  we=we, be=be)

    out = bert_embedder_head(descs_emb, imgs_emb, params)
    out = jax.block_until_ready(out)

    ref = bert_embedder_ref(descs_emb, imgs_emb, params)
    assert out.shape == (B, N, DIM_INP)
    assert jnp.allclose(out, ref, atol=2e-4, rtol=2e-4), "mismatch vs reference"

    print("KERNEL_OK")
</pallas_src>

<mosaic_0001>
module attributes {stable_mosaic.version = 11 : i64} {
  func.func @bert_embedder_kernel(%arg0: i32, %arg1: memref<8x768xf32, #tpu.memory_space<vmem>>, %arg2: memref<8x512xf32, #tpu.memory_space<vmem>>, %arg3: memref<768x1024xf32, #tpu.memory_space<vmem>>, %arg4: memref<1x1024xf32, #tpu.memory_space<vmem>>, %arg5: memref<1024x256xf32, #tpu.memory_space<vmem>>, %arg6: memref<1x256xf32, #tpu.memory_space<vmem>>, %arg7: memref<512x1024xf32, #tpu.memory_space<vmem>>, %arg8: memref<1x1024xf32, #tpu.memory_space<vmem>>, %arg9: memref<1024x256xf32, #tpu.memory_space<vmem>>, %arg10: memref<1x256xf32, #tpu.memory_space<vmem>>, %arg11: memref<256x128xf32, #tpu.memory_space<vmem>>, %arg12: memref<256x128xf32, #tpu.memory_space<vmem>>, %arg13: memref<1x128xf32, #tpu.memory_space<vmem>>, %arg14: memref<8x128xf32, #tpu.memory_space<vmem>>) attributes {dimension_semantics = [#tpu.dimension_semantics<parallel>], iteration_bounds = array<i64: 1>, scalar_prefetch = 0 : i64, scratch_operands = 0 : i64, tpu.core_type = #tpu.core_type<tc>, window_params = [{transform_indices = @transform_0, window_bounds = array<i64: 8, 768>}, {transform_indices = @transform_1, window_bounds = array<i64: 8, 512>}, {pipeline_mode = #tpu.pipeline_mode<synchronous>, transform_indices = @transform_2, window_bounds = array<i64: 768, 1024>}, {pipeline_mode = #tpu.pipeline_mode<synchronous>, transform_indices = @transform_3, window_bounds = array<i64: 1, 1024>}, {pipeline_mode = #tpu.pipeline_mode<synchronous>, transform_indices = @transform_4, window_bounds = array<i64: 1024, 256>}, {pipeline_mode = #tpu.pipeline_mode<synchronous>, transform_indices = @transform_5, window_bounds = array<i64: 1, 256>}, {pipeline_mode = #tpu.pipeline_mode<synchronous>, transform_indices = @transform_6, window_bounds = array<i64: 512, 1024>}, {pipeline_mode = #tpu.pipeline_mode<synchronous>, transform_indices = @transform_7, window_bounds = array<i64: 1, 1024>}, {pipeline_mode = #tpu.pipeline_mode<synchronous>, transform_indices = @transform_8, window_bounds = array<i64: 1024, 256>}, {pipeline_mode = #tpu.pipeline_mode<synchronous>, transform_indices = @transform_9, window_bounds = array<i64: 1, 256>}, {pipeline_mode = #tpu.pipeline_mode<synchronous>, transform_indices = @transform_10, window_bounds = array<i64: 256, 128>}, {pipeline_mode = #tpu.pipeline_mode<synchronous>, transform_indices = @transform_11, window_bounds = array<i64: 256, 128>}, {pipeline_mode = #tpu.pipeline_mode<synchronous>, transform_indices = @transform_12, window_bounds = array<i64: 1, 128>}, {transform_indices = @transform_13, window_bounds = array<i64: 8, 128>}]} {
    %c0 = arith.constant 0 : index
    %c0_0 = arith.constant 0 : index
    %0 = vector.load %arg1[%c0, %c0_0] : memref<8x768xf32, #tpu.memory_space<vmem>>, vector<8x768xf32>
    %c0_1 = arith.constant 0 : index
    %c0_2 = arith.constant 0 : index
    %1 = vector.load %arg2[%c0_1, %c0_2] : memref<8x512xf32, #tpu.memory_space<vmem>>, vector<8x512xf32>
    %c0_3 = arith.constant 0 : index
    %c0_4 = arith.constant 0 : index
    %2 = vector.load %arg3[%c0_3, %c0_4] : memref<768x1024xf32, #tpu.memory_space<vmem>>, vector<768x1024xf32>
    %cst = arith.constant dense<0.000000e+00> : vector<8x1024xf32>
    %3 = tpu.matmul %0, %2, %cst {dimension_numbers = #tpu.dot_dimension_numbers<[1], [0], [0], [1], [0, 0, 1, 1], [], []>} : vector<8x768xf32>, vector<768x1024xf32>, vector<8x1024xf32> -> vector<8x1024xf32>
    %c0_5 = arith.constant 0 : index
    %c0_6 = arith.constant 0 : index
    %4 = vector.load %arg4[%c0_5, %c0_6] : memref<1x1024xf32, #tpu.memory_space<vmem>>, vector<1x1024xf32>
    %5 = vector.shape_cast %4 : vector<1x1024xf32> to vector<1024xf32>
    %6 = vector.shape_cast %5 : vector<1024xf32> to vector<1x1024xf32>
    %7 = vector.broadcast %6 : vector<1x1024xf32> to vector<8x1024xf32>
    %8 = arith.addf %3, %7 : vector<8x1024xf32>
    %cst_7 = arith.constant 5.000000e-01 : f32
    %9 = vector.broadcast %cst_7 : f32 to vector<8x1024xf32>
    %10 = arith.mulf %9, %8 : vector<8x1024xf32>
    %cst_8 = arith.constant 4.471500e-02 : f32
    %11 = vector.broadcast %cst_8 : f32 to vector<8x1024xf32>
    %12 = arith.mulf %11, %8 : vector<8x1024xf32>
    %13 = arith.mulf %12, %8 : vector<8x1024xf32>
    %14 = arith.mulf %13, %8 : vector<8x1024xf32>
    %15 = arith.addf %8, %14 : vector<8x1024xf32>
    %cst_9 = arith.constant 0.797884583 : f32
    %16 = vector.broadcast %cst_9 : f32 to vector<8x1024xf32>
    %17 = arith.mulf %16, %15 : vector<8x1024xf32>
    %18 = math.tanh %17 : vector<8x1024xf32>
    %cst_10 = arith.constant 1.000000e+00 : f32
    %19 = vector.broadcast %cst_10 : f32 to vector<8x1024xf32>
    %20 = arith.addf %19, %18 : vector<8x1024xf32>
    %21 = arith.mulf %10, %20 : vector<8x1024xf32>
    %c0_11 = arith.constant 0 : index
    %c0_12 = arith.constant 0 : index
    %22 = vector.load %arg5[%c0_11, %c0_12] : memref<1024x256xf32, #tpu.memory_space<vmem>>, vector<1024x256xf32>
    %cst_13 = arith.constant dense<0.000000e+00> : vector<8x256xf32>
    %23 = tpu.matmul %21, %22, %cst_13 {dimension_numbers = #tpu.dot_dimension_numbers<[1], [0], [0], [1], [0, 0, 1, 1], [], []>} : vector<8x1024xf32>, vector<1024x256xf32>, vector<8x256xf32> -> vector<8x256xf32>
    %c0_14 = arith.constant 0 : index
    %c0_15 = arith.constant 0 : index
    %24 = vector.load %arg6[%c0_14, %c0_15] : memref<1x256xf32, #tpu.memory_space<vmem>>, vector<1x256xf32>
    %25 = vector.shape_cast %24 : vector<1x256xf32> to vector<256xf32>
    %26 = vector.shape_cast %25 : vector<256xf32> to vector<1x256xf32>
    %27 = vector.broadcast %26 : vector<1x256xf32> to vector<8x256xf32>
    %28 = arith.addf %23, %27 : vector<8x256xf32>
    %c0_16 = arith.constant 0 : index
    %c0_17 = arith.constant 0 : index
    %29 = vector.load %arg7[%c0_16, %c0_17] : memref<512x1024xf32, #tpu.memory_space<vmem>>, vector<512x1024xf32>
    %cst_18 = arith.constant dense<0.000000e+00> : vector<8x1024xf32>
    %30 = tpu.matmul %1, %29, %cst_18 {dimension_numbers = #tpu.dot_dimension_numbers<[1], [0], [0], [1], [0, 0, 1, 1], [], []>} : vector<8x512xf32>, vector<512x1024xf32>, vector<8x1024xf32> -> vector<8x1024xf32>
    %c0_19 = arith.constant 0 : index
    %c0_20 = arith.constant 0 : index
    %31 = vector.load %arg8[%c0_19, %c0_20] : memref<1x1024xf32, #tpu.memory_space<vmem>>, vector<1x1024xf32>
    %32 = vector.shape_cast %31 : vector<1x1024xf32> to vector<1024xf32>
    %33 = vector.shape_cast %32 : vector<1024xf32> to vector<1x1024xf32>
    %34 = vector.broadcast %33 : vector<1x1024xf32> to vector<8x1024xf32>
    %35 = arith.addf %30, %34 : vector<8x1024xf32>
    %cst_21 = arith.constant 5.000000e-01 : f32
    %36 = vector.broadcast %cst_21 : f32 to vector<8x1024xf32>
    %37 = arith.mulf %36, %35 : vector<8x1024xf32>
    %cst_22 = arith.constant 4.471500e-02 : f32
    %38 = vector.broadcast %cst_22 : f32 to vector<8x1024xf32>
    %39 = arith.mulf %38, %35 : vector<8x1024xf32>
    %40 = arith.mulf %39, %35 : vector<8x1024xf32>
    %41 = arith.mulf %40, %35 : vector<8x1024xf32>
    %42 = arith.addf %35, %41 : vector<8x1024xf32>
    %cst_23 = arith.constant 0.797884583 : f32
    %43 = vector.broadcast %cst_23 : f32 to vector<8x1024xf32>
    %44 = arith.mulf %43, %42 : vector<8x1024xf32>
    %45 = math.tanh %44 : vector<8x1024xf32>
    %cst_24 = arith.constant 1.000000e+00 : f32
    %46 = vector.broadcast %cst_24 : f32 to vector<8x1024xf32>
    %47 = arith.addf %46, %45 : vector<8x1024xf32>
    %48 = arith.mulf %37, %47 : vector<8x1024xf32>
    %c0_25 = arith.constant 0 : index
    %c0_26 = arith.constant 0 : index
    %49 = vector.load %arg9[%c0_25, %c0_26] : memref<1024x256xf32, #tpu.memory_space<vmem>>, vector<1024x256xf32>
    %cst_27 = arith.constant dense<0.000000e+00> : vector<8x256xf32>
    %50 = tpu.matmul %48, %49, %cst_27 {dimension_numbers = #tpu.dot_dimension_numbers<[1], [0], [0], [1], [0, 0, 1, 1], [], []>} : vector<8x1024xf32>, vector<1024x256xf32>, vector<8x256xf32> -> vector<8x256xf32>
    %c0_28 = arith.constant 0 : index
    %c0_29 = arith.constant 0 : index
    %51 = vector.load %arg10[%c0_28, %c0_29] : memref<1x256xf32, #tpu.memory_space<vmem>>, vector<1x256xf32>
    %52 = vector.shape_cast %51 : vector<1x256xf32> to vector<256xf32>
    %53 = vector.shape_cast %52 : vector<256xf32> to vector<1x256xf32>
    %54 = vector.broadcast %53 : vector<1x256xf32> to vector<8x256xf32>
    %55 = arith.addf %50, %54 : vector<8x256xf32>
    %56 = arith.mulf %28, %28 : vector<8x256xf32>
    %cst_30 = arith.constant dense<0.000000e+00> : vector<8xf32>
    %57 = vector.multi_reduction <add>, %56, %cst_30 [1] : vector<8x256xf32> to vector<8xf32>
    %58 = vector.shape_cast %57 : vector<8xf32> to vector<8x1xf32>
    %59 = math.rsqrt %58 : vector<8x1xf32>
    %60 = vector.broadcast %59 : vector<8x1xf32> to vector<8x256xf32>
    %61 = arith.mulf %28, %60 : vector<8x256xf32>
    %62 = arith.mulf %55, %55 : vector<8x256xf32>
    %cst_31 = arith.constant dense<0.000000e+00> : vector<8xf32>
    %63 = vector.multi_reduction <add>, %62, %cst_31 [1] : vector<8x256xf32> to vector<8xf32>
    %64 = vector.shape_cast %63 : vector<8xf32> to vector<8x1xf32>
    %65 = math.rsqrt %64 : vector<8x1xf32>
    %66 = vector.broadcast %65 : vector<8x1xf32> to vector<8x256xf32>
    %67 = arith.mulf %55, %66 : vector<8x256xf32>
    %c0_32 = arith.constant 0 : index
    %c0_33 = arith.constant 0 : index
    %68 = vector.load %arg11[%c0_32, %c0_33] : memref<256x128xf32, #tpu.memory_space<vmem>>, vector<256x128xf32>
    %cst_34 = arith.constant dense<0.000000e+00> : vector<8x128xf32>
    %69 = tpu.matmul %67, %68, %cst_34 {dimension_numbers = #tpu.dot_dimension_numbers<[1], [0], [0], [1], [0, 0, 1, 1], [], []>} : vector<8x256xf32>, vector<256x128xf32>, vector<8x128xf32> -> vector<8x128xf32>
    %c0_35 = arith.constant 0 : index
    %c0_36 = arith.constant 0 : index
    %70 = vector.load %arg12[%c0_35, %c0_36] : memref<256x128xf32, #tpu.memory_space<vmem>>, vector<256x128xf32>
    %cst_37 = arith.constant dense<0.000000e+00> : vector<8x128xf32>
    %71 = tpu.matmul %61, %70, %cst_37 {dimension_numbers = #tpu.dot_dimension_numbers<[1], [0], [0], [1], [0, 0, 1, 1], [], []>} : vector<8x256xf32>, vector<256x128xf32>, vector<8x128xf32> -> vector<8x128xf32>
    %72 = arith.addf %69, %71 : vector<8x128xf32>
    %c0_38 = arith.constant 0 : index
    %c0_39 = arith.constant 0 : index
    %73 = vector.load %arg13[%c0_38, %c0_39] : memref<1x128xf32, #tpu.memory_space<vmem>>, vector<1x128xf32>
    %74 = vector.shape_cast %73 : vector<1x128xf32> to vector<128xf32>
    %75 = vector.shape_cast %74 : vector<128xf32> to vector<1x128xf32>
    %76 = vector.broadcast %75 : vector<1x128xf32> to vector<8x128xf32>
    %77 = arith.addf %72, %76 : vector<8x128xf32>
    %c0_40 = arith.constant 0 : index
    %c0_41 = arith.constant 0 : index
    %78 = vector.load %arg14[%c0_40, %c0_41] : memref<8x128xf32, #tpu.memory_space<vmem>>, vector<8x128xf32>
    tpu.vector_store %arg14[%c0_40, %c0_41], %77 {strides = array<i32>} : memref<8x128xf32, #tpu.memory_space<vmem>>, vector<8x128xf32>,
    return
  }
  func.func @transform_0(%arg0: i32) -> (i32, i32) {
    %c0_i32 = arith.constant 0 : i32
    %c0_i32_0 = arith.constant 0 : i32
    return %arg0, %c0_i32 : i32, i32
  }
  func.func @transform_1(%arg0: i32) -> (i32, i32) {
    %c0_i32 = arith.constant 0 : i32
    %c0_i32_0 = arith.constant 0 : i32
    return %arg0, %c0_i32 : i32, i32
  }
  func.func @transform_2(%arg0: i32) -> (i32, i32) {
    %c0_i32 = arith.constant 0 : i32
    %c0_i32_0 = arith.constant 0 : i32
    %c0_i32_1 = arith.constant 0 : i32
    return %c0_i32, %c0_i32_0 : i32, i32
  }
  func.func @transform_3(%arg0: i32) -> (i32, i32) {
    %c0_i32 = arith.constant 0 : i32
    %c0_i32_0 = arith.constant 0 : i32
    %c0_i32_1 = arith.constant 0 : i32
    return %c0_i32, %c0_i32_0 : i32, i32
  }
  func.func @transform_4(%arg0: i32) -> (i32, i32) {
    %c0_i32 = arith.constant 0 : i32
    %c0_i32_0 = arith.constant 0 : i32
    %c0_i32_1 = arith.constant 0 : i32
    return %c0_i32, %c0_i32_0 : i32, i32
  }
  func.func @transform_5(%arg0: i32) -> (i32, i32) {
    %c0_i32 = arith.constant 0 : i32
    %c0_i32_0 = arith.constant 0 : i32
    %c0_i32_1 = arith.constant 0 : i32
    return %c0_i32, %c0_i32_0 : i32, i32
  }
  func.func @transform_6(%arg0: i32) -> (i32, i32) {
    %c0_i32 = arith.constant 0 : i32
    %c0_i32_0 = arith.constant 0 : i32
    %c0_i32_1 = arith.constant 0 : i32
    return %c0_i32, %c0_i32_0 : i32, i32
  }
  func.func @transform_7(%arg0: i32) -> (i32, i32) {
    %c0_i32 = arith.constant 0 : i32
    %c0_i32_0 = arith.constant 0 : i32
    %c0_i32_1 = arith.constant 0 : i32
    return %c0_i32, %c0_i32_0 : i32, i32
  }
  func.func @transform_8(%arg0: i32) -> (i32, i32) {
    %c0_i32 = arith.constant 0 : i32
    %c0_i32_0 = arith.constant 0 : i32
    %c0_i32_1 = arith.constant 0 : i32
    return %c0_i32, %c0_i32_0 : i32, i32
  }
  func.func @transform_9(%arg0: i32) -> (i32, i32) {
    %c0_i32 = arith.constant 0 : i32
    %c0_i32_0 = arith.constant 0 : i32
    %c0_i32_1 = arith.constant 0 : i32
    return %c0_i32, %c0_i32_0 : i32, i32
  }
  func.func @transform_10(%arg0: i32) -> (i32, i32) {
    %c0_i32 = arith.constant 0 : i32
    %c0_i32_0 = arith.constant 0 : i32
    %c0_i32_1 = arith.constant 0 : i32
    return %c0_i32, %c0_i32_0 : i32, i32
  }
  func.func @transform_11(%arg0: i32) -> (i32, i32) {
    %c0_i32 = arith.constant 0 : i32
    %c0_i32_0 = arith.constant 0 : i32
    %c0_i32_1 = arith.constant 0 : i32
    return %c0_i32, %c0_i32_0 : i32, i32
  }
  func.func @transform_12(%arg0: i32) -> (i32, i32) {
    %c0_i32 = arith.constant 0 : i32
    %c0_i32_0 = arith.constant 0 : i32
    %c0_i32_1 = arith.constant 0 : i32
    return %c0_i32, %c0_i32_0 : i32, i32
  }
  func.func @transform_13(%arg0: i32) -> (i32, i32) {
    %c0_i32 = arith.constant 0 : i32
    %c0_i32_0 = arith.constant 0 : i32
    return %arg0, %c0_i32 : i32, i32
  }
}

</mosaic_0001>

<bundles_post_ra>
// kernel: tpu_custom_call.1
= control target key start
LH: loop header
LB: loop body
LE: loop exit
PB: predicated region body
PF: predicated region fallthrough
CT: control target
= control target key end

     0   :  { %18 = vsyncpa [#allocation3], 0  ;;  %s5334_s0 = inlined_call_operand.hbm [shape: f32[8,768], index: 0, kind: input, shape index: {}]   ;;  %s5335_s1 = inlined_call_operand.hbm [shape: f32[8,512], index: 1, kind: input, shape index: {}]   ;;  %s5336_s2 = inlined_call_operand.hbm [shape: f32[768,1024], index: 2, kind: input, shape index: {}]   ;;  %s5337_s3 = inlined_call_operand.hbm [shape: f32[1,1024], index: 3, kind: input, shape index: {}]   ;;  %s5338_s4 = inlined_call_operand.hbm [shape: f32[1024,256], index: 4, kind: input, shape index: {}]   ;;  %s5339_s5 = inlined_call_operand.hbm [shape: f32[1,256], index: 5, kind: input, shape index: {}]   ;;  %s5340_s6 = inlined_call_operand.hbm [shape: f32[512,1024], index: 6, kind: input, shape index: {}]   ;;  %s5341_s7 = inlined_call_operand.hbm [shape: f32[1,1024], index: 7, kind: input, shape index: {}]   ;;  %s5342_s8 = inlined_call_operand.hbm [shape: f32[1024,256], index: 8, kind: input, shape index: {}]   ;;  %s5343_s9 = inlined_call_operand.hbm [shape: f32[1,256], index: 9, kind: input, shape index: {}]   ;;  %s5344_s10 = inlined_call_operand.hbm [shape: f32[256,128], index: 10, kind: input, shape index: {}]   ;;  %s5345_s11 = inlined_call_operand.hbm [shape: f32[256,128], index: 11, kind: input, shape index: {}]   ;;  %s5346_s12 = inlined_call_operand.hbm [shape: f32[1,128], index: 12, kind: input, shape index: {}]   ;;  %s5347_s13 = inlined_call_operand.hbm [shape: f32[8,128], index: 13, kind: output, shape index: {}]  }
   0x1   :  { %19 = vsyncpa [#allocation6], 0 }
   0x2   :  { %20 = vsyncpa [#allocation9], 0 }
   0x3   :  { %21 = vsyncpa [#allocation12], 0 }
   0x4   :  { %22 = vsyncpa [#allocation15], 0 }
   0x5   :  { %23 = vsyncpa [#allocation18], 0 }
   0x6   :  { %24 = vsyncpa [#allocation21], 0 }
   0x7   :  { %25 = vsyncpa [#allocation4], 0  ;;  %s4937_s25 = smov [#allocation5]   ;;  %s4938_s27 = smov [#allocation8]  }
   0x8   :  { %s42_s26 = sshll.u32 %s4937_s25, 4  ;;  %s64_s28 = sshll.u32 %s4938_s27, 4  ;;  %s43_s26 = int_to_ptr.vmem [resolvable:$true] %s42_s26  ;;  %s65_s28 = int_to_ptr.vmem [resolvable:$true] %s64_s28 }
   0x9   :  { %s4649_s29 = scalar_lea.vmem %s43_s26, 512  ;;  %p4654_p1 = scmp.lt.s32.totalorder %s43_s26, %s43_s26 }
   0xa   :  { %p4650_p0 = scmp.ne.s32.totalorder %s43_s26, %s4649_s29  ;;  %p4655_p2 = scmp.lt.s32.totalorder %s4649_s29, %s4649_s29 }
   0xc   :  { %p4656_p3 = por %p4655_p2, %p4654_p1 }
   0xe   :  { %p4657_p4 = pnand %p4656_p3, %p4650_p0 }
  0x10   :  { %4660 = shalt.err (!%p4657_p4)
}
  0x11   :  { %45 = dma.hbm_to_vmem [thread:$0]  %s5335_s1, 512, %s43_s26, [#allocation6]  }
  0x12   :  { %s4669_s15 = scalar_lea.vmem %s65_s28, 128  ;;  %p4674_p6 = scmp.lt.s32.totalorder %s65_s28, %s65_s28 }
  0x13   :  { %p4670_p5 = scmp.ne.s32.totalorder %s65_s28, %s4669_s15  ;;  %p4675_p7 = scmp.lt.s32.totalorder %s4669_s15, %s4669_s15 }
  0x15   :  { %p4676_p8 = por %p4675_p7, %p4674_p6 }
  0x17   :  { %p4677_p9 = pnand %p4676_p8, %p4670_p5 }
  0x19   :  { %4680 = shalt.err (!%p4677_p9)
}
  0x1a   :  { %67 = dma.hbm_to_vmem [thread:$0]  %s5337_s3, 128, %s65_s28, [#allocation9]  }
  0x1b   :  { %s4939_s18 = smov [#allocation11]   ;;  %s4940_s20 = smov [#allocation14]  }
  0x1c   :  { %s86_s19 = sshll.u32 %s4939_s18, 4  ;;  %s108_s21 = sshll.u32 %s4940_s20, 4  ;;  %s87_s19 = int_to_ptr.vmem [resolvable:$true] %s86_s19  ;;  %s109_s21 = int_to_ptr.vmem [resolvable:$true] %s108_s21 }
  0x1d   :  { %s4689_s22 = scalar_lea.vmem %s87_s19, 32  ;;  %p4694_p11 = scmp.lt.s32.totalorder %s87_s19, %s87_s19 }
  0x1e   :  { %p4690_p10 = scmp.ne.s32.totalorder %s87_s19, %s4689_s22  ;;  %p4695_p12 = scmp.lt.s32.totalorder %s4689_s22, %s4689_s22 }
  0x20   :  { %p4696_p13 = por %p4695_p12, %p4694_p11 }
  0x22   :  { %p4697_p0 = pnand %p4696_p13, %p4690_p10 }
  0x24   :  { %4700 = shalt.err (!%p4697_p0)
}
  0x25   :  { %89 = dma.hbm_to_vmem [thread:$0]  %s5339_s5, 32, %s87_s19, [#allocation12]  }
  0x26   :  { %s4709_s24 = scalar_lea.vmem %s109_s21, 128  ;;  %p4714_p2 = scmp.lt.s32.totalorder %s109_s21, %s109_s21 }
  0x27   :  { %p4710_p1 = scmp.ne.s32.totalorder %s109_s21, %s4709_s24  ;;  %p4715_p3 = scmp.lt.s32.totalorder %s4709_s24, %s4709_s24 }
  0x29   :  { %p4716_p4 = por %p4715_p3, %p4714_p2 }
  0x2b   :  { %p4717_p5 = pnand %p4716_p4, %p4710_p1 }
  0x2d   :  { %4720 = shalt.err (!%p4717_p5)
}
  0x2e   :  { %111 = dma.hbm_to_vmem [thread:$0]  %s5341_s7, 128, %s109_s21, [#allocation15]  }
  0x2f   :  { %s4941_s26 = smov [#allocation17]  }
  0x30   :  { %s130_s27 = sshll.u32 %s4941_s26, 4  ;;  %s131_s27 = int_to_ptr.vmem [resolvable:$true] %s130_s27 }
  0x31   :  { %s4729_s28 = scalar_lea.vmem %s131_s27, 32  ;;  %p4734_p7 = scmp.lt.s32.totalorder %s131_s27, %s131_s27 }
  0x32   :  { %p4730_p6 = scmp.ne.s32.totalorder %s131_s27, %s4729_s28  ;;  %p4735_p8 = scmp.lt.s32.totalorder %s4729_s28, %s4729_s28 }
  0x34   :  { %p4736_p9 = por %p4735_p8, %p4734_p7 }
  0x36   :  { %p4737_p10 = pnand %p4736_p9, %p4730_p6 }
  0x38   :  { %4740 = shalt.err (!%p4737_p10)
}
  0x39   :  { %133 = dma.hbm_to_vmem [thread:$0]  %s5343_s9, 32, %s131_s27, [#allocation18]  }
  0x3a   :  { %s4942_s30 = smov [#allocation20]   ;;  %s4943_s15 = smov [#allocation2]  }
  0x3b   :  { %s151_s14 = sshll.u32 %s4942_s30, 4  ;;  %s32_s16 = sshll.u32 %s4943_s15, 4  ;;  %s152_s14 = int_to_ptr.vmem [resolvable:$true] %s151_s14  ;;  %s33_s16 = int_to_ptr.vmem [resolvable:$true] %s32_s16 }
  0x3c   :  { %s4749_s7 = scalar_lea.vmem %s152_s14, 4096  ;;  %p4754_p12 = scmp.lt.s32.totalorder %s152_s14, %s152_s14 }
  0x3d   :  { %p4750_p11 = scmp.ne.s32.totalorder %s152_s14, %s4749_s7  ;;  %p4755_p13 = scmp.lt.s32.totalorder %s4749_s7, %s4749_s7 }
  0x3f   :  { %p4756_p0 = por %p4755_p13, %p4754_p12 }
  0x41   :  { %p4757_p1 = pnand %p4756_p0, %p4750_p11 }
  0x43   :  { %4760 = shalt.err (!%p4757_p1)
}
  0x44   :  { %s4944_s17 = smov 128   ;;  %s4945_s18 = smov 8  }
  0x45   :  { %157 = dma.hbm_to_vmem [thread:$0]  %s5345_s11, 4096, %s152_s14, [#allocation21], %s4944_s17, %s4944_s17, %s4945_s18  }
  0x46   :  { %s4769_s9 = scalar_lea.vmem %s33_s16, 768  ;;  %p4774_p3 = scmp.lt.s32.totalorder %s33_s16, %s33_s16 }
  0x47   :  { %p4770_p2 = scmp.ne.s32.totalorder %s33_s16, %s4769_s9  ;;  %p4775_p4 = scmp.lt.s32.totalorder %s4769_s9, %s4769_s9 }
  0x49   :  { %p4776_p5 = por %p4775_p4, %p4774_p3 }
  0x4b   :  { %p4777_p6 = pnand %p4776_p5, %p4770_p2 }
  0x4d   :  { %4780 = shalt.err (!%p4777_p6)
}
  0x4e   :  { %35 = dma.hbm_to_vmem [thread:$0]  %s5334_s0, 768, %s33_s16, [#allocation3]  }
  0x4f   :  { %s4946_s1 = smov [#allocation7]  }
  0x50   :  { %s51_s23 = sshll.u32 %s4946_s1, 4  ;;  %s52_s23 = int_to_ptr.vmem [resolvable:$true] %s51_s23 }
  0x51   :  { %s4789_s24 = scalar_lea.vmem %s52_s23, 98304  ;;  %p4794_p8 = scmp.lt.s32.totalorder %s52_s23, %s52_s23 }
  0x52   :  { %p4790_p7 = scmp.ne.s32.totalorder %s52_s23, %s4789_s24  ;;  %p4795_p9 = scmp.lt.s32.totalorder %s4789_s24, %s4789_s24 }
  0x54   :  { %p4796_p10 = por %p4795_p9, %p4794_p8 }
  0x56   :  { %p4797_p11 = pnand %p4796_p10, %p4790_p7 }
  0x58   :  { %4800 = shalt.err (!%p4797_p11)
}
  0x59   :  { %s4947_s11 = smov 1024   ;;  %s4948_s3 = smov 64  }
  0x5a   :  { %57 = dma.hbm_to_vmem [thread:$0]  %s5336_s2, 98304, %s52_s23, [#allocation6], %s4947_s11, %s4947_s11, %s4948_s3  }
  0x5b   :  { %s4949_s0 = smov [#allocation10]  }
  0x5c   :  { %s73_s27 = sshll.u32 %s4949_s0, 4  ;;  %s74_s27 = int_to_ptr.vmem [resolvable:$true] %s73_s27 }
  0x5d   :  { %s4809_s28 = scalar_lea.vmem %s74_s27, 32768  ;;  %p4814_p13 = scmp.lt.s32.totalorder %s74_s27, %s74_s27 }
  0x5e   :  { %p4810_p12 = scmp.ne.s32.totalorder %s74_s27, %s4809_s28  ;;  %p4815_p0 = scmp.lt.s32.totalorder %s4809_s28, %s4809_s28 }
  0x60   :  { %p4816_p1 = por %p4815_p0, %p4814_p13 }
  0x62   :  { %p4817_p2 = pnand %p4816_p1, %p4810_p12 }
  0x64   :  { %4820 = shalt.err (!%p4817_p2)
}
  0x65   :  { %s4950_s5 = smov 256   ;;  %s4951_s29 = smov 16  }
  0x66   :  { %79 = dma.hbm_to_vmem [thread:$0]  %s5338_s4, 32768, %s74_s27, [#allocation9], %s4950_s5, %s4950_s5, %s4951_s29  }
  0x67   :  { %s4952_s15 = smov [#allocation13]   ;;  %s4953_s2 = smov [#allocation16]  }
  0x68   :  { %s95_s16 = sshll.u32 %s4952_s15, 4  ;;  %s117_s7 = sshll.u32 %s4953_s2, 4  ;;  %s96_s16 = int_to_ptr.vmem [resolvable:$true] %s95_s16  ;;  %s118_s7 = int_to_ptr.vmem [resolvable:$true] %s117_s7 }
  0x69   :  { %s4829_s19 = scalar_lea.vmem %s96_s16, 65536  ;;  %p4834_p4 = scmp.lt.s32.totalorder %s96_s16, %s96_s16 }
  0x6a   :  { %p4830_p3 = scmp.ne.s32.totalorder %s96_s16, %s4829_s19  ;;  %p4835_p5 = scmp.lt.s32.totalorder %s4829_s19, %s4829_s19 }
  0x6c   :  { %p4836_p6 = por %p4835_p5, %p4834_p4 }
  0x6e   :  { %p4837_p7 = pnand %p4836_p6, %p4830_p3 }
  0x70   :  { %4840 = shalt.err (!%p4837_p7)
}
  0x71   :  { %101 = dma.hbm_to_vmem [thread:$0]  %s5340_s6, 65536, %s96_s16, [#allocation12], %s4947_s11, %s4947_s11, %s4948_s3  }
  0x72   :  { %s4849_s4 = scalar_lea.vmem %s118_s7, 32768  ;;  %p4854_p9 = scmp.lt.s32.totalorder %s118_s7, %s118_s7 }
  0x73   :  { %p4850_p8 = scmp.ne.s32.totalorder %s118_s7, %s4849_s4  ;;  %p4855_p10 = scmp.lt.s32.totalorder %s4849_s4, %s4849_s4 }
  0x75   :  { %p4856_p11 = por %p4855_p10, %p4854_p9 }
  0x77   :  { %p4857_p12 = pnand %p4856_p11, %p4850_p8 }
  0x79   :  { %4860 = shalt.err (!%p4857_p12)
}
  0x7a   :  { %123 = dma.hbm_to_vmem [thread:$0]  %s5342_s8, 32768, %s118_s7, [#allocation15], %s4950_s5, %s4950_s5, %s4951_s29  }
  0x7b   :  { %s4954_s1 = smov [#allocation19]   ;;  %s4955_s24 = smov [#allocation22]  }
  0x7c   :  { %s139_s23 = sshll.u32 %s4954_s1, 4  ;;  %s164_s25 = sshll.u32 %s4955_s24, 4  ;;  %s140_s23 = int_to_ptr.vmem [resolvable:$true] %s139_s23  ;;  %s165_s25 = int_to_ptr.vmem [resolvable:$true] %s164_s25 }
  0x7d   :  { %s4869_s26 = scalar_lea.vmem %s140_s23, 4096  ;;  %p4874_p0 = scmp.lt.s32.totalorder %s140_s23, %s140_s23 }
  0x7e   :  { %p4870_p13 = scmp.ne.s32.totalorder %s140_s23, %s4869_s26  ;;  %p4875_p1 = scmp.lt.s32.totalorder %s4869_s26, %s4869_s26 }
  0x80   :  { %p4876_p2 = por %p4875_p1, %p4874_p0 }
  0x82   :  { %p4877_p3 = pnand %p4876_p2, %p4870_p13 }
  0x84   :  { %4880 = shalt.err (!%p4877_p3)
}
  0x85   :  { %145 = dma.hbm_to_vmem [thread:$0]  %s5344_s10, 4096, %s140_s23, [#allocation18], %s4944_s17, %s4944_s17, %s4945_s18  }
  0x86   :  { %s4889_s8 = scalar_lea.vmem %s165_s25, 16  ;;  %s4893_s3 = scalar_lea.vmem %s165_s25, 32 }
  0x87   :  { %p4890_p4 = scmp.ne.s32.totalorder %s165_s25, %s4889_s8  ;;  %p4894_p5 = scmp.lt.s32.totalorder %s165_s25, %s165_s25 }
  0x88   :  { %p4895_p6 = scmp.lt.s32.totalorder %s4893_s3, %s4889_s8 }
  0x8a   :  { %p4896_p7 = por %p4895_p6, %p4894_p5 }
  0x8c   :  { %p4897_p8 = pnand %p4896_p7, %p4890_p4 }
  0x8e   :  { %4900 = shalt.err (!%p4897_p8)
}
  0x8f   :  { %167 = dma.hbm_to_vmem [thread:$0]  %s5346_s12, 16, %s165_s25, [#allocation21]  }
  0x90   :  { %4921 = dma.done.wait [#allocation3], 768  }
  0x91   :  { %4922 = vsyncadd [#allocation3], 4294966528 }
  0x92   :  { %4923 = dma.done.wait [#allocation6], 98816  }
  0x93   :  { %4924 = vsyncadd [#allocation6], 4294868480 }
  0x94   :  { %4925 = dma.done.wait [#allocation9], 32896  }
  0x95   :  { %4926 = vsyncadd [#allocation9], 4294934400 }
  0x96   :  { %4927 = dma.done.wait [#allocation12], 65568  }
  0x97   :  { %4928 = vsyncadd [#allocation12], 4294901728 }
  0x98   :  { %4929 = dma.done.wait [#allocation15], 32896  }
  0x99   :  { %4930 = vsyncadd [#allocation15], 4294934400 }
  0x9a   :  { %4931 = dma.done.wait [#allocation18], 4128  }
  0x9b   :  { %4932 = vsyncadd [#allocation18], 4294963168 }
  0x9c   :  { %4933 = dma.done.wait [#allocation21], 4112  }
  0x9d   :  { %4934 = vsyncadd [#allocation21], 4294963184  ;;  %v338_v0 = vld [vmem:[#allocation7 + $0x3c8] sm:$0xff]  ;;  %v337_v2 = vld [vmem:[#allocation7 + $0x3c0] sm:$0xff]  ;;  %s4956_s10 = smov [#allocation23]  }
  0x9e   :  { %v594_v1 = vld [vmem:[#allocation7 + $0xbc8] sm:$0xff]  ;;  %1027 = vmatprep.subr.mxu0 %v338_v0  ;;  %v593_v3 = vld [vmem:[#allocation7 + $0xbc0] sm:$0xff]  ;;  %s4484_s12 = sshll.u32 %s4956_s10, 4  ;;  %s4485_s12 = int_to_ptr.vmem [resolvable:$true] %s4484_s12 }
  0x9f   :  { %1098 = vmatprep.subr.mxu1 %v594_v1  ;;  %v330_v4 = vld [vmem:[#allocation7 + $0x388] sm:$0xff]  ;;  %1028 = vmatpush1.msra.mxu0 %v337_v2  ;;  %v329_v6 = vld [vmem:[#allocation7 + $0x380] sm:$0xff]  ;;  %s4901_s17 = scalar_lea.vmem %s4485_s12, 128  ;;  %p4906_p10 = scmp.lt.s32.totalorder %s4485_s12, %s4485_s12 }
  0xa0   :  { %v586_v5 = vld [vmem:[#allocation7 + $0xb88] sm:$0xff]  ;;  %1099 = vmatpush1.msra.mxu1 %v593_v3  ;;  %v585_v7 = vld [vmem:[#allocation7 + $0xb80] sm:$0xff]  ;;  %1029 = vmatprep.subr.mxu0 %v330_v4  ;;  %p4902_p9 = scmp.ne.s32.totalorder %s4485_s12, %s4901_s17  ;;  %p4907_p11 = scmp.lt.s32.totalorder %s4901_s17, %s4901_s17 }
  0xa1   :  { %v322_v8 = vld [vmem:[#allocation7 + $0x348] sm:$0xff]  ;;  %1100 = vmatprep.subr.mxu1 %v586_v5  ;;  %v321_v10 = vld [vmem:[#allocation7 + $0x340] sm:$0xff]  ;;  %1030 = vmatpush1.msra.mxu0 %v329_v6 }
  0xa2   :  { %v578_v9 = vld [vmem:[#allocation7 + $0xb48] sm:$0xff]  ;;  %v577_v11 = vld [vmem:[#allocation7 + $0xb40] sm:$0xff]  ;;  %1101 = vmatpush1.msra.mxu1 %v585_v7  ;;  %1031 = vmatprep.subr.mxu0 %v322_v8  ;;  %p4908_p12 = por %p4907_p11, %p4906_p10 }
  0xa3   :  { %v314_v12 = vld [vmem:[#allocation7 + $0x308] sm:$0xff]  ;;  %1102 = vmatprep.subr.mxu1 %v578_v9  ;;  %v313_v14 = vld [vmem:[#allocation7 + $0x300] sm:$0xff]  ;;  %1032 = vmatpush1.msra.mxu0 %v321_v10 }
  0xa4   :  { %v570_v13 = vld [vmem:[#allocation7 + $0xb08] sm:$0xff]  ;;  %v569_v15 = vld [vmem:[#allocation7 + $0xb00] sm:$0xff]  ;;  %1103 = vmatpush1.msra.mxu1 %v577_v11  ;;  %1033 = vmatprep.subr.mxu0 %v314_v12  ;;  %p4909_p13 = pnand %p4908_p12, %p4902_p9 }
  0xa5   :  { %v306_v16 = vld [vmem:[#allocation7 + $0x2c8] sm:$0xff]  ;;  %1104 = vmatprep.subr.mxu1 %v570_v13  ;;  %v305_v18 = vld [vmem:[#allocation7 + $0x2c0] sm:$0xff]  ;;  %1034 = vmatpush1.msra.mxu0 %v313_v14 }
  0xa6   :  { %v562_v17 = vld [vmem:[#allocation7 + $0xac8] sm:$0xff]  ;;  %v561_v19 = vld [vmem:[#allocation7 + $0xac0] sm:$0xff]  ;;  %1105 = vmatpush1.msra.mxu1 %v569_v15  ;;  %1035 = vmatprep.subr.mxu0 %v306_v16 }
  0xa7   :  { %v298_v20 = vld [vmem:[#allocation7 + $0x288] sm:$0xff]  ;;  %1106 = vmatprep.subr.mxu1 %v562_v17  ;;  %v297_v22 = vld [vmem:[#allocation7 + $0x280] sm:$0xff]  ;;  %1036 = vmatpush1.msra.mxu0 %v305_v18 }
  0xa8   :  { %v554_v21 = vld [vmem:[#allocation7 + $0xa88] sm:$0xff]  ;;  %v553_v23 = vld [vmem:[#allocation7 + $0xa80] sm:$0xff]  ;;  %1107 = vmatpush1.msra.mxu1 %v561_v19  ;;  %1037 = vmatprep.subr.mxu0 %v298_v20 }
  0xa9   :  { %v290_v24 = vld [vmem:[#allocation7 + $0x248] sm:$0xff]  ;;  %1108 = vmatprep.subr.mxu1 %v554_v21  ;;  %v289_v26 = vld [vmem:[#allocation7 + $0x240] sm:$0xff]  ;;  %1038 = vmatpush1.msra.mxu0 %v297_v22 }
  0xaa   :  { %v546_v25 = vld [vmem:[#allocation7 + $0xa48] sm:$0xff]  ;;  %v545_v27 = vld [vmem:[#allocation7 + $0xa40] sm:$0xff]  ;;  %1109 = vmatpush1.msra.mxu1 %v553_v23  ;;  %1039 = vmatprep.subr.mxu0 %v290_v24 }
  0xab   :  { %v282_v28 = vld [vmem:[#allocation7 + $0x208] sm:$0xff]  ;;  %1110 = vmatprep.subr.mxu1 %v546_v25  ;;  %v281_v30 = vld [vmem:[#allocation7 + $0x200] sm:$0xff]  ;;  %1040 = vmatpush1.msra.mxu0 %v289_v26 }
  0xac   :  { %v538_v29 = vld [vmem:[#allocation7 + $0xa08] sm:$0xff]  ;;  %v537_v31 = vld [vmem:[#allocation7 + $0xa00] sm:$0xff]  ;;  %1111 = vmatpush1.msra.mxu1 %v545_v27  ;;  %1041 = vmatprep.subr.mxu0 %v282_v28 }
  0xad   :  { %v274_v32 = vld [vmem:[#allocation7 + $0x1c8] sm:$0xff]  ;;  %1112 = vmatprep.subr.mxu1 %v538_v29  ;;  %v273_v34 = vld [vmem:[#allocation7 + $0x1c0] sm:$0xff]  ;;  %1042 = vmatpush1.msra.mxu0 %v281_v30 }
  0xae   :  { %v530_v33 = vld [vmem:[#allocation7 + $0x9c8] sm:$0xff]  ;;  %v529_v35 = vld [vmem:[#allocation7 + $0x9c0] sm:$0xff]  ;;  %1113 = vmatpush1.msra.mxu1 %v537_v31  ;;  %1043 = vmatprep.subr.mxu0 %v274_v32 }
  0xaf   :  { %v266_v36 = vld [vmem:[#allocation7 + $0x188] sm:$0xff]  ;;  %1114 = vmatprep.subr.mxu1 %v530_v33  ;;  %v265_v38 = vld [vmem:[#allocation7 + $0x180] sm:$0xff]  ;;  %1044 = vmatpush1.msra.mxu0 %v273_v34 }
  0xb0   :  { %v522_v37 = vld [vmem:[#allocation7 + $0x988] sm:$0xff]  ;;  %v521_v39 = vld [vmem:[#allocation7 + $0x980] sm:$0xff]  ;;  %1115 = vmatpush1.msra.mxu1 %v529_v35  ;;  %1045 = vmatprep.subr.mxu0 %v266_v36 }
  0xb1   :  { %v258_v40 = vld [vmem:[#allocation7 + $0x148] sm:$0xff]  ;;  %1116 = vmatprep.subr.mxu1 %v522_v37  ;;  %v257_v42 = vld [vmem:[#allocation7 + $0x140] sm:$0xff]  ;;  %1046 = vmatpush1.msra.mxu0 %v265_v38 }
  0xb2   :  { %v514_v41 = vld [vmem:[#allocation7 + $0x948] sm:$0xff]  ;;  %v513_v43 = vld [vmem:[#allocation7 + $0x940] sm:$0xff]  ;;  %1117 = vmatpush1.msra.mxu1 %v521_v39  ;;  %1047 = vmatprep.subr.mxu0 %v258_v40 }
  0xb3   :  { %v250_v44 = vld [vmem:[#allocation7 + $0x108] sm:$0xff]  ;;  %1118 = vmatprep.subr.mxu1 %v514_v41  ;;  %v249_v46 = vld [vmem:[#allocation7 + $0x100] sm:$0xff]  ;;  %1048 = vmatpush1.msra.mxu0 %v257_v42 }
  0xb4   :  { %v506_v45 = vld [vmem:[#allocation7 + $0x908] sm:$0xff]  ;;  %v505_v47 = vld [vmem:[#allocation7 + $0x900] sm:$0xff]  ;;  %1119 = vmatpush1.msra.mxu1 %v513_v43  ;;  %1049 = vmatprep.subr.mxu0 %v250_v44 }
  0xb5   :  { %v242_v48 = vld [vmem:[#allocation7 + $0xc8] sm:$0xff]  ;;  %1120 = vmatprep.subr.mxu1 %v506_v45  ;;  %v241_v50 = vld [vmem:[#allocation7 + $0xc0] sm:$0xff]  ;;  %1050 = vmatpush1.msra.mxu0 %v249_v46 }
  0xb6   :  { %v498_v49 = vld [vmem:[#allocation7 + $0x8c8] sm:$0xff]  ;;  %v497_v51 = vld [vmem:[#allocation7 + $0x8c0] sm:$0xff]  ;;  %1121 = vmatpush1.msra.mxu1 %v505_v47  ;;  %1051 = vmatprep.subr.mxu0 %v242_v48 }
  0xb7   :  { %v234_v52 = vld [vmem:[#allocation7 + $0x88] sm:$0xff]  ;;  %1122 = vmatprep.subr.mxu1 %v498_v49  ;;  %v233_v54 = vld [vmem:[#allocation7 + $0x80] sm:$0xff]  ;;  %1052 = vmatpush1.msra.mxu0 %v241_v50 }
  0xb8   :  { %v490_v53 = vld [vmem:[#allocation7 + $0x888] sm:$0xff]  ;;  %v489_v55 = vld [vmem:[#allocation7 + $0x880] sm:$0xff]  ;;  %1123 = vmatpush1.msra.mxu1 %v497_v51  ;;  %1053 = vmatprep.subr.mxu0 %v234_v52 }
  0xb9   :  { %v226_v56 = vld [vmem:[#allocation7 + $0x48] sm:$0xff]  ;;  %1124 = vmatprep.subr.mxu1 %v490_v53  ;;  %v225_v58 = vld [vmem:[#allocation7 + $0x40] sm:$0xff]  ;;  %1054 = vmatpush1.msra.mxu0 %v233_v54 }
  0xba   :  { %v482_v57 = vld [vmem:[#allocation7 + $0x848] sm:$0xff]  ;;  %v481_v59 = vld [vmem:[#allocation7 + $0x840] sm:$0xff]  ;;  %1125 = vmatpush1.msra.mxu1 %v489_v55  ;;  %1055 = vmatprep.subr.mxu0 %v226_v56 }
  0xbb   :  { %v218_v60 = vld [vmem:[#allocation7 + $0x8] sm:$0xff]  ;;  %1126 = vmatprep.subr.mxu1 %v482_v57  ;;  %v217_v62 = vld [vmem:[#allocation7] sm:$0xff]  ;;  %1056 = vmatpush1.msra.mxu0 %v225_v58 }
  0xbc   :  { %v474_v61 = vld [vmem:[#allocation7 + $0x808] sm:$0xff]  ;;  %v473_v63 = vld [vmem:[#allocation7 + $0x800] sm:$0xff]  ;;  %1127 = vmatpush1.msra.mxu1 %v481_v59  ;;  %1057 = vmatprep.subr.mxu0 %v218_v60 }
  0xbd   :  { %v466_v0 = vld [vmem:[#allocation7 + $0x7c8] sm:$0xff]  ;;  %1128 = vmatprep.subr.mxu1 %v474_v61  ;;  %v465_v2 = vld [vmem:[#allocation7 + $0x7c0] sm:$0xff]  ;;  %1058 = vmatpush1.msra.mxu0 %v217_v62 }
  0xbe   :  { %v722_v1 = vld [vmem:[#allocation7 + $0xfc8] sm:$0xff]  ;;  %v721_v3 = vld [vmem:[#allocation7 + $0xfc0] sm:$0xff]  ;;  %1129 = vmatpush1.msra.mxu1 %v473_v63  ;;  %1059 = vmatprep.subr.mxu0 %v466_v0  ;;  %v5078_v63 = vld [vmem:[#allocation2 + $0x8] sm:$0xff] }
  0xbf   :  { %v458_v4 = vld [vmem:[#allocation7 + $0x788] sm:$0xff]  ;;  %1130 = vmatprep.subr.mxu1 %v722_v1  ;;  %v457_v6 = vld [vmem:[#allocation7 + $0x780] sm:$0xff]  ;;  %1060 = vmatpush2.msra.mxu0 %v465_v2  ;;  %v5080_v1 = vld [vmem:[#allocation2] sm:$0xff] }
  0xc0   :  { %v714_v5 = vld [vmem:[#allocation7 + $0xf88] sm:$0xff]  ;;  %v713_v7 = vld [vmem:[#allocation7 + $0xf80] sm:$0xff]  ;;  %1131 = vmatpush2.msra.mxu1 %v721_v3  ;;  %1061 = vmatprep.subr.mxu0 %v458_v4  ;;  %v340_v4 = vld [vmem:[#allocation7 + $0x3d8] sm:$0xff] }
  0xc1   :  { %v450_v8 = vld [vmem:[#allocation7 + $0x748] sm:$0xff]  ;;  %1132 = vmatprep.subr.mxu1 %v714_v5  ;;  %v449_v10 = vld [vmem:[#allocation7 + $0x740] sm:$0xff]  ;;  %1062 = vmatpush2.msra.mxu0 %v457_v6 }
  0xc2   :  { %v706_v9 = vld [vmem:[#allocation7 + $0xf48] sm:$0xff]  ;;  %v705_v11 = vld [vmem:[#allocation7 + $0xf40] sm:$0xff]  ;;  %1133 = vmatpush2.msra.mxu1 %v713_v7  ;;  %1063 = vmatprep.subr.mxu0 %v450_v8  ;;  %v339_v7 = vld [vmem:[#allocation7 + $0x3d0] sm:$0xff] }
  0xc3   :  { %v442_v12 = vld [vmem:[#allocation7 + $0x708] sm:$0xff]  ;;  %1134 = vmatprep.subr.mxu1 %v706_v9  ;;  %v441_v14 = vld [vmem:[#allocation7 + $0x700] sm:$0xff]  ;;  %1064 = vmatpush2.msra.mxu0 %v449_v10  ;;  %v332_v9 = vld [vmem:[#allocation7 + $0x398] sm:$0xff] }
  0xc4   :  { %v698_v13 = vld [vmem:[#allocation7 + $0xf08] sm:$0xff]  ;;  %v697_v15 = vld [vmem:[#allocation7 + $0xf00] sm:$0xff]  ;;  %1135 = vmatpush2.msra.mxu1 %v705_v11  ;;  %1065 = vmatprep.subr.mxu0 %v442_v12  ;;  %v331_v11 = vld [vmem:[#allocation7 + $0x390] sm:$0xff] }
  0xc5   :  { %v434_v16 = vld [vmem:[#allocation7 + $0x6c8] sm:$0xff]  ;;  %1136 = vmatprep.subr.mxu1 %v698_v13  ;;  %v433_v18 = vld [vmem:[#allocation7 + $0x6c0] sm:$0xff]  ;;  %1066 = vmatpush2.msra.mxu0 %v441_v14  ;;  %v324_v13 = vld [vmem:[#allocation7 + $0x358] sm:$0xff] }
  0xc6   :  { %v690_v17 = vld [vmem:[#allocation7 + $0xec8] sm:$0xff]  ;;  %v689_v19 = vld [vmem:[#allocation7 + $0xec0] sm:$0xff]  ;;  %1137 = vmatpush2.msra.mxu1 %v697_v15  ;;  %1067 = vmatprep.subr.mxu0 %v434_v16  ;;  %v323_v15 = vld [vmem:[#allocation7 + $0x350] sm:$0xff] }
  0xc7   :  { %v426_v20 = vld [vmem:[#allocation7 + $0x688] sm:$0xff]  ;;  %1138 = vmatprep.subr.mxu1 %v690_v17  ;;  %v425_v22 = vld [vmem:[#allocation7 + $0x680] sm:$0xff]  ;;  %1068 = vmatpush2.msra.mxu0 %v433_v18  ;;  %v316_v17 = vld [vmem:[#allocation7 + $0x318] sm:$0xff] }
  0xc8   :  { %v682_v21 = vld [vmem:[#allocation7 + $0xe88] sm:$0xff]  ;;  %v681_v23 = vld [vmem:[#allocation7 + $0xe80] sm:$0xff]  ;;  %1139 = vmatpush2.msra.mxu1 %v689_v19  ;;  %1069 = vmatprep.subr.mxu0 %v426_v20  ;;  %v315_v19 = vld [vmem:[#allocation7 + $0x310] sm:$0xff] }
  0xc9   :  { %v418_v24 = vld [vmem:[#allocation7 + $0x648] sm:$0xff]  ;;  %1140 = vmatprep.subr.mxu1 %v682_v21  ;;  %v417_v26 = vld [vmem:[#allocation7 + $0x640] sm:$0xff]  ;;  %1070 = vmatpush2.msra.mxu0 %v425_v22  ;;  %v308_v21 = vld [vmem:[#allocation7 + $0x2d8] sm:$0xff] }
  0xca   :  { %v674_v25 = vld [vmem:[#allocation7 + $0xe48] sm:$0xff]  ;;  %v673_v27 = vld [vmem:[#allocation7 + $0xe40] sm:$0xff]  ;;  %1141 = vmatpush2.msra.mxu1 %v681_v23  ;;  %1071 = vmatprep.subr.mxu0 %v418_v24  ;;  %v307_v23 = vld [vmem:[#allocation7 + $0x2d0] sm:$0xff] }
  0xcb   :  { %v410_v28 = vld [vmem:[#allocation7 + $0x608] sm:$0xff]  ;;  %1142 = vmatprep.subr.mxu1 %v674_v25  ;;  %v409_v30 = vld [vmem:[#allocation7 + $0x600] sm:$0xff]  ;;  %1072 = vmatpush2.msra.mxu0 %v417_v26  ;;  %v300_v25 = vld [vmem:[#allocation7 + $0x298] sm:$0xff] }
  0xcc   :  { %v666_v29 = vld [vmem:[#allocation7 + $0xe08] sm:$0xff]  ;;  %v665_v31 = vld [vmem:[#allocation7 + $0xe00] sm:$0xff]  ;;  %1143 = vmatpush2.msra.mxu1 %v673_v27  ;;  %1073 = vmatprep.subr.mxu0 %v410_v28  ;;  %v299_v27 = vld [vmem:[#allocation7 + $0x290] sm:$0xff] }
  0xcd   :  { %v402_v32 = vld [vmem:[#allocation7 + $0x5c8] sm:$0xff]  ;;  %1144 = vmatprep.subr.mxu1 %v666_v29  ;;  %v401_v34 = vld [vmem:[#allocation7 + $0x5c0] sm:$0xff]  ;;  %1074 = vmatpush2.msra.mxu0 %v409_v30  ;;  %v292_v29 = vld [vmem:[#allocation7 + $0x258] sm:$0xff] }
  0xce   :  { %v658_v33 = vld [vmem:[#allocation7 + $0xdc8] sm:$0xff]  ;;  %v657_v35 = vld [vmem:[#allocation7 + $0xdc0] sm:$0xff]  ;;  %1145 = vmatpush2.msra.mxu1 %v665_v31  ;;  %1075 = vmatprep.subr.mxu0 %v402_v32  ;;  %v291_v31 = vld [vmem:[#allocation7 + $0x250] sm:$0xff] }
  0xcf   :  { %v394_v36 = vld [vmem:[#allocation7 + $0x588] sm:$0xff]  ;;  %1146 = vmatprep.subr.mxu1 %v658_v33  ;;  %v393_v38 = vld [vmem:[#allocation7 + $0x580] sm:$0xff]  ;;  %1076 = vmatpush2.msra.mxu0 %v401_v34  ;;  %v284_v33 = vld [vmem:[#allocation7 + $0x218] sm:$0xff] }
  0xd0   :  { %v650_v37 = vld [vmem:[#allocation7 + $0xd88] sm:$0xff]  ;;  %v649_v39 = vld [vmem:[#allocation7 + $0xd80] sm:$0xff]  ;;  %1147 = vmatpush2.msra.mxu1 %v657_v35  ;;  %1077 = vmatprep.subr.mxu0 %v394_v36  ;;  %v283_v35 = vld [vmem:[#allocation7 + $0x210] sm:$0xff] }
  0xd1   :  { %v386_v40 = vld [vmem:[#allocation7 + $0x548] sm:$0xff]  ;;  %1148 = vmatprep.subr.mxu1 %v650_v37  ;;  %v385_v42 = vld [vmem:[#allocation7 + $0x540] sm:$0xff]  ;;  %1078 = vmatpush2.msra.mxu0 %v393_v38  ;;  %v276_v37 = vld [vmem:[#allocation7 + $0x1d8] sm:$0xff] }
  0xd2   :  { %v642_v41 = vld [vmem:[#allocation7 + $0xd48] sm:$0xff]  ;;  %v641_v43 = vld [vmem:[#allocation7 + $0xd40] sm:$0xff]  ;;  %1149 = vmatpush2.msra.mxu1 %v649_v39  ;;  %1079 = vmatprep.subr.mxu0 %v386_v40  ;;  %v275_v39 = vld [vmem:[#allocation7 + $0x1d0] sm:$0xff] }
  0xd3   :  { %v378_v44 = vld [vmem:[#allocation7 + $0x508] sm:$0xff]  ;;  %1150 = vmatprep.subr.mxu1 %v642_v41  ;;  %v377_v46 = vld [vmem:[#allocation7 + $0x500] sm:$0xff]  ;;  %1080 = vmatpush2.msra.mxu0 %v385_v42  ;;  %v268_v41 = vld [vmem:[#allocation7 + $0x198] sm:$0xff] }
  0xd4   :  { %v634_v45 = vld [vmem:[#allocation7 + $0xd08] sm:$0xff]  ;;  %v633_v47 = vld [vmem:[#allocation7 + $0xd00] sm:$0xff]  ;;  %1151 = vmatpush2.msra.mxu1 %v641_v43  ;;  %1081 = vmatprep.subr.mxu0 %v378_v44  ;;  %v267_v43 = vld [vmem:[#allocation7 + $0x190] sm:$0xff] }
  0xd5   :  { %v370_v48 = vld [vmem:[#allocation7 + $0x4c8] sm:$0xff]  ;;  %1152 = vmatprep.subr.mxu1 %v634_v45  ;;  %v369_v50 = vld [vmem:[#allocation7 + $0x4c0] sm:$0xff]  ;;  %1082 = vmatpush2.msra.mxu0 %v377_v46  ;;  %v260_v45 = vld [vmem:[#allocation7 + $0x158] sm:$0xff] }
  0xd6   :  { %v626_v49 = vld [vmem:[#allocation7 + $0xcc8] sm:$0xff]  ;;  %v625_v51 = vld [vmem:[#allocation7 + $0xcc0] sm:$0xff]  ;;  %1153 = vmatpush2.msra.mxu1 %v633_v47  ;;  %1083 = vmatprep.subr.mxu0 %v370_v48  ;;  %v259_v47 = vld [vmem:[#allocation7 + $0x150] sm:$0xff] }
  0xd7   :  { %v362_v52 = vld [vmem:[#allocation7 + $0x488] sm:$0xff]  ;;  %1154 = vmatprep.subr.mxu1 %v626_v49  ;;  %v361_v54 = vld [vmem:[#allocation7 + $0x480] sm:$0xff]  ;;  %1084 = vmatpush2.msra.mxu0 %v369_v50  ;;  %v252_v49 = vld [vmem:[#allocation7 + $0x118] sm:$0xff] }
  0xd8   :  { %v618_v53 = vld [vmem:[#allocation7 + $0xc88] sm:$0xff]  ;;  %v617_v55 = vld [vmem:[#allocation7 + $0xc80] sm:$0xff]  ;;  %1155 = vmatpush2.msra.mxu1 %v625_v51  ;;  %1085 = vmatprep.subr.mxu0 %v362_v52  ;;  %v251_v51 = vld [vmem:[#allocation7 + $0x110] sm:$0xff] }
  0xd9   :  { %v354_v56 = vld [vmem:[#allocation7 + $0x448] sm:$0xff]  ;;  %1156 = vmatprep.subr.mxu1 %v618_v53  ;;  %v353_v58 = vld [vmem:[#allocation7 + $0x440] sm:$0xff]  ;;  %1086 = vmatpush2.msra.mxu0 %v361_v54  ;;  %v244_v53 = vld [vmem:[#allocation7 + $0xd8] sm:$0xff] }
  0xda   :  { %v610_v57 = vld [vmem:[#allocation7 + $0xc48] sm:$0xff]  ;;  %v609_v59 = vld [vmem:[#allocation7 + $0xc40] sm:$0xff]  ;;  %1157 = vmatpush2.msra.mxu1 %v617_v55  ;;  %1087 = vmatprep.subr.mxu0 %v354_v56  ;;  %v243_v55 = vld [vmem:[#allocation7 + $0xd0] sm:$0xff] }
  0xdb   :  { %v346_v60 = vld [vmem:[#allocation7 + $0x408] sm:$0xff]  ;;  %1158 = vmatprep.subr.mxu1 %v610_v57  ;;  %v345_v62 = vld [vmem:[#allocation7 + $0x400] sm:$0xff]  ;;  %1088 = vmatpush2.msra.mxu0 %v353_v58  ;;  %v236_v57 = vld [vmem:[#allocation7 + $0x98] sm:$0xff] }
  0xdc   :  { %v602_v61 = vld [vmem:[#allocation7 + $0xc08] sm:$0xff]  ;;  %1159 = vmatpush2.msra.mxu1 %v609_v59  ;;  %v601_v0 = vld [vmem:[#allocation7 + $0xc00] sm:$0xff]  ;;  %1089 = vmatprep.subr.mxu0 %v346_v60  ;;  %v235_v59 = vld [vmem:[#allocation7 + $0x90] sm:$0xff] }
  0xdd   :  { %1160 = vmatprep.subr.mxu1 %v602_v61  ;;  %v210_v2 = vld [vmem:[#allocation2 + $0x18] sm:$0xff]  ;;  %1090 = vmatpush2.msra.mxu0 %v345_v62  ;;  %v209_v5 = vld [vmem:[#allocation2 + $0x10] sm:$0xff]  ;;  %v228_v61 = vld [vmem:[#allocation7 + $0x58] sm:$0xff] }
  0xde   :  { %v850_v3 = vld [vmem:[#allocation7 + $0x13c8] sm:$0xff]  ;;  %1091 = vmatprep.mubr.f32.mxu0 %v5078_v63  ;;  %1161 = vmatpush2.msra.mxu1 %v601_v0  ;;  %v849_v6 = vld [vmem:[#allocation7 + $0x13c0] sm:$0xff]  ;;  %v227_v0 = vld [vmem:[#allocation7 + $0x50] sm:$0xff] }
  0xdf   :  { %1092 = vmatmul.mubr.f32.vlgmr.msra.gmra.mxu0 %v5080_v1  ;;  %1162 = vmatprep.mubr.f32.mxu1 %v210_v2  ;;  %v842_v8 = vld [vmem:[#allocation7 + $0x1388] sm:$0xff]  ;;  %v841_v10 = vld [vmem:[#allocation7 + $0x1380] sm:$0xff] }
  0xe0   :  { %1169 = vmatprep.subr.mxu0 %v850_v3  ;;  %1240 = vmatprep.subr.mxu1 %v340_v4  ;;  %v834_v12 = vld [vmem:[#allocation7 + $0x1348] sm:$0xff]  ;;  %v833_v14 = vld [vmem:[#allocation7 + $0x1340] sm:$0xff]  ;;  %v220_v3 = vld [vmem:[#allocation7 + $0x18] sm:$0xff] }
  0xe1   :  { %1163 = vmatmul.mubr.f32.vlgmr.msra.gmra.mxu1 %v209_v5  ;;  %1170 = vmatpush1.msra.mxu0 %v849_v6  ;;  %v826_v16 = vld [vmem:[#allocation7 + $0x1308] sm:$0xff]  ;;  %v825_v18 = vld [vmem:[#allocation7 + $0x1300] sm:$0xff]  ;;  %v219_v5 = vld [vmem:[#allocation7 + $0x10] sm:$0xff] }
  0xe2   :  { %1241 = vmatpush1.msra.mxu1 %v339_v7  ;;  %1171 = vmatprep.subr.mxu0 %v842_v8  ;;  %v818_v20 = vld [vmem:[#allocation7 + $0x12c8] sm:$0xff]  ;;  %v817_v22 = vld [vmem:[#allocation7 + $0x12c0] sm:$0xff]  ;;  %v468_v7 = vld [vmem:[#allocation7 + $0x7d8] sm:$0xff] }
  0xe3   :  { %1242 = vmatprep.subr.mxu1 %v332_v9  ;;  %1172 = vmatpush1.msra.mxu0 %v841_v10  ;;  %v810_v24 = vld [vmem:[#allocation7 + $0x1288] sm:$0xff]  ;;  %v809_v26 = vld [vmem:[#allocation7 + $0x1280] sm:$0xff]  ;;  %v467_v9 = vld [vmem:[#allocation7 + $0x7d0] sm:$0xff] }
  0xe4   :  { %1243 = vmatpush1.msra.mxu1 %v331_v11  ;;  %1173 = vmatprep.subr.mxu0 %v834_v12  ;;  %v802_v28 = vld [vmem:[#allocation7 + $0x1248] sm:$0xff]  ;;  %v801_v30 = vld [vmem:[#allocation7 + $0x1240] sm:$0xff]  ;;  %v460_v11 = vld [vmem:[#allocation7 + $0x798] sm:$0xff] }
  0xe5   :  { %1244 = vmatprep.subr.mxu1 %v324_v13  ;;  %1174 = vmatpush1.msra.mxu0 %v833_v14  ;;  %v794_v32 = vld [vmem:[#allocation7 + $0x1208] sm:$0xff]  ;;  %v793_v34 = vld [vmem:[#allocation7 + $0x1200] sm:$0xff]  ;;  %v459_v13 = vld [vmem:[#allocation7 + $0x790] sm:$0xff] }
  0xe6   :  { %1245 = vmatpush1.msra.mxu1 %v323_v15  ;;  %1175 = vmatprep.subr.mxu0 %v826_v16  ;;  %v786_v36 = vld [vmem:[#allocation7 + $0x11c8] sm:$0xff]  ;;  %v785_v38 = vld [vmem:[#allocation7 + $0x11c0] sm:$0xff]  ;;  %v452_v15 = vld [vmem:[#allocation7 + $0x758] sm:$0xff] }
  0xe7   :  { %1246 = vmatprep.subr.mxu1 %v316_v17  ;;  %1176 = vmatpush1.msra.mxu0 %v825_v18  ;;  %v778_v40 = vld [vmem:[#allocation7 + $0x1188] sm:$0xff]  ;;  %v777_v42 = vld [vmem:[#allocation7 + $0x1180] sm:$0xff]  ;;  %v451_v17 = vld [vmem:[#allocation7 + $0x750] sm:$0xff] }
  0xe8   :  { %1247 = vmatpush1.msra.mxu1 %v315_v19  ;;  %1177 = vmatprep.subr.mxu0 %v818_v20  ;;  %v770_v44 = vld [vmem:[#allocation7 + $0x1148] sm:$0xff]  ;;  %v769_v46 = vld [vmem:[#allocation7 + $0x1140] sm:$0xff]  ;;  %v444_v19 = vld [vmem:[#allocation7 + $0x718] sm:$0xff] }
  0xe9   :  { %1248 = vmatprep.subr.mxu1 %v308_v21  ;;  %1178 = vmatpush1.msra.mxu0 %v817_v22  ;;  %v762_v48 = vld [vmem:[#allocation7 + $0x1108] sm:$0xff]  ;;  %v761_v50 = vld [vmem:[#allocation7 + $0x1100] sm:$0xff]  ;;  %v443_v21 = vld [vmem:[#allocation7 + $0x710] sm:$0xff] }
  0xea   :  { %1249 = vmatpush1.msra.mxu1 %v307_v23  ;;  %1179 = vmatprep.subr.mxu0 %v810_v24  ;;  %v754_v52 = vld [vmem:[#allocation7 + $0x10c8] sm:$0xff]  ;;  %v753_v54 = vld [vmem:[#allocation7 + $0x10c0] sm:$0xff]  ;;  %v436_v23 = vld [vmem:[#allocation7 + $0x6d8] sm:$0xff] }
  0xeb   :  { %1250 = vmatprep.subr.mxu1 %v300_v25  ;;  %1180 = vmatpush1.msra.mxu0 %v809_v26  ;;  %v746_v56 = vld [vmem:[#allocation7 + $0x1088] sm:$0xff]  ;;  %v745_v58 = vld [vmem:[#allocation7 + $0x1080] sm:$0xff]  ;;  %v435_v25 = vld [vmem:[#allocation7 + $0x6d0] sm:$0xff] }
  0xec   :  { %1251 = vmatpush1.msra.mxu1 %v299_v27  ;;  %1181 = vmatprep.subr.mxu0 %v802_v28  ;;  %v738_v60 = vld [vmem:[#allocation7 + $0x1048] sm:$0xff]  ;;  %v737_v62 = vld [vmem:[#allocation7 + $0x1040] sm:$0xff]  ;;  %v428_v27 = vld [vmem:[#allocation7 + $0x698] sm:$0xff] }
  0xed   :  { %1252 = vmatprep.subr.mxu1 %v292_v29  ;;  %1182 = vmatpush1.msra.mxu0 %v801_v30  ;;  %v730_v2 = vld [vmem:[#allocation7 + $0x1008] sm:$0xff]  ;;  %v729_v4 = vld [vmem:[#allocation7 + $0x1000] sm:$0xff]  ;;  %v427_v29 = vld [vmem:[#allocation7 + $0x690] sm:$0xff] }
  0xee   :  { %1253 = vmatpush1.msra.mxu1 %v291_v31  ;;  %1183 = vmatprep.subr.mxu0 %v794_v32  ;;  %v978_v6 = vld [vmem:[#allocation7 + $0x17c8] sm:$0xff]  ;;  %v977_v8 = vld [vmem:[#allocation7 + $0x17c0] sm:$0xff]  ;;  %v420_v31 = vld [vmem:[#allocation7 + $0x658] sm:$0xff] }
  0xef   :  { %1254 = vmatprep.subr.mxu1 %v284_v33  ;;  %1184 = vmatpush1.msra.mxu0 %v793_v34  ;;  %v970_v10 = vld [vmem:[#allocation7 + $0x1788] sm:$0xff]  ;;  %v969_v12 = vld [vmem:[#allocation7 + $0x1780] sm:$0xff]  ;;  %v419_v33 = vld [vmem:[#allocation7 + $0x650] sm:$0xff] }
  0xf0   :  { %1255 = vmatpush1.msra.mxu1 %v283_v35  ;;  %1185 = vmatprep.subr.mxu0 %v786_v36  ;;  %v962_v14 = vld [vmem:[#allocation7 + $0x1748] sm:$0xff]  ;;  %v961_v16 = vld [vmem:[#allocation7 + $0x1740] sm:$0xff]  ;;  %v412_v35 = vld [vmem:[#allocation7 + $0x618] sm:$0xff] }
  0xf1   :  { %1256 = vmatprep.subr.mxu1 %v276_v37  ;;  %1186 = vmatpush1.msra.mxu0 %v785_v38  ;;  %v954_v18 = vld [vmem:[#allocation7 + $0x1708] sm:$0xff]  ;;  %v953_v20 = vld [vmem:[#allocation7 + $0x1700] sm:$0xff]  ;;  %v411_v37 = vld [vmem:[#allocation7 + $0x610] sm:$0xff] }
  0xf2   :  { %1257 = vmatpush1.msra.mxu1 %v275_v39  ;;  %1187 = vmatprep.subr.mxu0 %v778_v40  ;;  %v946_v22 = vld [vmem:[#allocation7 + $0x16c8] sm:$0xff]  ;;  %v945_v24 = vld [vmem:[#allocation7 + $0x16c0] sm:$0xff]  ;;  %v404_v39 = vld [vmem:[#allocation7 + $0x5d8] sm:$0xff] }
  0xf3   :  { %1258 = vmatprep.subr.mxu1 %v268_v41  ;;  %1188 = vmatpush1.msra.mxu0 %v777_v42  ;;  %v938_v26 = vld [vmem:[#allocation7 + $0x1688] sm:$0xff]  ;;  %v937_v28 = vld [vmem:[#allocation7 + $0x1680] sm:$0xff]  ;;  %v403_v41 = vld [vmem:[#allocation7 + $0x5d0] sm:$0xff] }
  0xf4   :  { %1259 = vmatpush1.msra.mxu1 %v267_v43  ;;  %1189 = vmatprep.subr.mxu0 %v770_v44  ;;  %v930_v30 = vld [vmem:[#allocation7 + $0x1648] sm:$0xff]  ;;  %v929_v32 = vld [vmem:[#allocation7 + $0x1640] sm:$0xff]  ;;  %v396_v43 = vld [vmem:[#allocation7 + $0x598] sm:$0xff] }
  0xf5   :  { %1260 = vmatprep.subr.mxu1 %v260_v45  ;;  %1190 = vmatpush1.msra.mxu0 %v769_v46  ;;  %v922_v34 = vld [vmem:[#allocation7 + $0x1608] sm:$0xff]  ;;  %v921_v36 = vld [vmem:[#allocation7 + $0x1600] sm:$0xff]  ;;  %v395_v45 = vld [vmem:[#allocation7 + $0x590] sm:$0xff] }
  0xf6   :  { %1261 = vmatpush1.msra.mxu1 %v259_v47  ;;  %1191 = vmatprep.subr.mxu0 %v762_v48  ;;  %v914_v38 = vld [vmem:[#allocation7 + $0x15c8] sm:$0xff]  ;;  %v913_v40 = vld [vmem:[#allocation7 + $0x15c0] sm:$0xff]  ;;  %v388_v47 = vld [vmem:[#allocation7 + $0x558] sm:$0xff] }
  0xf7   :  { %1262 = vmatprep.subr.mxu1 %v252_v49  ;;  %1192 = vmatpush1.msra.mxu0 %v761_v50  ;;  %v906_v42 = vld [vmem:[#allocation7 + $0x1588] sm:$0xff]  ;;  %v905_v44 = vld [vmem:[#allocation7 + $0x1580] sm:$0xff]  ;;  %v387_v49 = vld [vmem:[#allocation7 + $0x550] sm:$0xff] }
  0xf8   :  { %1263 = vmatpush1.msra.mxu1 %v251_v51  ;;  %1193 = vmatprep.subr.mxu0 %v754_v52  ;;  %v898_v46 = vld [vmem:[#allocation7 + $0x1548] sm:$0xff]  ;;  %v897_v48 = vld [vmem:[#allocation7 + $0x1540] sm:$0xff]  ;;  %v380_v51 = vld [vmem:[#allocation7 + $0x518] sm:$0xff] }
  0xf9   :  { %1264 = vmatprep.subr.mxu1 %v244_v53  ;;  %1194 = vmatpush1.msra.mxu0 %v753_v54  ;;  %v890_v50 = vld [vmem:[#allocation7 + $0x1508] sm:$0xff]  ;;  %v889_v52 = vld [vmem:[#allocation7 + $0x1500] sm:$0xff]  ;;  %v379_v53 = vld [vmem:[#allocation7 + $0x510] sm:$0xff] }
  0xfa   :  { %1265 = vmatpush1.msra.mxu1 %v243_v55  ;;  %1195 = vmatprep.subr.mxu0 %v746_v56  ;;  %v882_v54 = vld [vmem:[#allocation7 + $0x14c8] sm:$0xff]  ;;  %v372_v55 = vld [vmem:[#allocation7 + $0x4d8] sm:$0xff]  ;;  %v881_v56 = vld [vmem:[#allocation7 + $0x14c0] sm:$0xff] }
  0xfb   :  { %1266 = vmatprep.subr.mxu1 %v236_v57  ;;  %1196 = vmatpush1.msra.mxu0 %v745_v58  ;;  %v371_v57 = vld [vmem:[#allocation7 + $0x4d0] sm:$0xff]  ;;  %v874_v58 = vld [vmem:[#allocation7 + $0x1488] sm:$0xff] }
  0xfc   :  { %1267 = vmatpush1.msra.mxu1 %v235_v59  ;;  %1197 = vmatprep.subr.mxu0 %v738_v60  ;;  %v364_v59 = vld [vmem:[#allocation7 + $0x498] sm:$0xff]  ;;  %v873_v60 = vld [vmem:[#allocation7 + $0x1480] sm:$0xff] }
  0xfd   :  { %1268 = vmatprep.subr.mxu1 %v228_v61  ;;  %1198 = vmatpush1.msra.mxu0 %v737_v62  ;;  %v363_v61 = vld [vmem:[#allocation7 + $0x490] sm:$0xff]  ;;  %v866_v62 = vld [vmem:[#allocation7 + $0x1448] sm:$0xff] }
  0xfe   :  { %1269 = vmatpush1.msra.mxu1 %v227_v0  ;;  %1199 = vmatprep.subr.mxu0 %v730_v2  ;;  %v356_v0 = vld [vmem:[#allocation7 + $0x458] sm:$0xff]  ;;  %v865_v2 = vld [vmem:[#allocation7 + $0x1440] sm:$0xff] }
  0xff   :  { %1270 = vmatprep.subr.mxu1 %v220_v3  ;;  %1200 = vmatpush1.msra.mxu0 %v729_v4  ;;  %v355_v3 = vld [vmem:[#allocation7 + $0x450] sm:$0xff]  ;;  %v858_v4 = vld [vmem:[#allocation7 + $0x1408] sm:$0xff] }
 0x100   :  { %1271 = vmatpush1.msra.mxu1 %v219_v5  ;;  %1201 = vmatprep.subr.mxu0 %v978_v6  ;;  %v348_v5 = vld [vmem:[#allocation7 + $0x418] sm:$0xff]  ;;  %v857_v6 = vld [vmem:[#allocation7 + $0x1400] sm:$0xff] }
 0x101   :  { %1272 = vmatprep.subr.mxu1 %v468_v7  ;;  %1202 = vmatpush2.msra.mxu0 %v977_v8  ;;  %v5084_v7 = vld [vmem:[#allocation2 + $0x28] sm:$0xff]  ;;  %v347_v8 = vld [vmem:[#allocation7 + $0x410] sm:$0xff] }
 0x102   :  { %1273 = vmatpush2.msra.mxu1 %v467_v9  ;;  %1203 = vmatprep.subr.mxu0 %v970_v10  ;;  %v5086_v9 = vld [vmem:[#allocation2 + $0x20] sm:$0xff]  ;;  %v596_v10 = vld [vmem:[#allocation7 + $0xbd8] sm:$0xff] }
 0x103   :  { %1274 = vmatprep.subr.mxu1 %v460_v11  ;;  %1204 = vmatpush2.msra.mxu0 %v969_v12  ;;  %v852_v11 = vld [vmem:[#allocation7 + $0x13d8] sm:$0xff]  ;;  %v595_v12 = vld [vmem:[#allocation7 + $0xbd0] sm:$0xff] }
 0x104   :  { %1275 = vmatpush2.msra.mxu1 %v459_v13  ;;  %1205 = vmatprep.subr.mxu0 %v962_v14  ;;  %v851_v13 = vld [vmem:[#allocation7 + $0x13d0] sm:$0xff]  ;;  %v588_v14 = vld [vmem:[#allocation7 + $0xb98] sm:$0xff] }
 0x105   :  { %1276 = vmatprep.subr.mxu1 %v452_v15  ;;  %1206 = vmatpush2.msra.mxu0 %v961_v16  ;;  %v844_v15 = vld [vmem:[#allocation7 + $0x1398] sm:$0xff]  ;;  %v587_v16 = vld [vmem:[#allocation7 + $0xb90] sm:$0xff] }
 0x106   :  { %1277 = vmatpush2.msra.mxu1 %v451_v17  ;;  %1207 = vmatprep.subr.mxu0 %v954_v18  ;;  %v843_v17 = vld [vmem:[#allocation7 + $0x1390] sm:$0xff]  ;;  %v580_v18 = vld [vmem:[#allocation7 + $0xb58] sm:$0xff] }
 0x107   :  { %1278 = vmatprep.subr.mxu1 %v444_v19  ;;  %1208 = vmatpush2.msra.mxu0 %v953_v20  ;;  %v836_v19 = vld [vmem:[#allocation7 + $0x1358] sm:$0xff]  ;;  %v579_v20 = vld [vmem:[#allocation7 + $0xb50] sm:$0xff] }
 0x108   :  { %1279 = vmatpush2.msra.mxu1 %v443_v21  ;;  %1209 = vmatprep.subr.mxu0 %v946_v22  ;;  %v835_v21 = vld [vmem:[#allocation7 + $0x1350] sm:$0xff]  ;;  %v572_v22 = vld [vmem:[#allocation7 + $0xb18] sm:$0xff] }
 0x109   :  { %1280 = vmatprep.subr.mxu1 %v436_v23  ;;  %1210 = vmatpush2.msra.mxu0 %v945_v24  ;;  %v571_v23 = vld [vmem:[#allocation7 + $0xb10] sm:$0xff] }
 0x10a   :  { %1281 = vmatpush2.msra.mxu1 %v435_v25  ;;  %1211 = vmatprep.subr.mxu0 %v938_v26  ;;  %v827_v24 = vld [vmem:[#allocation7 + $0x1310] sm:$0xff]  ;;  %v820_v25 = vld [vmem:[#allocation7 + $0x12d8] sm:$0xff] }
 0x10b   :  { %1282 = vmatprep.subr.mxu1 %v428_v27  ;;  %1212 = vmatpush2.msra.mxu0 %v937_v28  ;;  %v563_v26 = vld [vmem:[#allocation7 + $0xad0] sm:$0xff]  ;;  %v556_v28 = vld [vmem:[#allocation7 + $0xa98] sm:$0xff] }
 0x10c   :  { %1283 = vmatpush2.msra.mxu1 %v427_v29  ;;  %1213 = vmatprep.subr.mxu0 %v930_v30  ;;  %v819_v27 = vld [vmem:[#allocation7 + $0x12d0] sm:$0xff]  ;;  %v812_v29 = vld [vmem:[#allocation7 + $0x1298] sm:$0xff] }
 0x10d   :  { %1284 = vmatprep.subr.mxu1 %v420_v31  ;;  %1214 = vmatpush2.msra.mxu0 %v929_v32  ;;  %v555_v30 = vld [vmem:[#allocation7 + $0xa90] sm:$0xff]  ;;  %v548_v32 = vld [vmem:[#allocation7 + $0xa58] sm:$0xff] }
 0x10e   :  { %1285 = vmatpush2.msra.mxu1 %v419_v33  ;;  %1215 = vmatprep.subr.mxu0 %v922_v34  ;;  %v811_v31 = vld [vmem:[#allocation7 + $0x1290] sm:$0xff]  ;;  %v804_v33 = vld [vmem:[#allocation7 + $0x1258] sm:$0xff] }
 0x10f   :  { %1286 = vmatprep.subr.mxu1 %v412_v35  ;;  %1216 = vmatpush2.msra.mxu0 %v921_v36  ;;  %v547_v34 = vld [vmem:[#allocation7 + $0xa50] sm:$0xff]  ;;  %v540_v36 = vld [vmem:[#allocation7 + $0xa18] sm:$0xff] }
 0x110   :  { %1287 = vmatpush2.msra.mxu1 %v411_v37  ;;  %1217 = vmatprep.subr.mxu0 %v914_v38  ;;  %v803_v35 = vld [vmem:[#allocation7 + $0x1250] sm:$0xff]  ;;  %v796_v37 = vld [vmem:[#allocation7 + $0x1218] sm:$0xff] }
 0x111   :  { %1288 = vmatprep.subr.mxu1 %v404_v39  ;;  %1218 = vmatpush2.msra.mxu0 %v913_v40  ;;  %v539_v38 = vld [vmem:[#allocation7 + $0xa10] sm:$0xff]  ;;  %v532_v40 = vld [vmem:[#allocation7 + $0x9d8] sm:$0xff] }
 0x112   :  { %1289 = vmatpush2.msra.mxu1 %v403_v41  ;;  %1219 = vmatprep.subr.mxu0 %v906_v42  ;;  %v795_v39 = vld [vmem:[#allocation7 + $0x1210] sm:$0xff]  ;;  %v788_v41 = vld [vmem:[#allocation7 + $0x11d8] sm:$0xff] }
 0x113   :  { %1290 = vmatprep.subr.mxu1 %v396_v43  ;;  %1220 = vmatpush2.msra.mxu0 %v905_v44  ;;  %v531_v42 = vld [vmem:[#allocation7 + $0x9d0] sm:$0xff]  ;;  %v524_v44 = vld [vmem:[#allocation7 + $0x998] sm:$0xff] }
 0x114   :  { %1291 = vmatpush2.msra.mxu1 %v395_v45  ;;  %1221 = vmatprep.subr.mxu0 %v898_v46  ;;  %v787_v43 = vld [vmem:[#allocation7 + $0x11d0] sm:$0xff]  ;;  %v780_v45 = vld [vmem:[#allocation7 + $0x1198] sm:$0xff] }
 0x115   :  { %1292 = vmatprep.subr.mxu1 %v388_v47  ;;  %1222 = vmatpush2.msra.mxu0 %v897_v48  ;;  %v523_v46 = vld [vmem:[#allocation7 + $0x990] sm:$0xff]  ;;  %v516_v48 = vld [vmem:[#allocation7 + $0x958] sm:$0xff] }
 0x116   :  { %1293 = vmatpush2.msra.mxu1 %v387_v49  ;;  %1223 = vmatprep.subr.mxu0 %v890_v50  ;;  %v779_v47 = vld [vmem:[#allocation7 + $0x1190] sm:$0xff]  ;;  %v772_v49 = vld [vmem:[#allocation7 + $0x1158] sm:$0xff] }
 0x117   :  { %1294 = vmatprep.subr.mxu1 %v380_v51  ;;  %1224 = vmatpush2.msra.mxu0 %v889_v52  ;;  %v515_v50 = vld [vmem:[#allocation7 + $0x950] sm:$0xff]  ;;  %v508_v52 = vld [vmem:[#allocation7 + $0x918] sm:$0xff] }
 0x118   :  { %1295 = vmatpush2.msra.mxu1 %v379_v53  ;;  %1225 = vmatprep.subr.mxu0 %v882_v54  ;;  %v771_v51 = vld [vmem:[#allocation7 + $0x1150] sm:$0xff]  ;;  %v764_v53 = vld [vmem:[#allocation7 + $0x1118] sm:$0xff] }
 0x119   :  { %1296 = vmatprep.subr.mxu1 %v372_v55  ;;  %1226 = vmatpush2.msra.mxu0 %v881_v56  ;;  %v507_v54 = vld [vmem:[#allocation7 + $0x910] sm:$0xff]  ;;  %v500_v56 = vld [vmem:[#allocation7 + $0x8d8] sm:$0xff] }
 0x11a   :  { %1297 = vmatpush2.msra.mxu1 %v371_v57  ;;  %1227 = vmatprep.subr.mxu0 %v874_v58  ;;  %v763_v55 = vld [vmem:[#allocation7 + $0x1110] sm:$0xff]  ;;  %v756_v57 = vld [vmem:[#allocation7 + $0x10d8] sm:$0xff] }
 0x11b   :  { %1298 = vmatprep.subr.mxu1 %v364_v59  ;;  %1228 = vmatpush2.msra.mxu0 %v873_v60  ;;  %v499_v58 = vld [vmem:[#allocation7 + $0x8d0] sm:$0xff]  ;;  %v492_v60 = vld [vmem:[#allocation7 + $0x898] sm:$0xff] }
 0x11c   :  { %1299 = vmatpush2.msra.mxu1 %v363_v61  ;;  %1229 = vmatprep.subr.mxu0 %v866_v62  ;;  %v755_v59 = vld [vmem:[#allocation7 + $0x10d0] sm:$0xff]  ;;  %v748_v61 = vld [vmem:[#allocation7 + $0x1098] sm:$0xff] }
 0x11d   :  { %1300 = vmatprep.subr.mxu1 %v356_v0  ;;  %1230 = vmatpush2.msra.mxu0 %v865_v2  ;;  %v491_v62 = vld [vmem:[#allocation7 + $0x890] sm:$0xff]  ;;  %v484_v2 = vld [vmem:[#allocation7 + $0x858] sm:$0xff] }
 0x11e   :  { %1301 = vmatpush2.msra.mxu1 %v355_v3  ;;  %1231 = vmatprep.subr.mxu0 %v858_v4  ;;  %v747_v0 = vld [vmem:[#allocation7 + $0x1090] sm:$0xff]  ;;  %v740_v3 = vld [vmem:[#allocation7 + $0x1058] sm:$0xff] }
 0x11f   :  { %1302 = vmatprep.subr.mxu1 %v348_v5  ;;  %1232 = vmatpush2.msra.mxu0 %v857_v6  ;;  %v483_v4 = vld [vmem:[#allocation7 + $0x850] sm:$0xff]  ;;  %v476_v6 = vld [vmem:[#allocation7 + $0x818] sm:$0xff] }
 0x120   :  { %1233 = vmatprep.mubr.f32.mxu0 %v5084_v7  ;;  %1303 = vmatpush2.msra.mxu1 %v347_v8  ;;  %v739_v5 = vld [vmem:[#allocation7 + $0x1050] sm:$0xff]  ;;  %v732_v8 = vld [vmem:[#allocation7 + $0x1018] sm:$0xff] }
 0x121   :  { %1234 = vmatmul.mubr.f32.vlgmr.msra.gmra.mxu0 %v5086_v9  ;;  %1304 = vmatprep.mubr.f32.mxu1 %v5078_v63  ;;  %v828_v63 = vld [vmem:[#allocation7 + $0x1318] sm:$0xff] }
 0x122   :  { %1311 = vmatprep.subr.mxu0 %v596_v10  ;;  %1382 = vmatprep.subr.mxu1 %v852_v11  ;;  %v475_v10 = vld [vmem:[#allocation7 + $0x810] sm:$0xff] }
 0x123   :  { %1305 = vmatmul.mubr.f32.vlgmr.msra.gmra.mxu1 %v5080_v1  ;;  %1312 = vmatpush1.msra.mxu0 %v595_v12  ;;  %v564_v1 = vld [vmem:[#allocation7 + $0xad8] sm:$0xff]  ;;  %v731_v11 = vld [vmem:[#allocation7 + $0x1010] sm:$0xff] }
 0x124   :  { %1383 = vmatpush1.msra.mxu1 %v851_v13  ;;  %1313 = vmatprep.subr.mxu0 %v588_v14  ;;  %v724_v12 = vld [vmem:[#allocation7 + $0xfd8] sm:$0xff]  ;;  %v723_v14 = vld [vmem:[#allocation7 + $0xfd0] sm:$0xff] }
 0x125   :  { %1384 = vmatprep.subr.mxu1 %v844_v15  ;;  %1314 = vmatpush1.msra.mxu0 %v587_v16  ;;  %v980_v13 = vld [vmem:[#allocation7 + $0x17d8] sm:$0xff]  ;;  %v979_v15 = vld [vmem:[#allocation7 + $0x17d0] sm:$0xff] }
 0x126   :  { %1385 = vmatpush1.msra.mxu1 %v843_v17  ;;  %1315 = vmatprep.subr.mxu0 %v580_v18  ;;  %v716_v16 = vld [vmem:[#allocation7 + $0xf98] sm:$0xff]  ;;  %v715_v18 = vld [vmem:[#allocation7 + $0xf90] sm:$0xff] }
 0x127   :  { %1386 = vmatprep.subr.mxu1 %v836_v19  ;;  %1316 = vmatpush1.msra.mxu0 %v579_v20  ;;  %v972_v17 = vld [vmem:[#allocation7 + $0x1798] sm:$0xff]  ;;  %v971_v19 = vld [vmem:[#allocation7 + $0x1790] sm:$0xff] }
 0x128   :  { %1387 = vmatpush1.msra.mxu1 %v835_v21  ;;  %1317 = vmatprep.subr.mxu0 %v572_v22  ;;  %v708_v20 = vld [vmem:[#allocation7 + $0xf58] sm:$0xff]  ;;  %v707_v22 = vld [vmem:[#allocation7 + $0xf50] sm:$0xff] }
 0x129   :  { %1388 = vmatprep.subr.mxu1 %v828_v63  ;;  %1318 = vmatpush1.msra.mxu0 %v571_v23  ;;  %v964_v21 = vld [vmem:[#allocation7 + $0x1758] sm:$0xff]  ;;  %v963_v63 = vld [vmem:[#allocation7 + $0x1750] sm:$0xff] }
 0x12a   :  { %1389 = vmatpush1.msra.mxu1 %v827_v24  ;;  %1319 = vmatprep.subr.mxu0 %v564_v1  ;;  %v700_v23 = vld [vmem:[#allocation7 + $0xf18] sm:$0xff]  ;;  %v699_v1 = vld [vmem:[#allocation7 + $0xf10] sm:$0xff] }
 0x12b   :  { %1390 = vmatprep.subr.mxu1 %v820_v25  ;;  %1320 = vmatpush1.msra.mxu0 %v563_v26  ;;  %v956_v24 = vld [vmem:[#allocation7 + $0x1718] sm:$0xff]  ;;  %v955_v25 = vld [vmem:[#allocation7 + $0x1710] sm:$0xff] }
 0x12c   :  { %1391 = vmatpush1.msra.mxu1 %v819_v27  ;;  %1321 = vmatprep.subr.mxu0 %v556_v28  ;;  %v692_v26 = vld [vmem:[#allocation7 + $0xed8] sm:$0xff]  ;;  %v691_v28 = vld [vmem:[#allocation7 + $0xed0] sm:$0xff] }
 0x12d   :  { %1392 = vmatprep.subr.mxu1 %v812_v29  ;;  %1322 = vmatpush1.msra.mxu0 %v555_v30  ;;  %v948_v27 = vld [vmem:[#allocation7 + $0x16d8] sm:$0xff]  ;;  %v947_v29 = vld [vmem:[#allocation7 + $0x16d0] sm:$0xff] }
 0x12e   :  { %1393 = vmatpush1.msra.mxu1 %v811_v31  ;;  %1323 = vmatprep.subr.mxu0 %v548_v32  ;;  %v684_v30 = vld [vmem:[#allocation7 + $0xe98] sm:$0xff]  ;;  %v683_v32 = vld [vmem:[#allocation7 + $0xe90] sm:$0xff] }
 0x12f   :  { %1394 = vmatprep.subr.mxu1 %v804_v33  ;;  %1324 = vmatpush1.msra.mxu0 %v547_v34  ;;  %v940_v31 = vld [vmem:[#allocation7 + $0x1698] sm:$0xff]  ;;  %v939_v33 = vld [vmem:[#allocation7 + $0x1690] sm:$0xff] }
 0x130   :  { %1395 = vmatpush1.msra.mxu1 %v803_v35  ;;  %1325 = vmatprep.subr.mxu0 %v540_v36  ;;  %v676_v34 = vld [vmem:[#allocation7 + $0xe58] sm:$0xff]  ;;  %v675_v36 = vld [vmem:[#allocation7 + $0xe50] sm:$0xff] }
 0x131   :  { %1396 = vmatprep.subr.mxu1 %v796_v37  ;;  %1326 = vmatpush1.msra.mxu0 %v539_v38  ;;  %v932_v35 = vld [vmem:[#allocation7 + $0x1658] sm:$0xff]  ;;  %v931_v37 = vld [vmem:[#allocation7 + $0x1650] sm:$0xff] }
 0x132   :  { %1397 = vmatpush1.msra.mxu1 %v795_v39  ;;  %1327 = vmatprep.subr.mxu0 %v532_v40  ;;  %v668_v38 = vld [vmem:[#allocation7 + $0xe18] sm:$0xff]  ;;  %v667_v40 = vld [vmem:[#allocation7 + $0xe10] sm:$0xff] }
 0x133   :  { %1398 = vmatprep.subr.mxu1 %v788_v41  ;;  %1328 = vmatpush1.msra.mxu0 %v531_v42  ;;  %v924_v39 = vld [vmem:[#allocation7 + $0x1618] sm:$0xff]  ;;  %v923_v41 = vld [vmem:[#allocation7 + $0x1610] sm:$0xff] }
 0x134   :  { %1399 = vmatpush1.msra.mxu1 %v787_v43  ;;  %1329 = vmatprep.subr.mxu0 %v524_v44  ;;  %v660_v42 = vld [vmem:[#allocation7 + $0xdd8] sm:$0xff]  ;;  %v659_v44 = vld [vmem:[#allocation7 + $0xdd0] sm:$0xff] }
 0x135   :  { %1400 = vmatprep.subr.mxu1 %v780_v45  ;;  %1330 = vmatpush1.msra.mxu0 %v523_v46  ;;  %v916_v43 = vld [vmem:[#allocation7 + $0x15d8] sm:$0xff]  ;;  %v915_v45 = vld [vmem:[#allocation7 + $0x15d0] sm:$0xff] }
 0x136   :  { %1401 = vmatpush1.msra.mxu1 %v779_v47  ;;  %1331 = vmatprep.subr.mxu0 %v516_v48  ;;  %v652_v46 = vld [vmem:[#allocation7 + $0xd98] sm:$0xff]  ;;  %v651_v48 = vld [vmem:[#allocation7 + $0xd90] sm:$0xff] }
 0x137   :  { %1402 = vmatprep.subr.mxu1 %v772_v49  ;;  %1332 = vmatpush1.msra.mxu0 %v515_v50  ;;  %v908_v47 = vld [vmem:[#allocation7 + $0x1598] sm:$0xff]  ;;  %v907_v49 = vld [vmem:[#allocation7 + $0x1590] sm:$0xff] }
 0x138   :  { %1403 = vmatpush1.msra.mxu1 %v771_v51  ;;  %1333 = vmatprep.subr.mxu0 %v508_v52  ;;  %v644_v50 = vld [vmem:[#allocation7 + $0xd58] sm:$0xff]  ;;  %v643_v52 = vld [vmem:[#allocation7 + $0xd50] sm:$0xff] }
 0x139   :  { %1404 = vmatprep.subr.mxu1 %v764_v53  ;;  %1334 = vmatpush1.msra.mxu0 %v507_v54  ;;  %v900_v51 = vld [vmem:[#allocation7 + $0x1558] sm:$0xff]  ;;  %v899_v53 = vld [vmem:[#allocation7 + $0x1550] sm:$0xff] }
 0x13a   :  { %1405 = vmatpush1.msra.mxu1 %v763_v55  ;;  %1335 = vmatprep.subr.mxu0 %v500_v56  ;;  %v636_v54 = vld [vmem:[#allocation7 + $0xd18] sm:$0xff]  ;;  %v635_v56 = vld [vmem:[#allocation7 + $0xd10] sm:$0xff] }
 0x13b   :  { %1406 = vmatprep.subr.mxu1 %v756_v57  ;;  %1336 = vmatpush1.msra.mxu0 %v499_v58  ;;  %v892_v55 = vld [vmem:[#allocation7 + $0x1518] sm:$0xff]  ;;  %v891_v57 = vld [vmem:[#allocation7 + $0x1510] sm:$0xff] }
 0x13c   :  { %1407 = vmatpush1.msra.mxu1 %v755_v59  ;;  %1337 = vmatprep.subr.mxu0 %v492_v60  ;;  %v628_v58 = vld [vmem:[#allocation7 + $0xcd8] sm:$0xff]  ;;  %v627_v60 = vld [vmem:[#allocation7 + $0xcd0] sm:$0xff] }
 0x13d   :  { %1408 = vmatprep.subr.mxu1 %v748_v61  ;;  %1338 = vmatpush1.msra.mxu0 %v491_v62  ;;  %v884_v59 = vld [vmem:[#allocation7 + $0x14d8] sm:$0xff]  ;;  %v883_v61 = vld [vmem:[#allocation7 + $0x14d0] sm:$0xff] }
 0x13e   :  { %1409 = vmatpush1.msra.mxu1 %v747_v0  ;;  %1339 = vmatprep.subr.mxu0 %v484_v2  ;;  %v620_v62 = vld [vmem:[#allocation7 + $0xc98] sm:$0xff]  ;;  %v619_v2 = vld [vmem:[#allocation7 + $0xc90] sm:$0xff] }
 0x13f   :  { %1410 = vmatprep.subr.mxu1 %v740_v3  ;;  %1340 = vmatpush1.msra.mxu0 %v483_v4  ;;  %v876_v0 = vld [vmem:[#allocation7 + $0x1498] sm:$0xff]  ;;  %v875_v3 = vld [vmem:[#allocation7 + $0x1490] sm:$0xff] }
 0x140   :  { %1411 = vmatpush1.msra.mxu1 %v739_v5  ;;  %1341 = vmatprep.subr.mxu0 %v476_v6  ;;  %v612_v4 = vld [vmem:[#allocation7 + $0xc58] sm:$0xff]  ;;  %v611_v6 = vld [vmem:[#allocation7 + $0xc50] sm:$0xff] }
 0x141   :  { %1412 = vmatprep.subr.mxu1 %v732_v8  ;;  %1342 = vmatpush1.msra.mxu0 %v475_v10  ;;  %v868_v5 = vld [vmem:[#allocation7 + $0x1458] sm:$0xff]  ;;  %v867_v8 = vld [vmem:[#allocation7 + $0x1450] sm:$0xff] }
 0x142   :  { %1413 = vmatpush1.msra.mxu1 %v731_v11  ;;  %1343 = vmatprep.subr.mxu0 %v724_v12  ;;  %v604_v10 = vld [vmem:[#allocation7 + $0xc18] sm:$0xff]  ;;  %v603_v12 = vld [vmem:[#allocation7 + $0xc10] sm:$0xff] }
 0x143   :  { %1414 = vmatprep.subr.mxu1 %v980_v13  ;;  %1344 = vmatpush2.msra.mxu0 %v723_v14  ;;  %v860_v11 = vld [vmem:[#allocation7 + $0x1418] sm:$0xff]  ;;  %v859_v13 = vld [vmem:[#allocation7 + $0x1410] sm:$0xff]  ;;  %v342_v14 = vld [vmem:[#allocation7 + $0x3e8] sm:$0xff] }
 0x144   :  { %1415 = vmatpush2.msra.mxu1 %v979_v15  ;;  %1345 = vmatprep.subr.mxu0 %v716_v16  ;;  %v5092_v15 = vld [vmem:[#allocation2 + $0x18] sm:$0xff] }
 0x145   :  { %1416 = vmatprep.subr.mxu1 %v972_v17  ;;  %1346 = vmatpush2.msra.mxu0 %v715_v18  ;;  %v598_v16 = vld [vmem:[#allocation7 + $0xbe8] sm:$0xff]  ;;  %v5095_v17 = vld [vmem:[#allocation2 + $0x10] sm:$0xff] }
 0x146   :  { %1417 = vmatpush2.msra.mxu1 %v971_v19  ;;  %1347 = vmatprep.subr.mxu0 %v708_v20  ;;  %v341_v18 = vld [vmem:[#allocation7 + $0x3e0] sm:$0xff]  ;;  %v334_v20 = vld [vmem:[#allocation7 + $0x3a8] sm:$0xff] }
 0x147   :  { %1418 = vmatprep.subr.mxu1 %v964_v21  ;;  %1348 = vmatpush2.msra.mxu0 %v707_v22  ;;  %v597_v19 = vld [vmem:[#allocation7 + $0xbe0] sm:$0xff]  ;;  %v590_v21 = vld [vmem:[#allocation7 + $0xba8] sm:$0xff] }
 0x148   :  { %1419 = vmatpush2.msra.mxu1 %v963_v63  ;;  %1349 = vmatprep.subr.mxu0 %v700_v23  ;;  %v333_v22 = vld [vmem:[#allocation7 + $0x3a0] sm:$0xff]  ;;  %v326_v23 = vld [vmem:[#allocation7 + $0x368] sm:$0xff] }
 0x149   :  { %1420 = vmatprep.subr.mxu1 %v956_v24  ;;  %1350 = vmatpush2.msra.mxu0 %v699_v1  ;;  %v589_v63 = vld [vmem:[#allocation7 + $0xba0] sm:$0xff]  ;;  %v582_v24 = vld [vmem:[#allocation7 + $0xb68] sm:$0xff] }
 0x14a   :  { %1421 = vmatpush2.msra.mxu1 %v955_v25  ;;  %1351 = vmatprep.subr.mxu0 %v692_v26  ;;  %v325_v1 = vld [vmem:[#allocation7 + $0x360] sm:$0xff]  ;;  %v318_v26 = vld [vmem:[#allocation7 + $0x328] sm:$0xff] }
 0x14b   :  { %1422 = vmatprep.subr.mxu1 %v948_v27  ;;  %1352 = vmatpush2.msra.mxu0 %v691_v28  ;;  %v581_v25 = vld [vmem:[#allocation7 + $0xb60] sm:$0xff] }
 0x14c   :  { %1423 = vmatpush2.msra.mxu1 %v947_v29  ;;  %1353 = vmatprep.subr.mxu0 %v684_v30  ;;  %v317_v27 = vld [vmem:[#allocation7 + $0x320] sm:$0xff]  ;;  %v566_v29 = vld [vmem:[#allocation7 + $0xae8] sm:$0xff] }
 0x14d   :  { %1424 = vmatprep.subr.mxu1 %v940_v31  ;;  %1354 = vmatpush2.msra.mxu0 %v683_v32  ;;  %v573_v28 = vld [vmem:[#allocation7 + $0xb20] sm:$0xff]  ;;  %v302_v32 = vld [vmem:[#allocation7 + $0x2a8] sm:$0xff] }
 0x14e   :  { %1425 = vmatpush2.msra.mxu1 %v939_v33  ;;  %1355 = vmatprep.subr.mxu0 %v676_v34  ;;  %v309_v30 = vld [vmem:[#allocation7 + $0x2e0] sm:$0xff]  ;;  %v558_v33 = vld [vmem:[#allocation7 + $0xaa8] sm:$0xff] }
 0x14f   :  { %1426 = vmatprep.subr.mxu1 %v932_v35  ;;  %1356 = vmatpush2.msra.mxu0 %v675_v36  ;;  %v565_v31 = vld [vmem:[#allocation7 + $0xae0] sm:$0xff]  ;;  %v294_v36 = vld [vmem:[#allocation7 + $0x268] sm:$0xff] }
 0x150   :  { %1427 = vmatpush2.msra.mxu1 %v931_v37  ;;  %1357 = vmatprep.subr.mxu0 %v668_v38  ;;  %v301_v34 = vld [vmem:[#allocation7 + $0x2a0] sm:$0xff]  ;;  %v550_v37 = vld [vmem:[#allocation7 + $0xa68] sm:$0xff] }
 0x151   :  { %1428 = vmatprep.subr.mxu1 %v924_v39  ;;  %1358 = vmatpush2.msra.mxu0 %v667_v40  ;;  %v557_v35 = vld [vmem:[#allocation7 + $0xaa0] sm:$0xff]  ;;  %v286_v40 = vld [vmem:[#allocation7 + $0x228] sm:$0xff] }
 0x152   :  { %1429 = vmatpush2.msra.mxu1 %v923_v41  ;;  %1359 = vmatprep.subr.mxu0 %v660_v42  ;;  %v293_v38 = vld [vmem:[#allocation7 + $0x260] sm:$0xff]  ;;  %v542_v41 = vld [vmem:[#allocation7 + $0xa28] sm:$0xff] }
 0x153   :  { %1430 = vmatprep.subr.mxu1 %v916_v43  ;;  %1360 = vmatpush2.msra.mxu0 %v659_v44  ;;  %v549_v39 = vld [vmem:[#allocation7 + $0xa60] sm:$0xff]  ;;  %v278_v44 = vld [vmem:[#allocation7 + $0x1e8] sm:$0xff] }
 0x154   :  { %1431 = vmatpush2.msra.mxu1 %v915_v45  ;;  %1361 = vmatprep.subr.mxu0 %v652_v46  ;;  %v285_v42 = vld [vmem:[#allocation7 + $0x220] sm:$0xff]  ;;  %v534_v45 = vld [vmem:[#allocation7 + $0x9e8] sm:$0xff] }
 0x155   :  { %1432 = vmatprep.subr.mxu1 %v908_v47  ;;  %1362 = vmatpush2.msra.mxu0 %v651_v48  ;;  %v541_v43 = vld [vmem:[#allocation7 + $0xa20] sm:$0xff]  ;;  %v270_v48 = vld [vmem:[#allocation7 + $0x1a8] sm:$0xff] }
 0x156   :  { %1433 = vmatpush2.msra.mxu1 %v907_v49  ;;  %1363 = vmatprep.subr.mxu0 %v644_v50  ;;  %v277_v46 = vld [vmem:[#allocation7 + $0x1e0] sm:$0xff]  ;;  %v526_v49 = vld [vmem:[#allocation7 + $0x9a8] sm:$0xff] }
 0x157   :  { %1434 = vmatprep.subr.mxu1 %v900_v51  ;;  %1364 = vmatpush2.msra.mxu0 %v643_v52  ;;  %v533_v47 = vld [vmem:[#allocation7 + $0x9e0] sm:$0xff]  ;;  %v262_v52 = vld [vmem:[#allocation7 + $0x168] sm:$0xff] }
 0x158   :  { %1435 = vmatpush2.msra.mxu1 %v899_v53  ;;  %1365 = vmatprep.subr.mxu0 %v636_v54  ;;  %v269_v50 = vld [vmem:[#allocation7 + $0x1a0] sm:$0xff]  ;;  %v518_v53 = vld [vmem:[#allocation7 + $0x968] sm:$0xff] }
 0x159   :  { %1436 = vmatprep.subr.mxu1 %v892_v55  ;;  %1366 = vmatpush2.msra.mxu0 %v635_v56  ;;  %v525_v51 = vld [vmem:[#allocation7 + $0x9a0] sm:$0xff]  ;;  %v254_v56 = vld [vmem:[#allocation7 + $0x128] sm:$0xff] }
 0x15a   :  { %1437 = vmatpush2.msra.mxu1 %v891_v57  ;;  %1367 = vmatprep.subr.mxu0 %v628_v58  ;;  %v261_v54 = vld [vmem:[#allocation7 + $0x160] sm:$0xff]  ;;  %v510_v57 = vld [vmem:[#allocation7 + $0x928] sm:$0xff] }
 0x15b   :  { %1438 = vmatprep.subr.mxu1 %v884_v59  ;;  %1368 = vmatpush2.msra.mxu0 %v627_v60  ;;  %v517_v55 = vld [vmem:[#allocation7 + $0x960] sm:$0xff]  ;;  %v246_v60 = vld [vmem:[#allocation7 + $0xe8] sm:$0xff] }
 0x15c   :  { %1439 = vmatpush2.msra.mxu1 %v883_v61  ;;  %1369 = vmatprep.subr.mxu0 %v620_v62  ;;  %v253_v58 = vld [vmem:[#allocation7 + $0x120] sm:$0xff]  ;;  %v502_v61 = vld [vmem:[#allocation7 + $0x8e8] sm:$0xff] }
 0x15d   :  { %1440 = vmatprep.subr.mxu1 %v876_v0  ;;  %1370 = vmatpush2.msra.mxu0 %v619_v2  ;;  %v509_v59 = vld [vmem:[#allocation7 + $0x920] sm:$0xff]  ;;  %v238_v2 = vld [vmem:[#allocation7 + $0xa8] sm:$0xff] }
 0x15e   :  { %1441 = vmatpush2.msra.mxu1 %v875_v3  ;;  %1371 = vmatprep.subr.mxu0 %v612_v4  ;;  %v245_v62 = vld [vmem:[#allocation7 + $0xe0] sm:$0xff]  ;;  %v494_v3 = vld [vmem:[#allocation7 + $0x8a8] sm:$0xff] }
 0x15f   :  { %1442 = vmatprep.subr.mxu1 %v868_v5  ;;  %1372 = vmatpush2.msra.mxu0 %v611_v6  ;;  %v501_v0 = vld [vmem:[#allocation7 + $0x8e0] sm:$0xff]  ;;  %v230_v6 = vld [vmem:[#allocation7 + $0x68] sm:$0xff] }
 0x160   :  { %1443 = vmatpush2.msra.mxu1 %v867_v8  ;;  %1373 = vmatprep.subr.mxu0 %v604_v10  ;;  %v237_v4 = vld [vmem:[#allocation7 + $0xa0] sm:$0xff]  ;;  %v486_v8 = vld [vmem:[#allocation7 + $0x868] sm:$0xff] }
 0x161   :  { %1444 = vmatprep.subr.mxu1 %v860_v11  ;;  %1374 = vmatpush2.msra.mxu0 %v603_v12  ;;  %v493_v5 = vld [vmem:[#allocation7 + $0x8a0] sm:$0xff]  ;;  %v222_v12 = vld [vmem:[#allocation7 + $0x28] sm:$0xff] }
 0x162   :  { %1375 = vmatprep.mubr.f32.mxu0 %v5092_v15  ;;  %1445 = vmatpush2.msra.mxu1 %v859_v13  ;;  %v229_v10 = vld [vmem:[#allocation7 + $0x60] sm:$0xff]  ;;  %v478_v13 = vld [vmem:[#allocation7 + $0x828] sm:$0xff] }
 0x163   :  { %1376 = vmatmul.mubr.f32.vlgmr.msra.gmra.mxu0 %v5095_v17  ;;  %1446 = vmatprep.mubr.f32.mxu1 %v5084_v7  ;;  %v574_v7 = vld [vmem:[#allocation7 + $0xb28] sm:$0xff]  ;;  %v485_v11 = vld [vmem:[#allocation7 + $0x860] sm:$0xff] }
 0x164   :  { %1453 = vmatprep.subr.mxu0 %v342_v14  ;;  %1524 = vmatprep.subr.mxu1 %v598_v16  ;;  %v221_v14 = vld [vmem:[#allocation7 + $0x20] sm:$0xff] }
 0x165   :  { %1447 = vmatmul.mubr.f32.vlgmr.msra.gmra.mxu1 %v5086_v9  ;;  %1454 = vmatpush1.msra.mxu0 %v341_v18  ;;  %v310_v9 = vld [vmem:[#allocation7 + $0x2e8] sm:$0xff]  ;;  %v477_v16 = vld [vmem:[#allocation7 + $0x820] sm:$0xff] }
 0x166   :  { %1525 = vmatpush1.msra.mxu1 %v597_v19  ;;  %1455 = vmatprep.subr.mxu0 %v334_v20  ;;  %v470_v18 = vld [vmem:[#allocation7 + $0x7e8] sm:$0xff]  ;;  %v469_v20 = vld [vmem:[#allocation7 + $0x7e0] sm:$0xff] }
 0x167   :  { %1526 = vmatprep.subr.mxu1 %v590_v21  ;;  %1456 = vmatpush1.msra.mxu0 %v333_v22  ;;  %v726_v19 = vld [vmem:[#allocation7 + $0xfe8] sm:$0xff]  ;;  %v725_v21 = vld [vmem:[#allocation7 + $0xfe0] sm:$0xff] }
 0x168   :  { %1527 = vmatpush1.msra.mxu1 %v589_v63  ;;  %1457 = vmatprep.subr.mxu0 %v326_v23  ;;  %v462_v22 = vld [vmem:[#allocation7 + $0x7a8] sm:$0xff]  ;;  %v461_v23 = vld [vmem:[#allocation7 + $0x7a0] sm:$0xff] }
 0x169   :  { %1528 = vmatprep.subr.mxu1 %v582_v24  ;;  %1458 = vmatpush1.msra.mxu0 %v325_v1  ;;  %v718_v63 = vld [vmem:[#allocation7 + $0xfa8] sm:$0xff]  ;;  %v717_v24 = vld [vmem:[#allocation7 + $0xfa0] sm:$0xff] }
 0x16a   :  { %1529 = vmatpush1.msra.mxu1 %v581_v25  ;;  %1459 = vmatprep.subr.mxu0 %v318_v26  ;;  %v454_v1 = vld [vmem:[#allocation7 + $0x768] sm:$0xff]  ;;  %v453_v26 = vld [vmem:[#allocation7 + $0x760] sm:$0xff] }
 0x16b   :  { %1530 = vmatprep.subr.mxu1 %v574_v7  ;;  %1460 = vmatpush1.msra.mxu0 %v317_v27  ;;  %v710_v25 = vld [vmem:[#allocation7 + $0xf68] sm:$0xff]  ;;  %v709_v7 = vld [vmem:[#allocation7 + $0xf60] sm:$0xff] }
 0x16c   :  { %1531 = vmatpush1.msra.mxu1 %v573_v28  ;;  %1461 = vmatprep.subr.mxu0 %v310_v9  ;;  %v446_v27 = vld [vmem:[#allocation7 + $0x728] sm:$0xff]  ;;  %v445_v9 = vld [vmem:[#allocation7 + $0x720] sm:$0xff] }
 0x16d   :  { %1532 = vmatprep.subr.mxu1 %v566_v29  ;;  %1462 = vmatpush1.msra.mxu0 %v309_v30  ;;  %v702_v28 = vld [vmem:[#allocation7 + $0xf28] sm:$0xff]  ;;  %v701_v29 = vld [vmem:[#allocation7 + $0xf20] sm:$0xff] }
 0x16e   :  { %1533 = vmatpush1.msra.mxu1 %v565_v31  ;;  %1463 = vmatprep.subr.mxu0 %v302_v32  ;;  %v438_v30 = vld [vmem:[#allocation7 + $0x6e8] sm:$0xff]  ;;  %v437_v32 = vld [vmem:[#allocation7 + $0x6e0] sm:$0xff] }
 0x16f   :  { %1534 = vmatprep.subr.mxu1 %v558_v33  ;;  %1464 = vmatpush1.msra.mxu0 %v301_v34  ;;  %v694_v31 = vld [vmem:[#allocation7 + $0xee8] sm:$0xff]  ;;  %v693_v33 = vld [vmem:[#allocation7 + $0xee0] sm:$0xff] }
 0x170   :  { %1535 = vmatpush1.msra.mxu1 %v557_v35  ;;  %1465 = vmatprep.subr.mxu0 %v294_v36  ;;  %v430_v34 = vld [vmem:[#allocation7 + $0x6a8] sm:$0xff]  ;;  %v429_v36 = vld [vmem:[#allocation7 + $0x6a0] sm:$0xff] }
 0x171   :  { %1536 = vmatprep.subr.mxu1 %v550_v37  ;;  %1466 = vmatpush1.msra.mxu0 %v293_v38  ;;  %v686_v35 = vld [vmem:[#allocation7 + $0xea8] sm:$0xff]  ;;  %v685_v37 = vld [vmem:[#allocation7 + $0xea0] sm:$0xff] }
 0x172   :  { %1537 = vmatpush1.msra.mxu1 %v549_v39  ;;  %1467 = vmatprep.subr.mxu0 %v286_v40  ;;  %v422_v38 = vld [vmem:[#allocation7 + $0x668] sm:$0xff]  ;;  %v421_v40 = vld [vmem:[#allocation7 + $0x660] sm:$0xff] }
 0x173   :  { %1538 = vmatprep.subr.mxu1 %v542_v41  ;;  %1468 = vmatpush1.msra.mxu0 %v285_v42  ;;  %v678_v39 = vld [vmem:[#allocation7 + $0xe68] sm:$0xff]  ;;  %v677_v41 = vld [vmem:[#allocation7 + $0xe60] sm:$0xff] }
 0x174   :  { %1539 = vmatpush1.msra.mxu1 %v541_v43  ;;  %1469 = vmatprep.subr.mxu0 %v278_v44  ;;  %v414_v42 = vld [vmem:[#allocation7 + $0x628] sm:$0xff]  ;;  %v987_v44 = vlaneseq }
 0x175   :  { %1540 = vmatprep.subr.mxu1 %v534_v45  ;;  %1470 = vmatpush1.msra.mxu0 %v277_v46  ;;  %v670_v43 = vld [vmem:[#allocation7 + $0xe28] sm:$0xff]  ;;  %v413_v45 = vld [vmem:[#allocation7 + $0x620] sm:$0xff] }
 0x176   :  { %1541 = vmatpush1.msra.mxu1 %v533_v47  ;;  %1471 = vmatprep.subr.mxu0 %v270_v48  ;;  %v669_v46 = vld [vmem:[#allocation7 + $0xe20] sm:$0xff]  ;;  %v406_v47 = vld [vmem:[#allocation7 + $0x5e8] sm:$0xff] }
 0x177   :  { %1542 = vmatprep.subr.mxu1 %v526_v49  ;;  %1472 = vmatpush1.msra.mxu0 %v269_v50  ;;  %v662_v48 = vld [vmem:[#allocation7 + $0xde8] sm:$0xff]  ;;  %v405_v49 = vld [vmem:[#allocation7 + $0x5e0] sm:$0xff] }
 0x178   :  { %1543 = vmatpush1.msra.mxu1 %v525_v51  ;;  %1473 = vmatprep.subr.mxu0 %v262_v52  ;;  %v661_v50 = vld [vmem:[#allocation7 + $0xde0] sm:$0xff]  ;;  %v398_v51 = vld [vmem:[#allocation7 + $0x5a8] sm:$0xff] }
 0x179   :  { %1544 = vmatprep.subr.mxu1 %v518_v53  ;;  %1474 = vmatpush1.msra.mxu0 %v261_v54  ;;  %v654_v52 = vld [vmem:[#allocation7 + $0xda8] sm:$0xff]  ;;  %v5100_v53 = vshrl.u32 %v987_v44, 7  ;;  %v397_v54 = vld [vmem:[#allocation7 + $0x5a0] sm:$0xff]  ;;  %v311_v44 = vld [vmem:[#allocation7 + $0x2f0] sm:$0xff] }
 0x17a   :  { %1545 = vmatpush1.msra.mxu1 %v517_v55  ;;  %1475 = vmatprep.subr.mxu0 %v254_v56  ;;  %v653_v55 = vld [vmem:[#allocation7 + $0xda0] sm:$0xff]  ;;  %v390_v56 = vld [vmem:[#allocation7 + $0x568] sm:$0xff] }
 0x17b   :  { %1546 = vmatprep.subr.mxu1 %v510_v57  ;;  %1476 = vmatpush1.msra.mxu0 %v253_v58  ;;  %v646_v57 = vld [vmem:[#allocation7 + $0xd68] sm:$0xff]  ;;  %v389_v58 = vld [vmem:[#allocation7 + $0x560] sm:$0xff] }
 0x17c   :  { %1547 = vmatpush1.msra.mxu1 %v509_v59  ;;  %1477 = vmatprep.subr.mxu0 %v246_v60  ;;  %v645_v59 = vld [vmem:[#allocation7 + $0xd60] sm:$0xff]  ;;  %v382_v60 = vld [vmem:[#allocation7 + $0x528] sm:$0xff] }
 0x17d   :  { %1548 = vmatprep.subr.mxu1 %v502_v61  ;;  %1478 = vmatpush1.msra.mxu0 %v245_v62  ;;  %v638_v61 = vld [vmem:[#allocation7 + $0xd28] sm:$0xff]  ;;  %v5103_v62 = vsub.s32 0, %v5100_v53 }
 0x17e   :  { %1549 = vmatpush1.msra.mxu1 %v501_v0  ;;  %1479 = vmatprep.subr.mxu0 %v238_v2  ;;  %v381_v0 = vld [vmem:[#allocation7 + $0x520] sm:$0xff] }
 0x17f   :  { %1550 = vmatprep.subr.mxu1 %v494_v3  ;;  %1480 = vmatpush1.msra.mxu0 %v237_v4  ;;  %v637_v2 = vld [vmem:[#allocation7 + $0xd20] sm:$0xff]  ;;  %v374_v4 = vld [vmem:[#allocation7 + $0x4e8] sm:$0xff] }
 0x180   :  { %1551 = vmatpush1.msra.mxu1 %v493_v5  ;;  %1481 = vmatprep.subr.mxu0 %v230_v6  ;;  %v5105_v3 = vld [vmem:[#allocation8] sm:$0xff]  ;;  %v630_v5 = vld [vmem:[#allocation7 + $0xce8] sm:$0xff] }
 0x181   :  { %1552 = vmatprep.subr.mxu1 %v486_v8  ;;  %1482 = vmatpush1.msra.mxu0 %v229_v10  ;;  %v373_v6 = vld [vmem:[#allocation7 + $0x4e0] sm:$0xff]  ;;  %v366_v10 = vld [vmem:[#allocation7 + $0x4a8] sm:$0xff] }
 0x182   :  { %1553 = vmatpush1.msra.mxu1 %v485_v11  ;;  %1483 = vmatprep.subr.mxu0 %v222_v12  ;;  %v629_v8 = vld [vmem:[#allocation7 + $0xce0] sm:$0xff]  ;;  %v622_v11 = vld [vmem:[#allocation7 + $0xca8] sm:$0xff]  ;;  %v990_v12 = vrot.slane %v5105_v3, %v5103_v62 }
 0x183   :  { %1554 = vmatprep.subr.mxu1 %v478_v13  ;;  %1484 = vmatpush1.msra.mxu0 %v221_v14  ;;  %v365_v13 = vld [vmem:[#allocation7 + $0x4a0] sm:$0xff] }
 0x184   :  { %1555 = vmatpush1.msra.mxu1 %v477_v16  ;;  %1485 = vmatprep.subr.mxu0 %v470_v18  ;;  %v621_v14 = vld [vmem:[#allocation7 + $0xca0] sm:$0xff]  ;;  %v358_v16 = vld [vmem:[#allocation7 + $0x468] sm:$0xff] }
 0x185   :  { %1556 = vmatprep.subr.mxu1 %v726_v19  ;;  %1486 = vmatpush2.msra.mxu0 %v469_v20  ;;  %v614_v18 = vld [vmem:[#allocation7 + $0xc68] sm:$0xff]  ;;  %v357_v19 = vld [vmem:[#allocation7 + $0x460] sm:$0xff] }
 0x186   :  { %1557 = vmatpush2.msra.mxu1 %v725_v21  ;;  %1487 = vmatprep.subr.mxu0 %v462_v22  ;;  %v613_v20 = vld [vmem:[#allocation7 + $0xc60] sm:$0xff]  ;;  %v350_v22 = vld [vmem:[#allocation7 + $0x428] sm:$0xff] }
 0x187   :  { %1558 = vmatprep.subr.mxu1 %v718_v63  ;;  %1488 = vmatpush2.msra.mxu0 %v461_v23  ;;  %v606_v63 = vld [vmem:[#allocation7 + $0xc28] sm:$0xff] }
 0x188   :  { %1559 = vmatpush2.msra.mxu1 %v717_v24  ;;  %1489 = vmatprep.subr.mxu0 %v454_v1  ;;  %v349_v24 = vld [vmem:[#allocation7 + $0x420] sm:$0xff] }
 0x189   :  { %1560 = vmatprep.subr.mxu1 %v710_v25  ;;  %1490 = vmatpush2.msra.mxu0 %v453_v26  ;;  %v605_v25 = vld [vmem:[#allocation7 + $0xc20] sm:$0xff] }
 0x18a   :  { %1561 = vmatpush2.msra.mxu1 %v709_v7  ;;  %1491 = vmatprep.subr.mxu0 %v446_v27  ;;  %v854_v7 = vld [vmem:[#allocation7 + $0x13e8] sm:$0xff]  ;;  %v5111_v27 = vld [vmem:[#allocation2 + $0x8] sm:$0xff] }
 0x18b   :  { %1562 = vmatprep.subr.mxu1 %v702_v28  ;;  %1492 = vmatpush2.msra.mxu0 %v445_v9  ;;  %v344_v28 = vld [vmem:[#allocation7 + $0x3f8] sm:$0xff]  ;;  %v5114_v9 = vld [vmem:[#allocation2] sm:$0xff] }
 0x18c   :  { %1563 = vmatpush2.msra.mxu1 %v701_v29  ;;  %1493 = vmatprep.subr.mxu0 %v438_v30  ;;  %v853_v29 = vld [vmem:[#allocation7 + $0x13e0] sm:$0xff]  ;;  %v343_v30 = vld [vmem:[#allocation7 + $0x3f0] sm:$0xff] }
 0x18d   :  { %1564 = vmatprep.subr.mxu1 %v694_v31  ;;  %1494 = vmatpush2.msra.mxu0 %v437_v32  ;;  %v846_v31 = vld [vmem:[#allocation7 + $0x13a8] sm:$0xff]  ;;  %v336_v32 = vld [vmem:[#allocation7 + $0x3b8] sm:$0xff] }
 0x18e   :  { %1565 = vmatpush2.msra.mxu1 %v693_v33  ;;  %1495 = vmatprep.subr.mxu0 %v430_v34  ;;  %v845_v33 = vld [vmem:[#allocation7 + $0x13a0] sm:$0xff]  ;;  %v335_v34 = vld [vmem:[#allocation7 + $0x3b0] sm:$0xff] }
 0x18f   :  { %1566 = vmatprep.subr.mxu1 %v686_v35  ;;  %1496 = vmatpush2.msra.mxu0 %v429_v36  ;;  %v838_v35 = vld [vmem:[#allocation7 + $0x1368] sm:$0xff]  ;;  %v328_v36 = vld [vmem:[#allocation7 + $0x378] sm:$0xff] }
 0x190   :  { %1567 = vmatpush2.msra.mxu1 %v685_v37  ;;  %1497 = vmatprep.subr.mxu0 %v422_v38  ;;  %v837_v37 = vld [vmem:[#allocation7 + $0x1360] sm:$0xff]  ;;  %v327_v38 = vld [vmem:[#allocation7 + $0x370] sm:$0xff] }
 0x191   :  { %1568 = vmatprep.subr.mxu1 %v678_v39  ;;  %1498 = vmatpush2.msra.mxu0 %v421_v40  ;;  %v830_v39 = vld [vmem:[#allocation7 + $0x1328] sm:$0xff]  ;;  %v829_v40 = vld [vmem:[#allocation7 + $0x1320] sm:$0xff] }
 0x192   :  { %1569 = vmatpush2.msra.mxu1 %v677_v41  ;;  %1499 = vmatprep.subr.mxu0 %v414_v42  ;;  %v319_v41 = vld [vmem:[#allocation7 + $0x330] sm:$0xff]  ;;  %v312_v42 = vld [vmem:[#allocation7 + $0x2f8] sm:$0xff] }
 0x193   :  { %1570 = vmatprep.subr.mxu1 %v670_v43  ;;  %1500 = vmatpush2.msra.mxu0 %v413_v45  ;;  %v821_v43 = vld [vmem:[#allocation7 + $0x12e0] sm:$0xff]  ;;  %v814_v45 = vld [vmem:[#allocation7 + $0x12a8] sm:$0xff] }
 0x194   :  { %1571 = vmatpush2.msra.mxu1 %v669_v46  ;;  %1501 = vmatprep.subr.mxu0 %v406_v47  ;;  %v304_v46 = vld [vmem:[#allocation7 + $0x2b8] sm:$0xff]  ;;  %v813_v47 = vld [vmem:[#allocation7 + $0x12a0] sm:$0xff] }
 0x195   :  { %1572 = vmatprep.subr.mxu1 %v662_v48  ;;  %1502 = vmatpush2.msra.mxu0 %v405_v49  ;;  %v303_v48 = vld [vmem:[#allocation7 + $0x2b0] sm:$0xff]  ;;  %v806_v49 = vld [vmem:[#allocation7 + $0x1268] sm:$0xff] }
 0x196   :  { %1573 = vmatpush2.msra.mxu1 %v661_v50  ;;  %1503 = vmatprep.subr.mxu0 %v398_v51  ;;  %v296_v50 = vld [vmem:[#allocation7 + $0x278] sm:$0xff]  ;;  %v805_v51 = vld [vmem:[#allocation7 + $0x1260] sm:$0xff] }
 0x197   :  { %1574 = vmatprep.subr.mxu1 %v654_v52  ;;  %1504 = vmatpush2.msra.mxu0 %v397_v54  ;;  %v295_v52 = vld [vmem:[#allocation7 + $0x270] sm:$0xff]  ;;  %v798_v54 = vld [vmem:[#allocation7 + $0x1228] sm:$0xff] }
 0x198   :  { %1575 = vmatpush2.msra.mxu1 %v653_v55  ;;  %1505 = vmatprep.subr.mxu0 %v390_v56  ;;  %v288_v55 = vld [vmem:[#allocation7 + $0x238] sm:$0xff]  ;;  %v797_v56 = vld [vmem:[#allocation7 + $0x1220] sm:$0xff] }
 0x199   :  { %1576 = vmatprep.subr.mxu1 %v646_v57  ;;  %1506 = vmatpush2.msra.mxu0 %v389_v58  ;;  %v287_v57 = vld [vmem:[#allocation7 + $0x230] sm:$0xff]  ;;  %v790_v58 = vld [vmem:[#allocation7 + $0x11e8] sm:$0xff] }
 0x19a   :  { %1577 = vmatpush2.msra.mxu1 %v645_v59  ;;  %1507 = vmatprep.subr.mxu0 %v382_v60  ;;  %v280_v59 = vld [vmem:[#allocation7 + $0x1f8] sm:$0xff]  ;;  %v789_v60 = vld [vmem:[#allocation7 + $0x11e0] sm:$0xff] }
 0x19b   :  { %1578 = vmatprep.subr.mxu1 %v638_v61  ;;  %1508 = vmatpush2.msra.mxu0 %v381_v0  ;;  %v279_v61 = vld [vmem:[#allocation7 + $0x1f0] sm:$0xff]  ;;  %v782_v0 = vld [vmem:[#allocation7 + $0x11a8] sm:$0xff] }
 0x19c   :  { %1579 = vmatpush2.msra.mxu1 %v637_v2  ;;  %1509 = vmatprep.subr.mxu0 %v374_v4  ;;  %v272_v2 = vld [vmem:[#allocation7 + $0x1b8] sm:$0xff]  ;;  %v781_v4 = vld [vmem:[#allocation7 + $0x11a0] sm:$0xff] }
 0x19d   :  { %1580 = vmatprep.subr.mxu1 %v630_v5  ;;  %1510 = vmatpush2.msra.mxu0 %v373_v6  ;;  %v271_v5 = vld [vmem:[#allocation7 + $0x1b0] sm:$0xff]  ;;  %v774_v6 = vld [vmem:[#allocation7 + $0x1168] sm:$0xff] }
 0x19e   :  { %1581 = vmatpush2.msra.mxu1 %v629_v8  ;;  %1511 = vmatprep.subr.mxu0 %v366_v10  ;;  %v264_v8 = vld [vmem:[#allocation7 + $0x178] sm:$0xff]  ;;  %v773_v10 = vld [vmem:[#allocation7 + $0x1160] sm:$0xff] }
 0x19f   :  { %1582 = vmatprep.subr.mxu1 %v622_v11  ;;  %v1093_v21 = vpop.f32.mrf.mxu0  ;;  %1512 = vmatpush2.msra.mxu0 %v365_v13  ;;  %v263_v11 = vld [vmem:[#allocation7 + $0x170] sm:$0xff]  ;;  %v256_v13 = vld [vmem:[#allocation7 + $0x138] sm:$0xff] }
 0x1a0   :  { %1583 = vmatpush2.msra.mxu1 %v621_v14  ;;  %v1094_v23 = vadd.f32 %v1093_v21, %v990_v12  ;;  %1513 = vmatprep.subr.mxu0 %v358_v16  ;;  %v766_v12 = vld [vmem:[#allocation7 + $0x1128] sm:$0xff]  ;;  %v765_v14 = vld [vmem:[#allocation7 + $0x1120] sm:$0xff]  ;;  %v255_v16 = vld [vmem:[#allocation7 + $0x130] sm:$0xff] }
 0x1a1   :  { %1584 = vmatprep.subr.mxu1 %v614_v18  ;;  %v1164_v1 = vpop.f32.mrf.mxu1  ;;  %1514 = vmatpush2.msra.mxu0 %v357_v19  ;;  %v758_v18 = vld [vmem:[#allocation7 + $0x10e8] sm:$0xff]  ;;  %v248_v19 = vld [vmem:[#allocation7 + $0xf8] sm:$0xff]  ;;  %v247_v21 = vld [vmem:[#allocation7 + $0xf0] sm:$0xff] }
 0x1a2   :  { %1585 = vmatpush2.msra.mxu1 %v613_v20  ;;  %v5109_v26 = vadd.f32 %v1164_v1, %v1094_v23  ;;  %1515 = vmatprep.subr.mxu0 %v350_v22  ;;  %v757_v20 = vld [vmem:[#allocation7 + $0x10e0] sm:$0xff]  ;;  %v750_v22 = vld [vmem:[#allocation7 + $0x10a8] sm:$0xff] }
 0x1a3   :  { %1586 = vmatprep.subr.mxu1 %v606_v63  ;;  %1516 = vmatpush2.msra.mxu0 %v349_v24  ;;  %v240_v63 = vld [vmem:[#allocation7 + $0xb8] sm:$0xff]  ;;  %v749_v23 = vld [vmem:[#allocation7 + $0x10a0] sm:$0xff]  ;;  %v239_v24 = vld [vmem:[#allocation7 + $0xb0] sm:$0xff] }
 0x1a4   :  { %1517 = vmatprep.mubr.f32.mxu0 %v5111_v27  ;;  %1587 = vmatpush2.msra.mxu1 %v605_v25  ;;  %v742_v1 = vld [vmem:[#allocation7 + $0x1068] sm:$0xff]  ;;  %v232_v25 = vld [vmem:[#allocation7 + $0x78] sm:$0xff] }
 0x1a5   :  { %1518 = vmatmul.mubr.f32.vlgmr.msra.gmra.mxu0 %v5114_v9  ;;  %1588 = vmatprep.mubr.f32.mxu1 %v5092_v15  ;;  %v320_v15 = vld [vmem:[#allocation7 + $0x338] sm:$0xff] }
 0x1a6   :  { %1595 = vmatprep.subr.mxu0 %v854_v7  ;;  %1666 = vmatprep.subr.mxu1 %v344_v28  ;;  %v741_v7 = vld [vmem:[#allocation7 + $0x1060] sm:$0xff]  ;;  %v231_v28 = vld [vmem:[#allocation7 + $0x70] sm:$0xff] }
 0x1a7   :  { %1589 = vmatmul.mubr.f32.vlgmr.msra.gmra.mxu1 %v5095_v17  ;;  %1596 = vmatpush1.msra.mxu0 %v853_v29  ;;  %v822_v17 = vld [vmem:[#allocation7 + $0x12e8] sm:$0xff] }
 0x1a8   :  { %1667 = vmatpush1.msra.mxu1 %v343_v30  ;;  %1597 = vmatprep.subr.mxu0 %v846_v31  ;;  %v734_v29 = vld [vmem:[#allocation7 + $0x1028] sm:$0xff]  ;;  %v224_v30 = vld [vmem:[#allocation7 + $0x38] sm:$0xff]  ;;  %v733_v31 = vld [vmem:[#allocation7 + $0x1020] sm:$0xff] }
 0x1a9   :  { %1668 = vmatprep.subr.mxu1 %v336_v32  ;;  %1598 = vmatpush1.msra.mxu0 %v845_v33  ;;  %v223_v32 = vld [vmem:[#allocation7 + $0x30] sm:$0xff]  ;;  %v982_v33 = vld [vmem:[#allocation7 + $0x17e8] sm:$0xff] }
 0x1aa   :  { %1669 = vmatpush1.msra.mxu1 %v335_v34  ;;  %1599 = vmatprep.subr.mxu0 %v838_v35  ;;  %v472_v34 = vld [vmem:[#allocation7 + $0x7f8] sm:$0xff]  ;;  %v981_v35 = vld [vmem:[#allocation7 + $0x17e0] sm:$0xff] }
 0x1ab   :  { %1670 = vmatprep.subr.mxu1 %v328_v36  ;;  %1600 = vmatpush1.msra.mxu0 %v837_v37  ;;  %v471_v36 = vld [vmem:[#allocation7 + $0x7f0] sm:$0xff]  ;;  %v974_v37 = vld [vmem:[#allocation7 + $0x17a8] sm:$0xff] }
 0x1ac   :  { %1671 = vmatpush1.msra.mxu1 %v327_v38  ;;  %1601 = vmatprep.subr.mxu0 %v830_v39  ;;  %v464_v38 = vld [vmem:[#allocation7 + $0x7b8] sm:$0xff]  ;;  %v973_v39 = vld [vmem:[#allocation7 + $0x17a0] sm:$0xff] }
 0x1ad   :  { %1672 = vmatprep.subr.mxu1 %v320_v15  ;;  %1602 = vmatpush1.msra.mxu0 %v829_v40  ;;  %v463_v15 = vld [vmem:[#allocation7 + $0x7b0] sm:$0xff]  ;;  %v966_v40 = vld [vmem:[#allocation7 + $0x1768] sm:$0xff] }
 0x1ae   :  { %1673 = vmatpush1.msra.mxu1 %v319_v41  ;;  %1603 = vmatprep.subr.mxu0 %v822_v17  ;;  %v456_v41 = vld [vmem:[#allocation7 + $0x778] sm:$0xff]  ;;  %v965_v17 = vld [vmem:[#allocation7 + $0x1760] sm:$0xff] }
 0x1af   :  { %1674 = vmatprep.subr.mxu1 %v312_v42  ;;  %1604 = vmatpush1.msra.mxu0 %v821_v43  ;;  %v455_v42 = vld [vmem:[#allocation7 + $0x770] sm:$0xff]  ;;  %v958_v43 = vld [vmem:[#allocation7 + $0x1728] sm:$0xff] }
 0x1b0   :  { %1675 = vmatpush1.msra.mxu1 %v311_v44  ;;  %1605 = vmatprep.subr.mxu0 %v814_v45  ;;  %v448_v44 = vld [vmem:[#allocation7 + $0x738] sm:$0xff]  ;;  %v957_v45 = vld [vmem:[#allocation7 + $0x1720] sm:$0xff] }
 0x1b1   :  { %1676 = vmatprep.subr.mxu1 %v304_v46  ;;  %1606 = vmatpush1.msra.mxu0 %v813_v47  ;;  %v447_v46 = vld [vmem:[#allocation7 + $0x730] sm:$0xff]  ;;  %v950_v47 = vld [vmem:[#allocation7 + $0x16e8] sm:$0xff] }
 0x1b2   :  { %1677 = vmatpush1.msra.mxu1 %v303_v48  ;;  %1607 = vmatprep.subr.mxu0 %v806_v49  ;;  %v440_v48 = vld [vmem:[#allocation7 + $0x6f8] sm:$0xff]  ;;  %v949_v49 = vld [vmem:[#allocation7 + $0x16e0] sm:$0xff] }
 0x1b3   :  { %1678 = vmatprep.subr.mxu1 %v296_v50  ;;  %1608 = vmatpush1.msra.mxu0 %v805_v51  ;;  %v439_v50 = vld [vmem:[#allocation7 + $0x6f0] sm:$0xff]  ;;  %v942_v51 = vld [vmem:[#allocation7 + $0x16a8] sm:$0xff] }
 0x1b4   :  { %1679 = vmatpush1.msra.mxu1 %v295_v52  ;;  %1609 = vmatprep.subr.mxu0 %v798_v54  ;;  %v432_v52 = vld [vmem:[#allocation7 + $0x6b8] sm:$0xff]  ;;  %v941_v54 = vld [vmem:[#allocation7 + $0x16a0] sm:$0xff] }
 0x1b5   :  { %1680 = vmatprep.subr.mxu1 %v288_v55  ;;  %1610 = vmatpush1.msra.mxu0 %v797_v56  ;;  %v431_v55 = vld [vmem:[#allocation7 + $0x6b0] sm:$0xff]  ;;  %v934_v56 = vld [vmem:[#allocation7 + $0x1668] sm:$0xff] }
 0x1b6   :  { %1681 = vmatpush1.msra.mxu1 %v287_v57  ;;  %1611 = vmatprep.subr.mxu0 %v790_v58  ;;  %v424_v57 = vld [vmem:[#allocation7 + $0x678] sm:$0xff]  ;;  %v933_v58 = vld [vmem:[#allocation7 + $0x1660] sm:$0xff] }
 0x1b7   :  { %1682 = vmatprep.subr.mxu1 %v280_v59  ;;  %1612 = vmatpush1.msra.mxu0 %v789_v60  ;;  %v423_v59 = vld [vmem:[#allocation7 + $0x670] sm:$0xff]  ;;  %v926_v60 = vld [vmem:[#allocation7 + $0x1628] sm:$0xff] }
 0x1b8   :  { %1683 = vmatpush1.msra.mxu1 %v279_v61  ;;  %1613 = vmatprep.subr.mxu0 %v782_v0  ;;  %v416_v61 = vld [vmem:[#allocation7 + $0x638] sm:$0xff]  ;;  %v925_v0 = vld [vmem:[#allocation7 + $0x1620] sm:$0xff] }
 0x1b9   :  { %1684 = vmatprep.subr.mxu1 %v272_v2  ;;  %1614 = vmatpush1.msra.mxu0 %v781_v4  ;;  %v415_v2 = vld [vmem:[#allocation7 + $0x630] sm:$0xff]  ;;  %v918_v4 = vld [vmem:[#allocation7 + $0x15e8] sm:$0xff] }
 0x1ba   :  { %1685 = vmatpush1.msra.mxu1 %v271_v5  ;;  %1615 = vmatprep.subr.mxu0 %v774_v6  ;;  %v408_v5 = vld [vmem:[#allocation7 + $0x5f8] sm:$0xff]  ;;  %v917_v6 = vld [vmem:[#allocation7 + $0x15e0] sm:$0xff] }
 0x1bb   :  { %1686 = vmatprep.subr.mxu1 %v264_v8  ;;  %1616 = vmatpush1.msra.mxu0 %v773_v10  ;;  %v407_v8 = vld [vmem:[#allocation7 + $0x5f0] sm:$0xff]  ;;  %v910_v10 = vld [vmem:[#allocation7 + $0x15a8] sm:$0xff] }
 0x1bc   :  { %1687 = vmatpush1.msra.mxu1 %v263_v11  ;;  %1617 = vmatprep.subr.mxu0 %v766_v12  ;;  %v400_v11 = vld [vmem:[#allocation7 + $0x5b8] sm:$0xff]  ;;  %v909_v12 = vld [vmem:[#allocation7 + $0x15a0] sm:$0xff] }
 0x1bd   :  { %1688 = vmatprep.subr.mxu1 %v256_v13  ;;  %1618 = vmatpush1.msra.mxu0 %v765_v14  ;;  %v399_v13 = vld [vmem:[#allocation7 + $0x5b0] sm:$0xff]  ;;  %v902_v14 = vld [vmem:[#allocation7 + $0x1568] sm:$0xff] }
 0x1be   :  { %1689 = vmatpush1.msra.mxu1 %v255_v16  ;;  %1619 = vmatprep.subr.mxu0 %v758_v18  ;;  %v392_v16 = vld [vmem:[#allocation7 + $0x578] sm:$0xff]  ;;  %v901_v18 = vld [vmem:[#allocation7 + $0x1560] sm:$0xff] }
 0x1bf   :  { %1690 = vmatprep.subr.mxu1 %v248_v19  ;;  %1620 = vmatpush1.msra.mxu0 %v757_v20  ;;  %v391_v19 = vld [vmem:[#allocation7 + $0x570] sm:$0xff]  ;;  %v894_v20 = vld [vmem:[#allocation7 + $0x1528] sm:$0xff] }
 0x1c0   :  { %1691 = vmatpush1.msra.mxu1 %v247_v21  ;;  %1621 = vmatprep.subr.mxu0 %v750_v22  ;;  %v384_v21 = vld [vmem:[#allocation7 + $0x538] sm:$0xff]  ;;  %v893_v22 = vld [vmem:[#allocation7 + $0x1520] sm:$0xff] }
 0x1c1   :  { %1692 = vmatprep.subr.mxu1 %v240_v63  ;;  %1622 = vmatpush1.msra.mxu0 %v749_v23  ;;  %v383_v63 = vld [vmem:[#allocation7 + $0x530] sm:$0xff]  ;;  %v886_v23 = vld [vmem:[#allocation7 + $0x14e8] sm:$0xff] }
 0x1c2   :  { %1693 = vmatpush1.msra.mxu1 %v239_v24  ;;  %1623 = vmatprep.subr.mxu0 %v742_v1  ;;  %v376_v24 = vld [vmem:[#allocation7 + $0x4f8] sm:$0xff]  ;;  %v885_v1 = vld [vmem:[#allocation7 + $0x14e0] sm:$0xff] }
 0x1c3   :  { %1694 = vmatprep.subr.mxu1 %v232_v25  ;;  %1624 = vmatpush1.msra.mxu0 %v741_v7  ;;  %v375_v25 = vld [vmem:[#allocation7 + $0x4f0] sm:$0xff]  ;;  %v878_v7 = vld [vmem:[#allocation7 + $0x14a8] sm:$0xff] }
 0x1c4   :  { %1695 = vmatpush1.msra.mxu1 %v231_v28  ;;  %1625 = vmatprep.subr.mxu0 %v734_v29  ;;  %v368_v28 = vld [vmem:[#allocation7 + $0x4b8] sm:$0xff]  ;;  %v5119_v29 = vpop.f32.mrf.mxu0 }
 0x1c5   :  { %1696 = vmatprep.subr.mxu1 %v224_v30  ;;  %1626 = vmatpush1.msra.mxu0 %v733_v31  ;;  %v877_v30 = vld [vmem:[#allocation7 + $0x14a0] sm:$0xff]  ;;  %v367_v31 = vld [vmem:[#allocation7 + $0x4b0] sm:$0xff] }
 0x1c6   :  { %1697 = vmatpush1.msra.mxu1 %v223_v32  ;;  %1627 = vmatprep.subr.mxu0 %v982_v33  ;;  %v870_v32 = vld [vmem:[#allocation7 + $0x1468] sm:$0xff]  ;;  %v360_v33 = vld [vmem:[#allocation7 + $0x478] sm:$0xff] }
 0x1c7   :  { %1698 = vmatprep.subr.mxu1 %v472_v34  ;;  %1628 = vmatpush2.msra.mxu0 %v981_v35  ;;  %v869_v34 = vld [vmem:[#allocation7 + $0x1460] sm:$0xff]  ;;  %v359_v35 = vld [vmem:[#allocation7 + $0x470] sm:$0xff] }
 0x1c8   :  { %1699 = vmatpush2.msra.mxu1 %v471_v36  ;;  %1629 = vmatprep.subr.mxu0 %v974_v37  ;;  %v862_v37 = vld [vmem:[#allocation7 + $0x1428] sm:$0xff] }
 0x1c9   :  { %1700 = vmatprep.subr.mxu1 %v464_v38  ;;  %1630 = vmatpush2.msra.mxu0 %v973_v39  ;;  %v352_v38 = vld [vmem:[#allocation7 + $0x438] sm:$0xff] }
 0x1ca   :  { %1701 = vmatpush2.msra.mxu1 %v463_v15  ;;  %1631 = vmatprep.subr.mxu0 %v966_v40  ;;  %v861_v15 = vld [vmem:[#allocation7 + $0x1420] sm:$0xff]  ;;  %v351_v40 = vld [vmem:[#allocation7 + $0x430] sm:$0xff] }
 0x1cb   :  { %1702 = vmatprep.subr.mxu1 %v456_v41  ;;  %1632 = vmatpush2.msra.mxu0 %v965_v17  ;;  %v600_v41 = vld [vmem:[#allocation7 + $0xbf8] sm:$0xff] }
 0x1cc   :  { %1703 = vmatpush2.msra.mxu1 %v455_v42  ;;  %1633 = vmatprep.subr.mxu0 %v958_v43  ;;  %v5124_v17 = vld [vmem:[#allocation2 + $0x28] sm:$0xff]  ;;  %v5127_v43 = vld [vmem:[#allocation2 + $0x20] sm:$0xff] }
 0x1cd   :  { %1704 = vmatprep.subr.mxu1 %v448_v44  ;;  %1634 = vmatpush2.msra.mxu0 %v957_v45  ;;  %v856_v42 = vld [vmem:[#allocation7 + $0x13f8] sm:$0xff]  ;;  %v855_v44 = vld [vmem:[#allocation7 + $0x13f0] sm:$0xff] }
 0x1ce   :  { %1705 = vmatpush2.msra.mxu1 %v447_v46  ;;  %1635 = vmatprep.subr.mxu0 %v950_v47  ;;  %v592_v45 = vld [vmem:[#allocation7 + $0xbb8] sm:$0xff]  ;;  %v591_v47 = vld [vmem:[#allocation7 + $0xbb0] sm:$0xff] }
 0x1cf   :  { %1706 = vmatprep.subr.mxu1 %v440_v48  ;;  %1636 = vmatpush2.msra.mxu0 %v949_v49  ;;  %v848_v46 = vld [vmem:[#allocation7 + $0x13b8] sm:$0xff]  ;;  %v847_v48 = vld [vmem:[#allocation7 + $0x13b0] sm:$0xff] }
 0x1d0   :  { %1707 = vmatpush2.msra.mxu1 %v439_v50  ;;  %1637 = vmatprep.subr.mxu0 %v942_v51  ;;  %v584_v49 = vld [vmem:[#allocation7 + $0xb78] sm:$0xff]  ;;  %v583_v51 = vld [vmem:[#allocation7 + $0xb70] sm:$0xff] }
 0x1d1   :  { %1708 = vmatprep.subr.mxu1 %v432_v52  ;;  %1638 = vmatpush2.msra.mxu0 %v941_v54  ;;  %v840_v50 = vld [vmem:[#allocation7 + $0x1378] sm:$0xff]  ;;  %v839_v52 = vld [vmem:[#allocation7 + $0x1370] sm:$0xff] }
 0x1d2   :  { %1709 = vmatpush2.msra.mxu1 %v431_v55  ;;  %1639 = vmatprep.subr.mxu0 %v934_v56  ;;  %v576_v54 = vld [vmem:[#allocation7 + $0xb38] sm:$0xff]  ;;  %v575_v55 = vld [vmem:[#allocation7 + $0xb30] sm:$0xff] }
 0x1d3   :  { %1710 = vmatprep.subr.mxu1 %v424_v57  ;;  %1640 = vmatpush2.msra.mxu0 %v933_v58  ;;  %v831_v56 = vld [vmem:[#allocation7 + $0x1330] sm:$0xff]  ;;  %v824_v57 = vld [vmem:[#allocation7 + $0x12f8] sm:$0xff] }
 0x1d4   :  { %1711 = vmatpush2.msra.mxu1 %v423_v59  ;;  %1641 = vmatprep.subr.mxu0 %v926_v60  ;;  %v567_v58 = vld [vmem:[#allocation7 + $0xaf0] sm:$0xff]  ;;  %v5133_v60 = vsub.s32 1, %v5100_v53 }
 0x1d5   :  { %1712 = vmatprep.subr.mxu1 %v416_v61  ;;  %1642 = vmatpush2.msra.mxu0 %v925_v0  ;;  %v823_v59 = vld [vmem:[#allocation7 + $0x12f0] sm:$0xff]  ;;  %v560_v61 = vld [vmem:[#allocation7 + $0xab8] sm:$0xff] }
 0x1d6   :  { %1713 = vmatpush2.msra.mxu1 %v415_v2  ;;  %1643 = vmatprep.subr.mxu0 %v918_v4  ;;  %v816_v0 = vld [vmem:[#allocation7 + $0x12b8] sm:$0xff]  ;;  %v559_v2 = vld [vmem:[#allocation7 + $0xab0] sm:$0xff] }
 0x1d7   :  { %1714 = vmatprep.subr.mxu1 %v408_v5  ;;  %1644 = vmatpush2.msra.mxu0 %v917_v6  ;;  %v815_v4 = vld [vmem:[#allocation7 + $0x12b0] sm:$0xff]  ;;  %v552_v5 = vld [vmem:[#allocation7 + $0xa78] sm:$0xff] }
 0x1d8   :  { %1715 = vmatpush2.msra.mxu1 %v407_v8  ;;  %1645 = vmatprep.subr.mxu0 %v910_v10  ;;  %v808_v6 = vld [vmem:[#allocation7 + $0x1278] sm:$0xff]  ;;  %v551_v8 = vld [vmem:[#allocation7 + $0xa70] sm:$0xff] }
 0x1d9   :  { %1716 = vmatprep.subr.mxu1 %v400_v11  ;;  %1646 = vmatpush2.msra.mxu0 %v909_v12  ;;  %v807_v10 = vld [vmem:[#allocation7 + $0x1270] sm:$0xff]  ;;  %v994_v11 = vrot.slane %v5105_v3, %v5133_v60  ;;  %v544_v12 = vld [vmem:[#allocation7 + $0xa38] sm:$0xff] }
 0x1da   :  { %1717 = vmatpush2.msra.mxu1 %v399_v13  ;;  %1647 = vmatprep.subr.mxu0 %v902_v14  ;;  %v800_v13 = vld [vmem:[#allocation7 + $0x1238] sm:$0xff]  ;;  %v543_v14 = vld [vmem:[#allocation7 + $0xa30] sm:$0xff] }
 0x1db   :  { %1718 = vmatprep.subr.mxu1 %v392_v16  ;;  %1648 = vmatpush2.msra.mxu0 %v901_v18  ;;  %v799_v16 = vld [vmem:[#allocation7 + $0x1230] sm:$0xff]  ;;  %v536_v18 = vld [vmem:[#allocation7 + $0x9f8] sm:$0xff] }
 0x1dc   :  { %1719 = vmatpush2.msra.mxu1 %v391_v19  ;;  %1649 = vmatprep.subr.mxu0 %v894_v20  ;;  %v792_v19 = vld [vmem:[#allocation7 + $0x11f8] sm:$0xff]  ;;  %v535_v20 = vld [vmem:[#allocation7 + $0x9f0] sm:$0xff] }
 0x1dd   :  { %1720 = vmatprep.subr.mxu1 %v384_v21  ;;  %1650 = vmatpush2.msra.mxu0 %v893_v22  ;;  %v791_v21 = vld [vmem:[#allocation7 + $0x11f0] sm:$0xff]  ;;  %v1096_v22 = vadd.f32 %v5119_v29, %v994_v11  ;;  %v528_v3 = vld [vmem:[#allocation7 + $0x9b8] sm:$0xff] }
 0x1de   :  { %1721 = vmatpush2.msra.mxu1 %v383_v63  ;;  %1651 = vmatprep.subr.mxu0 %v886_v23  ;;  %v784_v63 = vld [vmem:[#allocation7 + $0x11b8] sm:$0xff]  ;;  %v1166_v23 = vpop.f32.mrf.mxu1 }
 0x1df   :  { %1722 = vmatprep.subr.mxu1 %v376_v24  ;;  %1652 = vmatpush2.msra.mxu0 %v885_v1  ;;  %v527_v24 = vld [vmem:[#allocation7 + $0x9b0] sm:$0xff]  ;;  %v512_v29 = vld [vmem:[#allocation7 + $0x938] sm:$0xff] }
 0x1e0   :  { %1723 = vmatpush2.msra.mxu1 %v375_v25  ;;  %1653 = vmatprep.subr.mxu0 %v878_v7  ;;  %v783_v1 = vld [vmem:[#allocation7 + $0x11b0] sm:$0xff]  ;;  %v520_v25 = vld [vmem:[#allocation7 + $0x978] sm:$0xff] }
 0x1e1   :  { %1724 = vmatprep.subr.mxu1 %v368_v28  ;;  %v1235_v36 = vpop.f32.mrf.mxu0  ;;  %1654 = vmatpush2.msra.mxu0 %v877_v30  ;;  %v776_v7 = vld [vmem:[#allocation7 + $0x1178] sm:$0xff]  ;;  %v519_v30 = vld [vmem:[#allocation7 + $0x970] sm:$0xff] }
 0x1e2   :  { %1725 = vmatpush2.msra.mxu1 %v367_v31  ;;  %v5122_v39 = vadd.f32 %v1235_v36, %v5109_v26  ;;  %1655 = vmatprep.subr.mxu0 %v870_v32  ;;  %v599_v26 = vld [vmem:[#allocation7 + $0xbf0] sm:$0xff]  ;;  %v1167_v32 = vadd.f32 %v1166_v23, %v1096_v22  ;;  %v960_v11 = vld [vmem:[#allocation7 + $0x1738] sm:$0xff] }
 0x1e3   :  { %1726 = vmatprep.subr.mxu1 %v360_v33  ;;  %1656 = vmatpush2.msra.mxu0 %v869_v34  ;;  %v1237_v28 = vpop.f32.mrf.mxu0  ;;  %v775_v31 = vld [vmem:[#allocation7 + $0x1170] sm:$0xff]  ;;  %v768_v33 = vld [vmem:[#allocation7 + $0x1138] sm:$0xff] }
 0x1e4   :  { %1727 = vmatpush2.msra.mxu1 %v359_v35  ;;  %1657 = vmatprep.subr.mxu0 %v862_v37  ;;  %v511_v34 = vld [vmem:[#allocation7 + $0x930] sm:$0xff]  ;;  %v5138_v36 = vadd.f32 %v1237_v28, %v1167_v32  ;;  %v504_v37 = vld [vmem:[#allocation7 + $0x8f8] sm:$0xff] }
 0x1e5   :  { %1728 = vmatprep.subr.mxu1 %v352_v38  ;;  %1658 = vmatpush2.msra.mxu0 %v861_v15  ;;  %v767_v35 = vld [vmem:[#allocation7 + $0x1130] sm:$0xff]  ;;  %v760_v38 = vld [vmem:[#allocation7 + $0x10f8] sm:$0xff] }
 0x1e6   :  { %1659 = vmatprep.mubr.f32.mxu0 %v5124_v17  ;;  %1729 = vmatpush2.msra.mxu1 %v351_v40  ;;  %v503_v15 = vld [vmem:[#allocation7 + $0x8f0] sm:$0xff]  ;;  %v944_v22 = vld [vmem:[#allocation7 + $0x16b8] sm:$0xff] }
 0x1e7   :  { %1660 = vmatmul.mubr.f32.vlgmr.msra.gmra.mxu0 %v5127_v43  ;;  %1730 = vmatprep.mubr.f32.mxu1 %v5111_v27  ;;  %v832_v27 = vld [vmem:[#allocation7 + $0x1338] sm:$0xff]  ;;  %v759_v40 = vld [vmem:[#allocation7 + $0x10f0] sm:$0xff] }
 0x1e8   :  { %1737 = vmatprep.subr.mxu0 %v600_v41  ;;  %1808 = vmatprep.subr.mxu1 %v856_v42  ;;  %v496_v41 = vld [vmem:[#allocation7 + $0x8b8] sm:$0xff]  ;;  %v927_v32 = vld [vmem:[#allocation7 + $0x1630] sm:$0xff] }
 0x1e9   :  { %1731 = vmatmul.mubr.f32.vlgmr.msra.gmra.mxu1 %v5114_v9  ;;  %1738 = vmatpush1.msra.mxu0 %v599_v26  ;;  %v568_v9 = vld [vmem:[#allocation7 + $0xaf8] sm:$0xff]  ;;  %v495_v26 = vld [vmem:[#allocation7 + $0x8b0] sm:$0xff] }
 0x1ea   :  { %1809 = vmatpush1.msra.mxu1 %v855_v44  ;;  %1739 = vmatprep.subr.mxu0 %v592_v45  ;;  %v752_v42 = vld [vmem:[#allocation7 + $0x10b8] sm:$0xff]  ;;  %v751_v44 = vld [vmem:[#allocation7 + $0x10b0] sm:$0xff]  ;;  %v1888_v45 = vmul.f32 0.044715, %v5138_v36 }
 0x1eb   :  { %1810 = vmatprep.subr.mxu1 %v848_v46  ;;  %1740 = vmatpush1.msra.mxu0 %v591_v47  ;;  %v488_v46 = vld [vmem:[#allocation7 + $0x878] sm:$0xff] }
 0x1ec   :  { %1811 = vmatpush1.msra.mxu1 %v847_v48  ;;  %1741 = vmatprep.subr.mxu0 %v584_v49  ;;  %v744_v47 = vld [vmem:[#allocation7 + $0x1078] sm:$0xff]  ;;  %v487_v48 = vld [vmem:[#allocation7 + $0x870] sm:$0xff] }
 0x1ed   :  { %1812 = vmatprep.subr.mxu1 %v840_v50  ;;  %1742 = vmatpush1.msra.mxu0 %v583_v51  ;;  %v743_v49 = vld [vmem:[#allocation7 + $0x1070] sm:$0xff]  ;;  %v480_v50 = vld [vmem:[#allocation7 + $0x838] sm:$0xff] }
 0x1ee   :  { %1813 = vmatpush1.msra.mxu1 %v839_v52  ;;  %1743 = vmatprep.subr.mxu0 %v576_v54  ;;  %v736_v51 = vld [vmem:[#allocation7 + $0x1038] sm:$0xff]  ;;  %v479_v52 = vld [vmem:[#allocation7 + $0x830] sm:$0xff] }
 0x1ef   :  { %1814 = vmatprep.subr.mxu1 %v832_v27  ;;  %1744 = vmatpush1.msra.mxu0 %v575_v55  ;;  %v735_v54 = vld [vmem:[#allocation7 + $0x1030] sm:$0xff]  ;;  %v1896_v27 = vmul.f32 %v1888_v45, %v5138_v36  ;;  %v728_v55 = vld [vmem:[#allocation7 + $0xff8] sm:$0xff]  ;;  %v1001_v45 = vsub.s32 3, %v5100_v53 }
 0x1f0   :  { %1815 = vmatpush1.msra.mxu1 %v831_v56  ;;  %1745 = vmatprep.subr.mxu0 %v568_v9  ;;  %v984_v56 = vld [vmem:[#allocation7 + $0x17f8] sm:$0xff]  ;;  %v727_v9 = vld [vmem:[#allocation7 + $0xff0] sm:$0xff] }
 0x1f1   :  { %1816 = vmatprep.subr.mxu1 %v824_v57  ;;  %1746 = vmatpush1.msra.mxu0 %v567_v58  ;;  %v983_v57 = vld [vmem:[#allocation7 + $0x17f0] sm:$0xff]  ;;  %v720_v58 = vld [vmem:[#allocation7 + $0xfb8] sm:$0xff] }
 0x1f2   :  { %1817 = vmatpush1.msra.mxu1 %v823_v59  ;;  %1747 = vmatprep.subr.mxu0 %v560_v61  ;;  %v976_v59 = vld [vmem:[#allocation7 + $0x17b8] sm:$0xff]  ;;  %v719_v61 = vld [vmem:[#allocation7 + $0xfb0] sm:$0xff] }
 0x1f3   :  { %1818 = vmatprep.subr.mxu1 %v816_v0  ;;  %1748 = vmatpush1.msra.mxu0 %v559_v2  ;;  %v975_v0 = vld [vmem:[#allocation7 + $0x17b0] sm:$0xff]  ;;  %v712_v2 = vld [vmem:[#allocation7 + $0xf78] sm:$0xff] }
 0x1f4   :  { %1819 = vmatpush1.msra.mxu1 %v815_v4  ;;  %1749 = vmatprep.subr.mxu0 %v552_v5  ;;  %v968_v4 = vld [vmem:[#allocation7 + $0x1778] sm:$0xff]  ;;  %v1904_v5 = vmul.f32 %v1896_v27, %v5138_v36  ;;  %v887_v27 = vld [vmem:[#allocation7 + $0x14f0] sm:$0xff] }
 0x1f5   :  { %1820 = vmatprep.subr.mxu1 %v808_v6  ;;  %1750 = vmatpush1.msra.mxu0 %v551_v8  ;;  %v711_v6 = vld [vmem:[#allocation7 + $0xf70] sm:$0xff]  ;;  %v680_v23 = vld [vmem:[#allocation7 + $0xe78] sm:$0xff] }
 0x1f6   :  { %1821 = vmatpush1.msra.mxu1 %v807_v10  ;;  %1751 = vmatprep.subr.mxu0 %v544_v12  ;;  %v967_v8 = vld [vmem:[#allocation7 + $0x1770] sm:$0xff]  ;;  %v704_v10 = vld [vmem:[#allocation7 + $0xf38] sm:$0xff] }
 0x1f7   :  { %1822 = vmatprep.subr.mxu1 %v800_v13  ;;  %1752 = vmatpush1.msra.mxu0 %v543_v14  ;;  %v703_v12 = vld [vmem:[#allocation7 + $0xf30] sm:$0xff]  ;;  %v696_v14 = vld [vmem:[#allocation7 + $0xef8] sm:$0xff] }
 0x1f8   :  { %1823 = vmatpush1.msra.mxu1 %v799_v16  ;;  %1753 = vmatprep.subr.mxu0 %v536_v18  ;;  %v959_v13 = vld [vmem:[#allocation7 + $0x1730] sm:$0xff]  ;;  %v952_v16 = vld [vmem:[#allocation7 + $0x16f8] sm:$0xff]  ;;  %v1912_v18 = vadd.f32 %v1904_v5, %v5138_v36 }
 0x1f9   :  { %1824 = vmatprep.subr.mxu1 %v792_v19  ;;  %1754 = vmatpush1.msra.mxu0 %v535_v20  ;;  %v695_v19 = vld [vmem:[#allocation7 + $0xef0] sm:$0xff]  ;;  %v672_v28 = vld [vmem:[#allocation7 + $0xe38] sm:$0xff] }
 0x1fa   :  { %1825 = vmatpush1.msra.mxu1 %v791_v21  ;;  %1755 = vmatprep.subr.mxu0 %v528_v3  ;;  %v951_v20 = vld [vmem:[#allocation7 + $0x16f0] sm:$0xff]  ;;  %v688_v21 = vld [vmem:[#allocation7 + $0xeb8] sm:$0xff] }
 0x1fb   :  { %1826 = vmatprep.subr.mxu1 %v784_v63  ;;  %1756 = vmatpush1.msra.mxu0 %v527_v24  ;;  %v687_v3 = vld [vmem:[#allocation7 + $0xeb0] sm:$0xff]  ;;  %v936_v24 = vld [vmem:[#allocation7 + $0x1678] sm:$0xff] }
 0x1fc   :  { %1827 = vmatpush1.msra.mxu1 %v783_v1  ;;  %1757 = vmatprep.subr.mxu0 %v520_v25  ;;  %v943_v63 = vld [vmem:[#allocation7 + $0x16b0] sm:$0xff]  ;;  %v1920_v1 = vmul.f32 0.7978846, %v1912_v18 }
 0x1fd   :  { %1828 = vmatprep.subr.mxu1 %v776_v7  ;;  %1758 = vmatpush1.msra.mxu0 %v519_v30  ;;  %v679_v25 = vld [vmem:[#allocation7 + $0xe70] sm:$0xff]  ;;  %v928_v30 = vld [vmem:[#allocation7 + $0x1638] sm:$0xff] }
 0x1fe   :  { %1829 = vmatpush1.msra.mxu1 %v775_v31  ;;  %1759 = vmatprep.subr.mxu0 %v512_v29  ;;  %v935_v7 = vld [vmem:[#allocation7 + $0x1670] sm:$0xff]  ;;  %v664_v29 = vld [vmem:[#allocation7 + $0xdf8] sm:$0xff]  ;;  %4590 = vtanh.f32 %v1920_v1 }
 0x1ff   :  { %1830 = vmatprep.subr.mxu1 %v768_v33  ;;  %1760 = vmatpush1.msra.mxu0 %v511_v34  ;;  %v671_v31 = vld [vmem:[#allocation7 + $0xe30] sm:$0xff]  ;;  %v920_v33 = vld [vmem:[#allocation7 + $0x15f8] sm:$0xff] }
 0x200   :  { %1831 = vmatpush1.msra.mxu1 %v767_v35  ;;  %1761 = vmatprep.subr.mxu0 %v504_v37  ;;  %v663_v34 = vld [vmem:[#allocation7 + $0xdf0] sm:$0xff]  ;;  %v656_v37 = vld [vmem:[#allocation7 + $0xdb8] sm:$0xff] }
 0x201   :  { %1832 = vmatprep.subr.mxu1 %v760_v38  ;;  %1762 = vmatpush1.msra.mxu0 %v503_v15  ;;  %v919_v35 = vld [vmem:[#allocation7 + $0x15f0] sm:$0xff]  ;;  %v912_v38 = vld [vmem:[#allocation7 + $0x15b8] sm:$0xff] }
 0x202   :  { %1833 = vmatpush1.msra.mxu1 %v759_v40  ;;  %1763 = vmatprep.subr.mxu0 %v496_v41  ;;  %v655_v15 = vld [vmem:[#allocation7 + $0xdb0] sm:$0xff]  ;;  %v648_v41 = vld [vmem:[#allocation7 + $0xd78] sm:$0xff] }
 0x203   :  { %1834 = vmatprep.subr.mxu1 %v752_v42  ;;  %1764 = vmatpush1.msra.mxu0 %v495_v26  ;;  %v911_v40 = vld [vmem:[#allocation7 + $0x15b0] sm:$0xff]  ;;  %v904_v42 = vld [vmem:[#allocation7 + $0x1578] sm:$0xff] }
 0x204   :  { %1835 = vmatpush1.msra.mxu1 %v751_v44  ;;  %1765 = vmatprep.subr.mxu0 %v488_v46  ;;  %v647_v26 = vld [vmem:[#allocation7 + $0xd70] sm:$0xff]  ;;  %v640_v46 = vld [vmem:[#allocation7 + $0xd38] sm:$0xff] }
 0x205   :  { %1836 = vmatprep.subr.mxu1 %v744_v47  ;;  %1766 = vmatpush1.msra.mxu0 %v487_v48  ;;  %v903_v44 = vld [vmem:[#allocation7 + $0x1570] sm:$0xff]  ;;  %v896_v47 = vld [vmem:[#allocation7 + $0x1538] sm:$0xff]  ;;  %v5145_v48 = vpop.f32.mrf.mxu1 }
 0x206   :  { %1837 = vmatpush1.msra.mxu1 %v743_v49  ;;  %1767 = vmatprep.subr.mxu0 %v480_v50  ;;  %v639_v49 = vld [vmem:[#allocation7 + $0xd30] sm:$0xff]  ;;  %v1981_v1 = vld [vmem:[#allocation10 + $0xf0] sm:$0xff] }
 0x207   :  { %1838 = vmatprep.subr.mxu1 %v736_v51  ;;  %1768 = vmatpush1.msra.mxu0 %v479_v52  ;;  %v895_v50 = vld [vmem:[#allocation7 + $0x1530] sm:$0xff]  ;;  %v632_v51 = vld [vmem:[#allocation7 + $0xcf8] sm:$0xff] }
 0x208   :  { %1839 = vmatpush1.msra.mxu1 %v735_v54  ;;  %1769 = vmatprep.subr.mxu0 %v728_v55  ;;  %v888_v52 = vld [vmem:[#allocation7 + $0x14f8] sm:$0xff]  ;;  %v631_v54 = vld [vmem:[#allocation7 + $0xcf0] sm:$0xff]  ;;  %v5147_v55 = vld [vmem:[#allocation8] sm:$0xff] }
 0x209   :  { %1840 = vmatprep.subr.mxu1 %v984_v56  ;;  %1770 = vmatpush2.msra.mxu0 %v727_v9  ;;  %v1002_v56 = vrot.slane %v5147_v55, %v1001_v45  ;;  %v624_v9 = vld [vmem:[#allocation7 + $0xcb8] sm:$0xff]  ;;  %v615_v5 = vld [vmem:[#allocation7 + $0xc70] sm:$0xff] }
 0x20a   :  { %1841 = vmatpush2.msra.mxu1 %v983_v57  ;;  %1771 = vmatprep.subr.mxu0 %v720_v58  ;;  %v880_v57 = vld [vmem:[#allocation7 + $0x14b8] sm:$0xff]  ;;  %v1308_v58 = vpop.f32.mrf.mxu1  ;;  %v863_v18 = vld [vmem:[#allocation7 + $0x1430] sm:$0xff] }
 0x20b   :  { %1842 = vmatprep.subr.mxu1 %v976_v59  ;;  %1772 = vmatpush2.msra.mxu0 %v719_v61  ;;  %v623_v59 = vld [vmem:[#allocation7 + $0xcb0] sm:$0xff] }
 0x20c   :  { %1843 = vmatpush2.msra.mxu1 %v975_v0  ;;  %1773 = vmatprep.subr.mxu0 %v712_v2  ;;  %v879_v61 = vld [vmem:[#allocation7 + $0x14b0] sm:$0xff]  ;;  %v616_v0 = vld [vmem:[#allocation7 + $0xc78] sm:$0xff] }
 0x20d   :  { %1844 = vmatprep.subr.mxu1 %v968_v4  ;;  %1774 = vmatpush2.msra.mxu0 %v711_v6  ;;  %v872_v2 = vld [vmem:[#allocation7 + $0x1478] sm:$0xff]  ;;  %v4591_v4 = vpop.eup %4590  ;;  %v871_v6 = vld [vmem:[#allocation7 + $0x1470] sm:$0xff] }
 0x20e   :  { %1845 = vmatpush2.msra.mxu1 %v967_v8  ;;  %1775 = vmatprep.subr.mxu0 %v704_v10  ;;  %v1309_v10 = vadd.f32 %v1308_v58, %v1002_v56  ;;  %v2035_v56 = vld [vmem:[#allocation10 + $0x2a0] sm:$0xff]  ;;  %v1969_v58 = vld [vmem:[#allocation10 + $0x90] sm:$0xff] }
 0x20f   :  { %1846 = vmatprep.subr.mxu1 %v960_v11  ;;  %1776 = vmatpush2.msra.mxu0 %v703_v12  ;;  %v608_v11 = vld [vmem:[#allocation7 + $0xc38] sm:$0xff] }
 0x210   :  { %1847 = vmatpush2.msra.mxu1 %v959_v13  ;;  %1777 = vmatprep.subr.mxu0 %v696_v14  ;;  %v864_v12 = vld [vmem:[#allocation7 + $0x1438] sm:$0xff]  ;;  %v607_v13 = vld [vmem:[#allocation7 + $0xc30] sm:$0xff] }
 0x211   :  { %1848 = vmatprep.subr.mxu1 %v952_v16  ;;  %1778 = vmatpush2.msra.mxu0 %v695_v19  ;;  %v1936_v19 = vadd.f32 1.0, %v4591_v4 }
 0x212   :  { %1849 = vmatpush2.msra.mxu1 %v951_v20  ;;  %1779 = vmatprep.subr.mxu0 %v688_v21 }
 0x213   :  { %1850 = vmatprep.subr.mxu1 %v944_v22  ;;  %1780 = vmatpush2.msra.mxu0 %v687_v3  ;;  %v4633_v22 = vld [vmem:[#allocation2 + $0x18] sm:$0xff]  ;;  %v1982_v3 = vld [vmem:[#allocation10 + $0xf8] sm:$0xff] }
 0x214   :  { %1851 = vmatpush2.msra.mxu1 %v943_v63  ;;  %1781 = vmatprep.subr.mxu0 %v680_v23  ;;  %v2046_v63 = vld [vmem:[#allocation10 + $0x2f8] sm:$0xff]  ;;  %v1880_v23 = vmul.f32 0.5, %v5138_v36 }
 0x215   :  { %1852 = vmatprep.subr.mxu1 %v936_v24  ;;  %1782 = vmatpush2.msra.mxu0 %v679_v25  ;;  %v4634_v25 = vld [vmem:[#allocation2 + $0x10] sm:$0xff] }
 0x216   :  { %1853 = vmatpush2.msra.mxu1 %v935_v7  ;;  %1783 = vmatprep.subr.mxu0 %v672_v28  ;;  %v1944_v7 = vmul.f32 %v1936_v19, %v1880_v23  ;;  %v2045_v28 = vld [vmem:[#allocation10 + $0x2f0] sm:$0xff]  ;;  %v1962_v19 = vld [vmem:[#allocation10 + $0x58] sm:$0xff]  ;;  %v1959_v23 = vld [vmem:[#allocation10 + $0x40] sm:$0xff] }
 0x217   :  { %1854 = vmatprep.subr.mxu1 %v928_v30  ;;  %1784 = vmatpush2.msra.mxu0 %v671_v31  ;;  %v1980_v30 = vld [vmem:[#allocation10 + $0xe8] sm:$0xff] }
 0x218   :  { %1855 = vmatpush2.msra.mxu1 %v927_v32  ;;  %1785 = vmatprep.subr.mxu0 %v664_v29  ;;  %v2044_v32 = vld [vmem:[#allocation10 + $0x2e8] sm:$0xff]  ;;  %v1979_v29 = vld [vmem:[#allocation10 + $0xe0] sm:$0xff] }
 0x219   :  { %1856 = vmatprep.subr.mxu1 %v920_v33  ;;  %1786 = vmatpush2.msra.mxu0 %v663_v34  ;;  %v2043_v33 = vld [vmem:[#allocation10 + $0x2e0] sm:$0xff]  ;;  %v2042_v34 = vld [vmem:[#allocation10 + $0x2d8] sm:$0xff] }
 0x21a   :  { %1857 = vmatpush2.msra.mxu1 %v919_v35  ;;  %1787 = vmatprep.subr.mxu0 %v656_v37  ;;  %v1977_v35 = vld [vmem:[#allocation10 + $0xd0] sm:$0xff]  ;;  %v1976_v37 = vld [vmem:[#allocation10 + $0xc8] sm:$0xff] }
 0x21b   :  { %1858 = vmatprep.subr.mxu1 %v912_v38  ;;  %1788 = vmatpush2.msra.mxu0 %v655_v15  ;;  %v2040_v15 = vld [vmem:[#allocation10 + $0x2c8] sm:$0xff] }
 0x21c   :  { %1859 = vmatpush2.msra.mxu1 %v911_v40  ;;  %1789 = vmatprep.subr.mxu0 %v648_v41  ;;  %v1975_v40 = vld [vmem:[#allocation10 + $0xc0] sm:$0xff]  ;;  %v997_v41 = vsub.s32 2, %v5100_v53 }
 0x21d   :  { %1860 = vmatprep.subr.mxu1 %v904_v42  ;;  %1790 = vmatpush2.msra.mxu0 %v647_v26  ;;  %v2039_v42 = vld [vmem:[#allocation10 + $0x2c0] sm:$0xff]  ;;  %v1974_v26 = vld [vmem:[#allocation10 + $0xb8] sm:$0xff] }
 0x21e   :  { %1861 = vmatpush2.msra.mxu1 %v903_v44  ;;  %1791 = vmatprep.subr.mxu0 %v640_v46  ;;  %v2038_v46 = vld [vmem:[#allocation10 + $0x2b8] sm:$0xff] }
 0x21f   :  { %1862 = vmatprep.subr.mxu1 %v896_v47  ;;  %1792 = vmatpush2.msra.mxu0 %v639_v49  ;;  %v1973_v47 = vld [vmem:[#allocation10 + $0xb0] sm:$0xff] }
 0x220   :  { %1863 = vmatpush2.msra.mxu1 %v895_v50  ;;  %1793 = vmatprep.subr.mxu0 %v632_v51  ;;  %v2037_v49 = vld [vmem:[#allocation10 + $0x2b0] sm:$0xff]  ;;  %v1972_v50 = vld [vmem:[#allocation10 + $0xa8] sm:$0xff] }
 0x221   :  { %1864 = vmatprep.subr.mxu1 %v888_v52  ;;  %1794 = vmatpush2.msra.mxu0 %v631_v54  ;;  %v2036_v51 = vld [vmem:[#allocation10 + $0x2a8] sm:$0xff]  ;;  %v1971_v52 = vld [vmem:[#allocation10 + $0xa0] sm:$0xff] }
 0x222   :  { %1865 = vmatpush2.msra.mxu1 %v887_v27  ;;  %1795 = vmatprep.subr.mxu0 %v624_v9  ;;  %v998_v27 = vrot.slane %v5147_v55, %v997_v41  ;;  %v1970_v9 = vld [vmem:[#allocation10 + $0x98] sm:$0xff]  ;;  %v2031_v55 = vld [vmem:[#allocation10 + $0x280] sm:$0xff] }
 0x223   :  { %1866 = vmatprep.subr.mxu1 %v880_v57  ;;  %v5152_v8 = vpop.f32.mrf.mxu0  ;;  %1796 = vmatpush2.msra.mxu0 %v623_v59  ;;  %v2034_v57 = vld [vmem:[#allocation10 + $0x298] sm:$0xff]  ;;  %v2033_v59 = vld [vmem:[#allocation10 + $0x290] sm:$0xff] }
 0x224   :  { %1867 = vmatpush2.msra.mxu1 %v879_v61  ;;  %1797 = vmatprep.subr.mxu0 %v616_v0  ;;  %v1968_v61 = vld [vmem:[#allocation10 + $0x88] sm:$0xff]  ;;  %v1307_v4 = vadd.f32 %v5145_v48, %v998_v27  ;;  %v2027_v48 = vld [vmem:[#allocation10 + $0x260] sm:$0xff]  ;;  %v2077_v27 = vld [vmem:[#allocation10 + $0x3f0] sm:$0xff] }
 0x225   :  { %1868 = vmatprep.subr.mxu1 %v872_v2  ;;  %v5154_v14 = vpop.f32.mrf.mxu1  ;;  %v1379_v16 = vpop.f32.mrf.mxu0  ;;  %1798 = vmatpush2.msra.mxu0 %v615_v5  ;;  %v2032_v0 = vld [vmem:[#allocation10 + $0x288] sm:$0xff]  ;;  %v1967_v2 = vld [vmem:[#allocation10 + $0x80] sm:$0xff]  ;;  %v1966_v5 = vld [vmem:[#allocation10 + $0x78] sm:$0xff] }
 0x226   :  { %1869 = vmatpush2.msra.mxu1 %v871_v6  ;;  %v1380_v20 = vadd.f32 %v1379_v16, %v1309_v10  ;;  %1799 = vmatprep.subr.mxu0 %v608_v11  ;;  %v2030_v6 = vld [vmem:[#allocation10 + $0x278] sm:$0xff]  ;;  %v1965_v10 = vld [vmem:[#allocation10 + $0x70] sm:$0xff]  ;;  %v1378_v11 = vadd.f32 %v5152_v8, %v1307_v4  ;;  %v2028_v16 = vld [vmem:[#allocation10 + $0x268] sm:$0xff] }
 0x227   :  { %1870 = vmatprep.subr.mxu1 %v864_v12  ;;  %v1450_v21 = vpop.f32.mrf.mxu1  ;;  %1800 = vmatpush2.msra.mxu0 %v607_v13  ;;  %v2029_v12 = vld [vmem:[#allocation10 + $0x270] sm:$0xff]  ;;  %v1964_v13 = vld [vmem:[#allocation10 + $0x68] sm:$0xff] }
 0x228   :  { %1801 = vmatprep.mubr.f32.mxu0 %v4633_v22  ;;  %v5157_v24 = vadd.f32 %v1450_v21, %v1380_v20  ;;  %1871 = vmatpush2.msra.mxu1 %v863_v18  ;;  %v1963_v18 = vld [vmem:[#allocation10 + $0x60] sm:$0xff]  ;;  %v2026_v20 = vld [vmem:[#allocation10 + $0x258] sm:$0xff]  ;;  %v1961_v21 = vld [vmem:[#allocation10 + $0x50] sm:$0xff]  ;;  %v5172_v22 = vadd.f32 %v5154_v14, %v1378_v11 }
 0x229   :  { %1872 = vmatprep.mubr.f32.mxu1 %v5124_v17  ;;  %1802 = vmatmul.mubr.f32.vlgmr.msra.gmra.mxu0 %v4634_v25  ;;  %v1978_v17 = vld [vmem:[#allocation10 + $0xd8] sm:$0xff]  ;;  %v2025_v8 = vld [vmem:[#allocation10 + $0x250] sm:$0xff]  ;;  %v2071_v11 = vld [vmem:[#allocation10 + $0x3c0] sm:$0xff] }
 0x22a   :  { %1873 = vmatmul.mubr.f32.vlgmr.msra.gmra.mxu1 %v5127_v43  ;;  %v1890_v31 = vmul.f32 0.044715, %v5157_v24  ;;  %2219 = vmatprep.subr.mxu0 %v1982_v3  ;;  %v2041_v43 = vld [vmem:[#allocation10 + $0x2d0] sm:$0xff]  ;;  %v1960_v3 = vld [vmem:[#allocation10 + $0x48] sm:$0xff]  ;;  %v1958_v25 = vld [vmem:[#allocation10 + $0x38] sm:$0xff] }
 0x22b   :  { %2290 = vmatprep.subr.mxu1 %v2046_v63  ;;  %2220 = vmatpush1.msra.mxu0 %v1981_v1  ;;  %v2024_v63 = vld [vmem:[#allocation10 + $0x248] sm:$0xff]  ;;  %v2023_v1 = vld [vmem:[#allocation10 + $0x240] sm:$0xff]  ;;  %v1889_v14 = vmul.f32 0.044715, %v5172_v22  ;;  %v2009_v4 = vld [vmem:[#allocation10 + $0x1d0] sm:$0xff] }
 0x22c   :  { %2283 = vmatprep.mubr.f32.mxu0 %v1944_v7  ;;  %v1898_v36 = vmul.f32 %v1890_v31, %v5157_v24  ;;  %2291 = vmatpush1.msra.mxu1 %v2045_v28  ;;  %v1887_v7 = vmul.f32 0.044715, %v5122_v39  ;;  %v2022_v28 = vld [vmem:[#allocation10 + $0x238] sm:$0xff]  ;;  %v2021_v31 = vld [vmem:[#allocation10 + $0x230] sm:$0xff] }
 0x22d   :  { %2221 = vmatprep.subr.mxu0 %v1980_v30  ;;  %2292 = vmatprep.subr.mxu1 %v2044_v32  ;;  %v1957_v30 = vld [vmem:[#allocation10 + $0x30] sm:$0xff]  ;;  %v1956_v32 = vld [vmem:[#allocation10 + $0x28] sm:$0xff] }
 0x22e   :  { %2222 = vmatpush1.msra.mxu0 %v1979_v29  ;;  %v1906_v38 = vmul.f32 %v1898_v36, %v5157_v24  ;;  %2293 = vmatpush1.msra.mxu1 %v2043_v33  ;;  %v2020_v29 = vld [vmem:[#allocation10 + $0x228] sm:$0xff]  ;;  %v1955_v36 = vld [vmem:[#allocation10 + $0x20] sm:$0xff] }
 0x22f   :  { %2223 = vmatprep.subr.mxu0 %v1978_v17  ;;  %2294 = vmatprep.subr.mxu1 %v2042_v34  ;;  %v2019_v17 = vld [vmem:[#allocation10 + $0x220] sm:$0xff]  ;;  %v1954_v34 = vld [vmem:[#allocation10 + $0x18] sm:$0xff] }
 0x230   :  { %2224 = vmatpush1.msra.mxu0 %v1977_v35  ;;  %v1914_v44 = vadd.f32 %v1906_v38, %v5157_v24  ;;  %2295 = vmatpush1.msra.mxu1 %v2041_v43  ;;  %v1895_v35 = vmul.f32 %v1887_v7, %v5122_v39  ;;  %v2018_v43 = vld [vmem:[#allocation10 + $0x218] sm:$0xff]  ;;  %v1897_v38 = vmul.f32 %v1889_v14, %v5172_v22  ;;  %v2000_v7 = vld [vmem:[#allocation10 + $0x188] sm:$0xff]  ;;  %v2063_v14 = vld [vmem:[#allocation10 + $0x380] sm:$0xff] }
 0x231   :  { %2225 = vmatprep.subr.mxu0 %v1976_v37  ;;  %2296 = vmatprep.subr.mxu1 %v2040_v15  ;;  %v1953_v37 = vld [vmem:[#allocation10 + $0x10] sm:$0xff] }
 0x232   :  { %2226 = vmatpush1.msra.mxu0 %v1975_v40  ;;  %2297 = vmatpush1.msra.mxu1 %v2039_v42  ;;  %v1922_v54 = vmul.f32 0.7978846, %v1914_v44  ;;  %v2017_v15 = vld [vmem:[#allocation10 + $0x210] sm:$0xff]  ;;  %v1952_v40 = vld [vmem:[#allocation10 + $0x8] sm:$0xff] }
 0x233   :  { %2227 = vmatprep.subr.mxu0 %v1974_v26  ;;  %2298 = vmatprep.subr.mxu1 %v2038_v46  ;;  %v2016_v42 = vld [vmem:[#allocation10 + $0x208] sm:$0xff]  ;;  %v1951_v26 = vld [vmem:[#allocation10] sm:$0xff] }
 0x234   :  { %2228 = vmatpush1.msra.mxu0 %v1973_v47  ;;  %2299 = vmatpush1.msra.mxu1 %v2037_v49  ;;  %4592 = vtanh.f32 %v1922_v54  ;;  %v2015_v46 = vld [vmem:[#allocation10 + $0x200] sm:$0xff]  ;;  %v2014_v47 = vld [vmem:[#allocation10 + $0x1f8] sm:$0xff]  ;;  %v1903_v49 = vmul.f32 %v1895_v35, %v5122_v39  ;;  %v1905_v54 = vmul.f32 %v1897_v38, %v5172_v22  ;;  %v1993_v38 = vld [vmem:[#allocation10 + $0x150] sm:$0xff] }
 0x235   :  { %2229 = vmatprep.subr.mxu0 %v1972_v50  ;;  %2300 = vmatprep.subr.mxu1 %v2036_v51  ;;  %v2078_v50 = vld [vmem:[#allocation10 + $0x3f8] sm:$0xff]  ;;  %v2013_v51 = vld [vmem:[#allocation10 + $0x1f0] sm:$0xff]  ;;  %v2059_v35 = vld [vmem:[#allocation10 + $0x360] sm:$0xff] }
 0x236   :  { %2230 = vmatpush1.msra.mxu0 %v1971_v52  ;;  %2301 = vmatpush1.msra.mxu1 %v2035_v56  ;;  %v1882_v52 = vmul.f32 0.5, %v5157_v24  ;;  %v2012_v56 = vld [vmem:[#allocation10 + $0x1e8] sm:$0xff]  ;;  %v2074_v24 = vld [vmem:[#allocation10 + $0x3d8] sm:$0xff] }
 0x237   :  { %2231 = vmatprep.subr.mxu0 %v1970_v9  ;;  %2302 = vmatprep.subr.mxu1 %v2034_v57  ;;  %v2076_v9 = vld [vmem:[#allocation10 + $0x3e8] sm:$0xff]  ;;  %v2011_v57 = vld [vmem:[#allocation10 + $0x1e0] sm:$0xff] }
 0x238   :  { %2232 = vmatpush1.msra.mxu0 %v1969_v58  ;;  %2303 = vmatpush1.msra.mxu1 %v2033_v59  ;;  %v2075_v59 = vld [vmem:[#allocation10 + $0x3e0] sm:$0xff] }
 0x239   :  { %2233 = vmatprep.subr.mxu0 %v1968_v61  ;;  %2304 = vmatprep.subr.mxu1 %v2032_v0  ;;  %v1911_v61 = vadd.f32 %v1903_v49, %v5122_v39  ;;  %v2010_v0 = vld [vmem:[#allocation10 + $0x1d8] sm:$0xff] }
 0x23a   :  { %2234 = vmatpush1.msra.mxu0 %v1967_v2  ;;  %2305 = vmatpush1.msra.mxu1 %v2031_v55  ;;  %v1913_v2 = vadd.f32 %v1905_v54, %v5172_v22  ;;  %v2073_v55 = vld [vmem:[#allocation10 + $0x3d0] sm:$0xff]  ;;  %v1988_v54 = vld [vmem:[#allocation10 + $0x128] sm:$0xff] }
 0x23b   :  { %2235 = vmatprep.subr.mxu0 %v1966_v5  ;;  %2306 = vmatprep.subr.mxu1 %v2030_v6  ;;  %v2008_v5 = vld [vmem:[#allocation10 + $0x1c8] sm:$0xff] }
 0x23c   :  { %2236 = vmatpush1.msra.mxu0 %v1965_v10  ;;  %2307 = vmatpush1.msra.mxu1 %v2029_v12  ;;  %v2072_v6 = vld [vmem:[#allocation10 + $0x3c8] sm:$0xff]  ;;  %v2007_v10 = vld [vmem:[#allocation10 + $0x1c0] sm:$0xff]  ;;  %v2006_v12 = vld [vmem:[#allocation10 + $0x1b8] sm:$0xff] }
 0x23d   :  { %2237 = vmatprep.subr.mxu0 %v1964_v13  ;;  %2308 = vmatprep.subr.mxu1 %v2028_v16  ;;  %v2070_v13 = vld [vmem:[#allocation10 + $0x3b8] sm:$0xff]  ;;  %v1919_v16 = vmul.f32 0.7978846, %v1911_v61  ;;  %v2049_v61 = vld [vmem:[#allocation10 + $0x310] sm:$0xff] }
 0x23e   :  { %2238 = vmatpush1.msra.mxu0 %v1963_v18  ;;  %2309 = vmatpush1.msra.mxu1 %v2027_v48  ;;  %v2005_v18 = vld [vmem:[#allocation10 + $0x1b0] sm:$0xff] }
 0x23f   :  { %2239 = vmatprep.subr.mxu0 %v1962_v19  ;;  %2310 = vmatprep.subr.mxu1 %v2026_v20  ;;  %v2069_v48 = vld [vmem:[#allocation10 + $0x3b0] sm:$0xff]  ;;  %v1921_v19 = vmul.f32 0.7978846, %v1913_v2  ;;  %v2004_v20 = vld [vmem:[#allocation10 + $0x1a8] sm:$0xff]  ;;  %4594 = vtanh.f32 %v1919_v16  ;;  %v2174_v16 = vld [vmem:[#allocation10 + $0x6f8] sm:$0xff] }
 0x240   :  { %2240 = vmatpush1.msra.mxu0 %v1961_v21  ;;  %2311 = vmatpush1.msra.mxu1 %v2025_v8  ;;  %v2068_v21 = vld [vmem:[#allocation10 + $0x3a8] sm:$0xff]  ;;  %v2003_v8 = vld [vmem:[#allocation10 + $0x1a0] sm:$0xff] }
 0x241   :  { %2241 = vmatprep.subr.mxu0 %v1960_v3  ;;  %2312 = vmatprep.subr.mxu1 %v2024_v63  ;;  %v4593_v33 = vpop.eup %4592  ;;  %v2067_v3 = vld [vmem:[#allocation10 + $0x3a0] sm:$0xff]  ;;  %v2002_v63 = vld [vmem:[#allocation10 + $0x198] sm:$0xff]  ;;  %4596 = vtanh.f32 %v1921_v19  ;;  %v1984_v2 = vld [vmem:[#allocation10 + $0x108] sm:$0xff] }
 0x242   :  { %2242 = vmatpush1.msra.mxu0 %v1959_v23  ;;  %2313 = vmatpush1.msra.mxu1 %v2023_v1  ;;  %v1938_v44 = vadd.f32 1.0, %v4593_v33  ;;  %v2066_v23 = vld [vmem:[#allocation10 + $0x398] sm:$0xff]  ;;  %v2001_v1 = vld [vmem:[#allocation10 + $0x190] sm:$0xff]  ;;  %v1996_v33 = vld [vmem:[#allocation10 + $0x168] sm:$0xff] }
 0x243   :  { %2243 = vmatprep.subr.mxu0 %v1958_v25  ;;  %2314 = vmatprep.subr.mxu1 %v2022_v28  ;;  %v2065_v25 = vld [vmem:[#allocation10 + $0x390] sm:$0xff]  ;;  %v2064_v28 = vld [vmem:[#allocation10 + $0x388] sm:$0xff] }
 0x244   :  { %2244 = vmatpush1.msra.mxu0 %v1957_v30  ;;  %2315 = vmatpush1.msra.mxu1 %v2021_v31  ;;  %v1946_v58 = vmul.f32 %v1938_v44, %v1882_v52  ;;  %v1999_v30 = vld [vmem:[#allocation10 + $0x180] sm:$0xff]  ;;  %v1998_v31 = vld [vmem:[#allocation10 + $0x178] sm:$0xff]  ;;  %v2108_v19 = vld [vmem:[#allocation10 + $0x4e8] sm:$0xff] }
 0x245   :  { %2245 = vmatprep.subr.mxu0 %v1956_v32  ;;  %2316 = vmatprep.subr.mxu1 %v2020_v29  ;;  %v2062_v32 = vld [vmem:[#allocation10 + $0x378] sm:$0xff]  ;;  %v1997_v29 = vld [vmem:[#allocation10 + $0x170] sm:$0xff]  ;;  %v2055_v44 = vld [vmem:[#allocation10 + $0x340] sm:$0xff] }
 0x246   :  { %2246 = vmatpush1.msra.mxu0 %v1955_v36  ;;  %2317 = vmatpush1.msra.mxu1 %v2019_v17  ;;  %v2061_v36 = vld [vmem:[#allocation10 + $0x370] sm:$0xff]  ;;  %v2060_v17 = vld [vmem:[#allocation10 + $0x368] sm:$0xff] }
 0x247   :  { %2247 = vmatprep.subr.mxu0 %v1954_v34  ;;  %2318 = vmatprep.subr.mxu1 %v2018_v43  ;;  %v1995_v34 = vld [vmem:[#allocation10 + $0x160] sm:$0xff]  ;;  %v1994_v43 = vld [vmem:[#allocation10 + $0x158] sm:$0xff] }
 0x248   :  { %2248 = vmatpush1.msra.mxu0 %v1953_v37  ;;  %2319 = vmatpush1.msra.mxu1 %v2017_v15  ;;  %v2058_v37 = vld [vmem:[#allocation10 + $0x358] sm:$0xff]  ;;  %v2057_v15 = vld [vmem:[#allocation10 + $0x350] sm:$0xff] }
 0x249   :  { %2249 = vmatprep.subr.mxu0 %v1952_v40  ;;  %2320 = vmatprep.subr.mxu1 %v2016_v42  ;;  %v1992_v40 = vld [vmem:[#allocation10 + $0x148] sm:$0xff] }
 0x24a   :  { %2250 = vmatpush1.msra.mxu0 %v1951_v26  ;;  %2321 = vmatpush1.msra.mxu1 %v2015_v46  ;;  %v2056_v42 = vld [vmem:[#allocation10 + $0x348] sm:$0xff]  ;;  %v1991_v26 = vld [vmem:[#allocation10 + $0x140] sm:$0xff]  ;;  %v1990_v46 = vld [vmem:[#allocation10 + $0x138] sm:$0xff] }
 0x24b   :  { %2251 = vmatprep.subr.mxu0 %v2014_v47  ;;  %2322 = vmatprep.subr.mxu1 %v2078_v50  ;;  %v2054_v47 = vld [vmem:[#allocation10 + $0x338] sm:$0xff]  ;;  %v1989_v50 = vld [vmem:[#allocation10 + $0x130] sm:$0xff] }
 0x24c   :  { %2252 = vmatpush2.msra.mxu0 %v2013_v51  ;;  %2323 = vmatpush2.msra.mxu1 %v2077_v27  ;;  %v4595_v49 = vpop.eup %4594  ;;  %v2053_v51 = vld [vmem:[#allocation10 + $0x330] sm:$0xff]  ;;  %v2052_v27 = vld [vmem:[#allocation10 + $0x328] sm:$0xff] }
 0x24d   :  { %2253 = vmatprep.subr.mxu0 %v2012_v56  ;;  %2324 = vmatprep.subr.mxu1 %v2076_v9  ;;  %v1987_v56 = vld [vmem:[#allocation10 + $0x120] sm:$0xff] }
 0x24e   :  { %2254 = vmatpush2.msra.mxu0 %v2011_v57  ;;  %2325 = vmatpush2.msra.mxu1 %v2075_v59  ;;  %v4597_v52 = vpop.eup %4596  ;;  %v2051_v9 = vld [vmem:[#allocation10 + $0x320] sm:$0xff]  ;;  %v1986_v57 = vld [vmem:[#allocation10 + $0x118] sm:$0xff]  ;;  %v1985_v59 = vld [vmem:[#allocation10 + $0x110] sm:$0xff] }
 0x24f   :  { %2354 = vmatprep.mubr.f32.mxu1 %v1946_v58  ;;  %2255 = vmatprep.subr.mxu0 %v2010_v0  ;;  %v2050_v58 = vld [vmem:[#allocation10 + $0x318] sm:$0xff]  ;;  %v1935_v0 = vadd.f32 1.0, %v4595_v49  ;;  %v2156_v49 = vld [vmem:[#allocation10 + $0x668] sm:$0xff] }
 0x250   :  { %2326 = vmatprep.subr.mxu1 %v2074_v24  ;;  %2256 = vmatpush2.msra.mxu0 %v2009_v4  ;;  %v1937_v24 = vadd.f32 1.0, %v4597_v52  ;;  %v2048_v4 = vld [vmem:[#allocation10 + $0x308] sm:$0xff]  ;;  %v2090_v52 = vld [vmem:[#allocation10 + $0x458] sm:$0xff] }
 0x251   :  { %2327 = vmatpush2.msra.mxu1 %v2073_v55  ;;  %2257 = vmatprep.subr.mxu0 %v2008_v5  ;;  %v1983_v55 = vld [vmem:[#allocation10 + $0x100] sm:$0xff] }
 0x252   :  { %2328 = vmatprep.subr.mxu1 %v2072_v6  ;;  %2258 = vmatpush2.msra.mxu0 %v2007_v10  ;;  %v2047_v5 = vld [vmem:[#allocation10 + $0x300] sm:$0xff]  ;;  %v1879_v6 = vmul.f32 0.5, %v5122_v39  ;;  %v1881_v10 = vmul.f32 0.5, %v5172_v22 }
 0x253   :  { %2329 = vmatpush2.msra.mxu1 %v2071_v11  ;;  %2259 = vmatprep.subr.mxu0 %v2006_v12  ;;  %v2107_v39 = vld [vmem:[#allocation10 + $0x4e0] sm:$0xff] }
 0x254   :  { %2330 = vmatprep.subr.mxu1 %v2070_v13  ;;  %2260 = vmatpush2.msra.mxu0 %v2005_v18  ;;  %v1943_v11 = vmul.f32 %v1935_v0, %v1879_v6  ;;  %v1945_v12 = vmul.f32 %v1937_v24, %v1881_v10  ;;  %v2110_v13 = vld [vmem:[#allocation10 + $0x4f8] sm:$0xff]  ;;  %v2109_v18 = vld [vmem:[#allocation10 + $0x4f0] sm:$0xff]  ;;  %v2171_v22 = vld [vmem:[#allocation10 + $0x6e0] sm:$0xff] }
 0x255   :  { %2331 = vmatpush2.msra.mxu1 %v2069_v48  ;;  %2261 = vmatprep.subr.mxu0 %v2004_v20  ;;  %v2173_v48 = vld [vmem:[#allocation10 + $0x6f0] sm:$0xff]  ;;  %v2172_v20 = vld [vmem:[#allocation10 + $0x6e8] sm:$0xff]  ;;  %v2150_v0 = vld [vmem:[#allocation10 + $0x638] sm:$0xff] }
 0x256   :  { %2332 = vmatprep.subr.mxu1 %v2068_v21  ;;  %2262 = vmatpush2.msra.mxu0 %v2003_v8  ;;  %v2106_v21 = vld [vmem:[#allocation10 + $0x4d8] sm:$0xff]  ;;  %v2085_v24 = vld [vmem:[#allocation10 + $0x430] sm:$0xff]  ;;  %v2147_v6 = vld [vmem:[#allocation10 + $0x620] sm:$0xff] }
 0x257   :  { %2333 = vmatpush2.msra.mxu1 %v2067_v3  ;;  %2263 = vmatprep.subr.mxu0 %v2002_v63  ;;  %v2170_v8 = vld [vmem:[#allocation10 + $0x6d8] sm:$0xff]  ;;  %v2105_v3 = vld [vmem:[#allocation10 + $0x4d0] sm:$0xff] }
 0x258   :  { %2334 = vmatprep.subr.mxu1 %v2066_v23  ;;  %2264 = vmatpush2.msra.mxu0 %v2001_v1  ;;  %v2169_v63 = vld [vmem:[#allocation10 + $0x6d0] sm:$0xff]  ;;  %v2104_v23 = vld [vmem:[#allocation10 + $0x4c8] sm:$0xff]  ;;  %v2082_v10 = vld [vmem:[#allocation10 + $0x418] sm:$0xff] }
 0x259   :  { %2335 = vmatpush2.msra.mxu1 %v2065_v25  ;;  %2265 = vmatprep.subr.mxu0 %v2000_v7  ;;  %v2168_v1 = vld [vmem:[#allocation10 + $0x6c8] sm:$0xff]  ;;  %v2103_v25 = vld [vmem:[#allocation10 + $0x4c0] sm:$0xff] }
 0x25a   :  { %2336 = vmatprep.subr.mxu1 %v2064_v28  ;;  %2266 = vmatpush2.msra.mxu0 %v1999_v30  ;;  %v2167_v7 = vld [vmem:[#allocation10 + $0x6c0] sm:$0xff]  ;;  %v2102_v28 = vld [vmem:[#allocation10 + $0x4b8] sm:$0xff] }
 0x25b   :  { %2337 = vmatpush2.msra.mxu1 %v2063_v14  ;;  %2267 = vmatprep.subr.mxu0 %v1998_v31  ;;  %v2166_v30 = vld [vmem:[#allocation10 + $0x6b8] sm:$0xff]  ;;  %v2101_v14 = vld [vmem:[#allocation10 + $0x4b0] sm:$0xff] }
 0x25c   :  { %2338 = vmatprep.subr.mxu1 %v2062_v32  ;;  %2268 = vmatpush2.msra.mxu0 %v1997_v29  ;;  %v2165_v31 = vld [vmem:[#allocation10 + $0x6b0] sm:$0xff]  ;;  %v2100_v32 = vld [vmem:[#allocation10 + $0x4a8] sm:$0xff] }
 0x25d   :  { %2339 = vmatpush2.msra.mxu1 %v2061_v36  ;;  %2269 = vmatprep.subr.mxu0 %v1996_v33  ;;  %v2164_v29 = vld [vmem:[#allocation10 + $0x6a8] sm:$0xff]  ;;  %v2099_v36 = vld [vmem:[#allocation10 + $0x4a0] sm:$0xff] }
 0x25e   :  { %2340 = vmatprep.subr.mxu1 %v2060_v17  ;;  %2270 = vmatpush2.msra.mxu0 %v1995_v34  ;;  %v2163_v33 = vld [vmem:[#allocation10 + $0x6a0] sm:$0xff]  ;;  %v2098_v17 = vld [vmem:[#allocation10 + $0x498] sm:$0xff] }
 0x25f   :  { %2341 = vmatpush2.msra.mxu1 %v2059_v35  ;;  %2271 = vmatprep.subr.mxu0 %v1994_v43  ;;  %v2162_v34 = vld [vmem:[#allocation10 + $0x698] sm:$0xff]  ;;  %v2097_v35 = vld [vmem:[#allocation10 + $0x490] sm:$0xff] }
 0x260   :  { %2342 = vmatprep.subr.mxu1 %v2058_v37  ;;  %2272 = vmatpush2.msra.mxu0 %v1993_v38  ;;  %v2161_v43 = vld [vmem:[#allocation10 + $0x690] sm:$0xff]  ;;  %v2096_v37 = vld [vmem:[#allocation10 + $0x488] sm:$0xff] }
 0x261   :  { %2343 = vmatpush2.msra.mxu1 %v2057_v15  ;;  %2273 = vmatprep.subr.mxu0 %v1992_v40  ;;  %v2160_v38 = vld [vmem:[#allocation10 + $0x688] sm:$0xff]  ;;  %v2095_v15 = vld [vmem:[#allocation10 + $0x480] sm:$0xff] }
 0x262   :  { %2344 = vmatprep.subr.mxu1 %v2056_v42  ;;  %2274 = vmatpush2.msra.mxu0 %v1991_v26  ;;  %v2159_v40 = vld [vmem:[#allocation10 + $0x680] sm:$0xff]  ;;  %v2094_v42 = vld [vmem:[#allocation10 + $0x478] sm:$0xff] }
 0x263   :  { %2345 = vmatpush2.msra.mxu1 %v2055_v44  ;;  %2275 = vmatprep.subr.mxu0 %v1990_v46  ;;  %v2158_v26 = vld [vmem:[#allocation10 + $0x678] sm:$0xff]  ;;  %v2093_v44 = vld [vmem:[#allocation10 + $0x470] sm:$0xff] }
 0x264   :  { %2346 = vmatprep.subr.mxu1 %v2054_v47  ;;  %2276 = vmatpush2.msra.mxu0 %v1989_v50  ;;  %v2157_v46 = vld [vmem:[#allocation10 + $0x670] sm:$0xff]  ;;  %v2092_v47 = vld [vmem:[#allocation10 + $0x468] sm:$0xff]  ;;  %v2091_v50 = vld [vmem:[#allocation10 + $0x460] sm:$0xff] }
 0x265   :  { %2347 = vmatpush2.msra.mxu1 %v2053_v51  ;;  %2277 = vmatprep.subr.mxu0 %v1988_v54  ;;  %v2155_v51 = vld [vmem:[#allocation10 + $0x660] sm:$0xff]  ;;  %v2154_v54 = vld [vmem:[#allocation10 + $0x658] sm:$0xff] }
 0x266   :  { %2348 = vmatprep.subr.mxu1 %v2052_v27  ;;  %2278 = vmatpush2.msra.mxu0 %v1987_v56  ;;  %v2089_v27 = vld [vmem:[#allocation10 + $0x450] sm:$0xff] }
 0x267   :  { %2349 = vmatpush2.msra.mxu1 %v2051_v9  ;;  %2279 = vmatprep.subr.mxu0 %v1986_v57  ;;  %v2153_v56 = vld [vmem:[#allocation10 + $0x650] sm:$0xff]  ;;  %v2088_v9 = vld [vmem:[#allocation10 + $0x448] sm:$0xff] }
 0x268   :  { %2350 = vmatprep.subr.mxu1 %v2050_v58  ;;  %2280 = vmatpush2.msra.mxu0 %v1985_v59  ;;  %v2152_v57 = vld [vmem:[#allocation10 + $0x648] sm:$0xff]  ;;  %v2087_v58 = vld [vmem:[#allocation10 + $0x440] sm:$0xff] }
 0x269   :  { %2351 = vmatpush2.msra.mxu1 %v2049_v61  ;;  %2281 = vmatprep.subr.mxu0 %v1984_v2  ;;  %v2151_v59 = vld [vmem:[#allocation10 + $0x640] sm:$0xff]  ;;  %v2086_v61 = vld [vmem:[#allocation10 + $0x438] sm:$0xff]  ;;  %v2149_v2 = vld [vmem:[#allocation10 + $0x630] sm:$0xff] }
 0x26a   :  { %2352 = vmatprep.subr.mxu1 %v2048_v4  ;;  %2282 = vmatpush2.msra.mxu0 %v1983_v55  ;;  %v2084_v4 = vld [vmem:[#allocation10 + $0x428] sm:$0xff] }
 0x26b   :  { %2353 = vmatpush2.msra.mxu1 %v2047_v5  ;;  %2284 = vmatmul.mubr.f32.vlgmr.msra.gmra.mxu0 %v1943_v11  ;;  %v2148_v55 = vld [vmem:[#allocation10 + $0x628] sm:$0xff]  ;;  %v2083_v5 = vld [vmem:[#allocation10 + $0x420] sm:$0xff]  ;;  %v2146_v11 = vld [vmem:[#allocation10 + $0x618] sm:$0xff] }
 0x26c   :  { %2355 = vmatmul.mubr.f32.vlgmr.msra.gmra.mxu1 %v1945_v12  ;;  %2361 = vmatprep.subr.mxu0 %v2110_v13  ;;  %v2081_v12 = vld [vmem:[#allocation10 + $0x410] sm:$0xff] }
 0x26d   :  { %2432 = vmatprep.subr.mxu1 %v2174_v16  ;;  %2362 = vmatpush1.msra.mxu0 %v2109_v18  ;;  %v2145_v13 = vld [vmem:[#allocation10 + $0x610] sm:$0xff]  ;;  %v2080_v16 = vld [vmem:[#allocation10 + $0x408] sm:$0xff] }
 0x26e   :  { %2433 = vmatpush1.msra.mxu1 %v2173_v48  ;;  %2363 = vmatprep.subr.mxu0 %v2108_v19  ;;  %v2144_v18 = vld [vmem:[#allocation10 + $0x608] sm:$0xff]  ;;  %v2079_v48 = vld [vmem:[#allocation10 + $0x400] sm:$0xff] }
 0x26f   :  { %2434 = vmatprep.subr.mxu1 %v2172_v20  ;;  %2364 = vmatpush1.msra.mxu0 %v2107_v39  ;;  %v2143_v19 = vld [vmem:[#allocation10 + $0x600] sm:$0xff]  ;;  %v2142_v20 = vld [vmem:[#allocation10 + $0x5f8] sm:$0xff] }
 0x270   :  { %2435 = vmatpush1.msra.mxu1 %v2171_v22  ;;  %2365 = vmatprep.subr.mxu0 %v2106_v21  ;;  %v2206_v39 = vld [vmem:[#allocation10 + $0x7f8] sm:$0xff]  ;;  %v2141_v22 = vld [vmem:[#allocation10 + $0x5f0] sm:$0xff] }
 0x271   :  { %2436 = vmatprep.subr.mxu1 %v2170_v8  ;;  %2366 = vmatpush1.msra.mxu0 %v2105_v3  ;;  %v2205_v21 = vld [vmem:[#allocation10 + $0x7f0] sm:$0xff]  ;;  %v2140_v8 = vld [vmem:[#allocation10 + $0x5e8] sm:$0xff] }
 0x272   :  { %2437 = vmatpush1.msra.mxu1 %v2169_v63  ;;  %2367 = vmatprep.subr.mxu0 %v2104_v23  ;;  %v2204_v3 = vld [vmem:[#allocation10 + $0x7e8] sm:$0xff]  ;;  %v2139_v63 = vld [vmem:[#allocation10 + $0x5e0] sm:$0xff] }
 0x273   :  { %2438 = vmatprep.subr.mxu1 %v2168_v1  ;;  %2368 = vmatpush1.msra.mxu0 %v2103_v25  ;;  %v2203_v23 = vld [vmem:[#allocation10 + $0x7e0] sm:$0xff]  ;;  %v2138_v1 = vld [vmem:[#allocation10 + $0x5d8] sm:$0xff] }
 0x274   :  { %2439 = vmatpush1.msra.mxu1 %v2167_v7  ;;  %2369 = vmatprep.subr.mxu0 %v2102_v28  ;;  %v2202_v25 = vld [vmem:[#allocation10 + $0x7d8] sm:$0xff]  ;;  %v2137_v7 = vld [vmem:[#allocation10 + $0x5d0] sm:$0xff] }
 0x275   :  { %2440 = vmatprep.subr.mxu1 %v2166_v30  ;;  %2370 = vmatpush1.msra.mxu0 %v2101_v14  ;;  %v2201_v28 = vld [vmem:[#allocation10 + $0x7d0] sm:$0xff]  ;;  %v2136_v30 = vld [vmem:[#allocation10 + $0x5c8] sm:$0xff] }
 0x276   :  { %2441 = vmatpush1.msra.mxu1 %v2165_v31  ;;  %2371 = vmatprep.subr.mxu0 %v2100_v32  ;;  %v2200_v14 = vld [vmem:[#allocation10 + $0x7c8] sm:$0xff]  ;;  %v2135_v31 = vld [vmem:[#allocation10 + $0x5c0] sm:$0xff] }
 0x277   :  { %2442 = vmatprep.subr.mxu1 %v2164_v29  ;;  %2372 = vmatpush1.msra.mxu0 %v2099_v36  ;;  %v2199_v32 = vld [vmem:[#allocation10 + $0x7c0] sm:$0xff]  ;;  %v2134_v29 = vld [vmem:[#allocation10 + $0x5b8] sm:$0xff] }
 0x278   :  { %2443 = vmatpush1.msra.mxu1 %v2163_v33  ;;  %2373 = vmatprep.subr.mxu0 %v2098_v17  ;;  %v2198_v36 = vld [vmem:[#allocation10 + $0x7b8] sm:$0xff]  ;;  %v2133_v33 = vld [vmem:[#allocation10 + $0x5b0] sm:$0xff] }
 0x279   :  { %2444 = vmatprep.subr.mxu1 %v2162_v34  ;;  %2374 = vmatpush1.msra.mxu0 %v2097_v35  ;;  %v2197_v17 = vld [vmem:[#allocation10 + $0x7b0] sm:$0xff]  ;;  %v2132_v34 = vld [vmem:[#allocation10 + $0x5a8] sm:$0xff] }
 0x27a   :  { %2445 = vmatpush1.msra.mxu1 %v2161_v43  ;;  %2375 = vmatprep.subr.mxu0 %v2096_v37  ;;  %v2196_v35 = vld [vmem:[#allocation10 + $0x7a8] sm:$0xff]  ;;  %v2131_v43 = vld [vmem:[#allocation10 + $0x5a0] sm:$0xff] }
 0x27b   :  { %2446 = vmatprep.subr.mxu1 %v2160_v38  ;;  %2376 = vmatpush1.msra.mxu0 %v2095_v15  ;;  %v2195_v37 = vld [vmem:[#allocation10 + $0x7a0] sm:$0xff]  ;;  %v2130_v38 = vld [vmem:[#allocation10 + $0x598] sm:$0xff] }
 0x27c   :  { %2447 = vmatpush1.msra.mxu1 %v2159_v40  ;;  %2377 = vmatprep.subr.mxu0 %v2094_v42  ;;  %v2194_v15 = vld [vmem:[#allocation10 + $0x798] sm:$0xff]  ;;  %v2129_v40 = vld [vmem:[#allocation10 + $0x590] sm:$0xff] }
 0x27d   :  { %2448 = vmatprep.subr.mxu1 %v2158_v26  ;;  %2378 = vmatpush1.msra.mxu0 %v2093_v44  ;;  %v2193_v42 = vld [vmem:[#allocation10 + $0x790] sm:$0xff]  ;;  %v2128_v26 = vld [vmem:[#allocation10 + $0x588] sm:$0xff] }
 0x27e   :  { %2449 = vmatpush1.msra.mxu1 %v2157_v46  ;;  %2379 = vmatprep.subr.mxu0 %v2092_v47  ;;  %v2192_v44 = vld [vmem:[#allocation10 + $0x788] sm:$0xff]  ;;  %v2127_v46 = vld [vmem:[#allocation10 + $0x580] sm:$0xff] }
 0x27f   :  { %2450 = vmatprep.subr.mxu1 %v2156_v49  ;;  %2380 = vmatpush1.msra.mxu0 %v2091_v50  ;;  %v2191_v47 = vld [vmem:[#allocation10 + $0x780] sm:$0xff]  ;;  %v1005_v49 = vsub.s32 4, %v5100_v53  ;;  %v2126_v50 = vld [vmem:[#allocation10 + $0x578] sm:$0xff] }
 0x280   :  { %2451 = vmatpush1.msra.mxu1 %v2155_v51  ;;  %2381 = vmatprep.subr.mxu0 %v2090_v52  ;;  %v2190_v51 = vld [vmem:[#allocation10 + $0x778] sm:$0xff]  ;;  %v2125_v52 = vld [vmem:[#allocation10 + $0x570] sm:$0xff] }
 0x281   :  { %2452 = vmatprep.subr.mxu1 %v2154_v54  ;;  %2382 = vmatpush1.msra.mxu0 %v2089_v27  ;;  %v2189_v54 = vld [vmem:[#allocation10 + $0x770] sm:$0xff]  ;;  %v1009_v27 = vsub.s32 5, %v5100_v53 }
 0x282   :  { %2453 = vmatpush1.msra.mxu1 %v2153_v56  ;;  %2383 = vmatprep.subr.mxu0 %v2088_v9  ;;  %v2124_v56 = vld [vmem:[#allocation10 + $0x568] sm:$0xff] }
 0x283   :  { %2454 = vmatprep.subr.mxu1 %v2152_v57  ;;  %2384 = vmatpush1.msra.mxu0 %v2087_v58  ;;  %v2188_v9 = vld [vmem:[#allocation10 + $0x768] sm:$0xff]  ;;  %v1519_v57 = vpop.f32.mrf.mxu0  ;;  %v2123_v58 = vld [vmem:[#allocation10 + $0x560] sm:$0xff] }
 0x284   :  { %2455 = vmatpush1.msra.mxu1 %v2151_v59  ;;  %2385 = vmatprep.subr.mxu0 %v2086_v61  ;;  %v2187_v59 = vld [vmem:[#allocation10 + $0x760] sm:$0xff]  ;;  %v5187_v61 = vld [vmem:[#allocation8] sm:$0xff] }
 0x285   :  { %2456 = vmatprep.subr.mxu1 %v2150_v0  ;;  %2386 = vmatpush1.msra.mxu0 %v2085_v24  ;;  %v1006_v0 = vrot.slane %v5187_v61, %v1005_v49  ;;  %v2122_v24 = vld [vmem:[#allocation10 + $0x558] sm:$0xff] }
 0x286   :  { %2457 = vmatpush1.msra.mxu1 %v2149_v2  ;;  %2387 = vmatprep.subr.mxu0 %v2084_v4  ;;  %v2186_v2 = vld [vmem:[#allocation10 + $0x758] sm:$0xff]  ;;  %v2121_v4 = vld [vmem:[#allocation10 + $0x550] sm:$0xff] }
 0x287   :  { %2458 = vmatprep.subr.mxu1 %v2148_v55  ;;  %2388 = vmatpush1.msra.mxu0 %v2083_v5  ;;  %v2185_v55 = vld [vmem:[#allocation10 + $0x750] sm:$0xff]  ;;  %v1010_v5 = vrot.slane %v5187_v61, %v1009_v27 }
 0x288   :  { %2459 = vmatpush1.msra.mxu1 %v2147_v6  ;;  %2389 = vmatprep.subr.mxu0 %v2082_v10  ;;  %v2120_v6 = vld [vmem:[#allocation10 + $0x548] sm:$0xff] }
 0x289   :  { %2460 = vmatprep.subr.mxu1 %v2146_v11  ;;  %2390 = vmatpush1.msra.mxu0 %v2081_v12  ;;  %v2184_v10 = vld [vmem:[#allocation10 + $0x748] sm:$0xff]  ;;  %v1590_v11 = vpop.f32.mrf.mxu1  ;;  %v1521_v12 = vpop.f32.mrf.mxu0 }
 0x28a   :  { %2461 = vmatpush1.msra.mxu1 %v2145_v13  ;;  %2391 = vmatprep.subr.mxu0 %v2080_v16  ;;  %v2119_v13 = vld [vmem:[#allocation10 + $0x540] sm:$0xff] }
 0x28b   :  { %2462 = vmatprep.subr.mxu1 %v2144_v18  ;;  %2392 = vmatpush1.msra.mxu0 %v2079_v48  ;;  %v2183_v16 = vld [vmem:[#allocation10 + $0x740] sm:$0xff]  ;;  %v1520_v18 = vadd.f32 %v1519_v57, %v1006_v0  ;;  %v2118_v48 = vld [vmem:[#allocation10 + $0x538] sm:$0xff] }
 0x28c   :  { %2463 = vmatpush1.msra.mxu1 %v2143_v19  ;;  %2393 = vmatprep.subr.mxu0 %v2142_v20  ;;  %v2182_v19 = vld [vmem:[#allocation10 + $0x738] sm:$0xff]  ;;  %v2117_v20 = vld [vmem:[#allocation10 + $0x530] sm:$0xff] }
 0x28d   :  { %2464 = vmatprep.subr.mxu1 %v2206_v39  ;;  %2394 = vmatpush2.msra.mxu0 %v2141_v22  ;;  %v2181_v39 = vld [vmem:[#allocation10 + $0x730] sm:$0xff]  ;;  %v1522_v22 = vadd.f32 %v1521_v12, %v1010_v5 }
 0x28e   :  { %2465 = vmatpush2.msra.mxu1 %v2205_v21  ;;  %2395 = vmatprep.subr.mxu0 %v2140_v8  ;;  %v2116_v21 = vld [vmem:[#allocation10 + $0x528] sm:$0xff] }
 0x28f   :  { %2466 = vmatprep.subr.mxu1 %v2204_v3  ;;  %2396 = vmatpush2.msra.mxu0 %v2139_v63  ;;  %v2180_v8 = vld [vmem:[#allocation10 + $0x728] sm:$0xff]  ;;  %v1592_v3 = vpop.f32.mrf.mxu1  ;;  %v2115_v63 = vld [vmem:[#allocation10 + $0x520] sm:$0xff] }
 0x290   :  { %2467 = vmatpush2.msra.mxu1 %v2203_v23  ;;  %2397 = vmatprep.subr.mxu0 %v2138_v1  ;;  %v2179_v23 = vld [vmem:[#allocation10 + $0x720] sm:$0xff]  ;;  %v1591_v1 = vadd.f32 %v1590_v11, %v1520_v18  ;;  %v2608_v5 = vld [vmem:[#allocation13 + $0x348] sm:$0xff] }
 0x291   :  { %2468 = vmatprep.subr.mxu1 %v2202_v25  ;;  %2398 = vmatpush2.msra.mxu0 %v2137_v7  ;;  %v2114_v25 = vld [vmem:[#allocation10 + $0x518] sm:$0xff]  ;;  %v2599_v11 = vld [vmem:[#allocation13 + $0x300] sm:$0xff]  ;;  %v2592_v12 = vld [vmem:[#allocation13 + $0x2c8] sm:$0xff] }
 0x292   :  { %2469 = vmatpush2.msra.mxu1 %v2201_v28  ;;  %2399 = vmatprep.subr.mxu0 %v2136_v30  ;;  %v2178_v7 = vld [vmem:[#allocation10 + $0x718] sm:$0xff]  ;;  %v2113_v30 = vld [vmem:[#allocation10 + $0x510] sm:$0xff]  ;;  %v2583_v18 = vld [vmem:[#allocation13 + $0x280] sm:$0xff] }
 0x293   :  { %2470 = vmatprep.subr.mxu1 %v2200_v14  ;;  %2400 = vmatpush2.msra.mxu0 %v2135_v31  ;;  %v2177_v14 = vld [vmem:[#allocation10 + $0x710] sm:$0xff]  ;;  %v1593_v31 = vadd.f32 %v1592_v3, %v1522_v22  ;;  %v2551_v3 = vld [vmem:[#allocation13 + $0x180] sm:$0xff] }
 0x294   :  { %2471 = vmatpush2.msra.mxu1 %v2199_v32  ;;  %2401 = vmatprep.subr.mxu0 %v2134_v29  ;;  %v2112_v29 = vld [vmem:[#allocation10 + $0x508] sm:$0xff] }
 0x295   :  { %2472 = vmatprep.subr.mxu1 %v2198_v36  ;;  %2402 = vmatpush2.msra.mxu0 %v2133_v33  ;;  %v2176_v36 = vld [vmem:[#allocation10 + $0x708] sm:$0xff] }
 0x296   :  { %2473 = vmatpush2.msra.mxu1 %v2197_v17  ;;  %2403 = vmatprep.subr.mxu0 %v2132_v34  ;;  %v2111_v17 = vld [vmem:[#allocation10 + $0x500] sm:$0xff]  ;;  %v2560_v22 = vld [vmem:[#allocation13 + $0x1c8] sm:$0xff] }
 0x297   :  { %2474 = vmatprep.subr.mxu1 %v2196_v35  ;;  %2404 = vmatpush2.msra.mxu0 %v2131_v43  ;;  %v2175_v34 = vld [vmem:[#allocation10 + $0x700] sm:$0xff] }
 0x298   :  { %2475 = vmatpush2.msra.mxu1 %v2195_v37  ;;  %2405 = vmatprep.subr.mxu0 %v2130_v38  ;;  %v2624_v37 = vld [vmem:[#allocation13 + $0x3c8] sm:$0xff] }
 0x299   :  { %2476 = vmatprep.subr.mxu1 %v2194_v15  ;;  %2406 = vmatpush2.msra.mxu0 %v2129_v40  ;;  %v2880_v38 = vld [vmem:[#allocation13 + $0xbc8] sm:$0xff] }
 0x29a   :  { %2477 = vmatpush2.msra.mxu1 %v2193_v42  ;;  %2407 = vmatprep.subr.mxu0 %v2128_v26 }
 0x29b   :  { %2478 = vmatprep.subr.mxu1 %v2192_v44  ;;  %2408 = vmatpush2.msra.mxu0 %v2127_v46 }
 0x29c   :  { %2479 = vmatpush2.msra.mxu1 %v2191_v47  ;;  %2409 = vmatprep.subr.mxu0 %v2126_v50 }
 0x29d   :  { %2480 = vmatprep.subr.mxu1 %v2190_v51  ;;  %2410 = vmatpush2.msra.mxu0 %v2125_v52 }
 0x29e   :  { %2481 = vmatpush2.msra.mxu1 %v2189_v54  ;;  %2411 = vmatprep.subr.mxu0 %v2124_v56 }
 0x29f   :  { %2482 = vmatprep.subr.mxu1 %v2188_v9  ;;  %2412 = vmatpush2.msra.mxu0 %v2123_v58 }
 0x2a0   :  { %2483 = vmatpush2.msra.mxu1 %v2187_v59  ;;  %2413 = vmatprep.subr.mxu0 %v2122_v24  ;;  %v2623_v24 = vld [vmem:[#allocation13 + $0x3c0] sm:$0xff] }
 0x2a1   :  { %2484 = vmatprep.subr.mxu1 %v2186_v2  ;;  %2414 = vmatpush2.msra.mxu0 %v2121_v4  ;;  %v5195_v2 = vld [vmem:[#allocation5 + $0x8] sm:$0xff]  ;;  %v2616_v4 = vld [vmem:[#allocation13 + $0x388] sm:$0xff] }
 0x2a2   :  { %2485 = vmatpush2.msra.mxu1 %v2185_v55  ;;  %2415 = vmatprep.subr.mxu0 %v2120_v6  ;;  %v2615_v55 = vld [vmem:[#allocation13 + $0x380] sm:$0xff] }
 0x2a3   :  { %2486 = vmatprep.subr.mxu1 %v2184_v10  ;;  %2416 = vmatpush2.msra.mxu0 %v2119_v13  ;;  %v2607_v6 = vld [vmem:[#allocation13 + $0x340] sm:$0xff]  ;;  %v2600_v10 = vld [vmem:[#allocation13 + $0x308] sm:$0xff] }
 0x2a4   :  { %2487 = vmatpush2.msra.mxu1 %v2183_v16  ;;  %2417 = vmatprep.subr.mxu0 %v2118_v48  ;;  %v2591_v13 = vld [vmem:[#allocation13 + $0x2c0] sm:$0xff]  ;;  %v2584_v16 = vld [vmem:[#allocation13 + $0x288] sm:$0xff] }
 0x2a5   :  { %2488 = vmatprep.subr.mxu1 %v2182_v19  ;;  %2418 = vmatpush2.msra.mxu0 %v2117_v20  ;;  %v2576_v48 = vld [vmem:[#allocation13 + $0x248] sm:$0xff]  ;;  %v2575_v19 = vld [vmem:[#allocation13 + $0x240] sm:$0xff] }
 0x2a6   :  { %2489 = vmatpush2.msra.mxu1 %v2181_v39  ;;  %2419 = vmatprep.subr.mxu0 %v2116_v21  ;;  %v2568_v20 = vld [vmem:[#allocation13 + $0x208] sm:$0xff]  ;;  %v2567_v39 = vld [vmem:[#allocation13 + $0x200] sm:$0xff] }
 0x2a7   :  { %v1661_v28 = vpop.f32.mrf.mxu0  ;;  %2490 = vmatprep.subr.mxu1 %v2180_v8  ;;  %2420 = vmatpush2.msra.mxu0 %v2115_v63  ;;  %v2559_v21 = vld [vmem:[#allocation13 + $0x1c0] sm:$0xff]  ;;  %v2552_v8 = vld [vmem:[#allocation13 + $0x188] sm:$0xff] }
 0x2a8   :  { %v1662_v32 = vadd.f32 %v1661_v28, %v1591_v1  ;;  %2491 = vmatpush2.msra.mxu1 %v2179_v23  ;;  %2421 = vmatprep.subr.mxu0 %v2114_v25  ;;  %v2544_v63 = vld [vmem:[#allocation13 + $0x148] sm:$0xff]  ;;  %v2543_v23 = vld [vmem:[#allocation13 + $0x140] sm:$0xff] }
 0x2a9   :  { %v1663_v33 = vpop.f32.mrf.mxu0  ;;  %2492 = vmatprep.subr.mxu1 %v2178_v7  ;;  %2422 = vmatpush2.msra.mxu0 %v2113_v30  ;;  %v2536_v1 = vld [vmem:[#allocation13 + $0x108] sm:$0xff]  ;;  %v2535_v25 = vld [vmem:[#allocation13 + $0x100] sm:$0xff] }
 0x2aa   :  { %v1891_v35 = vmul.f32 0.044715, %v1662_v32  ;;  %v1664_v43 = vadd.f32 %v1663_v33, %v1593_v31  ;;  %2493 = vmatpush2.msra.mxu1 %v2177_v14  ;;  %2423 = vmatprep.subr.mxu0 %v2112_v29  ;;  %v1883_v58 = vmul.f32 0.5, %v1662_v32  ;;  %v2528_v7 = vld [vmem:[#allocation13 + $0xc8] sm:$0xff]  ;;  %v2527_v28 = vld [vmem:[#allocation13 + $0xc0] sm:$0xff]  ;;  %v1013_v14 = vsub.s32 6, %v5100_v53  ;;  %v1732_v33 = vpop.f32.mrf.mxu1 }
 0x2ab   :  { %2494 = vmatprep.subr.mxu1 %v2176_v36  ;;  %2424 = vmatpush2.msra.mxu0 %v2111_v17  ;;  %v2520_v30 = vld [vmem:[#allocation13 + $0x88] sm:$0xff]  ;;  %v2519_v31 = vld [vmem:[#allocation13 + $0x80] sm:$0xff]  ;;  %v1017_v29 = vsub.s32 7, %v5100_v53 }
 0x2ac   :  { %v1899_v15 = vmul.f32 %v1891_v35, %v1662_v32  ;;  %v1892_v40 = vmul.f32 0.044715, %v1664_v43  ;;  %2495 = vmatpush2.msra.mxu1 %v2175_v34  ;;  %3057 = vmatprep.subr.mxu0 %v2624_v37  ;;  %v1884_v9 = vmul.f32 0.5, %v1664_v43  ;;  %v2511_v36 = vld [vmem:[#allocation13 + $0x40] sm:$0xff]  ;;  %v2504_v17 = vld [vmem:[#allocation13 + $0x8] sm:$0xff]  ;;  %v1014_v34 = vrot.slane %v5187_v61, %v1013_v14 }
 0x2ad   :  { %3128 = vmatprep.subr.mxu1 %v2880_v38  ;;  %v2503_v35 = vld [vmem:[#allocation13] sm:$0xff]  ;;  %v1018_v37 = vrot.slane %v5187_v61, %v1017_v29 }
 0x2ae   :  { %v1907_v42 = vmul.f32 %v1899_v15, %v1662_v32  ;;  %v1900_v26 = vmul.f32 %v1892_v40, %v1664_v43  ;;  %v2751_v38 = vld [vmem:[#allocation13 + $0x7c0] sm:$0xff]  ;;  %v1734_v15 = vpop.f32.mrf.mxu1  ;;  %v2744_v40 = vld [vmem:[#allocation13 + $0x788] sm:$0xff] }
 0x2b0   :  { %v1915_v44 = vadd.f32 %v1907_v42, %v1662_v32  ;;  %v1908_v46 = vmul.f32 %v1900_v26, %v1664_v43  ;;  %v2512_v32 = vld [vmem:[#allocation13 + $0x48] sm:$0xff]  ;;  %v1733_v42 = vadd.f32 %v1732_v33, %v1014_v34  ;;  %v2743_v26 = vld [vmem:[#allocation13 + $0x780] sm:$0xff] }
 0x2b1   :  { %v2640_v33 = vld [vmem:[#allocation13 + $0x448] sm:$0xff] }
 0x2b2   :  { %v1916_v47 = vadd.f32 %v1908_v46, %v1664_v43  ;;  %v1923_v50 = vmul.f32 0.7978846, %v1915_v44  ;;  %v2752_v43 = vld [vmem:[#allocation13 + $0x7c8] sm:$0xff] }
 0x2b3   :  { %v2632_v34 = vld [vmem:[#allocation13 + $0x408] sm:$0xff] }
 0x2b4   :  { %v1924_v51 = vmul.f32 0.7978846, %v1916_v47  ;;  %4598 = vtanh.f32 %v1923_v50  ;;  %v2736_v47 = vld [vmem:[#allocation13 + $0x748] sm:$0xff]  ;;  %v1735_v50 = vadd.f32 %v1734_v15, %v1018_v37  ;;  %v2626_v37 = vld [vmem:[#allocation13 + $0x3d8] sm:$0xff]  ;;  %v2625_v15 = vld [vmem:[#allocation13 + $0x3d0] sm:$0xff] }
 0x2b6   :  { %4600 = vtanh.f32 %v1924_v51 }
 0x2c1   :  { %v4599_v52 = vpop.eup %4598 }
 0x2c2   :  { %v1939_v56 = vadd.f32 1.0, %v4599_v52  ;;  %v2735_v52 = vld [vmem:[#allocation13 + $0x740] sm:$0xff] }
 0x2c3   :  { %v4601_v54 = vpop.eup %4600 }
 0x2c4   :  { %v1940_v57 = vadd.f32 1.0, %v4601_v54  ;;  %v1947_v0 = vmul.f32 %v1939_v56, %v1883_v58  ;;  %v2728_v56 = vld [vmem:[#allocation13 + $0x708] sm:$0xff] }
 0x2c6   :  { %v1948_v59 = vmul.f32 %v1940_v57, %v1884_v9  ;;  %v2727_v57 = vld [vmem:[#allocation13 + $0x700] sm:$0xff] }
 0x2c8   :  { %2425 = vmatprep.mubr.f32.mxu0 %v1948_v59  ;;  %v2720_v59 = vld [vmem:[#allocation13 + $0x6c8] sm:$0xff] }
 0x2c9   :  { %2426 = vmatmul.mubr.f32.vlgmr.msra.gmra.mxu0 %v1947_v0 }
 0x2ca   :  { %3058 = vmatpush1.msra.mxu0 %v2623_v24  ;;  %3121 = vmatprep.mubr.f32.mxu0 %v5195_v2 }
 0x2cb   :  { %3059 = vmatprep.subr.mxu0 %v2616_v4  ;;  %v2719_v4 = vld [vmem:[#allocation13 + $0x6c0] sm:$0xff] }
 0x2cc   :  { %3060 = vmatpush1.msra.mxu0 %v2615_v55  ;;  %v2712_v55 = vld [vmem:[#allocation13 + $0x688] sm:$0xff] }
 0x2cd   :  { %3061 = vmatprep.subr.mxu0 %v2608_v5 }
 0x2ce   :  { %3062 = vmatpush1.msra.mxu0 %v2607_v6 }
 0x2cf   :  { %3063 = vmatprep.subr.mxu0 %v2600_v10  ;;  %v2711_v10 = vld [vmem:[#allocation13 + $0x680] sm:$0xff] }
 0x2d0   :  { %3064 = vmatpush1.msra.mxu0 %v2599_v11  ;;  %v2704_v11 = vld [vmem:[#allocation13 + $0x648] sm:$0xff] }
 0x2d1   :  { %3065 = vmatprep.subr.mxu0 %v2592_v12 }
 0x2d2   :  { %3066 = vmatpush1.msra.mxu0 %v2591_v13 }
 0x2d3   :  { %3067 = vmatprep.subr.mxu0 %v2584_v16  ;;  %v2703_v16 = vld [vmem:[#allocation13 + $0x640] sm:$0xff] }
 0x2d4   :  { %3068 = vmatpush1.msra.mxu0 %v2583_v18  ;;  %v2696_v18 = vld [vmem:[#allocation13 + $0x608] sm:$0xff] }
 0x2d5   :  { %3069 = vmatprep.subr.mxu0 %v2576_v48 }
 0x2d6   :  { %3070 = vmatpush1.msra.mxu0 %v2575_v19 }
 0x2d7   :  { %3071 = vmatprep.subr.mxu0 %v2568_v20  ;;  %v2695_v20 = vld [vmem:[#allocation13 + $0x600] sm:$0xff] }
 0x2d8   :  { %3072 = vmatpush1.msra.mxu0 %v2567_v39  ;;  %v2688_v39 = vld [vmem:[#allocation13 + $0x5c8] sm:$0xff] }
 0x2d9   :  { %3073 = vmatprep.subr.mxu0 %v2560_v22 }
 0x2da   :  { %3074 = vmatpush1.msra.mxu0 %v2559_v21 }
 0x2db   :  { %3075 = vmatprep.subr.mxu0 %v2552_v8  ;;  %v2687_v8 = vld [vmem:[#allocation13 + $0x5c0] sm:$0xff] }
 0x2dc   :  { %3076 = vmatpush1.msra.mxu0 %v2551_v3  ;;  %v2680_v3 = vld [vmem:[#allocation13 + $0x588] sm:$0xff] }
 0x2dd   :  { %3077 = vmatprep.subr.mxu0 %v2544_v63 }
 0x2de   :  { %3078 = vmatpush1.msra.mxu0 %v2543_v23  ;;  %v2679_v23 = vld [vmem:[#allocation13 + $0x580] sm:$0xff] }
 0x2df   :  { %3079 = vmatprep.subr.mxu0 %v2536_v1  ;;  %v2672_v1 = vld [vmem:[#allocation13 + $0x548] sm:$0xff] }
 0x2e0   :  { %3080 = vmatpush1.msra.mxu0 %v2535_v25  ;;  %v2671_v25 = vld [vmem:[#allocation13 + $0x540] sm:$0xff] }
 0x2e1   :  { %3081 = vmatprep.subr.mxu0 %v2528_v7  ;;  %v2664_v7 = vld [vmem:[#allocation13 + $0x508] sm:$0xff] }
 0x2e2   :  { %3082 = vmatpush1.msra.mxu0 %v2527_v28  ;;  %v2663_v28 = vld [vmem:[#allocation13 + $0x500] sm:$0xff] }
 0x2e3   :  { %3083 = vmatprep.subr.mxu0 %v2520_v30  ;;  %v2656_v30 = vld [vmem:[#allocation13 + $0x4c8] sm:$0xff] }
 0x2e4   :  { %3084 = vmatpush1.msra.mxu0 %v2519_v31  ;;  %v2655_v31 = vld [vmem:[#allocation13 + $0x4c0] sm:$0xff] }
 0x2e5   :  { %3085 = vmatprep.subr.mxu0 %v2512_v32  ;;  %v2648_v32 = vld [vmem:[#allocation13 + $0x488] sm:$0xff] }
 0x2e6   :  { %3086 = vmatpush1.msra.mxu0 %v2511_v36  ;;  %v2647_v36 = vld [vmem:[#allocation13 + $0x480] sm:$0xff] }
 0x2e7   :  { %3087 = vmatprep.subr.mxu0 %v2504_v17  ;;  %v2639_v17 = vld [vmem:[#allocation13 + $0x440] sm:$0xff] }
 0x2e8   :  { %3088 = vmatpush1.msra.mxu0 %v2503_v35  ;;  %v2631_v35 = vld [vmem:[#allocation13 + $0x400] sm:$0xff] }
 0x2e9   :  { %3089 = vmatprep.subr.mxu0 %v2752_v43  ;;  %v1803_v44 = vpop.f32.mrf.mxu0 }
 0x2ea   :  { %v1874_v46 = vpop.f32.mrf.mxu1  ;;  %3090 = vmatpush2.msra.mxu0 %v2751_v38  ;;  %v1804_v51 = vadd.f32 %v1803_v44, %v1733_v42  ;;  %v5218_v38 = vld [vmem:[#allocation5] sm:$0xff] }
 0x2eb   :  { %3091 = vmatprep.subr.mxu0 %v2744_v40  ;;  %v1805_v54 = vpop.f32.mrf.mxu0 }
 0x2ec   :  { %3092 = vmatpush2.msra.mxu0 %v2743_v26  ;;  %v5206_v61 = vadd.f32 %v1874_v46, %v1804_v51  ;;  %v1806_v9 = vadd.f32 %v1805_v54, %v1735_v50  ;;  %v1876_v58 = vpop.f32.mrf.mxu1  ;;  %v2618_v26 = vld [vmem:[#allocation13 + $0x398] sm:$0xff]  ;;  %v2609_v54 = vld [vmem:[#allocation13 + $0x350] sm:$0xff] }
 0x2ed   :  { %3093 = vmatprep.subr.mxu0 %v2736_v47  ;;  %v2617_v47 = vld [vmem:[#allocation13 + $0x390] sm:$0xff]  ;;  %v2610_v51 = vld [vmem:[#allocation13 + $0x358] sm:$0xff] }
 0x2ee   :  { %3094 = vmatpush2.msra.mxu0 %v2735_v52  ;;  %v1893_v0 = vmul.f32 0.044715, %v5206_v61  ;;  %v5209_v24 = vadd.f32 %v1876_v58, %v1806_v9  ;;  %v1885_v50 = vmul.f32 0.5, %v5206_v61  ;;  %v2879_v9 = vld [vmem:[#allocation13 + $0xbc0] sm:$0xff]  ;;  %v2872_v58 = vld [vmem:[#allocation13 + $0xb88] sm:$0xff] }
 0x2ef   :  { %3095 = vmatprep.subr.mxu0 %v2728_v56 }
 0x2f0   :  { %3096 = vmatpush2.msra.mxu0 %v2727_v57  ;;  %v1901_v5 = vmul.f32 %v1893_v0, %v5206_v61  ;;  %v1894_v6 = vmul.f32 0.044715, %v5209_v24  ;;  %v1886_v44 = vmul.f32 0.5, %v5209_v24  ;;  %v2602_v57 = vld [vmem:[#allocation13 + $0x318] sm:$0xff]  ;;  %v2871_v0 = vld [vmem:[#allocation13 + $0xb80] sm:$0xff] }
 0x2f1   :  { %3097 = vmatprep.subr.mxu0 %v2720_v59  ;;  %v2601_v59 = vld [vmem:[#allocation13 + $0x310] sm:$0xff] }
 0x2f2   :  { %3098 = vmatpush2.msra.mxu0 %v2719_v4  ;;  %v1909_v12 = vmul.f32 %v1901_v5, %v5206_v61  ;;  %v1902_v13 = vmul.f32 %v1894_v6, %v5209_v24  ;;  %v2593_v4 = vld [vmem:[#allocation13 + $0x2d0] sm:$0xff]  ;;  %v2856_v5 = vld [vmem:[#allocation13 + $0xb08] sm:$0xff] }
 0x2f3   :  { %3099 = vmatprep.subr.mxu0 %v2712_v55  ;;  %v2586_v55 = vld [vmem:[#allocation13 + $0x298] sm:$0xff]  ;;  %v2585_v6 = vld [vmem:[#allocation13 + $0x290] sm:$0xff] }
 0x2f4   :  { %3100 = vmatpush2.msra.mxu0 %v2711_v10  ;;  %v1917_v48 = vadd.f32 %v1909_v12, %v5206_v61  ;;  %v1910_v19 = vmul.f32 %v1902_v13, %v5209_v24  ;;  %v2864_v61 = vld [vmem:[#allocation13 + $0xb48] sm:$0xff]  ;;  %v2855_v10 = vld [vmem:[#allocation13 + $0xb00] sm:$0xff]  ;;  %v2577_v13 = vld [vmem:[#allocation13 + $0x250] sm:$0xff] }
 0x2f5   :  { %3101 = vmatprep.subr.mxu0 %v2704_v11  ;;  %v2578_v11 = vld [vmem:[#allocation13 + $0x258] sm:$0xff]  ;;  %v2848_v12 = vld [vmem:[#allocation13 + $0xac8] sm:$0xff] }
 0x2f6   :  { %3102 = vmatpush2.msra.mxu0 %v2703_v16  ;;  %v1918_v22 = vadd.f32 %v1910_v19, %v5209_v24  ;;  %v1925_v21 = vmul.f32 0.7978846, %v1917_v48  ;;  %v2594_v24 = vld [vmem:[#allocation13 + $0x2d8] sm:$0xff]  ;;  %v2847_v16 = vld [vmem:[#allocation13 + $0xac0] sm:$0xff]  ;;  %v2840_v48 = vld [vmem:[#allocation13 + $0xa88] sm:$0xff] }
 0x2f7   :  { %3103 = vmatprep.subr.mxu0 %v2696_v18  ;;  %v2570_v18 = vld [vmem:[#allocation13 + $0x218] sm:$0xff]  ;;  %v2569_v19 = vld [vmem:[#allocation13 + $0x210] sm:$0xff] }
 0x2f8   :  { %3104 = vmatpush2.msra.mxu0 %v2695_v20  ;;  %v1926_v63 = vmul.f32 0.7978846, %v1918_v22  ;;  %4602 = vtanh.f32 %v1925_v21  ;;  %v2839_v20 = vld [vmem:[#allocation13 + $0xa80] sm:$0xff]  ;;  %v2832_v22 = vld [vmem:[#allocation13 + $0xa48] sm:$0xff]  ;;  %v2561_v21 = vld [vmem:[#allocation13 + $0x1d0] sm:$0xff] }
 0x2f9   :  { %3105 = vmatprep.subr.mxu0 %v2688_v39  ;;  %v2562_v39 = vld [vmem:[#allocation13 + $0x1d8] sm:$0xff] }
 0x2fa   :  { %3106 = vmatpush2.msra.mxu0 %v2687_v8  ;;  %4604 = vtanh.f32 %v1926_v63  ;;  %v2831_v8 = vld [vmem:[#allocation13 + $0xa40] sm:$0xff]  ;;  %v2824_v63 = vld [vmem:[#allocation13 + $0xa08] sm:$0xff] }
 0x2fb   :  { %3107 = vmatprep.subr.mxu0 %v2680_v3  ;;  %v2554_v3 = vld [vmem:[#allocation13 + $0x198] sm:$0xff] }
 0x2fc   :  { %3108 = vmatpush2.msra.mxu0 %v2679_v23  ;;  %v2553_v23 = vld [vmem:[#allocation13 + $0x190] sm:$0xff] }
 0x2fd   :  { %3109 = vmatprep.subr.mxu0 %v2672_v1  ;;  %v2823_v1 = vld [vmem:[#allocation13 + $0xa00] sm:$0xff] }
 0x2fe   :  { %3110 = vmatpush2.msra.mxu0 %v2671_v25  ;;  %v2546_v25 = vld [vmem:[#allocation13 + $0x158] sm:$0xff] }
 0x2ff   :  { %3111 = vmatprep.subr.mxu0 %v2664_v7  ;;  %v2816_v7 = vld [vmem:[#allocation13 + $0x9c8] sm:$0xff] }
 0x300   :  { %3112 = vmatpush2.msra.mxu0 %v2663_v28  ;;  %v2545_v28 = vld [vmem:[#allocation13 + $0x150] sm:$0xff] }
 0x301   :  { %3113 = vmatprep.subr.mxu0 %v2656_v30  ;;  %v2815_v30 = vld [vmem:[#allocation13 + $0x9c0] sm:$0xff] }
 0x302   :  { %3114 = vmatpush2.msra.mxu0 %v2655_v31  ;;  %v2538_v31 = vld [vmem:[#allocation13 + $0x118] sm:$0xff] }
 0x303   :  { %3115 = vmatprep.subr.mxu0 %v2648_v32  ;;  %v2808_v32 = vld [vmem:[#allocation13 + $0x988] sm:$0xff] }
 0x304   :  { %3116 = vmatpush2.msra.mxu0 %v2647_v36  ;;  %v2537_v36 = vld [vmem:[#allocation13 + $0x110] sm:$0xff] }
 0x305   :  { %3117 = vmatprep.subr.mxu0 %v2640_v33  ;;  %v4603_v43 = vpop.eup %4602  ;;  %v2807_v33 = vld [vmem:[#allocation13 + $0x980] sm:$0xff] }
 0x306   :  { %3118 = vmatpush2.msra.mxu0 %v2639_v17  ;;  %v1941_v42 = vadd.f32 1.0, %v4603_v43  ;;  %v2530_v17 = vld [vmem:[#allocation13 + $0xd8] sm:$0xff]  ;;  %v2799_v43 = vld [vmem:[#allocation13 + $0x940] sm:$0xff] }
 0x307   :  { %3119 = vmatprep.subr.mxu0 %v2632_v34  ;;  %v4605_v40 = vpop.eup %4604  ;;  %v2800_v34 = vld [vmem:[#allocation13 + $0x948] sm:$0xff] }
 0x308   :  { %3120 = vmatpush2.msra.mxu0 %v2631_v35  ;;  %v1942_v46 = vadd.f32 1.0, %v4605_v40  ;;  %v1949_v56 = vmul.f32 %v1941_v42, %v1885_v50  ;;  %v2529_v35 = vld [vmem:[#allocation13 + $0xd0] sm:$0xff]  ;;  %v2791_v42 = vld [vmem:[#allocation13 + $0x900] sm:$0xff] }
 0x309   :  { %3199 = vmatprep.subr.mxu0 %v2626_v37  ;;  %3122 = vmatmul.mubr.f32.vlgmr.msra.gmra.mxu0 %v5218_v38  ;;  %v2522_v37 = vld [vmem:[#allocation13 + $0x98] sm:$0xff]  ;;  %v2521_v40 = vld [vmem:[#allocation13 + $0x90] sm:$0xff] }
 0x30a   :  { %3200 = vmatpush1.msra.mxu0 %v2625_v15  ;;  %3263 = vmatprep.mubr.f32.mxu0 %v5195_v2  ;;  %v1950_v52 = vmul.f32 %v1942_v46, %v1886_v44  ;;  %v2863_v2 = vld [vmem:[#allocation13 + $0xb40] sm:$0xff]  ;;  %v2792_v15 = vld [vmem:[#allocation13 + $0x908] sm:$0xff]  ;;  %v2513_v50 = vld [vmem:[#allocation13 + $0x50] sm:$0xff] }
 0x30b   :  { %3201 = vmatprep.subr.mxu0 %v2618_v26  ;;  %v2514_v26 = vld [vmem:[#allocation13 + $0x58] sm:$0xff]  ;;  %v2784_v44 = vld [vmem:[#allocation13 + $0x8c8] sm:$0xff] }
 0x30c   :  { %3202 = vmatpush1.msra.mxu0 %v2617_v47  ;;  %2496 = vmatprep.mubr.f32.mxu1 %v1950_v52  ;;  %v5224_v46 = vld [vmem:[#allocation5 + $0x18] sm:$0xff]  ;;  %v2783_v47 = vld [vmem:[#allocation13 + $0x8c0] sm:$0xff]  ;;  %v2506_v52 = vld [vmem:[#allocation13 + $0x18] sm:$0xff] }
 0x30d   :  { %3203 = vmatprep.subr.mxu0 %v2610_v51  ;;  %2497 = vmatmul.mubr.f32.vlgmr.msra.gmra.mxu1 %v1949_v56  ;;  %v2776_v51 = vld [vmem:[#allocation13 + $0x888] sm:$0xff]  ;;  %v2505_v56 = vld [vmem:[#allocation13 + $0x10] sm:$0xff] }
 0x30e   :  { %3204 = vmatpush1.msra.mxu0 %v2609_v54  ;;  %3129 = vmatpush1.msra.mxu1 %v2879_v9  ;;  %v2775_v54 = vld [vmem:[#allocation13 + $0x880] sm:$0xff]  ;;  %v2768_v9 = vld [vmem:[#allocation13 + $0x848] sm:$0xff] }
 0x30f   :  { %3205 = vmatprep.subr.mxu0 %v2602_v57  ;;  %3130 = vmatprep.subr.mxu1 %v2872_v58  ;;  %v2754_v57 = vld [vmem:[#allocation13 + $0x7d8] sm:$0xff]  ;;  %v2767_v58 = vld [vmem:[#allocation13 + $0x840] sm:$0xff] }
 0x310   :  { %3206 = vmatpush1.msra.mxu0 %v2601_v59  ;;  %3131 = vmatpush1.msra.mxu1 %v2871_v0  ;;  %v2753_v59 = vld [vmem:[#allocation13 + $0x7d0] sm:$0xff]  ;;  %v2760_v0 = vld [vmem:[#allocation13 + $0x808] sm:$0xff] }
 0x311   :  { %3207 = vmatprep.subr.mxu0 %v2594_v24  ;;  %3132 = vmatprep.subr.mxu1 %v2864_v61  ;;  %v2746_v24 = vld [vmem:[#allocation13 + $0x798] sm:$0xff]  ;;  %v2759_v61 = vld [vmem:[#allocation13 + $0x800] sm:$0xff] }
 0x312   :  { %3208 = vmatpush1.msra.mxu0 %v2593_v4  ;;  %3133 = vmatpush1.msra.mxu1 %v2863_v2  ;;  %v2745_v4 = vld [vmem:[#allocation13 + $0x790] sm:$0xff]  ;;  %v3008_v2 = vld [vmem:[#allocation13 + $0xfc8] sm:$0xff] }
 0x313   :  { %3209 = vmatprep.subr.mxu0 %v2586_v55  ;;  %3134 = vmatprep.subr.mxu1 %v2856_v5  ;;  %v2738_v55 = vld [vmem:[#allocation13 + $0x758] sm:$0xff]  ;;  %v3007_v5 = vld [vmem:[#allocation13 + $0xfc0] sm:$0xff] }
 0x314   :  { %3210 = vmatpush1.msra.mxu0 %v2585_v6  ;;  %3135 = vmatpush1.msra.mxu1 %v2855_v10  ;;  %v2737_v6 = vld [vmem:[#allocation13 + $0x750] sm:$0xff]  ;;  %v3000_v10 = vld [vmem:[#allocation13 + $0xf88] sm:$0xff] }
 0x315   :  { %3211 = vmatprep.subr.mxu0 %v2578_v11  ;;  %3136 = vmatprep.subr.mxu1 %v2848_v12  ;;  %v2730_v11 = vld [vmem:[#allocation13 + $0x718] sm:$0xff]  ;;  %v2999_v12 = vld [vmem:[#allocation13 + $0xf80] sm:$0xff] }
 0x316   :  { %3212 = vmatpush1.msra.mxu0 %v2577_v13  ;;  %3137 = vmatpush1.msra.mxu1 %v2847_v16  ;;  %v2729_v13 = vld [vmem:[#allocation13 + $0x710] sm:$0xff]  ;;  %v2992_v16 = vld [vmem:[#allocation13 + $0xf48] sm:$0xff] }
 0x317   :  { %3213 = vmatprep.subr.mxu0 %v2570_v18  ;;  %3138 = vmatprep.subr.mxu1 %v2840_v48  ;;  %v2722_v18 = vld [vmem:[#allocation13 + $0x6d8] sm:$0xff]  ;;  %v2991_v48 = vld [vmem:[#allocation13 + $0xf40] sm:$0xff] }
 0x318   :  { %3214 = vmatpush1.msra.mxu0 %v2569_v19  ;;  %3139 = vmatpush1.msra.mxu1 %v2839_v20  ;;  %v2721_v19 = vld [vmem:[#allocation13 + $0x6d0] sm:$0xff]  ;;  %v2984_v20 = vld [vmem:[#allocation13 + $0xf08] sm:$0xff] }
 0x319   :  { %3215 = vmatprep.subr.mxu0 %v2562_v39  ;;  %3140 = vmatprep.subr.mxu1 %v2832_v22  ;;  %v2714_v39 = vld [vmem:[#allocation13 + $0x698] sm:$0xff]  ;;  %v2983_v22 = vld [vmem:[#allocation13 + $0xf00] sm:$0xff] }
 0x31a   :  { %3216 = vmatpush1.msra.mxu0 %v2561_v21  ;;  %3141 = vmatpush1.msra.mxu1 %v2831_v8  ;;  %v2713_v21 = vld [vmem:[#allocation13 + $0x690] sm:$0xff]  ;;  %v2976_v8 = vld [vmem:[#allocation13 + $0xec8] sm:$0xff] }
 0x31b   :  { %3217 = vmatprep.subr.mxu0 %v2554_v3  ;;  %3142 = vmatprep.subr.mxu1 %v2824_v63  ;;  %v2706_v3 = vld [vmem:[#allocation13 + $0x658] sm:$0xff]  ;;  %v2975_v63 = vld [vmem:[#allocation13 + $0xec0] sm:$0xff] }
 0x31c   :  { %3218 = vmatpush1.msra.mxu0 %v2553_v23  ;;  %3143 = vmatpush1.msra.mxu1 %v2823_v1  ;;  %v2705_v23 = vld [vmem:[#allocation13 + $0x650] sm:$0xff]  ;;  %v2968_v1 = vld [vmem:[#allocation13 + $0xe88] sm:$0xff] }
 0x31d   :  { %3219 = vmatprep.subr.mxu0 %v2546_v25  ;;  %3144 = vmatprep.subr.mxu1 %v2816_v7  ;;  %v2698_v25 = vld [vmem:[#allocation13 + $0x618] sm:$0xff]  ;;  %v2967_v7 = vld [vmem:[#allocation13 + $0xe80] sm:$0xff] }
 0x31e   :  { %3220 = vmatpush1.msra.mxu0 %v2545_v28  ;;  %3145 = vmatpush1.msra.mxu1 %v2815_v30  ;;  %v2697_v28 = vld [vmem:[#allocation13 + $0x610] sm:$0xff]  ;;  %v2960_v30 = vld [vmem:[#allocation13 + $0xe48] sm:$0xff] }
 0x31f   :  { %3221 = vmatprep.subr.mxu0 %v2538_v31  ;;  %3146 = vmatprep.subr.mxu1 %v2808_v32  ;;  %v2690_v31 = vld [vmem:[#allocation13 + $0x5d8] sm:$0xff]  ;;  %v2959_v32 = vld [vmem:[#allocation13 + $0xe40] sm:$0xff] }
 0x320   :  { %3222 = vmatpush1.msra.mxu0 %v2537_v36  ;;  %3147 = vmatpush1.msra.mxu1 %v2807_v33  ;;  %v2689_v36 = vld [vmem:[#allocation13 + $0x5d0] sm:$0xff]  ;;  %v2952_v33 = vld [vmem:[#allocation13 + $0xe08] sm:$0xff] }
 0x321   :  { %3223 = vmatprep.subr.mxu0 %v2530_v17  ;;  %3148 = vmatprep.subr.mxu1 %v2800_v34  ;;  %v2682_v17 = vld [vmem:[#allocation13 + $0x598] sm:$0xff]  ;;  %v2951_v34 = vld [vmem:[#allocation13 + $0xe00] sm:$0xff] }
 0x322   :  { %3224 = vmatpush1.msra.mxu0 %v2529_v35  ;;  %3149 = vmatpush1.msra.mxu1 %v2799_v43  ;;  %v2681_v35 = vld [vmem:[#allocation13 + $0x590] sm:$0xff]  ;;  %v2944_v43 = vld [vmem:[#allocation13 + $0xdc8] sm:$0xff] }
 0x323   :  { %3225 = vmatprep.subr.mxu0 %v2522_v37  ;;  %3150 = vmatprep.subr.mxu1 %v2792_v15  ;;  %v2674_v37 = vld [vmem:[#allocation13 + $0x558] sm:$0xff]  ;;  %v2943_v15 = vld [vmem:[#allocation13 + $0xdc0] sm:$0xff] }
 0x324   :  { %3226 = vmatpush1.msra.mxu0 %v2521_v40  ;;  %3151 = vmatpush1.msra.mxu1 %v2791_v42  ;;  %v2673_v40 = vld [vmem:[#allocation13 + $0x550] sm:$0xff]  ;;  %v2936_v42 = vld [vmem:[#allocation13 + $0xd88] sm:$0xff] }
 0x325   :  { %3227 = vmatprep.subr.mxu0 %v2514_v26  ;;  %3152 = vmatprep.subr.mxu1 %v2784_v44  ;;  %v2666_v26 = vld [vmem:[#allocation13 + $0x518] sm:$0xff]  ;;  %v2935_v44 = vld [vmem:[#allocation13 + $0xd80] sm:$0xff] }
 0x326   :  { %3192 = vmatprep.mubr.f32.mxu1 %v5224_v46  ;;  %3153 = vmatpush1.msra.mxu1 %v2783_v47  ;;  %v2665_v47 = vld [vmem:[#allocation13 + $0x510] sm:$0xff] }
 0x327   :  { %3228 = vmatpush1.msra.mxu0 %v2513_v50  ;;  %3154 = vmatprep.subr.mxu1 %v2776_v51  ;;  %v2928_v50 = vld [vmem:[#allocation13 + $0xd48] sm:$0xff]  ;;  %v2658_v51 = vld [vmem:[#allocation13 + $0x4d8] sm:$0xff] }
 0x328   :  { %3229 = vmatprep.subr.mxu0 %v2506_v52  ;;  %3155 = vmatpush1.msra.mxu1 %v2775_v54  ;;  %v2927_v52 = vld [vmem:[#allocation13 + $0xd40] sm:$0xff]  ;;  %v2657_v54 = vld [vmem:[#allocation13 + $0x4d0] sm:$0xff] }
 0x329   :  { %3230 = vmatpush1.msra.mxu0 %v2505_v56  ;;  %3156 = vmatprep.subr.mxu1 %v2768_v9  ;;  %v2920_v56 = vld [vmem:[#allocation13 + $0xd08] sm:$0xff]  ;;  %v2650_v9 = vld [vmem:[#allocation13 + $0x498] sm:$0xff] }
 0x32a   :  { %3231 = vmatprep.subr.mxu0 %v2754_v57  ;;  %3157 = vmatpush1.msra.mxu1 %v2767_v58  ;;  %v2919_v57 = vld [vmem:[#allocation13 + $0xd00] sm:$0xff]  ;;  %v2649_v58 = vld [vmem:[#allocation13 + $0x490] sm:$0xff] }
 0x32b   :  { %3232 = vmatpush2.msra.mxu0 %v2753_v59  ;;  %3158 = vmatprep.subr.mxu1 %v2760_v0  ;;  %v2912_v59 = vld [vmem:[#allocation13 + $0xcc8] sm:$0xff]  ;;  %v2642_v0 = vld [vmem:[#allocation13 + $0x458] sm:$0xff] }
 0x32c   :  { %3233 = vmatprep.subr.mxu0 %v2746_v24  ;;  %3159 = vmatpush1.msra.mxu1 %v2759_v61  ;;  %v2911_v24 = vld [vmem:[#allocation13 + $0xcc0] sm:$0xff]  ;;  %v2641_v61 = vld [vmem:[#allocation13 + $0x450] sm:$0xff] }
 0x32d   :  { %3234 = vmatpush2.msra.mxu0 %v2745_v4  ;;  %3160 = vmatprep.subr.mxu1 %v3008_v2  ;;  %v2904_v4 = vld [vmem:[#allocation13 + $0xc88] sm:$0xff]  ;;  %v2634_v2 = vld [vmem:[#allocation13 + $0x418] sm:$0xff] }
 0x32e   :  { %3235 = vmatprep.subr.mxu0 %v2738_v55  ;;  %3161 = vmatpush2.msra.mxu1 %v3007_v5  ;;  %v2903_v55 = vld [vmem:[#allocation13 + $0xc80] sm:$0xff]  ;;  %v2633_v5 = vld [vmem:[#allocation13 + $0x410] sm:$0xff] }
 0x32f   :  { %3236 = vmatpush2.msra.mxu0 %v2737_v6  ;;  %3162 = vmatprep.subr.mxu1 %v3000_v10  ;;  %v2896_v6 = vld [vmem:[#allocation13 + $0xc48] sm:$0xff] }
 0x330   :  { %3237 = vmatprep.subr.mxu0 %v2730_v11  ;;  %3163 = vmatpush2.msra.mxu1 %v2999_v12  ;;  %v2628_v10 = vld [vmem:[#allocation13 + $0x3e8] sm:$0xff]  ;;  %v2895_v11 = vld [vmem:[#allocation13 + $0xc40] sm:$0xff] }
 0x331   :  { %3238 = vmatpush2.msra.mxu0 %v2729_v13  ;;  %3164 = vmatprep.subr.mxu1 %v2992_v16  ;;  %v2888_v12 = vld [vmem:[#allocation13 + $0xc08] sm:$0xff]  ;;  %v2627_v13 = vld [vmem:[#allocation13 + $0x3e0] sm:$0xff] }
 0x332   :  { %3239 = vmatprep.subr.mxu0 %v2722_v18  ;;  %3165 = vmatpush2.msra.mxu1 %v2991_v48  ;;  %v2887_v16 = vld [vmem:[#allocation13 + $0xc00] sm:$0xff]  ;;  %v2620_v18 = vld [vmem:[#allocation13 + $0x3a8] sm:$0xff] }
 0x333   :  { %3240 = vmatpush2.msra.mxu0 %v2721_v19  ;;  %3166 = vmatprep.subr.mxu1 %v2984_v20  ;;  %v5227_v48 = vld [vmem:[#allocation5 + $0x10] sm:$0xff]  ;;  %v2882_v19 = vld [vmem:[#allocation13 + $0xbd8] sm:$0xff]  ;;  %v2881_v20 = vld [vmem:[#allocation13 + $0xbd0] sm:$0xff] }
 0x334   :  { %3241 = vmatprep.subr.mxu0 %v2714_v39  ;;  %3167 = vmatpush2.msra.mxu1 %v2983_v22  ;;  %v2619_v39 = vld [vmem:[#allocation13 + $0x3a0] sm:$0xff]  ;;  %v2874_v22 = vld [vmem:[#allocation13 + $0xb98] sm:$0xff] }
 0x335   :  { %3242 = vmatpush2.msra.mxu0 %v2713_v21  ;;  %3168 = vmatprep.subr.mxu1 %v2976_v8  ;;  %v2612_v21 = vld [vmem:[#allocation13 + $0x368] sm:$0xff]  ;;  %v2873_v8 = vld [vmem:[#allocation13 + $0xb90] sm:$0xff] }
 0x336   :  { %3243 = vmatprep.subr.mxu0 %v2706_v3  ;;  %3169 = vmatpush2.msra.mxu1 %v2975_v63  ;;  %v2611_v3 = vld [vmem:[#allocation13 + $0x360] sm:$0xff]  ;;  %v2866_v63 = vld [vmem:[#allocation13 + $0xb58] sm:$0xff] }
 0x337   :  { %3244 = vmatpush2.msra.mxu0 %v2705_v23  ;;  %3170 = vmatprep.subr.mxu1 %v2968_v1  ;;  %v2604_v23 = vld [vmem:[#allocation13 + $0x328] sm:$0xff]  ;;  %v2865_v1 = vld [vmem:[#allocation13 + $0xb50] sm:$0xff] }
 0x338   :  { %3245 = vmatprep.subr.mxu0 %v2698_v25  ;;  %3171 = vmatpush2.msra.mxu1 %v2967_v7  ;;  %v2858_v25 = vld [vmem:[#allocation13 + $0xb18] sm:$0xff]  ;;  %v2596_v7 = vld [vmem:[#allocation13 + $0x2e8] sm:$0xff] }
 0x339   :  { %3246 = vmatpush2.msra.mxu0 %v2697_v28  ;;  %3172 = vmatprep.subr.mxu1 %v2960_v30  ;;  %v2857_v28 = vld [vmem:[#allocation13 + $0xb10] sm:$0xff]  ;;  %v2595_v30 = vld [vmem:[#allocation13 + $0x2e0] sm:$0xff] }
 0x33a   :  { %3247 = vmatprep.subr.mxu0 %v2690_v31  ;;  %3173 = vmatpush2.msra.mxu1 %v2959_v32  ;;  %v2850_v31 = vld [vmem:[#allocation13 + $0xad8] sm:$0xff]  ;;  %v2588_v32 = vld [vmem:[#allocation13 + $0x2a8] sm:$0xff] }
 0x33b   :  { %3248 = vmatpush2.msra.mxu0 %v2689_v36  ;;  %3174 = vmatprep.subr.mxu1 %v2952_v33  ;;  %v2849_v36 = vld [vmem:[#allocation13 + $0xad0] sm:$0xff]  ;;  %v2587_v33 = vld [vmem:[#allocation13 + $0x2a0] sm:$0xff] }
 0x33c   :  { %3249 = vmatprep.subr.mxu0 %v2682_v17  ;;  %3175 = vmatpush2.msra.mxu1 %v2951_v34  ;;  %v2842_v17 = vld [vmem:[#allocation13 + $0xa98] sm:$0xff]  ;;  %v2580_v34 = vld [vmem:[#allocation13 + $0x268] sm:$0xff] }
 0x33d   :  { %3250 = vmatpush2.msra.mxu0 %v2681_v35  ;;  %3176 = vmatprep.subr.mxu1 %v2944_v43  ;;  %v2841_v35 = vld [vmem:[#allocation13 + $0xa90] sm:$0xff]  ;;  %v2579_v43 = vld [vmem:[#allocation13 + $0x260] sm:$0xff] }
 0x33e   :  { %3251 = vmatprep.subr.mxu0 %v2674_v37  ;;  %3177 = vmatpush2.msra.mxu1 %v2943_v15  ;;  %v2834_v37 = vld [vmem:[#allocation13 + $0xa58] sm:$0xff]  ;;  %v2572_v15 = vld [vmem:[#allocation13 + $0x228] sm:$0xff] }
 0x33f   :  { %3252 = vmatpush2.msra.mxu0 %v2673_v40  ;;  %3178 = vmatprep.subr.mxu1 %v2936_v42  ;;  %v2833_v40 = vld [vmem:[#allocation13 + $0xa50] sm:$0xff]  ;;  %v2571_v42 = vld [vmem:[#allocation13 + $0x220] sm:$0xff] }
 0x340   :  { %3253 = vmatprep.subr.mxu0 %v2666_v26  ;;  %3179 = vmatpush2.msra.mxu1 %v2935_v44  ;;  %v2826_v26 = vld [vmem:[#allocation13 + $0xa18] sm:$0xff]  ;;  %v2564_v44 = vld [vmem:[#allocation13 + $0x1e8] sm:$0xff] }
 0x341   :  { %3254 = vmatpush2.msra.mxu0 %v2665_v47  ;;  %3180 = vmatprep.subr.mxu1 %v2928_v50  ;;  %v2825_v47 = vld [vmem:[#allocation13 + $0xa10] sm:$0xff]  ;;  %v2563_v50 = vld [vmem:[#allocation13 + $0x1e0] sm:$0xff] }
 0x342   :  { %3255 = vmatprep.subr.mxu0 %v2658_v51  ;;  %3181 = vmatpush2.msra.mxu1 %v2927_v52  ;;  %v2818_v51 = vld [vmem:[#allocation13 + $0x9d8] sm:$0xff]  ;;  %v2556_v52 = vld [vmem:[#allocation13 + $0x1a8] sm:$0xff] }
 0x343   :  { %3256 = vmatpush2.msra.mxu0 %v2657_v54  ;;  %3182 = vmatprep.subr.mxu1 %v2920_v56  ;;  %v2817_v54 = vld [vmem:[#allocation13 + $0x9d0] sm:$0xff]  ;;  %v2555_v56 = vld [vmem:[#allocation13 + $0x1a0] sm:$0xff] }
 0x344   :  { %3257 = vmatprep.subr.mxu0 %v2650_v9  ;;  %3183 = vmatpush2.msra.mxu1 %v2919_v57  ;;  %v2810_v9 = vld [vmem:[#allocation13 + $0x998] sm:$0xff]  ;;  %v2548_v57 = vld [vmem:[#allocation13 + $0x168] sm:$0xff] }
 0x345   :  { %3258 = vmatpush2.msra.mxu0 %v2649_v58  ;;  %3184 = vmatprep.subr.mxu1 %v2912_v59  ;;  %v2809_v58 = vld [vmem:[#allocation13 + $0x990] sm:$0xff]  ;;  %v2547_v59 = vld [vmem:[#allocation13 + $0x160] sm:$0xff] }
 0x346   :  { %3259 = vmatprep.subr.mxu0 %v2642_v0  ;;  %3185 = vmatpush2.msra.mxu1 %v2911_v24  ;;  %v2802_v0 = vld [vmem:[#allocation13 + $0x958] sm:$0xff]  ;;  %v2540_v24 = vld [vmem:[#allocation13 + $0x128] sm:$0xff] }
 0x347   :  { %3260 = vmatpush2.msra.mxu0 %v2641_v61  ;;  %3186 = vmatprep.subr.mxu1 %v2904_v4  ;;  %v2801_v61 = vld [vmem:[#allocation13 + $0x950] sm:$0xff]  ;;  %v2539_v4 = vld [vmem:[#allocation13 + $0x120] sm:$0xff] }
 0x348   :  { %3261 = vmatprep.subr.mxu0 %v2634_v2  ;;  %3187 = vmatpush2.msra.mxu1 %v2903_v55  ;;  %v2794_v2 = vld [vmem:[#allocation13 + $0x918] sm:$0xff]  ;;  %v2532_v55 = vld [vmem:[#allocation13 + $0xe8] sm:$0xff] }
 0x349   :  { %3262 = vmatpush2.msra.mxu0 %v2633_v5  ;;  %3188 = vmatprep.subr.mxu1 %v2896_v6  ;;  %v2793_v5 = vld [vmem:[#allocation13 + $0x910] sm:$0xff]  ;;  %v2531_v6 = vld [vmem:[#allocation13 + $0xe0] sm:$0xff] }
 0x34a   :  { %3341 = vmatprep.subr.mxu0 %v2628_v10  ;;  %3189 = vmatpush2.msra.mxu1 %v2895_v11  ;;  %v2786_v10 = vld [vmem:[#allocation13 + $0x8d8] sm:$0xff]  ;;  %v2524_v11 = vld [vmem:[#allocation13 + $0xa8] sm:$0xff] }
 0x34b   :  { %3264 = vmatmul.mubr.f32.vlgmr.msra.gmra.mxu0 %v5218_v38  ;;  %3190 = vmatprep.subr.mxu1 %v2888_v12  ;;  %v2603_v38 = vld [vmem:[#allocation13 + $0x320] sm:$0xff]  ;;  %v2785_v12 = vld [vmem:[#allocation13 + $0x8d0] sm:$0xff] }
 0x34c   :  { %3342 = vmatpush1.msra.mxu0 %v2627_v13  ;;  %3191 = vmatpush2.msra.mxu1 %v2887_v16  ;;  %v2523_v13 = vld [vmem:[#allocation13 + $0xa0] sm:$0xff]  ;;  %v2778_v16 = vld [vmem:[#allocation13 + $0x898] sm:$0xff] }
 0x34d   :  { %3343 = vmatprep.subr.mxu0 %v2620_v18  ;;  %3193 = vmatmul.mubr.f32.vlgmr.msra.gmra.mxu1 %v5227_v48  ;;  %v2516_v18 = vld [vmem:[#allocation13 + $0x68] sm:$0xff] }
 0x34e   :  { %3270 = vmatprep.subr.mxu1 %v2882_v19  ;;  %3344 = vmatpush1.msra.mxu0 %v2619_v39  ;;  %v2777_v19 = vld [vmem:[#allocation13 + $0x890] sm:$0xff]  ;;  %v2515_v39 = vld [vmem:[#allocation13 + $0x60] sm:$0xff] }
 0x34f   :  { %3271 = vmatpush1.msra.mxu1 %v2881_v20  ;;  %3345 = vmatprep.subr.mxu0 %v2612_v21  ;;  %v2770_v20 = vld [vmem:[#allocation13 + $0x858] sm:$0xff]  ;;  %v2508_v21 = vld [vmem:[#allocation13 + $0x28] sm:$0xff] }
 0x350   :  { %3272 = vmatprep.subr.mxu1 %v2874_v22  ;;  %3346 = vmatpush1.msra.mxu0 %v2611_v3  ;;  %v2769_v22 = vld [vmem:[#allocation13 + $0x850] sm:$0xff]  ;;  %v2507_v3 = vld [vmem:[#allocation13 + $0x20] sm:$0xff] }
 0x351   :  { %3273 = vmatpush1.msra.mxu1 %v2873_v8  ;;  %3347 = vmatprep.subr.mxu0 %v2604_v23  ;;  %v2762_v8 = vld [vmem:[#allocation13 + $0x818] sm:$0xff]  ;;  %v2756_v23 = vld [vmem:[#allocation13 + $0x7e8] sm:$0xff] }
 0x352   :  { %3274 = vmatprep.subr.mxu1 %v2866_v63  ;;  %3348 = vmatpush1.msra.mxu0 %v2603_v38  ;;  %v2761_v63 = vld [vmem:[#allocation13 + $0x810] sm:$0xff]  ;;  %v2755_v38 = vld [vmem:[#allocation13 + $0x7e0] sm:$0xff] }
 0x353   :  { %3275 = vmatpush1.msra.mxu1 %v2865_v1  ;;  %3349 = vmatprep.subr.mxu0 %v2596_v7  ;;  %v3010_v1 = vld [vmem:[#allocation13 + $0xfd8] sm:$0xff]  ;;  %v2748_v7 = vld [vmem:[#allocation13 + $0x7a8] sm:$0xff] }
 0x354   :  { %3276 = vmatprep.subr.mxu1 %v2858_v25  ;;  %3350 = vmatpush1.msra.mxu0 %v2595_v30  ;;  %v3009_v25 = vld [vmem:[#allocation13 + $0xfd0] sm:$0xff]  ;;  %v2747_v30 = vld [vmem:[#allocation13 + $0x7a0] sm:$0xff] }
 0x355   :  { %3277 = vmatpush1.msra.mxu1 %v2857_v28  ;;  %3351 = vmatprep.subr.mxu0 %v2588_v32  ;;  %v3002_v28 = vld [vmem:[#allocation13 + $0xf98] sm:$0xff] }
 0x356   :  { %3278 = vmatprep.subr.mxu1 %v2850_v31  ;;  %3352 = vmatpush1.msra.mxu0 %v2587_v33  ;;  %v3001_v31 = vld [vmem:[#allocation13 + $0xf90] sm:$0xff]  ;;  %v2994_v32 = vld [vmem:[#allocation13 + $0xf58] sm:$0xff] }
 0x357   :  { %3279 = vmatpush1.msra.mxu1 %v2849_v36  ;;  %3353 = vmatprep.subr.mxu0 %v2580_v34  ;;  %v2739_v36 = vld [vmem:[#allocation13 + $0x760] sm:$0xff]  ;;  %v2993_v33 = vld [vmem:[#allocation13 + $0xf50] sm:$0xff]  ;;  %v2986_v34 = vld [vmem:[#allocation13 + $0xf18] sm:$0xff] }
 0x358   :  { %3280 = vmatprep.subr.mxu1 %v2842_v17  ;;  %3354 = vmatpush1.msra.mxu0 %v2579_v43  ;;  %v2732_v17 = vld [vmem:[#allocation13 + $0x728] sm:$0xff]  ;;  %v2985_v43 = vld [vmem:[#allocation13 + $0xf10] sm:$0xff] }
 0x359   :  { %3281 = vmatpush1.msra.mxu1 %v2841_v35  ;;  %3355 = vmatprep.subr.mxu0 %v2572_v15  ;;  %v2731_v35 = vld [vmem:[#allocation13 + $0x720] sm:$0xff]  ;;  %v2978_v15 = vld [vmem:[#allocation13 + $0xed8] sm:$0xff] }
 0x35a   :  { %3282 = vmatprep.subr.mxu1 %v2834_v37  ;;  %3356 = vmatpush1.msra.mxu0 %v2571_v42  ;;  %v2724_v37 = vld [vmem:[#allocation13 + $0x6e8] sm:$0xff]  ;;  %v2977_v42 = vld [vmem:[#allocation13 + $0xed0] sm:$0xff] }
 0x35b   :  { %3283 = vmatpush1.msra.mxu1 %v2833_v40  ;;  %3357 = vmatprep.subr.mxu0 %v2564_v44  ;;  %v2723_v40 = vld [vmem:[#allocation13 + $0x6e0] sm:$0xff]  ;;  %v2970_v44 = vld [vmem:[#allocation13 + $0xe98] sm:$0xff] }
 0x35c   :  { %3284 = vmatprep.subr.mxu1 %v2826_v26  ;;  %3358 = vmatpush1.msra.mxu0 %v2563_v50  ;;  %v2716_v26 = vld [vmem:[#allocation13 + $0x6a8] sm:$0xff]  ;;  %v2969_v50 = vld [vmem:[#allocation13 + $0xe90] sm:$0xff] }
 0x35d   :  { %3285 = vmatpush1.msra.mxu1 %v2825_v47  ;;  %3359 = vmatprep.subr.mxu0 %v2556_v52  ;;  %v2715_v47 = vld [vmem:[#allocation13 + $0x6a0] sm:$0xff]  ;;  %v2962_v52 = vld [vmem:[#allocation13 + $0xe58] sm:$0xff] }
 0x35e   :  { %3286 = vmatprep.subr.mxu1 %v2818_v51  ;;  %3360 = vmatpush1.msra.mxu0 %v2555_v56  ;;  %v2708_v51 = vld [vmem:[#allocation13 + $0x668] sm:$0xff]  ;;  %v2961_v56 = vld [vmem:[#allocation13 + $0xe50] sm:$0xff] }
 0x35f   :  { %3287 = vmatpush1.msra.mxu1 %v2817_v54  ;;  %3361 = vmatprep.subr.mxu0 %v2548_v57  ;;  %v2707_v54 = vld [vmem:[#allocation13 + $0x660] sm:$0xff]  ;;  %v2954_v57 = vld [vmem:[#allocation13 + $0xe18] sm:$0xff] }
 0x360   :  { %3288 = vmatprep.subr.mxu1 %v2810_v9  ;;  %3362 = vmatpush1.msra.mxu0 %v2547_v59  ;;  %v2700_v9 = vld [vmem:[#allocation13 + $0x628] sm:$0xff]  ;;  %v2953_v59 = vld [vmem:[#allocation13 + $0xe10] sm:$0xff] }
 0x361   :  { %3289 = vmatpush1.msra.mxu1 %v2809_v58  ;;  %3363 = vmatprep.subr.mxu0 %v2540_v24  ;;  %v2699_v58 = vld [vmem:[#allocation13 + $0x620] sm:$0xff]  ;;  %v2946_v24 = vld [vmem:[#allocation13 + $0xdd8] sm:$0xff] }
 0x362   :  { %3290 = vmatprep.subr.mxu1 %v2802_v0  ;;  %3364 = vmatpush1.msra.mxu0 %v2539_v4  ;;  %v2692_v0 = vld [vmem:[#allocation13 + $0x5e8] sm:$0xff]  ;;  %v2945_v4 = vld [vmem:[#allocation13 + $0xdd0] sm:$0xff] }
 0x363   :  { %3291 = vmatpush1.msra.mxu1 %v2801_v61  ;;  %3365 = vmatprep.subr.mxu0 %v2532_v55  ;;  %v2691_v61 = vld [vmem:[#allocation13 + $0x5e0] sm:$0xff]  ;;  %v2938_v55 = vld [vmem:[#allocation13 + $0xd98] sm:$0xff] }
 0x364   :  { %3292 = vmatprep.subr.mxu1 %v2794_v2  ;;  %3366 = vmatpush1.msra.mxu0 %v2531_v6  ;;  %v2684_v2 = vld [vmem:[#allocation13 + $0x5a8] sm:$0xff]  ;;  %v2937_v6 = vld [vmem:[#allocation13 + $0xd90] sm:$0xff] }
 0x365   :  { %3293 = vmatpush1.msra.mxu1 %v2793_v5  ;;  %3367 = vmatprep.subr.mxu0 %v2524_v11  ;;  %v2683_v5 = vld [vmem:[#allocation13 + $0x5a0] sm:$0xff]  ;;  %v2930_v11 = vld [vmem:[#allocation13 + $0xd58] sm:$0xff] }
 0x366   :  { %3294 = vmatprep.subr.mxu1 %v2786_v10  ;;  %3368 = vmatpush1.msra.mxu0 %v2523_v13  ;;  %v2676_v10 = vld [vmem:[#allocation13 + $0x568] sm:$0xff]  ;;  %v2929_v13 = vld [vmem:[#allocation13 + $0xd50] sm:$0xff] }
 0x367   :  { %3295 = vmatpush1.msra.mxu1 %v2785_v12  ;;  %3369 = vmatprep.subr.mxu0 %v2516_v18  ;;  %v2675_v12 = vld [vmem:[#allocation13 + $0x560] sm:$0xff]  ;;  %v2922_v18 = vld [vmem:[#allocation13 + $0xd18] sm:$0xff] }
 0x368   :  { %3296 = vmatprep.subr.mxu1 %v2778_v16  ;;  %3334 = vmatprep.mubr.f32.mxu1 %v5224_v46  ;;  %v2740_v46 = vld [vmem:[#allocation13 + $0x768] sm:$0xff] }
 0x369   :  { %3297 = vmatpush1.msra.mxu1 %v2777_v19  ;;  %3370 = vmatpush1.msra.mxu0 %v2515_v39  ;;  %v2668_v16 = vld [vmem:[#allocation13 + $0x528] sm:$0xff]  ;;  %v2667_v19 = vld [vmem:[#allocation13 + $0x520] sm:$0xff] }
 0x36a   :  { %3298 = vmatprep.subr.mxu1 %v2770_v20  ;;  %3371 = vmatprep.subr.mxu0 %v2508_v21  ;;  %v2921_v20 = vld [vmem:[#allocation13 + $0xd10] sm:$0xff]  ;;  %v2660_v39 = vld [vmem:[#allocation13 + $0x4e8] sm:$0xff]  ;;  %v2659_v21 = vld [vmem:[#allocation13 + $0x4e0] sm:$0xff] }
 0x36b   :  { %3299 = vmatpush1.msra.mxu1 %v2769_v22  ;;  %3372 = vmatpush1.msra.mxu0 %v2507_v3  ;;  %v2914_v22 = vld [vmem:[#allocation13 + $0xcd8] sm:$0xff]  ;;  %v2652_v3 = vld [vmem:[#allocation13 + $0x4a8] sm:$0xff] }
 0x36c   :  { %3300 = vmatprep.subr.mxu1 %v2762_v8  ;;  %3373 = vmatprep.subr.mxu0 %v2756_v23  ;;  %v2913_v8 = vld [vmem:[#allocation13 + $0xcd0] sm:$0xff]  ;;  %v2651_v23 = vld [vmem:[#allocation13 + $0x4a0] sm:$0xff] }
 0x36d   :  { %3301 = vmatpush1.msra.mxu1 %v2761_v63  ;;  %3374 = vmatpush2.msra.mxu0 %v2755_v38  ;;  %v2906_v63 = vld [vmem:[#allocation13 + $0xc98] sm:$0xff]  ;;  %v2644_v38 = vld [vmem:[#allocation13 + $0x468] sm:$0xff] }
 0x36e   :  { %3302 = vmatprep.subr.mxu1 %v3010_v1  ;;  %3375 = vmatprep.subr.mxu0 %v2748_v7  ;;  %v2905_v1 = vld [vmem:[#allocation13 + $0xc90] sm:$0xff]  ;;  %v2643_v7 = vld [vmem:[#allocation13 + $0x460] sm:$0xff] }
 0x36f   :  { %3303 = vmatpush2.msra.mxu1 %v3009_v25  ;;  %3376 = vmatpush2.msra.mxu0 %v2747_v30  ;;  %v2898_v25 = vld [vmem:[#allocation13 + $0xc58] sm:$0xff]  ;;  %v2636_v30 = vld [vmem:[#allocation13 + $0x428] sm:$0xff] }
 0x370   :  { %3304 = vmatprep.subr.mxu1 %v3002_v28  ;;  %3377 = vmatprep.subr.mxu0 %v2740_v46  ;;  %v2897_v28 = vld [vmem:[#allocation13 + $0xc50] sm:$0xff]  ;;  %v2635_v46 = vld [vmem:[#allocation13 + $0x420] sm:$0xff] }
 0x371   :  { %3305 = vmatpush2.msra.mxu1 %v3001_v31  ;;  %3378 = vmatpush2.msra.mxu0 %v2739_v36  ;;  %v2890_v31 = vld [vmem:[#allocation13 + $0xc18] sm:$0xff]  ;;  %v2884_v36 = vld [vmem:[#allocation13 + $0xbe8] sm:$0xff] }
 0x372   :  { %3306 = vmatprep.subr.mxu1 %v2994_v32  ;;  %3379 = vmatprep.subr.mxu0 %v2732_v17  ;;  %v2889_v32 = vld [vmem:[#allocation13 + $0xc10] sm:$0xff]  ;;  %v2630_v17 = vld [vmem:[#allocation13 + $0x3f8] sm:$0xff] }
 0x373   :  { %3307 = vmatpush2.msra.mxu1 %v2993_v33  ;;  %3380 = vmatpush2.msra.mxu0 %v2731_v35  ;;  %v2883_v33 = vld [vmem:[#allocation13 + $0xbe0] sm:$0xff] }
 0x374   :  { %3308 = vmatprep.subr.mxu1 %v2986_v34  ;;  %3381 = vmatprep.subr.mxu0 %v2724_v37  ;;  %v2876_v34 = vld [vmem:[#allocation13 + $0xba8] sm:$0xff]  ;;  %v5232_v35 = vld [vmem:[#allocation5 + $0x8] sm:$0xff]  ;;  %v2629_v37 = vld [vmem:[#allocation13 + $0x3f0] sm:$0xff] }
 0x375   :  { %3309 = vmatpush2.msra.mxu1 %v2985_v43  ;;  %3382 = vmatpush2.msra.mxu0 %v2723_v40  ;;  %v2875_v43 = vld [vmem:[#allocation13 + $0xba0] sm:$0xff]  ;;  %v2622_v40 = vld [vmem:[#allocation13 + $0x3b8] sm:$0xff] }
 0x376   :  { %3310 = vmatprep.subr.mxu1 %v2978_v15  ;;  %3383 = vmatprep.subr.mxu0 %v2716_v26  ;;  %v2868_v15 = vld [vmem:[#allocation13 + $0xb68] sm:$0xff]  ;;  %v5236_v26 = vld [vmem:[#allocation5] sm:$0xff] }
 0x377   :  { %3311 = vmatpush2.msra.mxu1 %v2977_v42  ;;  %3384 = vmatpush2.msra.mxu0 %v2715_v47  ;;  %v2867_v42 = vld [vmem:[#allocation13 + $0xb60] sm:$0xff]  ;;  %v2860_v47 = vld [vmem:[#allocation13 + $0xb28] sm:$0xff] }
 0x378   :  { %3312 = vmatprep.subr.mxu1 %v2970_v44  ;;  %3385 = vmatprep.subr.mxu0 %v2708_v51  ;;  %v2621_v44 = vld [vmem:[#allocation13 + $0x3b0] sm:$0xff] }
 0x379   :  { %3313 = vmatpush2.msra.mxu1 %v2969_v50  ;;  %3386 = vmatpush2.msra.mxu0 %v2707_v54  ;;  %v2614_v50 = vld [vmem:[#allocation13 + $0x378] sm:$0xff]  ;;  %v2613_v51 = vld [vmem:[#allocation13 + $0x370] sm:$0xff] }
 0x37a   :  { %3314 = vmatprep.subr.mxu1 %v2962_v52  ;;  %3387 = vmatprep.subr.mxu0 %v2700_v9  ;;  %v2852_v52 = vld [vmem:[#allocation13 + $0xae8] sm:$0xff]  ;;  %v2606_v54 = vld [vmem:[#allocation13 + $0x338] sm:$0xff]  ;;  %v2605_v9 = vld [vmem:[#allocation13 + $0x330] sm:$0xff] }
 0x37b   :  { %3315 = vmatpush2.msra.mxu1 %v2961_v56  ;;  %3388 = vmatpush2.msra.mxu0 %v2699_v58  ;;  %v2851_v56 = vld [vmem:[#allocation13 + $0xae0] sm:$0xff]  ;;  %v2598_v58 = vld [vmem:[#allocation13 + $0x2f8] sm:$0xff] }
 0x37c   :  { %3316 = vmatprep.subr.mxu1 %v2954_v57  ;;  %3389 = vmatprep.subr.mxu0 %v2692_v0  ;;  %v2844_v57 = vld [vmem:[#allocation13 + $0xaa8] sm:$0xff]  ;;  %v2597_v0 = vld [vmem:[#allocation13 + $0x2f0] sm:$0xff] }
 0x37d   :  { %3317 = vmatpush2.msra.mxu1 %v2953_v59  ;;  %3390 = vmatpush2.msra.mxu0 %v2691_v61  ;;  %v2843_v59 = vld [vmem:[#allocation13 + $0xaa0] sm:$0xff]  ;;  %v2590_v61 = vld [vmem:[#allocation13 + $0x2b8] sm:$0xff] }
 0x37e   :  { %3318 = vmatprep.subr.mxu1 %v2946_v24  ;;  %3391 = vmatprep.subr.mxu0 %v2684_v2  ;;  %v2836_v24 = vld [vmem:[#allocation13 + $0xa68] sm:$0xff]  ;;  %v2589_v2 = vld [vmem:[#allocation13 + $0x2b0] sm:$0xff] }
 0x37f   :  { %3319 = vmatpush2.msra.mxu1 %v2945_v4  ;;  %3392 = vmatpush2.msra.mxu0 %v2683_v5  ;;  %v2835_v4 = vld [vmem:[#allocation13 + $0xa60] sm:$0xff]  ;;  %v2582_v5 = vld [vmem:[#allocation13 + $0x278] sm:$0xff] }
 0x380   :  { %3320 = vmatprep.subr.mxu1 %v2938_v55  ;;  %3393 = vmatprep.subr.mxu0 %v2676_v10  ;;  %v2828_v55 = vld [vmem:[#allocation13 + $0xa28] sm:$0xff]  ;;  %v2581_v10 = vld [vmem:[#allocation13 + $0x270] sm:$0xff] }
 0x381   :  { %3321 = vmatpush2.msra.mxu1 %v2937_v6  ;;  %3394 = vmatpush2.msra.mxu0 %v2675_v12  ;;  %v2827_v6 = vld [vmem:[#allocation13 + $0xa20] sm:$0xff]  ;;  %v2574_v12 = vld [vmem:[#allocation13 + $0x238] sm:$0xff] }
 0x382   :  { %3322 = vmatprep.subr.mxu1 %v2930_v11  ;;  %3395 = vmatprep.subr.mxu0 %v2668_v16  ;;  %v2820_v11 = vld [vmem:[#allocation13 + $0x9e8] sm:$0xff]  ;;  %v2573_v16 = vld [vmem:[#allocation13 + $0x230] sm:$0xff] }
 0x383   :  { %3323 = vmatpush2.msra.mxu1 %v2929_v13  ;;  %3396 = vmatpush2.msra.mxu0 %v2667_v19  ;;  %v2819_v13 = vld [vmem:[#allocation13 + $0x9e0] sm:$0xff]  ;;  %v2566_v19 = vld [vmem:[#allocation13 + $0x1f8] sm:$0xff] }
 0x384   :  { %3324 = vmatprep.subr.mxu1 %v2922_v18  ;;  %3397 = vmatprep.subr.mxu0 %v2660_v39  ;;  %v2812_v18 = vld [vmem:[#allocation13 + $0x9a8] sm:$0xff]  ;;  %v2565_v39 = vld [vmem:[#allocation13 + $0x1f0] sm:$0xff] }
 0x385   :  { %3325 = vmatpush2.msra.mxu1 %v2921_v20  ;;  %3398 = vmatpush2.msra.mxu0 %v2659_v21  ;;  %v2811_v20 = vld [vmem:[#allocation13 + $0x9a0] sm:$0xff]  ;;  %v2558_v21 = vld [vmem:[#allocation13 + $0x1b8] sm:$0xff] }
 0x386   :  { %3326 = vmatprep.subr.mxu1 %v2914_v22  ;;  %3399 = vmatprep.subr.mxu0 %v2652_v3  ;;  %v2804_v22 = vld [vmem:[#allocation13 + $0x968] sm:$0xff]  ;;  %v2557_v3 = vld [vmem:[#allocation13 + $0x1b0] sm:$0xff] }
 0x387   :  { %3327 = vmatpush2.msra.mxu1 %v2913_v8  ;;  %3400 = vmatpush2.msra.mxu0 %v2651_v23  ;;  %v2803_v8 = vld [vmem:[#allocation13 + $0x960] sm:$0xff]  ;;  %v2550_v23 = vld [vmem:[#allocation13 + $0x178] sm:$0xff] }
 0x388   :  { %3328 = vmatprep.subr.mxu1 %v2906_v63  ;;  %3401 = vmatprep.subr.mxu0 %v2644_v38  ;;  %v2796_v63 = vld [vmem:[#allocation13 + $0x928] sm:$0xff]  ;;  %v2549_v38 = vld [vmem:[#allocation13 + $0x170] sm:$0xff] }
 0x389   :  { %3329 = vmatpush2.msra.mxu1 %v2905_v1  ;;  %3402 = vmatpush2.msra.mxu0 %v2643_v7  ;;  %v2795_v1 = vld [vmem:[#allocation13 + $0x920] sm:$0xff]  ;;  %v2542_v7 = vld [vmem:[#allocation13 + $0x138] sm:$0xff] }
 0x38a   :  { %3330 = vmatprep.subr.mxu1 %v2898_v25  ;;  %3403 = vmatprep.subr.mxu0 %v2636_v30  ;;  %v2788_v25 = vld [vmem:[#allocation13 + $0x8e8] sm:$0xff]  ;;  %v2541_v30 = vld [vmem:[#allocation13 + $0x130] sm:$0xff] }
 0x38b   :  { %3331 = vmatpush2.msra.mxu1 %v2897_v28  ;;  %3404 = vmatpush2.msra.mxu0 %v2635_v46  ;;  %v2787_v28 = vld [vmem:[#allocation13 + $0x8e0] sm:$0xff]  ;;  %v2534_v46 = vld [vmem:[#allocation13 + $0xf8] sm:$0xff] }
 0x38c   :  { %3332 = vmatprep.subr.mxu1 %v2890_v31  ;;  %3405 = vmatprep.mubr.f32.mxu0 %v5232_v35  ;;  %v2780_v31 = vld [vmem:[#allocation13 + $0x8a8] sm:$0xff] }
 0x38d   :  { %3333 = vmatpush2.msra.mxu1 %v2889_v32  ;;  %3483 = vmatprep.subr.mxu0 %v2630_v17  ;;  %v2779_v32 = vld [vmem:[#allocation13 + $0x8a0] sm:$0xff]  ;;  %v2526_v17 = vld [vmem:[#allocation13 + $0xb8] sm:$0xff] }
 0x38e   :  { %3335 = vmatmul.mubr.f32.vlgmr.msra.gmra.mxu1 %v5227_v48  ;;  %3412 = vmatprep.subr.mxu1 %v2884_v36  ;;  %v2859_v48 = vld [vmem:[#allocation13 + $0xb20] sm:$0xff]  ;;  %v2533_v36 = vld [vmem:[#allocation13 + $0xf0] sm:$0xff] }
 0x38f   :  { %3413 = vmatpush1.msra.mxu1 %v2883_v33  ;;  %3406 = vmatmul.mubr.f32.vlgmr.msra.gmra.mxu0 %v5236_v26  ;;  %v2772_v33 = vld [vmem:[#allocation13 + $0x868] sm:$0xff] }
 0x390   :  { %3414 = vmatprep.subr.mxu1 %v2876_v34  ;;  %3484 = vmatpush1.msra.mxu0 %v2629_v37  ;;  %v2771_v34 = vld [vmem:[#allocation13 + $0x860] sm:$0xff]  ;;  %v2764_v37 = vld [vmem:[#allocation13 + $0x828] sm:$0xff] }
 0x391   :  { %3415 = vmatpush1.msra.mxu1 %v2875_v43  ;;  %3485 = vmatprep.subr.mxu0 %v2622_v40  ;;  %v2525_v43 = vld [vmem:[#allocation13 + $0xb0] sm:$0xff]  ;;  %v2763_v40 = vld [vmem:[#allocation13 + $0x820] sm:$0xff] }
 0x392   :  { %3416 = vmatprep.subr.mxu1 %v2868_v15  ;;  %3486 = vmatpush1.msra.mxu0 %v2621_v44  ;;  %v2518_v15 = vld [vmem:[#allocation13 + $0x78] sm:$0xff]  ;;  %v2517_v44 = vld [vmem:[#allocation13 + $0x70] sm:$0xff] }
 0x393   :  { %3417 = vmatpush1.msra.mxu1 %v2867_v42  ;;  %3487 = vmatprep.subr.mxu0 %v2614_v50  ;;  %v3012_v42 = vld [vmem:[#allocation13 + $0xfe8] sm:$0xff]  ;;  %v2510_v50 = vld [vmem:[#allocation13 + $0x38] sm:$0xff] }
 0x394   :  { %3418 = vmatprep.subr.mxu1 %v2860_v47  ;;  %3488 = vmatpush1.msra.mxu0 %v2613_v51  ;;  %v3011_v47 = vld [vmem:[#allocation13 + $0xfe0] sm:$0xff]  ;;  %v5239_v51 = vld [vmem:[#allocation5 + $0x18] sm:$0xff] }
 0x395   :  { %3419 = vmatpush1.msra.mxu1 %v2859_v48  ;;  %3489 = vmatprep.subr.mxu0 %v2606_v54  ;;  %v3004_v48 = vld [vmem:[#allocation13 + $0xfa8] sm:$0xff]  ;;  %v3003_v54 = vld [vmem:[#allocation13 + $0xfa0] sm:$0xff] }
 0x396   :  { %3420 = vmatprep.subr.mxu1 %v2852_v52  ;;  %3490 = vmatpush1.msra.mxu0 %v2605_v9  ;;  %v2509_v52 = vld [vmem:[#allocation13 + $0x30] sm:$0xff]  ;;  %v2996_v9 = vld [vmem:[#allocation13 + $0xf68] sm:$0xff] }
 0x397   :  { %3421 = vmatpush1.msra.mxu1 %v2851_v56  ;;  %3491 = vmatprep.subr.mxu0 %v2598_v58  ;;  %v2758_v56 = vld [vmem:[#allocation13 + $0x7f8] sm:$0xff]  ;;  %v2995_v58 = vld [vmem:[#allocation13 + $0xf60] sm:$0xff] }
 0x398   :  { %3422 = vmatprep.subr.mxu1 %v2844_v57  ;;  %3492 = vmatpush1.msra.mxu0 %v2597_v0  ;;  %v2757_v57 = vld [vmem:[#allocation13 + $0x7f0] sm:$0xff]  ;;  %v2988_v0 = vld [vmem:[#allocation13 + $0xf28] sm:$0xff] }
 0x399   :  { %3423 = vmatpush1.msra.mxu1 %v2843_v59  ;;  %3493 = vmatprep.subr.mxu0 %v2590_v61  ;;  %v2750_v59 = vld [vmem:[#allocation13 + $0x7b8] sm:$0xff]  ;;  %v2987_v61 = vld [vmem:[#allocation13 + $0xf20] sm:$0xff] }
 0x39a   :  { %3424 = vmatprep.subr.mxu1 %v2836_v24  ;;  %3494 = vmatpush1.msra.mxu0 %v2589_v2  ;;  %v2749_v24 = vld [vmem:[#allocation13 + $0x7b0] sm:$0xff]  ;;  %v2980_v2 = vld [vmem:[#allocation13 + $0xee8] sm:$0xff] }
 0x39b   :  { %3425 = vmatpush1.msra.mxu1 %v2835_v4  ;;  %3495 = vmatprep.subr.mxu0 %v2582_v5  ;;  %v2742_v4 = vld [vmem:[#allocation13 + $0x778] sm:$0xff]  ;;  %v2979_v5 = vld [vmem:[#allocation13 + $0xee0] sm:$0xff] }
 0x39c   :  { %3426 = vmatprep.subr.mxu1 %v2828_v55  ;;  %3496 = vmatpush1.msra.mxu0 %v2581_v10  ;;  %v2741_v55 = vld [vmem:[#allocation13 + $0x770] sm:$0xff]  ;;  %v2972_v10 = vld [vmem:[#allocation13 + $0xea8] sm:$0xff] }
 0x39d   :  { %3427 = vmatpush1.msra.mxu1 %v2827_v6  ;;  %3497 = vmatprep.subr.mxu0 %v2574_v12  ;;  %v2734_v6 = vld [vmem:[#allocation13 + $0x738] sm:$0xff]  ;;  %v2971_v12 = vld [vmem:[#allocation13 + $0xea0] sm:$0xff] }
 0x39e   :  { %3428 = vmatprep.subr.mxu1 %v2820_v11  ;;  %3498 = vmatpush1.msra.mxu0 %v2573_v16  ;;  %v2733_v11 = vld [vmem:[#allocation13 + $0x730] sm:$0xff]  ;;  %v2964_v16 = vld [vmem:[#allocation13 + $0xe68] sm:$0xff] }
 0x39f   :  { %3429 = vmatpush1.msra.mxu1 %v2819_v13  ;;  %3499 = vmatprep.subr.mxu0 %v2566_v19  ;;  %v2726_v13 = vld [vmem:[#allocation13 + $0x6f8] sm:$0xff]  ;;  %v2963_v19 = vld [vmem:[#allocation13 + $0xe60] sm:$0xff] }
 0x3a0   :  { %3430 = vmatprep.subr.mxu1 %v2812_v18  ;;  %3500 = vmatpush1.msra.mxu0 %v2565_v39  ;;  %v2725_v18 = vld [vmem:[#allocation13 + $0x6f0] sm:$0xff]  ;;  %v2956_v39 = vld [vmem:[#allocation13 + $0xe28] sm:$0xff] }
 0x3a1   :  { %3431 = vmatpush1.msra.mxu1 %v2811_v20  ;;  %3501 = vmatprep.subr.mxu0 %v2558_v21  ;;  %v2718_v20 = vld [vmem:[#allocation13 + $0x6b8] sm:$0xff]  ;;  %v2955_v21 = vld [vmem:[#allocation13 + $0xe20] sm:$0xff] }
 0x3a2   :  { %3432 = vmatprep.subr.mxu1 %v2804_v22  ;;  %3502 = vmatpush1.msra.mxu0 %v2557_v3  ;;  %v2717_v22 = vld [vmem:[#allocation13 + $0x6b0] sm:$0xff]  ;;  %v2948_v3 = vld [vmem:[#allocation13 + $0xde8] sm:$0xff] }
 0x3a3   :  { %3433 = vmatpush1.msra.mxu1 %v2803_v8  ;;  %3503 = vmatprep.subr.mxu0 %v2550_v23  ;;  %v2710_v8 = vld [vmem:[#allocation13 + $0x678] sm:$0xff]  ;;  %v2947_v23 = vld [vmem:[#allocation13 + $0xde0] sm:$0xff] }
 0x3a4   :  { %3434 = vmatprep.subr.mxu1 %v2796_v63  ;;  %3504 = vmatpush1.msra.mxu0 %v2549_v38  ;;  %v2709_v63 = vld [vmem:[#allocation13 + $0x670] sm:$0xff]  ;;  %v2940_v38 = vld [vmem:[#allocation13 + $0xda8] sm:$0xff] }
 0x3a5   :  { %3435 = vmatpush1.msra.mxu1 %v2795_v1  ;;  %3505 = vmatprep.subr.mxu0 %v2542_v7  ;;  %v2702_v1 = vld [vmem:[#allocation13 + $0x638] sm:$0xff]  ;;  %v2939_v7 = vld [vmem:[#allocation13 + $0xda0] sm:$0xff] }
 0x3a6   :  { %3436 = vmatprep.subr.mxu1 %v2788_v25  ;;  %3506 = vmatpush1.msra.mxu0 %v2541_v30  ;;  %v2701_v25 = vld [vmem:[#allocation13 + $0x630] sm:$0xff]  ;;  %v2932_v30 = vld [vmem:[#allocation13 + $0xd68] sm:$0xff] }
 0x3a7   :  { %3437 = vmatpush1.msra.mxu1 %v2787_v28  ;;  %3507 = vmatprep.subr.mxu0 %v2534_v46  ;;  %v2694_v28 = vld [vmem:[#allocation13 + $0x5f8] sm:$0xff] }
 0x3a8   :  { %3438 = vmatprep.subr.mxu1 %v2780_v31  ;;  %3508 = vmatpush1.msra.mxu0 %v2533_v36  ;;  %v2693_v31 = vld [vmem:[#allocation13 + $0x5f0] sm:$0xff]  ;;  %v2207_v46 = vld [vmem:[#allocation11] sm:$0x3] }
 0x3a9   :  { %3439 = vmatpush1.msra.mxu1 %v2779_v32  ;;  %3509 = vmatprep.subr.mxu0 %v2526_v17  ;;  %v2931_v32 = vld [vmem:[#allocation13 + $0xd60] sm:$0xff]  ;;  %v2686_v36 = vld [vmem:[#allocation13 + $0x5b8] sm:$0xff]  ;;  %v2685_v17 = vld [vmem:[#allocation13 + $0x5b0] sm:$0xff] }
 0x3aa   :  { %3440 = vmatprep.subr.mxu1 %v2772_v33  ;;  %3510 = vmatpush1.msra.mxu0 %v2525_v43  ;;  %v2924_v33 = vld [vmem:[#allocation13 + $0xd28] sm:$0xff]  ;;  %v2923_v43 = vld [vmem:[#allocation13 + $0xd20] sm:$0xff] }
 0x3ab   :  { %3441 = vmatpush1.msra.mxu1 %v2771_v34  ;;  %3511 = vmatprep.subr.mxu0 %v2518_v15  ;;  %v2285_v34 = vpop.f32.mrf.mxu0  ;;  %v2212_v15 = vrot.slane %v2207_v46, %v5103_v62 }
 0x3ac   :  { %3442 = vmatprep.subr.mxu1 %v2764_v37  ;;  %3476 = vmatprep.mubr.f32.mxu1 %v5239_v51  ;;  %v2678_v37 = vld [vmem:[#allocation13 + $0x578] sm:$0xff] }
 0x3ad   :  { %3443 = vmatpush1.msra.mxu1 %v2763_v40  ;;  %3512 = vmatpush1.msra.mxu0 %v2517_v44  ;;  %v2916_v40 = vld [vmem:[#allocation13 + $0xce8] sm:$0xff]  ;;  %v2915_v44 = vld [vmem:[#allocation13 + $0xce0] sm:$0xff] }
 0x3ae   :  { %3444 = vmatprep.subr.mxu1 %v3012_v42  ;;  %3513 = vmatprep.subr.mxu0 %v2510_v50  ;;  %v2677_v42 = vld [vmem:[#allocation13 + $0x570] sm:$0xff]  ;;  %v2216_v50 = vrot.slane %v2207_v46, %v5133_v60  ;;  %v2862_v46 = vld [vmem:[#allocation13 + $0xb38] sm:$0xff] }
 0x3af   :  { %3445 = vmatpush2.msra.mxu1 %v3011_v47  ;;  %3514 = vmatpush1.msra.mxu0 %v2509_v52  ;;  %v2670_v47 = vld [vmem:[#allocation13 + $0x538] sm:$0xff]  ;;  %v2669_v52 = vld [vmem:[#allocation13 + $0x530] sm:$0xff] }
 0x3b0   :  { %3446 = vmatprep.subr.mxu1 %v3004_v48  ;;  %3515 = vmatprep.subr.mxu0 %v2758_v56  ;;  %v2908_v48 = vld [vmem:[#allocation13 + $0xca8] sm:$0xff]  ;;  %v2907_v56 = vld [vmem:[#allocation13 + $0xca0] sm:$0xff] }
 0x3b1   :  { %3447 = vmatpush2.msra.mxu1 %v3003_v54  ;;  %3516 = vmatpush2.msra.mxu0 %v2757_v57  ;;  %v2287_v54 = vpop.f32.mrf.mxu0  ;;  %v2286_v57 = vadd.f32 %v2285_v34, %v2212_v15  ;;  %v2846_v15 = vld [vmem:[#allocation13 + $0xab8] sm:$0xff] }
 0x3b2   :  { %3448 = vmatprep.subr.mxu1 %v2996_v9  ;;  %3517 = vmatprep.subr.mxu0 %v2750_v59  ;;  %v2662_v9 = vld [vmem:[#allocation13 + $0x4f8] sm:$0xff]  ;;  %v2661_v59 = vld [vmem:[#allocation13 + $0x4f0] sm:$0xff] }
 0x3b3   :  { %3449 = vmatpush2.msra.mxu1 %v2995_v58  ;;  %3518 = vmatpush2.msra.mxu0 %v2749_v24  ;;  %v2900_v58 = vld [vmem:[#allocation13 + $0xc68] sm:$0xff]  ;;  %v2427_v24 = vpop.f32.mrf.mxu0 }
 0x3b4   :  { %3450 = vmatprep.subr.mxu1 %v2988_v0  ;;  %3519 = vmatprep.subr.mxu0 %v2742_v4  ;;  %v2356_v0 = vpop.f32.mrf.mxu1  ;;  %v2654_v4 = vld [vmem:[#allocation13 + $0x4b8] sm:$0xff] }
 0x3b5   :  { %3451 = vmatpush2.msra.mxu1 %v2987_v61  ;;  %3520 = vmatpush2.msra.mxu0 %v2741_v55  ;;  %v2899_v61 = vld [vmem:[#allocation13 + $0xc60] sm:$0xff]  ;;  %v2892_v55 = vld [vmem:[#allocation13 + $0xc28] sm:$0xff] }
 0x3b6   :  { %3452 = vmatprep.subr.mxu1 %v2980_v2  ;;  %3521 = vmatprep.subr.mxu0 %v2734_v6  ;;  %v2288_v2 = vadd.f32 %v2287_v54, %v2216_v50  ;;  %v2891_v6 = vld [vmem:[#allocation13 + $0xc20] sm:$0xff]  ;;  %v3723_v50 = vld [vmem:[#allocation16 + $0xd0] sm:$0xff] }
 0x3b7   :  { %3453 = vmatpush2.msra.mxu1 %v2979_v5  ;;  %3522 = vmatpush2.msra.mxu0 %v2733_v11  ;;  %v2653_v5 = vld [vmem:[#allocation13 + $0x4b0] sm:$0xff]  ;;  %v2357_v11 = vadd.f32 %v2356_v0, %v2286_v57  ;;  %v2830_v54 = vld [vmem:[#allocation13 + $0xa38] sm:$0xff] }
 0x3b8   :  { %3454 = vmatprep.subr.mxu1 %v2972_v10  ;;  %3523 = vmatprep.subr.mxu0 %v2726_v13  ;;  %v2646_v10 = vld [vmem:[#allocation13 + $0x478] sm:$0xff]  ;;  %v2358_v13 = vpop.f32.mrf.mxu1  ;;  %v3718_v0 = vld [vmem:[#allocation16 + $0xa8] sm:$0xff] }
 0x3b9   :  { %3455 = vmatpush2.msra.mxu1 %v2971_v12  ;;  %3524 = vmatpush2.msra.mxu0 %v2725_v18  ;;  %v2886_v12 = vld [vmem:[#allocation13 + $0xbf8] sm:$0xff]  ;;  %v2885_v18 = vld [vmem:[#allocation13 + $0xbf0] sm:$0xff] }
 0x3ba   :  { %3456 = vmatprep.subr.mxu1 %v2964_v16  ;;  %3525 = vmatprep.subr.mxu0 %v2718_v20  ;;  %v2429_v16 = vpop.f32.mrf.mxu0  ;;  %v2359_v20 = vadd.f32 %v2358_v13, %v2288_v2  ;;  %v2822_v57 = vld [vmem:[#allocation13 + $0x9f8] sm:$0xff]  ;;  %v3716_v2 = vld [vmem:[#allocation16 + $0x98] sm:$0xff]  ;;  %v2797_v13 = vld [vmem:[#allocation13 + $0x930] sm:$0xff] }
 0x3bb   :  { %3457 = vmatpush2.msra.mxu1 %v2963_v19  ;;  %3526 = vmatpush2.msra.mxu0 %v2717_v22  ;;  %v2645_v19 = vld [vmem:[#allocation13 + $0x470] sm:$0xff]  ;;  %v2878_v22 = vld [vmem:[#allocation13 + $0xbb8] sm:$0xff] }
 0x3bc   :  { %3458 = vmatprep.subr.mxu1 %v2956_v39  ;;  %3527 = vmatprep.subr.mxu0 %v2710_v8  ;;  %v2428_v39 = vadd.f32 %v2427_v24, %v2357_v11  ;;  %v5244_v8 = vld [vmem:[#allocation5 + $0x10] sm:$0xff]  ;;  %v2814_v24 = vld [vmem:[#allocation13 + $0x9b8] sm:$0xff] }
 0x3bd   :  { %3459 = vmatpush2.msra.mxu1 %v2955_v21  ;;  %3528 = vmatpush2.msra.mxu0 %v2709_v63  ;;  %v2638_v21 = vld [vmem:[#allocation13 + $0x438] sm:$0xff]  ;;  %v2877_v63 = vld [vmem:[#allocation13 + $0xbb0] sm:$0xff] }
 0x3be   :  { %3460 = vmatprep.subr.mxu1 %v2948_v3  ;;  %3529 = vmatprep.subr.mxu0 %v2702_v1  ;;  %v2430_v1 = vadd.f32 %v2429_v16, %v2359_v20  ;;  %v2798_v11 = vld [vmem:[#allocation13 + $0x938] sm:$0xff]  ;;  %v3712_v16 = vld [vmem:[#allocation16 + $0x78] sm:$0xff]  ;;  %v2789_v20 = vld [vmem:[#allocation13 + $0x8f0] sm:$0xff] }
 0x3bf   :  { %3461 = vmatpush2.msra.mxu1 %v2947_v23  ;;  %3530 = vmatpush2.msra.mxu0 %v2701_v25  ;;  %v2637_v23 = vld [vmem:[#allocation13 + $0x430] sm:$0xff]  ;;  %v2870_v25 = vld [vmem:[#allocation13 + $0xb78] sm:$0xff] }
 0x3c0   :  { %3462 = vmatprep.subr.mxu1 %v2940_v38  ;;  %3531 = vmatprep.subr.mxu0 %v2694_v28  ;;  %v2869_v28 = vld [vmem:[#allocation13 + $0xb70] sm:$0xff] }
 0x3c1   :  { %3463 = vmatpush2.msra.mxu1 %v2939_v7  ;;  %3532 = vmatpush2.msra.mxu0 %v2693_v31 }
 0x3c2   :  { %3464 = vmatprep.subr.mxu1 %v2932_v30  ;;  %3533 = vmatprep.subr.mxu0 %v2686_v36  ;;  %v3728_v30 = vld [vmem:[#allocation16 + $0xf8] sm:$0xff]  ;;  %v3727_v36 = vld [vmem:[#allocation16 + $0xf0] sm:$0xff] }
 0x3c3   :  { %3465 = vmatpush2.msra.mxu1 %v2931_v32  ;;  %3534 = vmatpush2.msra.mxu0 %v2685_v17  ;;  %v2861_v32 = vld [vmem:[#allocation13 + $0xb30] sm:$0xff] }
 0x3c4   :  { %3466 = vmatprep.subr.mxu1 %v2924_v33  ;;  %3535 = vmatprep.subr.mxu0 %v2678_v37  ;;  %v2854_v33 = vld [vmem:[#allocation13 + $0xaf8] sm:$0xff]  ;;  %v2853_v37 = vld [vmem:[#allocation13 + $0xaf0] sm:$0xff] }
 0x3c5   :  { %3467 = vmatpush2.msra.mxu1 %v2923_v43  ;;  %3536 = vmatpush2.msra.mxu0 %v2677_v42  ;;  %v3726_v43 = vld [vmem:[#allocation16 + $0xe8] sm:$0xff] }
 0x3c6   :  { %3468 = vmatprep.subr.mxu1 %v2916_v40  ;;  %3537 = vmatprep.subr.mxu0 %v2670_v47  ;;  %v2845_v42 = vld [vmem:[#allocation13 + $0xab0] sm:$0xff]  ;;  %v2838_v47 = vld [vmem:[#allocation13 + $0xa78] sm:$0xff] }
 0x3c7   :  { %3469 = vmatpush2.msra.mxu1 %v2915_v44  ;;  %3538 = vmatpush2.msra.mxu0 %v2669_v52  ;;  %v3724_v44 = vld [vmem:[#allocation16 + $0xd8] sm:$0xff]  ;;  %v3722_v52 = vld [vmem:[#allocation16 + $0xc8] sm:$0xff] }
 0x3c8   :  { %3470 = vmatprep.subr.mxu1 %v2908_v48  ;;  %3539 = vmatprep.subr.mxu0 %v2662_v9  ;;  %v2837_v48 = vld [vmem:[#allocation13 + $0xa70] sm:$0xff]  ;;  %v3720_v9 = vld [vmem:[#allocation16 + $0xb8] sm:$0xff] }
 0x3c9   :  { %3471 = vmatpush2.msra.mxu1 %v2907_v56  ;;  %3540 = vmatpush2.msra.mxu0 %v2661_v59  ;;  %v2829_v56 = vld [vmem:[#allocation13 + $0xa30] sm:$0xff] }
 0x3ca   :  { %3472 = vmatprep.subr.mxu1 %v2900_v58  ;;  %3541 = vmatprep.subr.mxu0 %v2654_v4  ;;  %v3719_v58 = vld [vmem:[#allocation16 + $0xb0] sm:$0xff]  ;;  %v2821_v59 = vld [vmem:[#allocation13 + $0x9f0] sm:$0xff] }
 0x3cb   :  { %3473 = vmatpush2.msra.mxu1 %v2899_v61  ;;  %3542 = vmatpush2.msra.mxu0 %v2653_v5  ;;  %v3717_v61 = vld [vmem:[#allocation16 + $0xa0] sm:$0xff]  ;;  %v2813_v4 = vld [vmem:[#allocation13 + $0x9b0] sm:$0xff]  ;;  %v3715_v5 = vld [vmem:[#allocation16 + $0x90] sm:$0xff] }
 0x3cc   :  { %3474 = vmatprep.subr.mxu1 %v2892_v55  ;;  %3543 = vmatprep.subr.mxu0 %v2646_v10  ;;  %v2806_v55 = vld [vmem:[#allocation13 + $0x978] sm:$0xff]  ;;  %v3714_v10 = vld [vmem:[#allocation16 + $0x88] sm:$0xff] }
 0x3cd   :  { %3475 = vmatpush2.msra.mxu1 %v2891_v6  ;;  %v2498_v3 = vpop.f32.mrf.mxu1  ;;  %3544 = vmatpush2.msra.mxu0 %v2645_v19  ;;  %v2805_v6 = vld [vmem:[#allocation13 + $0x970] sm:$0xff]  ;;  %v3711_v19 = vld [vmem:[#allocation16 + $0x70] sm:$0xff] }
 0x3ce   :  { %3477 = vmatmul.mubr.f32.vlgmr.msra.gmra.mxu1 %v5244_v8  ;;  %3554 = vmatprep.subr.mxu1 %v2886_v12  ;;  %v5247_v38 = vadd.f32 %v2498_v3, %v2428_v39  ;;  %v3713_v12 = vld [vmem:[#allocation16 + $0x80] sm:$0xff]  ;;  %v3710_v39 = vld [vmem:[#allocation16 + $0x68] sm:$0xff] }
 0x3cf   :  { %3555 = vmatpush1.msra.mxu1 %v2885_v18  ;;  %v2500_v7 = vpop.f32.mrf.mxu1  ;;  %3545 = vmatprep.subr.mxu0 %v2638_v21  ;;  %v2790_v18 = vld [vmem:[#allocation13 + $0x8f8] sm:$0xff]  ;;  %v3709_v21 = vld [vmem:[#allocation16 + $0x60] sm:$0xff]  ;;  %v2781_v3 = vld [vmem:[#allocation13 + $0x8b0] sm:$0xff] }
 0x3d0   :  { %3556 = vmatprep.subr.mxu1 %v2878_v22  ;;  %v5249_v31 = vadd.f32 %v2500_v7, %v2430_v1  ;;  %3546 = vmatpush2.msra.mxu0 %v2637_v23  ;;  %v4249_v17 = vmul.f32 %v5247_v38, %v5247_v38  ;;  %v2782_v22 = vld [vmem:[#allocation13 + $0x8b8] sm:$0xff]  ;;  %v3706_v7 = vld [vmem:[#allocation16 + $0x48] sm:$0xff] }
 0x3d1   :  { %3557 = vmatpush1.msra.mxu1 %v2877_v63  ;;  %3547 = vmatprep.mubr.f32.mxu0 %v5232_v35  ;;  %v3725_v35 = vld [vmem:[#allocation16 + $0xe0] sm:$0xff]  ;;  %v3708_v63 = vld [vmem:[#allocation16 + $0x58] sm:$0xff]  ;;  %v2774_v23 = vld [vmem:[#allocation13 + $0x878] sm:$0xff] }
 0x3d2   :  { %3558 = vmatprep.subr.mxu1 %v2870_v25  ;;  %v4250_v34 = vmul.f32 %v5249_v31, %v5249_v31  ;;  %3965 = vmatprep.subr.mxu0 %v3728_v30  ;;  %v3707_v1 = vld [vmem:[#allocation16 + $0x50] sm:$0xff]  ;;  %v2773_v25 = vld [vmem:[#allocation13 + $0x870] sm:$0xff]  ;;  %v3705_v30 = vld [vmem:[#allocation16 + $0x40] sm:$0xff] }
 0x3d3   :  { %3559 = vmatpush1.msra.mxu1 %v2869_v28  ;;  %3548 = vmatmul.mubr.f32.vlgmr.msra.gmra.mxu0 %v5236_v26  ;;  %v3721_v26 = vld [vmem:[#allocation16 + $0xc0] sm:$0xff]  ;;  %v2766_v28 = vld [vmem:[#allocation13 + $0x838] sm:$0xff] }
 0x3d4   :  { %3560 = vmatprep.subr.mxu1 %v2862_v46  ;;  %v4251_v40 = vadd.f32 %v4250_v34, %v4249_v17  ;;  %3966 = vmatpush1.msra.mxu0 %v3727_v36  ;;  %v2765_v46 = vld [vmem:[#allocation13 + $0x830] sm:$0xff]  ;;  %v3014_v36 = vld [vmem:[#allocation13 + $0xff8] sm:$0xff] }
 0x3d5   :  { %3561 = vmatpush1.msra.mxu1 %v2861_v32  ;;  %3967 = vmatprep.subr.mxu0 %v3726_v43  ;;  %v3704_v32 = vld [vmem:[#allocation16 + $0x38] sm:$0xff]  ;;  %v3013_v17 = vld [vmem:[#allocation13 + $0xff0] sm:$0xff]  ;;  %v3006_v43 = vld [vmem:[#allocation13 + $0xfb8] sm:$0xff] }
 0x3d6   :  { %3562 = vmatprep.subr.mxu1 %v2854_v33  ;;  %4252 = vadd.xlane.f32.xlu0 %v4251_v40  ;;  %v3703_v33 = vld [vmem:[#allocation16 + $0x30] sm:$0xff]  ;;  %v3702_v34 = vld [vmem:[#allocation16 + $0x28] sm:$0xff]  ;;  %v3700_v40 = vld [vmem:[#allocation16 + $0x18] sm:$0xff] }
 0x3d7   :  { %3563 = vmatpush1.msra.mxu1 %v2853_v37  ;;  %3968 = vmatpush1.msra.mxu0 %v3725_v35  ;;  %v3701_v37 = vld [vmem:[#allocation16 + $0x20] sm:$0xff]  ;;  %v2998_v35 = vld [vmem:[#allocation13 + $0xf78] sm:$0xff] }
 0x3d8   :  { %3564 = vmatprep.subr.mxu1 %v2846_v15  ;;  %3969 = vmatprep.subr.mxu0 %v3724_v44  ;;  %v3005_v15 = vld [vmem:[#allocation13 + $0xfb0] sm:$0xff]  ;;  %v3699_v44 = vld [vmem:[#allocation16 + $0x10] sm:$0xff] }
 0x3d9   :  { %3565 = vmatpush1.msra.mxu1 %v2845_v42  ;;  %3970 = vmatpush1.msra.mxu0 %v3723_v50  ;;  %v2997_v42 = vld [vmem:[#allocation13 + $0xf70] sm:$0xff] }
 0x3da   :  { %3566 = vmatprep.subr.mxu1 %v2838_v47  ;;  %3971 = vmatprep.subr.mxu0 %v3722_v52  ;;  %v2990_v47 = vld [vmem:[#allocation13 + $0xf38] sm:$0xff]  ;;  %v3698_v50 = vld [vmem:[#allocation16 + $0x8] sm:$0xff]  ;;  %v3697_v52 = vld [vmem:[#allocation16] sm:$0xff] }
 0x3db   :  { %3567 = vmatpush1.msra.mxu1 %v2837_v48  ;;  %3972 = vmatpush1.msra.mxu0 %v3721_v26  ;;  %v2989_v48 = vld [vmem:[#allocation13 + $0xf30] sm:$0xff]  ;;  %v3760_v26 = vld [vmem:[#allocation16 + $0x1f8] sm:$0xff] }
 0x3dc   :  { %3568 = vmatprep.subr.mxu1 %v2830_v54  ;;  %3973 = vmatprep.subr.mxu0 %v3720_v9  ;;  %v2982_v54 = vld [vmem:[#allocation13 + $0xef8] sm:$0xff] }
 0x3dd   :  { %3569 = vmatpush1.msra.mxu1 %v2829_v56  ;;  %3974 = vmatpush1.msra.mxu0 %v3719_v58  ;;  %v2981_v56 = vld [vmem:[#allocation13 + $0xef0] sm:$0xff]  ;;  %v3759_v9 = vld [vmem:[#allocation16 + $0x1f0] sm:$0xff] }
 0x3de   :  { %3570 = vmatprep.subr.mxu1 %v2822_v57  ;;  %3975 = vmatprep.subr.mxu0 %v3718_v0  ;;  %v2974_v57 = vld [vmem:[#allocation13 + $0xeb8] sm:$0xff]  ;;  %v3758_v58 = vld [vmem:[#allocation16 + $0x1e8] sm:$0xff]  ;;  %v3757_v0 = vld [vmem:[#allocation16 + $0x1e0] sm:$0xff] }
 0x3df   :  { %3571 = vmatpush1.msra.mxu1 %v2821_v59  ;;  %3976 = vmatpush1.msra.mxu0 %v3717_v61  ;;  %v2973_v59 = vld [vmem:[#allocation13 + $0xeb0] sm:$0xff] }
 0x3e0   :  { %3572 = vmatprep.subr.mxu1 %v2814_v24  ;;  %3977 = vmatprep.subr.mxu0 %v3716_v2  ;;  %v2966_v24 = vld [vmem:[#allocation13 + $0xe78] sm:$0xff]  ;;  %v2965_v61 = vld [vmem:[#allocation13 + $0xe70] sm:$0xff] }
 0x3e1   :  { %3573 = vmatpush1.msra.mxu1 %v2813_v4  ;;  %3978 = vmatpush1.msra.mxu0 %v3715_v5  ;;  %v3755_v4 = vld [vmem:[#allocation16 + $0x1d0] sm:$0xff]  ;;  %v2957_v5 = vld [vmem:[#allocation13 + $0xe30] sm:$0xff] }
 0x3e2   :  { %3574 = vmatprep.subr.mxu1 %v2806_v55  ;;  %3979 = vmatprep.subr.mxu0 %v3714_v10  ;;  %v2958_v2 = vld [vmem:[#allocation13 + $0xe38] sm:$0xff]  ;;  %v3754_v55 = vld [vmem:[#allocation16 + $0x1c8] sm:$0xff] }
 0x3e3   :  { %3575 = vmatpush1.msra.mxu1 %v2805_v6  ;;  %3980 = vmatpush1.msra.mxu0 %v3713_v12  ;;  %v3753_v6 = vld [vmem:[#allocation16 + $0x1c0] sm:$0xff]  ;;  %v2950_v10 = vld [vmem:[#allocation13 + $0xdf8] sm:$0xff]  ;;  %v2949_v12 = vld [vmem:[#allocation13 + $0xdf0] sm:$0xff] }
 0x3e4   :  { %3576 = vmatprep.subr.mxu1 %v2798_v11  ;;  %3981 = vmatprep.subr.mxu0 %v3712_v16  ;;  %v3752_v11 = vld [vmem:[#allocation16 + $0x1b8] sm:$0xff]  ;;  %v2942_v16 = vld [vmem:[#allocation13 + $0xdb8] sm:$0xff] }
 0x3e5   :  { %3577 = vmatpush1.msra.mxu1 %v2797_v13  ;;  %3982 = vmatpush1.msra.mxu0 %v3711_v19  ;;  %v3751_v13 = vld [vmem:[#allocation16 + $0x1b0] sm:$0xff]  ;;  %v2941_v19 = vld [vmem:[#allocation13 + $0xdb0] sm:$0xff] }
 0x3e6   :  { %3578 = vmatprep.subr.mxu1 %v2790_v18  ;;  %3983 = vmatprep.subr.mxu0 %v3710_v39  ;;  %v3750_v18 = vld [vmem:[#allocation16 + $0x1a8] sm:$0xff]  ;;  %v2934_v39 = vld [vmem:[#allocation13 + $0xd78] sm:$0xff] }
 0x3e7   :  { %3579 = vmatpush1.msra.mxu1 %v2789_v20  ;;  %3984 = vmatpush1.msra.mxu0 %v3709_v21  ;;  %v3749_v20 = vld [vmem:[#allocation16 + $0x1a0] sm:$0xff]  ;;  %v2933_v21 = vld [vmem:[#allocation13 + $0xd70] sm:$0xff] }
 0x3e8   :  { %3580 = vmatprep.subr.mxu1 %v2782_v22  ;;  %3985 = vmatprep.subr.mxu0 %v3708_v63  ;;  %v3748_v22 = vld [vmem:[#allocation16 + $0x198] sm:$0xff]  ;;  %v2926_v63 = vld [vmem:[#allocation13 + $0xd38] sm:$0xff] }
 0x3e9   :  { %3581 = vmatpush1.msra.mxu1 %v2781_v3  ;;  %3986 = vmatpush1.msra.mxu0 %v3707_v1  ;;  %v3747_v3 = vld [vmem:[#allocation16 + $0x190] sm:$0xff]  ;;  %v2925_v1 = vld [vmem:[#allocation13 + $0xd30] sm:$0xff] }
 0x3ea   :  { %3582 = vmatprep.subr.mxu1 %v2774_v23  ;;  %3987 = vmatprep.subr.mxu0 %v3706_v7  ;;  %v3746_v23 = vld [vmem:[#allocation16 + $0x188] sm:$0xff]  ;;  %v2918_v7 = vld [vmem:[#allocation13 + $0xcf8] sm:$0xff] }
 0x3eb   :  { %3583 = vmatpush1.msra.mxu1 %v2773_v25  ;;  %3988 = vmatpush1.msra.mxu0 %v3705_v30  ;;  %v3745_v25 = vld [vmem:[#allocation16 + $0x180] sm:$0xff]  ;;  %v2917_v30 = vld [vmem:[#allocation13 + $0xcf0] sm:$0xff] }
 0x3ec   :  { %3584 = vmatprep.subr.mxu1 %v2766_v28  ;;  %3989 = vmatprep.subr.mxu0 %v3704_v32  ;;  %v3744_v28 = vld [vmem:[#allocation16 + $0x178] sm:$0xff]  ;;  %v3743_v32 = vld [vmem:[#allocation16 + $0x170] sm:$0xff] }
 0x3ed   :  { %3585 = vmatpush1.msra.mxu1 %v2765_v46  ;;  %3990 = vmatpush1.msra.mxu0 %v3703_v33  ;;  %v5258_v46 = vld [vmem:[#allocation14] sm:$0xff]  ;;  %v3742_v33 = vld [vmem:[#allocation16 + $0x168] sm:$0xff] }
 0x3ee   :  { %3586 = vmatprep.subr.mxu1 %v3014_v36  ;;  %3991 = vmatprep.subr.mxu0 %v3702_v34  ;;  %v2910_v36 = vld [vmem:[#allocation13 + $0xcb8] sm:$0xff]  ;;  %v3123_v34 = vpop.f32.mrf.mxu0 }
 0x3ef   :  { %3587 = vmatpush2.msra.mxu1 %v3013_v17  ;;  %3992 = vmatpush1.msra.mxu0 %v3701_v37  ;;  %v2909_v17 = vld [vmem:[#allocation13 + $0xcb0] sm:$0xff]  ;;  %v2902_v37 = vld [vmem:[#allocation13 + $0xc78] sm:$0xff] }
 0x3f0   :  { %3588 = vmatprep.subr.mxu1 %v3006_v43  ;;  %3993 = vmatprep.subr.mxu0 %v3700_v40  ;;  %v3741_v43 = vld [vmem:[#allocation16 + $0x160] sm:$0xff]  ;;  %v3740_v40 = vld [vmem:[#allocation16 + $0x158] sm:$0xff] }
 0x3f1   :  { %3589 = vmatpush2.msra.mxu1 %v3005_v15  ;;  %3618 = vmatprep.mubr.f32.mxu1 %v5239_v51  ;;  %v3756_v51 = vld [vmem:[#allocation16 + $0x1d8] sm:$0xff]  ;;  %v3020_v15 = vrot.slane %v5258_v46, %v5103_v62 }
 0x3f2   :  { %3590 = vmatprep.subr.mxu1 %v2998_v35  ;;  %3994 = vmatpush1.msra.mxu0 %v3699_v44  ;;  %v2901_v35 = vld [vmem:[#allocation13 + $0xc70] sm:$0xff]  ;;  %v2894_v44 = vld [vmem:[#allocation13 + $0xc38] sm:$0xff] }
 0x3f3   :  { %3591 = vmatpush2.msra.mxu1 %v2997_v42  ;;  %3995 = vmatprep.subr.mxu0 %v3698_v50  ;;  %v3739_v42 = vld [vmem:[#allocation16 + $0x150] sm:$0xff]  ;;  %v3738_v50 = vld [vmem:[#allocation16 + $0x148] sm:$0xff] }
 0x3f4   :  { %3592 = vmatprep.subr.mxu1 %v2990_v47  ;;  %3996 = vmatpush1.msra.mxu0 %v3697_v52  ;;  %v3024_v47 = vrot.slane %v5258_v46, %v5133_v60  ;;  %v2893_v52 = vld [vmem:[#allocation13 + $0xc30] sm:$0xff] }
 0x3f5   :  { %3593 = vmatpush2.msra.mxu1 %v2989_v48  ;;  %3997 = vmatprep.subr.mxu0 %v3760_v26  ;;  %v3125_v48 = vpop.f32.mrf.mxu0  ;;  %v3124_v26 = vadd.f32 %v3123_v34, %v3020_v15  ;;  %v3775_v15 = vld [vmem:[#allocation16 + $0x270] sm:$0xff] }
 0x3f6   :  { %3594 = vmatprep.subr.mxu1 %v2982_v54  ;;  %3998 = vmatpush2.msra.mxu0 %v3759_v9  ;;  %v3737_v54 = vld [vmem:[#allocation16 + $0x140] sm:$0xff]  ;;  %v3735_v9 = vld [vmem:[#allocation16 + $0x130] sm:$0xff] }
 0x3f7   :  { %3595 = vmatpush2.msra.mxu1 %v2981_v56  ;;  %3999 = vmatprep.subr.mxu0 %v3758_v58  ;;  %v3736_v56 = vld [vmem:[#allocation16 + $0x138] sm:$0xff]  ;;  %v3126_v58 = vadd.f32 %v3125_v48, %v3024_v47  ;;  %v3770_v47 = vld [vmem:[#allocation16 + $0x248] sm:$0xff] }
 0x3f8   :  { %3596 = vmatprep.subr.mxu1 %v2974_v57  ;;  %4000 = vmatpush2.msra.mxu0 %v3757_v0  ;;  %v3792_v57 = vld [vmem:[#allocation16 + $0x2f8] sm:$0xff]  ;;  %v3791_v0 = vld [vmem:[#allocation16 + $0x2f0] sm:$0xff] }
 0x3f9   :  { %3597 = vmatpush2.msra.mxu1 %v2973_v59  ;;  %4001 = vmatprep.subr.mxu0 %v3756_v51  ;;  %v3734_v59 = vld [vmem:[#allocation16 + $0x128] sm:$0xff]  ;;  %v3733_v51 = vld [vmem:[#allocation16 + $0x120] sm:$0xff]  ;;  %v3768_v48 = vld [vmem:[#allocation16 + $0x238] sm:$0xff] }
 0x3fa   :  { %3598 = vmatprep.subr.mxu1 %v2966_v24  ;;  %4002 = vmatpush2.msra.mxu0 %v3755_v4 }
 0x3fb   :  { %3599 = vmatpush2.msra.mxu1 %v2965_v61  ;;  %4003 = vmatprep.subr.mxu0 %v3754_v55  ;;  %v3790_v61 = vld [vmem:[#allocation16 + $0x2e8] sm:$0xff]  ;;  %v3789_v55 = vld [vmem:[#allocation16 + $0x2e0] sm:$0xff] }
 0x3fc   :  { %3600 = vmatprep.subr.mxu1 %v2958_v2  ;;  %4004 = vmatpush2.msra.mxu0 %v3753_v6  ;;  %v3732_v2 = vld [vmem:[#allocation16 + $0x118] sm:$0xff]  ;;  %v3731_v6 = vld [vmem:[#allocation16 + $0x110] sm:$0xff] }
 0x3fd   :  { %3601 = vmatpush2.msra.mxu1 %v2957_v5  ;;  %4005 = vmatprep.subr.mxu0 %v3752_v11 }
 0x3fe   :  { %3602 = vmatprep.subr.mxu1 %v2950_v10  ;;  %4006 = vmatpush2.msra.mxu0 %v3751_v13  ;;  %v3788_v10 = vld [vmem:[#allocation16 + $0x2d8] sm:$0xff]  ;;  %v3787_v13 = vld [vmem:[#allocation16 + $0x2d0] sm:$0xff] }
 0x3ff   :  { %3603 = vmatpush2.msra.mxu1 %v2949_v12  ;;  %4007 = vmatprep.subr.mxu0 %v3750_v18  ;;  %v3786_v18 = vld [vmem:[#allocation16 + $0x2c8] sm:$0xff] }
 0x400   :  { %3604 = vmatprep.subr.mxu1 %v2942_v16  ;;  %4008 = vmatpush2.msra.mxu0 %v3749_v20  ;;  %v3729_v16 = vld [vmem:[#allocation16 + $0x100] sm:$0xff] }
 0x401   :  { %3605 = vmatpush2.msra.mxu1 %v2941_v19  ;;  %4009 = vmatprep.subr.mxu0 %v3748_v22  ;;  %v3856_v22 = vld [vmem:[#allocation16 + $0x4f8] sm:$0xff] }
 0x402   :  { %3606 = vmatprep.subr.mxu1 %v2934_v39  ;;  %4010 = vmatpush2.msra.mxu0 %v3747_v3  ;;  %v3785_v39 = vld [vmem:[#allocation16 + $0x2c0] sm:$0xff] }
 0x403   :  { %3607 = vmatpush2.msra.mxu1 %v2933_v21  ;;  %4011 = vmatprep.subr.mxu0 %v3746_v23  ;;  %v3784_v21 = vld [vmem:[#allocation16 + $0x2b8] sm:$0xff]  ;;  %v3783_v23 = vld [vmem:[#allocation16 + $0x2b0] sm:$0xff] }
 0x404   :  { %3608 = vmatprep.subr.mxu1 %v2926_v63  ;;  %4012 = vmatpush2.msra.mxu0 %v3745_v25 }
 0x405   :  { %3609 = vmatpush2.msra.mxu1 %v2925_v1  ;;  %4013 = vmatprep.subr.mxu0 %v3744_v28  ;;  %v3782_v1 = vld [vmem:[#allocation16 + $0x2a8] sm:$0xff]  ;;  %v3781_v28 = vld [vmem:[#allocation16 + $0x2a0] sm:$0xff] }
 0x406   :  { %3610 = vmatprep.subr.mxu1 %v2918_v7  ;;  %4014 = vmatpush2.msra.mxu0 %v3743_v32 }
 0x407   :  { %3611 = vmatpush2.msra.mxu1 %v2917_v30  ;;  %4015 = vmatprep.subr.mxu0 %v3742_v33  ;;  %v3780_v30 = vld [vmem:[#allocation16 + $0x298] sm:$0xff]  ;;  %v3779_v33 = vld [vmem:[#allocation16 + $0x290] sm:$0xff] }
 0x408   :  { %3612 = vmatprep.subr.mxu1 %v2910_v36  ;;  %4016 = vmatpush2.msra.mxu0 %v3741_v43  ;;  %v3777_v43 = vld [vmem:[#allocation16 + $0x280] sm:$0xff] }
 0x409   :  { %3613 = vmatpush2.msra.mxu1 %v2909_v17  ;;  %4017 = vmatprep.subr.mxu0 %v3740_v40  ;;  %v3778_v17 = vld [vmem:[#allocation16 + $0x288] sm:$0xff] }
 0x40a   :  { %3614 = vmatprep.subr.mxu1 %v2902_v37  ;;  %4018 = vmatpush2.msra.mxu0 %v3739_v42  ;;  %v3776_v37 = vld [vmem:[#allocation16 + $0x278] sm:$0xff]  ;;  %v3774_v40 = vld [vmem:[#allocation16 + $0x268] sm:$0xff] }
 0x40b   :  { %3615 = vmatpush2.msra.mxu1 %v2901_v35  ;;  %4019 = vmatprep.subr.mxu0 %v3738_v50  ;;  %v3773_v35 = vld [vmem:[#allocation16 + $0x260] sm:$0xff]  ;;  %v3772_v42 = vld [vmem:[#allocation16 + $0x258] sm:$0xff] }
 0x40c   :  { %3616 = vmatprep.subr.mxu1 %v2894_v44  ;;  %4020 = vmatpush2.msra.mxu0 %v3737_v54  ;;  %v3771_v44 = vld [vmem:[#allocation16 + $0x250] sm:$0xff]  ;;  %v3769_v50 = vld [vmem:[#allocation16 + $0x240] sm:$0xff]  ;;  %v3766_v54 = vld [vmem:[#allocation16 + $0x228] sm:$0xff] }
 0x40d   :  { %3617 = vmatpush2.msra.mxu1 %v2893_v52  ;;  %v3194_v24 = vpop.f32.mrf.mxu1  ;;  %4021 = vmatprep.subr.mxu0 %v3736_v56  ;;  %v3767_v52 = vld [vmem:[#allocation16 + $0x230] sm:$0xff] }
 0x40e   :  { %3619 = vmatmul.mubr.f32.vlgmr.msra.gmra.mxu1 %v5244_v8  ;;  %v5265_v4 = vadd.f32 %v3194_v24, %v3124_v26  ;;  %4022 = vmatpush2.msra.mxu0 %v3735_v9  ;;  %v3730_v8 = vld [vmem:[#allocation16 + $0x108] sm:$0xff]  ;;  %v3765_v26 = vld [vmem:[#allocation16 + $0x220] sm:$0xff]  ;;  %v3764_v9 = vld [vmem:[#allocation16 + $0x218] sm:$0xff] }
 0x40f   :  { %4036 = vmatprep.subr.mxu1 %v3792_v57  ;;  %v3196_v5 = vpop.f32.mrf.mxu1  ;;  %4023 = vmatprep.subr.mxu0 %v3734_v59  ;;  %v3763_v57 = vld [vmem:[#allocation16 + $0x210] sm:$0xff] }
 0x410   :  { %4037 = vmatpush1.msra.mxu1 %v3791_v0  ;;  %v3633_v11 = vmul.f32 0.044715, %v5265_v4  ;;  %v5268_v12 = vadd.f32 %v3196_v5, %v3126_v58  ;;  %4024 = vmatpush2.msra.mxu0 %v3733_v51  ;;  %v3762_v0 = vld [vmem:[#allocation16 + $0x208] sm:$0xff] }
 0x411   :  { %4038 = vmatprep.subr.mxu1 %v3790_v61  ;;  %4025 = vmatprep.subr.mxu0 %v3732_v2  ;;  %v3761_v61 = vld [vmem:[#allocation16 + $0x200] sm:$0xff]  ;;  %v3625_v2 = vmul.f32 0.5, %v5265_v4 }
 0x412   :  { %4039 = vmatpush1.msra.mxu1 %v3789_v55  ;;  %v3641_v19 = vmul.f32 %v3633_v11, %v5265_v4  ;;  %v3634_v20 = vmul.f32 0.044715, %v5268_v12  ;;  %4026 = vmatpush2.msra.mxu0 %v3731_v6  ;;  %v3626_v24 = vmul.f32 0.5, %v5268_v12  ;;  %v3824_v55 = vld [vmem:[#allocation16 + $0x3f8] sm:$0xff]  ;;  %v3823_v6 = vld [vmem:[#allocation16 + $0x3f0] sm:$0xff]  ;;  %v3822_v11 = vld [vmem:[#allocation16 + $0x3e8] sm:$0xff] }
 0x413   :  { %4040 = vmatprep.subr.mxu1 %v3788_v10  ;;  %4027 = vmatprep.subr.mxu0 %v3730_v8  ;;  %v3855_v8 = vld [vmem:[#allocation16 + $0x4f0] sm:$0xff] }
 0x414   :  { %4041 = vmatpush1.msra.mxu1 %v3787_v13  ;;  %v3649_v3 = vmul.f32 %v3641_v19, %v5265_v4  ;;  %v3642_v63 = vmul.f32 %v3634_v20, %v5268_v12  ;;  %4028 = vmatpush2.msra.mxu0 %v3729_v16  ;;  %v3821_v13 = vld [vmem:[#allocation16 + $0x3e0] sm:$0xff]  ;;  %v3854_v16 = vld [vmem:[#allocation16 + $0x4e8] sm:$0xff]  ;;  %v3819_v19 = vld [vmem:[#allocation16 + $0x3d0] sm:$0xff] }
 0x415   :  { %4042 = vmatprep.subr.mxu1 %v3786_v18  ;;  %4107 = vmatprep.subr.mxu0 %v3856_v22  ;;  %v3853_v18 = vld [vmem:[#allocation16 + $0x4e0] sm:$0xff]  ;;  %v3818_v20 = vld [vmem:[#allocation16 + $0x3c8] sm:$0xff] }
 0x416   :  { %4043 = vmatpush1.msra.mxu1 %v3785_v39  ;;  %v3657_v25 = vadd.f32 %v3649_v3, %v5265_v4  ;;  %v3650_v7 = vmul.f32 %v3642_v63, %v5268_v12  ;;  %v3852_v4 = vld [vmem:[#allocation16 + $0x4d8] sm:$0xff]  ;;  %v3851_v39 = vld [vmem:[#allocation16 + $0x4d0] sm:$0xff]  ;;  %v3817_v22 = vld [vmem:[#allocation16 + $0x3c0] sm:$0xff] }
 0x417   :  { %4044 = vmatprep.subr.mxu1 %v3784_v21  ;;  %v3850_v21 = vld [vmem:[#allocation16 + $0x4c8] sm:$0xff]  ;;  %v3816_v3 = vld [vmem:[#allocation16 + $0x3b8] sm:$0xff]  ;;  %v3849_v63 = vld [vmem:[#allocation16 + $0x4c0] sm:$0xff] }
 0x418   :  { %4045 = vmatpush1.msra.mxu1 %v3783_v23  ;;  %v3658_v32 = vadd.f32 %v3650_v7, %v5268_v12  ;;  %v3665_v36 = vmul.f32 0.7978846, %v3657_v25  ;;  %v3820_v12 = vld [vmem:[#allocation16 + $0x3d8] sm:$0xff]  ;;  %v3815_v23 = vld [vmem:[#allocation16 + $0x3b0] sm:$0xff]  ;;  %v3814_v25 = vld [vmem:[#allocation16 + $0x3a8] sm:$0xff] }
 0x419   :  { %4046 = vmatprep.subr.mxu1 %v3782_v1  ;;  %v3848_v1 = vld [vmem:[#allocation16 + $0x4b8] sm:$0xff]  ;;  %v3847_v7 = vld [vmem:[#allocation16 + $0x4b0] sm:$0xff] }
 0x41a   :  { %4047 = vmatpush1.msra.mxu1 %v3781_v28  ;;  %v3666_v34 = vmul.f32 0.7978846, %v3658_v32  ;;  %4606 = vtanh.f32 %v3665_v36  ;;  %v3813_v28 = vld [vmem:[#allocation16 + $0x3a0] sm:$0xff]  ;;  %v3812_v32 = vld [vmem:[#allocation16 + $0x398] sm:$0xff] }
 0x41b   :  { %4048 = vmatprep.subr.mxu1 %v3780_v30  ;;  %v3846_v30 = vld [vmem:[#allocation16 + $0x4a8] sm:$0xff]  ;;  %v3845_v36 = vld [vmem:[#allocation16 + $0x4a0] sm:$0xff] }
 0x41c   :  { %4049 = vmatpush1.msra.mxu1 %v3779_v33  ;;  %4608 = vtanh.f32 %v3666_v34  ;;  %v3811_v33 = vld [vmem:[#allocation16 + $0x390] sm:$0xff]  ;;  %v3810_v34 = vld [vmem:[#allocation16 + $0x388] sm:$0xff] }
 0x41d   :  { %4050 = vmatprep.subr.mxu1 %v3778_v17  ;;  %v3844_v17 = vld [vmem:[#allocation16 + $0x498] sm:$0xff] }
 0x41e   :  { %4051 = vmatpush1.msra.mxu1 %v3777_v43  ;;  %v3843_v43 = vld [vmem:[#allocation16 + $0x490] sm:$0xff] }
 0x41f   :  { %4052 = vmatprep.subr.mxu1 %v3776_v37  ;;  %v3809_v37 = vld [vmem:[#allocation16 + $0x380] sm:$0xff] }
 0x420   :  { %4053 = vmatpush1.msra.mxu1 %v3775_v15  ;;  %v3842_v15 = vld [vmem:[#allocation16 + $0x488] sm:$0xff] }
 0x421   :  { %4054 = vmatprep.subr.mxu1 %v3774_v40  ;;  %v3808_v40 = vld [vmem:[#allocation16 + $0x378] sm:$0xff] }
 0x422   :  { %4055 = vmatpush1.msra.mxu1 %v3773_v35  ;;  %v3841_v35 = vld [vmem:[#allocation16 + $0x480] sm:$0xff] }
 0x423   :  { %4056 = vmatprep.subr.mxu1 %v3772_v42  ;;  %v3807_v42 = vld [vmem:[#allocation16 + $0x370] sm:$0xff] }
 0x424   :  { %4057 = vmatpush1.msra.mxu1 %v3771_v44  ;;  %v3840_v44 = vld [vmem:[#allocation16 + $0x478] sm:$0xff] }
 0x425   :  { %4058 = vmatprep.subr.mxu1 %v3770_v47  ;;  %v3806_v47 = vld [vmem:[#allocation16 + $0x368] sm:$0xff] }
 0x426   :  { %4059 = vmatpush1.msra.mxu1 %v3769_v50  ;;  %v3839_v50 = vld [vmem:[#allocation16 + $0x470] sm:$0xff] }
 0x427   :  { %4060 = vmatprep.subr.mxu1 %v3768_v48  ;;  %v4607_v56 = vpop.eup %4606  ;;  %v3805_v48 = vld [vmem:[#allocation16 + $0x360] sm:$0xff] }
 0x428   :  { %4061 = vmatpush1.msra.mxu1 %v3767_v52  ;;  %v3681_v59 = vadd.f32 1.0, %v4607_v56  ;;  %v3838_v52 = vld [vmem:[#allocation16 + $0x468] sm:$0xff]  ;;  %v3803_v56 = vld [vmem:[#allocation16 + $0x350] sm:$0xff] }
 0x429   :  { %4062 = vmatprep.subr.mxu1 %v3766_v54  ;;  %v4609_v58 = vpop.eup %4608  ;;  %v3804_v54 = vld [vmem:[#allocation16 + $0x358] sm:$0xff] }
 0x42a   :  { %4063 = vmatpush1.msra.mxu1 %v3765_v26  ;;  %v3682_v51 = vadd.f32 1.0, %v4609_v58  ;;  %v3689_v10 = vmul.f32 %v3681_v59, %v3625_v2  ;;  %v3837_v26 = vld [vmem:[#allocation16 + $0x460] sm:$0xff]  ;;  %v3835_v58 = vld [vmem:[#allocation16 + $0x450] sm:$0xff]  ;;  %v3832_v2 = vld [vmem:[#allocation16 + $0x438] sm:$0xff] }
 0x42b   :  { %4064 = vmatprep.subr.mxu1 %v3764_v9  ;;  %v3836_v9 = vld [vmem:[#allocation16 + $0x458] sm:$0xff]  ;;  %v3801_v59 = vld [vmem:[#allocation16 + $0x340] sm:$0xff] }
 0x42c   :  { %4065 = vmatpush1.msra.mxu1 %v3763_v57  ;;  %v3690_v5 = vmul.f32 %v3682_v51, %v3626_v24  ;;  %v3802_v57 = vld [vmem:[#allocation16 + $0x348] sm:$0xff]  ;;  %v3800_v24 = vld [vmem:[#allocation16 + $0x338] sm:$0xff]  ;;  %v3833_v51 = vld [vmem:[#allocation16 + $0x440] sm:$0xff] }
 0x42d   :  { %4066 = vmatprep.subr.mxu1 %v3762_v0  ;;  %v3834_v0 = vld [vmem:[#allocation16 + $0x448] sm:$0xff] }
 0x42e   :  { %4067 = vmatpush1.msra.mxu1 %v3761_v61  ;;  %4029 = vmatprep.mubr.f32.mxu0 %v3690_v5  ;;  %v3799_v61 = vld [vmem:[#allocation16 + $0x330] sm:$0xff]  ;;  %v3798_v5 = vld [vmem:[#allocation16 + $0x328] sm:$0xff] }
 0x42f   :  { %4068 = vmatprep.subr.mxu1 %v3824_v55  ;;  %4030 = vmatmul.mubr.f32.vlgmr.msra.gmra.mxu0 %v3689_v10  ;;  %v3265_v55 = vpop.f32.mrf.mxu0  ;;  %v3028_v10 = vrot.slane %v5258_v46, %v997_v41  ;;  %v3827_v41 = vld [vmem:[#allocation16 + $0x410] sm:$0xff] }
 0x430   :  { %4069 = vmatpush2.msra.mxu1 %v3823_v6  ;;  %4108 = vmatpush1.msra.mxu0 %v3855_v8  ;;  %v3831_v6 = vld [vmem:[#allocation16 + $0x430] sm:$0xff]  ;;  %v3830_v8 = vld [vmem:[#allocation16 + $0x428] sm:$0xff] }
 0x431   :  { %4070 = vmatprep.subr.mxu1 %v3822_v11  ;;  %4109 = vmatprep.subr.mxu0 %v3854_v16  ;;  %v3797_v11 = vld [vmem:[#allocation16 + $0x320] sm:$0xff] }
 0x432   :  { %4071 = vmatpush2.msra.mxu1 %v3821_v13  ;;  %4110 = vmatpush1.msra.mxu0 %v3853_v18  ;;  %v3796_v13 = vld [vmem:[#allocation16 + $0x318] sm:$0xff]  ;;  %v3829_v16 = vld [vmem:[#allocation16 + $0x420] sm:$0xff]  ;;  %v3795_v18 = vld [vmem:[#allocation16 + $0x310] sm:$0xff] }
 0x433   :  { %4072 = vmatprep.subr.mxu1 %v3820_v12  ;;  %4111 = vmatprep.subr.mxu0 %v3852_v4  ;;  %v3032_v12 = vrot.slane %v5258_v46, %v1001_v45  ;;  %v3267_v4 = vpop.f32.mrf.mxu0  ;;  %v3888_v45 = vld [vmem:[#allocation16 + $0x5f8] sm:$0xff] }
 0x434   :  { %4073 = vmatpush2.msra.mxu1 %v3819_v19  ;;  %4112 = vmatpush1.msra.mxu0 %v3851_v39  ;;  %v3828_v19 = vld [vmem:[#allocation16 + $0x418] sm:$0xff]  ;;  %v3266_v39 = vadd.f32 %v3265_v55, %v3028_v10  ;;  %v3865_v10 = vld [vmem:[#allocation16 + $0x540] sm:$0xff] }
 0x435   :  { %4074 = vmatprep.subr.mxu1 %v3818_v20  ;;  %4113 = vmatprep.subr.mxu0 %v3850_v21  ;;  %v3794_v20 = vld [vmem:[#allocation16 + $0x308] sm:$0xff]  ;;  %v3868_v55 = vld [vmem:[#allocation16 + $0x558] sm:$0xff] }
 0x436   :  { %4075 = vmatpush2.msra.mxu1 %v3817_v22  ;;  %4114 = vmatpush1.msra.mxu0 %v3849_v63  ;;  %v3793_v22 = vld [vmem:[#allocation16 + $0x300] sm:$0xff]  ;;  %v3826_v21 = vld [vmem:[#allocation16 + $0x408] sm:$0xff]  ;;  %v3920_v63 = vld [vmem:[#allocation16 + $0x6f8] sm:$0xff] }
 0x437   :  { %4076 = vmatprep.subr.mxu1 %v3816_v3  ;;  %4115 = vmatprep.subr.mxu0 %v3848_v1  ;;  %v3825_v3 = vld [vmem:[#allocation16 + $0x400] sm:$0xff] }
 0x438   :  { %4077 = vmatpush2.msra.mxu1 %v3815_v23  ;;  %4116 = vmatpush1.msra.mxu0 %v3847_v7  ;;  %v3268_v23 = vadd.f32 %v3267_v4, %v3032_v12  ;;  %v3861_v12 = vld [vmem:[#allocation16 + $0x520] sm:$0xff] }
 0x439   :  { %4078 = vmatprep.subr.mxu1 %v3814_v25  ;;  %4117 = vmatprep.subr.mxu0 %v3846_v30  ;;  %v3887_v25 = vld [vmem:[#allocation16 + $0x5f0] sm:$0xff] }
 0x43a   :  { %4079 = vmatpush2.msra.mxu1 %v3813_v28  ;;  %4118 = vmatpush1.msra.mxu0 %v3845_v36  ;;  %v3886_v28 = vld [vmem:[#allocation16 + $0x5e8] sm:$0xff] }
 0x43b   :  { %4080 = vmatprep.subr.mxu1 %v3812_v32  ;;  %4119 = vmatprep.subr.mxu0 %v3844_v17  ;;  %v3885_v32 = vld [vmem:[#allocation16 + $0x5e0] sm:$0xff]  ;;  %v3884_v17 = vld [vmem:[#allocation16 + $0x5d8] sm:$0xff] }
 0x43c   :  { %4081 = vmatpush2.msra.mxu1 %v3811_v33  ;;  %4120 = vmatpush1.msra.mxu0 %v3843_v43 }
 0x43d   :  { %4082 = vmatprep.subr.mxu1 %v3810_v34  ;;  %4121 = vmatprep.subr.mxu0 %v3842_v15  ;;  %v3883_v34 = vld [vmem:[#allocation16 + $0x5d0] sm:$0xff]  ;;  %v3882_v15 = vld [vmem:[#allocation16 + $0x5c8] sm:$0xff] }
 0x43e   :  { %4083 = vmatpush2.msra.mxu1 %v3809_v37  ;;  %4122 = vmatpush1.msra.mxu0 %v3841_v35 }
 0x43f   :  { %4084 = vmatprep.subr.mxu1 %v3808_v40  ;;  %4123 = vmatprep.subr.mxu0 %v3840_v44  ;;  %v3881_v40 = vld [vmem:[#allocation16 + $0x5c0] sm:$0xff]  ;;  %v3880_v44 = vld [vmem:[#allocation16 + $0x5b8] sm:$0xff] }
 0x440   :  { %4085 = vmatpush2.msra.mxu1 %v3807_v42  ;;  %4124 = vmatpush1.msra.mxu0 %v3839_v50 }
 0x441   :  { %4086 = vmatprep.subr.mxu1 %v3806_v47  ;;  %4125 = vmatprep.subr.mxu0 %v3838_v52  ;;  %v3879_v47 = vld [vmem:[#allocation16 + $0x5b0] sm:$0xff]  ;;  %v3878_v52 = vld [vmem:[#allocation16 + $0x5a8] sm:$0xff] }
 0x442   :  { %4087 = vmatpush2.msra.mxu1 %v3805_v48  ;;  %4126 = vmatpush1.msra.mxu0 %v3837_v26 }
 0x443   :  { %4088 = vmatprep.subr.mxu1 %v3804_v54  ;;  %4127 = vmatprep.subr.mxu0 %v3836_v9  ;;  %v3877_v54 = vld [vmem:[#allocation16 + $0x5a0] sm:$0xff]  ;;  %v3876_v9 = vld [vmem:[#allocation16 + $0x598] sm:$0xff] }
 0x444   :  { %4089 = vmatpush2.msra.mxu1 %v3803_v56  ;;  %4128 = vmatpush1.msra.mxu0 %v3835_v58 }
 0x445   :  { %4090 = vmatprep.subr.mxu1 %v3802_v57  ;;  %4129 = vmatprep.subr.mxu0 %v3834_v0  ;;  %v3875_v57 = vld [vmem:[#allocation16 + $0x590] sm:$0xff]  ;;  %v3873_v0 = vld [vmem:[#allocation16 + $0x580] sm:$0xff] }
 0x446   :  { %4091 = vmatpush2.msra.mxu1 %v3801_v59  ;;  %4130 = vmatpush1.msra.mxu0 %v3833_v51  ;;  %v3874_v59 = vld [vmem:[#allocation16 + $0x588] sm:$0xff]  ;;  %v3871_v51 = vld [vmem:[#allocation16 + $0x570] sm:$0xff] }
 0x447   :  { %4092 = vmatprep.subr.mxu1 %v3800_v24  ;;  %4131 = vmatprep.subr.mxu0 %v3832_v2  ;;  %v3872_v24 = vld [vmem:[#allocation16 + $0x578] sm:$0xff]  ;;  %v3869_v2 = vld [vmem:[#allocation16 + $0x560] sm:$0xff] }
 0x448   :  { %4093 = vmatpush2.msra.mxu1 %v3799_v61  ;;  %4132 = vmatpush1.msra.mxu0 %v3831_v6  ;;  %v3870_v61 = vld [vmem:[#allocation16 + $0x568] sm:$0xff] }
 0x449   :  { %4094 = vmatprep.subr.mxu1 %v3798_v5  ;;  %4133 = vmatprep.subr.mxu0 %v3830_v8  ;;  %v3867_v5 = vld [vmem:[#allocation16 + $0x550] sm:$0xff]  ;;  %v3866_v6 = vld [vmem:[#allocation16 + $0x548] sm:$0xff] }
 0x44a   :  { %4095 = vmatpush2.msra.mxu1 %v3797_v11  ;;  %4134 = vmatpush1.msra.mxu0 %v3829_v16  ;;  %v3864_v11 = vld [vmem:[#allocation16 + $0x538] sm:$0xff]  ;;  %v3863_v8 = vld [vmem:[#allocation16 + $0x530] sm:$0xff] }
 0x44b   :  { %4096 = vmatprep.subr.mxu1 %v3796_v13  ;;  %4135 = vmatprep.subr.mxu0 %v3828_v19  ;;  %v3862_v13 = vld [vmem:[#allocation16 + $0x528] sm:$0xff] }
 0x44c   :  { %4097 = vmatpush2.msra.mxu1 %v3795_v18  ;;  %4136 = vmatpush1.msra.mxu0 %v3827_v41  ;;  %v3860_v18 = vld [vmem:[#allocation16 + $0x518] sm:$0xff] }
 0x44d   :  { %4098 = vmatprep.subr.mxu1 %v3794_v20  ;;  %4137 = vmatprep.subr.mxu0 %v3826_v21  ;;  %v3859_v20 = vld [vmem:[#allocation16 + $0x510] sm:$0xff] }
 0x44e   :  { %v3336_v1 = vpop.f32.mrf.mxu1  ;;  %4099 = vmatpush2.msra.mxu1 %v3793_v22  ;;  %4138 = vmatpush1.msra.mxu0 %v3825_v3  ;;  %v3858_v22 = vld [vmem:[#allocation16 + $0x508] sm:$0xff]  ;;  %v3857_v3 = vld [vmem:[#allocation16 + $0x500] sm:$0xff] }
 0x44f   :  { %v5285_v7 = vadd.f32 %v3336_v1, %v3266_v39  ;;  %4178 = vmatprep.subr.mxu1 %v3920_v63  ;;  %4139 = vmatprep.subr.mxu0 %v3888_v45  ;;  %v3919_v1 = vld [vmem:[#allocation16 + $0x6f0] sm:$0xff] }
 0x450   :  { %v3338_v30 = vpop.f32.mrf.mxu1  ;;  %4140 = vmatpush2.msra.mxu0 %v3887_v25  ;;  %v3918_v25 = vld [vmem:[#allocation16 + $0x6e8] sm:$0xff] }
 0x451   :  { %v3635_v36 = vmul.f32 0.044715, %v5285_v7  ;;  %v5288_v33 = vadd.f32 %v3338_v30, %v3268_v23  ;;  %4141 = vmatprep.subr.mxu0 %v3886_v28  ;;  %v3627_v21 = vmul.f32 0.5, %v5285_v7  ;;  %v4328_v23 = vld [vmem:[#allocation20 + $0xf8] sm:$0xff] }
 0x452   :  { %4142 = vmatpush2.msra.mxu0 %v3885_v32  ;;  %v3917_v28 = vld [vmem:[#allocation16 + $0x6e0] sm:$0xff]  ;;  %v3916_v30 = vld [vmem:[#allocation16 + $0x6d8] sm:$0xff]  ;;  %v3915_v32 = vld [vmem:[#allocation16 + $0x6d0] sm:$0xff] }
 0x453   :  { %v3643_v43 = vmul.f32 %v3635_v36, %v5285_v7  ;;  %v3636_v37 = vmul.f32 0.044715, %v5288_v33  ;;  %4143 = vmatprep.subr.mxu0 %v3884_v17  ;;  %v3628_v41 = vmul.f32 0.5, %v5288_v33  ;;  %v3913_v36 = vld [vmem:[#allocation16 + $0x6c0] sm:$0xff]  ;;  %v3911_v17 = vld [vmem:[#allocation16 + $0x6b0] sm:$0xff] }
 0x454   :  { %4144 = vmatpush2.msra.mxu0 %v3883_v34  ;;  %v3910_v34 = vld [vmem:[#allocation16 + $0x6a8] sm:$0xff] }
 0x455   :  { %v3651_v35 = vmul.f32 %v3643_v43, %v5285_v7  ;;  %v3644_v42 = vmul.f32 %v3636_v37, %v5288_v33  ;;  %4145 = vmatprep.subr.mxu0 %v3882_v15  ;;  %v3909_v43 = vld [vmem:[#allocation16 + $0x6a0] sm:$0xff]  ;;  %v3908_v37 = vld [vmem:[#allocation16 + $0x698] sm:$0xff]  ;;  %v3907_v15 = vld [vmem:[#allocation16 + $0x690] sm:$0xff] }
 0x456   :  { %4146 = vmatpush2.msra.mxu0 %v3881_v40  ;;  %v3906_v40 = vld [vmem:[#allocation16 + $0x688] sm:$0xff] }
 0x457   :  { %v3659_v50 = vadd.f32 %v3651_v35, %v5285_v7  ;;  %v3652_v48 = vmul.f32 %v3644_v42, %v5288_v33  ;;  %4147 = vmatprep.subr.mxu0 %v3880_v44  ;;  %v3914_v7 = vld [vmem:[#allocation16 + $0x6c8] sm:$0xff]  ;;  %v3905_v35 = vld [vmem:[#allocation16 + $0x680] sm:$0xff]  ;;  %v3904_v42 = vld [vmem:[#allocation16 + $0x678] sm:$0xff] }
 0x458   :  { %4148 = vmatpush2.msra.mxu0 %v3879_v47  ;;  %v3903_v44 = vld [vmem:[#allocation16 + $0x670] sm:$0xff]  ;;  %v3902_v47 = vld [vmem:[#allocation16 + $0x668] sm:$0xff] }
 0x459   :  { %v3660_v26 = vadd.f32 %v3652_v48, %v5288_v33  ;;  %v3667_v56 = vmul.f32 0.7978846, %v3659_v50  ;;  %4149 = vmatprep.subr.mxu0 %v3878_v52  ;;  %v3912_v33 = vld [vmem:[#allocation16 + $0x6b8] sm:$0xff]  ;;  %v3901_v50 = vld [vmem:[#allocation16 + $0x660] sm:$0xff]  ;;  %v3899_v52 = vld [vmem:[#allocation16 + $0x650] sm:$0xff] }
 0x45a   :  { %4150 = vmatpush2.msra.mxu0 %v3877_v54  ;;  %v3900_v48 = vld [vmem:[#allocation16 + $0x658] sm:$0xff]  ;;  %v3898_v54 = vld [vmem:[#allocation16 + $0x648] sm:$0xff] }
 0x45b   :  { %v3668_v58 = vmul.f32 0.7978846, %v3660_v26  ;;  %4610 = vtanh.f32 %v3667_v56  ;;  %4151 = vmatprep.subr.mxu0 %v3876_v9  ;;  %v3897_v26 = vld [vmem:[#allocation16 + $0x640] sm:$0xff]  ;;  %v3896_v56 = vld [vmem:[#allocation16 + $0x638] sm:$0xff]  ;;  %v3407_v9 = vpop.f32.mrf.mxu0 }
 0x45c   :  { %4152 = vmatpush2.msra.mxu0 %v3875_v57  ;;  %v3895_v57 = vld [vmem:[#allocation16 + $0x630] sm:$0xff] }
 0x45d   :  { %4612 = vtanh.f32 %v3668_v58  ;;  %4153 = vmatprep.subr.mxu0 %v3874_v59  ;;  %v3036_v58 = vrot.slane %v5258_v46, %v1005_v49  ;;  %v3894_v59 = vld [vmem:[#allocation16 + $0x628] sm:$0xff]  ;;  %v3952_v49 = vld [vmem:[#allocation16 + $0x7f8] sm:$0xff] }
 0x45e   :  { %4154 = vmatpush2.msra.mxu0 %v3873_v0  ;;  %v3893_v0 = vld [vmem:[#allocation16 + $0x620] sm:$0xff] }
 0x45f   :  { %4155 = vmatprep.subr.mxu0 %v3872_v24  ;;  %v3040_v24 = vrot.slane %v5258_v46, %v1009_v27  ;;  %v3950_v27 = vld [vmem:[#allocation16 + $0x7e8] sm:$0xff] }
 0x460   :  { %4156 = vmatpush2.msra.mxu0 %v3871_v51  ;;  %v3892_v51 = vld [vmem:[#allocation16 + $0x618] sm:$0xff] }
 0x461   :  { %4157 = vmatprep.subr.mxu0 %v3870_v61  ;;  %v3409_v61 = vpop.f32.mrf.mxu0 }
 0x462   :  { %4158 = vmatpush2.msra.mxu0 %v3869_v2  ;;  %v3891_v2 = vld [vmem:[#allocation16 + $0x610] sm:$0xff] }
 0x463   :  { %4159 = vmatprep.subr.mxu0 %v3868_v55  ;;  %v3408_v55 = vadd.f32 %v3407_v9, %v3036_v58  ;;  %v3924_v9 = vld [vmem:[#allocation16 + $0x718] sm:$0xff] }
 0x464   :  { %4160 = vmatpush2.msra.mxu0 %v3867_v5  ;;  %v3890_v5 = vld [vmem:[#allocation16 + $0x608] sm:$0xff] }
 0x465   :  { %4161 = vmatprep.subr.mxu0 %v3866_v6  ;;  %v3889_v6 = vld [vmem:[#allocation16 + $0x600] sm:$0xff] }
 0x466   :  { %4162 = vmatpush2.msra.mxu0 %v3865_v10  ;;  %v3410_v10 = vadd.f32 %v3409_v61, %v3040_v24 }
 0x467   :  { %4163 = vmatprep.subr.mxu0 %v3864_v11 }
 0x468   :  { %v4611_v16 = vpop.eup %4610  ;;  %4164 = vmatpush2.msra.mxu0 %v3863_v8  ;;  %v3951_v8 = vld [vmem:[#allocation16 + $0x7f0] sm:$0xff] }
 0x469   :  { %v3683_v4 = vadd.f32 1.0, %v4611_v16  ;;  %4165 = vmatprep.subr.mxu0 %v3862_v13  ;;  %v3949_v16 = vld [vmem:[#allocation16 + $0x7e0] sm:$0xff] }
 0x46a   :  { %v4613_v19 = vpop.eup %4612  ;;  %4166 = vmatpush2.msra.mxu0 %v3861_v12 }
 0x46b   :  { %v3684_v39 = vadd.f32 1.0, %v4613_v19  ;;  %4167 = vmatprep.subr.mxu0 %v3860_v18  ;;  %v3691_v45 = vmul.f32 %v3683_v4, %v3627_v21  ;;  %v3948_v19 = vld [vmem:[#allocation16 + $0x7d8] sm:$0xff]  ;;  %v3947_v4 = vld [vmem:[#allocation16 + $0x7d0] sm:$0xff] }
 0x46c   :  { %4168 = vmatpush2.msra.mxu0 %v3859_v20 }
 0x46d   :  { %v3692_v63 = vmul.f32 %v3684_v39, %v3628_v41  ;;  %4169 = vmatprep.subr.mxu0 %v3858_v22  ;;  %v3946_v39 = vld [vmem:[#allocation16 + $0x7c8] sm:$0xff]  ;;  %v3945_v22 = vld [vmem:[#allocation16 + $0x7c0] sm:$0xff] }
 0x46e   :  { %4170 = vmatpush2.msra.mxu0 %v3857_v3 }
 0x46f   :  { %4100 = vmatprep.mubr.f32.mxu1 %v3692_v63  ;;  %4500 = vmatprep.subr.mxu0 %v4328_v23  ;;  %v3944_v63 = vld [vmem:[#allocation16 + $0x7b8] sm:$0xff]  ;;  %v3943_v23 = vld [vmem:[#allocation16 + $0x7b0] sm:$0xff] }
 0x470   :  { %4101 = vmatmul.mubr.f32.vlgmr.msra.gmra.mxu1 %v3691_v45 }
 0x471   :  { %4179 = vmatpush1.msra.mxu1 %v3919_v1 }
 0x472   :  { %4180 = vmatprep.subr.mxu1 %v3918_v25  ;;  %v3942_v25 = vld [vmem:[#allocation16 + $0x7a8] sm:$0xff] }
 0x473   :  { %4181 = vmatpush1.msra.mxu1 %v3917_v28  ;;  %v3941_v28 = vld [vmem:[#allocation16 + $0x7a0] sm:$0xff] }
 0x474   :  { %4182 = vmatprep.subr.mxu1 %v3916_v30 }
 0x475   :  { %4183 = vmatpush1.msra.mxu1 %v3915_v32 }
 0x476   :  { %4184 = vmatprep.subr.mxu1 %v3914_v7  ;;  %v3940_v7 = vld [vmem:[#allocation16 + $0x798] sm:$0xff] }
 0x477   :  { %4185 = vmatpush1.msra.mxu1 %v3913_v36  ;;  %v3939_v36 = vld [vmem:[#allocation16 + $0x790] sm:$0xff] }
 0x478   :  { %4186 = vmatprep.subr.mxu1 %v3912_v33 }
 0x479   :  { %4187 = vmatpush1.msra.mxu1 %v3911_v17  ;;  %v3938_v17 = vld [vmem:[#allocation16 + $0x788] sm:$0xff] }
 0x47a   :  { %4188 = vmatprep.subr.mxu1 %v3910_v34  ;;  %v4253_v34 = vpop.xlane.xlu0 %4252 }
 0x47b   :  { %4189 = vmatpush1.msra.mxu1 %v3909_v43  ;;  %v3937_v43 = vld [vmem:[#allocation16 + $0x780] sm:$0xff] }
 0x47c   :  { %4190 = vmatprep.subr.mxu1 %v3908_v37  ;;  %v3936_v37 = vld [vmem:[#allocation16 + $0x778] sm:$0xff] }
 0x47d   :  { %4191 = vmatpush1.msra.mxu1 %v3907_v15  ;;  %v3935_v15 = vld [vmem:[#allocation16 + $0x770] sm:$0xff] }
 0x47e   :  { %4192 = vmatprep.subr.mxu1 %v3906_v40  ;;  %v3934_v40 = vld [vmem:[#allocation16 + $0x768] sm:$0xff] }
 0x47f   :  { %4193 = vmatpush1.msra.mxu1 %v3905_v35  ;;  %v3933_v35 = vld [vmem:[#allocation16 + $0x760] sm:$0xff] }
 0x480   :  { %4194 = vmatprep.subr.mxu1 %v3904_v42  ;;  %v3932_v42 = vld [vmem:[#allocation16 + $0x758] sm:$0xff] }
 0x481   :  { %4195 = vmatpush1.msra.mxu1 %v3903_v44  ;;  %v3931_v44 = vld [vmem:[#allocation16 + $0x750] sm:$0xff] }
 0x482   :  { %4196 = vmatprep.subr.mxu1 %v3902_v47  ;;  %v3930_v47 = vld [vmem:[#allocation16 + $0x748] sm:$0xff] }
 0x483   :  { %4197 = vmatpush1.msra.mxu1 %v3901_v50  ;;  %v3929_v50 = vld [vmem:[#allocation16 + $0x740] sm:$0xff] }
 0x484   :  { %4198 = vmatprep.subr.mxu1 %v3900_v48  ;;  %v3928_v48 = vld [vmem:[#allocation16 + $0x738] sm:$0xff] }
 0x485   :  { %4199 = vmatpush1.msra.mxu1 %v3899_v52  ;;  %v3927_v52 = vld [vmem:[#allocation16 + $0x730] sm:$0xff] }
 0x486   :  { %4200 = vmatprep.subr.mxu1 %v3898_v54  ;;  %v3926_v54 = vld [vmem:[#allocation16 + $0x728] sm:$0xff] }
 0x487   :  { %4201 = vmatpush1.msra.mxu1 %v3897_v26 }
 0x488   :  { %4202 = vmatprep.subr.mxu1 %v3896_v56  ;;  %v3925_v56 = vld [vmem:[#allocation16 + $0x720] sm:$0xff] }
 0x489   :  { %4203 = vmatpush1.msra.mxu1 %v3895_v57 }
 0x48a   :  { %4204 = vmatprep.subr.mxu1 %v3894_v59  ;;  %v3923_v59 = vld [vmem:[#allocation16 + $0x710] sm:$0xff] }
 0x48b   :  { %4205 = vmatpush1.msra.mxu1 %v3893_v0 }
 0x48c   :  { %4206 = vmatprep.subr.mxu1 %v3892_v51  ;;  %v3922_v51 = vld [vmem:[#allocation16 + $0x708] sm:$0xff] }
 0x48d   :  { %4207 = vmatpush1.msra.mxu1 %v3891_v2 }
 0x48e   :  { %v3478_v11 = vpop.f32.mrf.mxu1  ;;  %4208 = vmatprep.subr.mxu1 %v3890_v5 }
 0x48f   :  { %v5305_v13 = vadd.f32 %v3478_v11, %v3408_v55  ;;  %4209 = vmatpush1.msra.mxu1 %v3889_v6  ;;  %v3921_v55 = vld [vmem:[#allocation16 + $0x700] sm:$0xff] }
 0x490   :  { %v3480_v46 = vpop.f32.mrf.mxu1  ;;  %4210 = vmatprep.subr.mxu1 %v3952_v49  ;;  %v4327_v49 = vld [vmem:[#allocation20 + $0xf0] sm:$0xff] }
 0x491   :  { %v3637_v12 = vmul.f32 0.044715, %v5305_v13  ;;  %v5308_v18 = vadd.f32 %v3480_v46, %v3410_v10  ;;  %4211 = vmatpush2.msra.mxu1 %v3951_v8  ;;  %v3629_v2 = vmul.f32 0.5, %v5305_v13  ;;  %v4312_v10 = vld [vmem:[#allocation20 + $0x78] sm:$0xff]  ;;  %v4311_v8 = vld [vmem:[#allocation20 + $0x70] sm:$0xff]  ;;  %v4325_v46 = vld [vmem:[#allocation20 + $0xe0] sm:$0xff] }
 0x492   :  { %4212 = vmatprep.subr.mxu1 %v3950_v27  ;;  %v4326_v27 = vld [vmem:[#allocation20 + $0xe8] sm:$0xff] }
 0x493   :  { %v3645_v20 = vmul.f32 %v3637_v12, %v5305_v13  ;;  %v3638_v41 = vmul.f32 0.044715, %v5308_v18  ;;  %4213 = vmatpush2.msra.mxu1 %v3949_v16  ;;  %v3630_v0 = vmul.f32 0.5, %v5308_v18  ;;  %v4309_v16 = vld [vmem:[#allocation20 + $0x60] sm:$0xff]  ;;  %v4324_v12 = vld [vmem:[#allocation20 + $0xd8] sm:$0xff] }
 0x494   :  { %4214 = vmatprep.subr.mxu1 %v3948_v19  ;;  %v4323_v19 = vld [vmem:[#allocation20 + $0xd0] sm:$0xff] }
 0x495   :  { %v3653_v21 = vmul.f32 %v3645_v20, %v5305_v13  ;;  %v3646_v3 = vmul.f32 %v3638_v41, %v5308_v18  ;;  %4215 = vmatpush2.msra.mxu1 %v3947_v4  ;;  %v4322_v4 = vld [vmem:[#allocation20 + $0xc8] sm:$0xff]  ;;  %v4321_v41 = vld [vmem:[#allocation20 + $0xc0] sm:$0xff] }
 0x496   :  { %4216 = vmatprep.subr.mxu1 %v3946_v39  ;;  %v4306_v20 = vld [vmem:[#allocation20 + $0x48] sm:$0xff]  ;;  %v4305_v39 = vld [vmem:[#allocation20 + $0x40] sm:$0xff] }
 0x497   :  { %v3661_v45 = vadd.f32 %v3653_v21, %v5305_v13  ;;  %v3654_v1 = vmul.f32 %v3646_v3, %v5308_v18  ;;  %4217 = vmatpush2.msra.mxu1 %v3945_v22  ;;  %v4310_v13 = vld [vmem:[#allocation20 + $0x68] sm:$0xff]  ;;  %v4320_v22 = vld [vmem:[#allocation20 + $0xb8] sm:$0xff]  ;;  %v4319_v3 = vld [vmem:[#allocation20 + $0xb0] sm:$0xff] }
 0x498   :  { %4218 = vmatprep.subr.mxu1 %v3944_v63  ;;  %v4304_v21 = vld [vmem:[#allocation20 + $0x38] sm:$0xff]  ;;  %v4303_v63 = vld [vmem:[#allocation20 + $0x30] sm:$0xff] }
 0x499   :  { %v3662_v30 = vadd.f32 %v3654_v1, %v5308_v18  ;;  %v3669_v32 = vmul.f32 0.7978846, %v3661_v45  ;;  %4219 = vmatpush2.msra.mxu1 %v3943_v23  ;;  %v4308_v18 = vld [vmem:[#allocation20 + $0x58] sm:$0xff]  ;;  %v4318_v23 = vld [vmem:[#allocation20 + $0xa8] sm:$0xff]  ;;  %v4317_v1 = vld [vmem:[#allocation20 + $0xa0] sm:$0xff] }
 0x49a   :  { %4220 = vmatprep.subr.mxu1 %v3942_v25  ;;  %v4302_v45 = vld [vmem:[#allocation20 + $0x28] sm:$0xff]  ;;  %v4301_v25 = vld [vmem:[#allocation20 + $0x20] sm:$0xff] }
 0x49b   :  { %v3670_v33 = vmul.f32 0.7978846, %v3662_v30  ;;  %4614 = vtanh.f32 %v3669_v32  ;;  %4221 = vmatpush2.msra.mxu1 %v3941_v28  ;;  %v4316_v28 = vld [vmem:[#allocation20 + $0x98] sm:$0xff]  ;;  %v4315_v32 = vld [vmem:[#allocation20 + $0x90] sm:$0xff] }
 0x49c   :  { %4222 = vmatprep.subr.mxu1 %v3940_v7  ;;  %v4300_v30 = vld [vmem:[#allocation20 + $0x18] sm:$0xff] }
 0x49d   :  { %4616 = vtanh.f32 %v3670_v33  ;;  %4223 = vmatpush2.msra.mxu1 %v3939_v36  ;;  %v4640_v7 = vld [vmem:[#allocation14] sm:$0xff]  ;;  %v3549_v33 = vpop.f32.mrf.mxu0 }
 0x49e   :  { %4224 = vmatprep.subr.mxu1 %v3938_v17  ;;  %4618 = vrsqrt.f32 %v4253_v34  ;;  %v3044_v36 = vrot.slane %v4640_v7, %v1013_v14  ;;  %v4299_v17 = vld [vmem:[#allocation20 + $0x10] sm:$0xff]  ;;  %v4314_v34 = vld [vmem:[#allocation20 + $0x88] sm:$0xff] }
 0x49f   :  { %4225 = vmatpush2.msra.mxu1 %v3937_v43  ;;  %v4298_v43 = vld [vmem:[#allocation20 + $0x8] sm:$0xff] }
 0x4a0   :  { %4226 = vmatprep.subr.mxu1 %v3936_v37  ;;  %v3550_v37 = vadd.f32 %v3549_v33, %v3044_v36 }
 0x4a1   :  { %4227 = vmatpush2.msra.mxu1 %v3935_v15  ;;  %v3048_v15 = vrot.slane %v4640_v7, %v1017_v29 }
 0x4a2   :  { %4228 = vmatprep.subr.mxu1 %v3934_v40  ;;  %v4313_v40 = vld [vmem:[#allocation20 + $0x80] sm:$0xff] }
 0x4a3   :  { %4229 = vmatpush2.msra.mxu1 %v3933_v35  ;;  %v3551_v35 = vpop.f32.mrf.mxu0 }
 0x4a4   :  { %4230 = vmatprep.subr.mxu1 %v3932_v42  ;;  %v4297_v42 = vld [vmem:[#allocation20] sm:$0xff] }
 0x4a5   :  { %4231 = vmatpush2.msra.mxu1 %v3931_v44 }
 0x4a6   :  { %4232 = vmatprep.subr.mxu1 %v3930_v47  ;;  %v3552_v47 = vadd.f32 %v3551_v35, %v3048_v15  ;;  %v4273_v35 = vld [vmem:[#allocation19 + $0x40] sm:$0xff] }
 0x4a7   :  { %4233 = vmatpush2.msra.mxu1 %v3929_v50 }
 0x4a8   :  { %v4615_v26 = vpop.eup %4614  ;;  %4234 = vmatprep.subr.mxu1 %v3928_v48 }
 0x4a9   :  { %4235 = vmatpush2.msra.mxu1 %v3927_v52  ;;  %v3685_v58 = vadd.f32 1.0, %v4615_v26 }
 0x4aa   :  { %v4617_v57 = vpop.eup %4616  ;;  %4236 = vmatprep.subr.mxu1 %v3926_v54 }
 0x4ab   :  { %v3686_v24 = vadd.f32 1.0, %v4617_v57  ;;  %4237 = vmatpush2.msra.mxu1 %v3925_v56  ;;  %v5318_v61 = vpop.eup %4618  ;;  %v3693_v6 = vmul.f32 %v3685_v58, %v3629_v2 }
 0x4ac   :  { %4238 = vmatprep.subr.mxu1 %v3924_v9  ;;  %v4256_v11 = vmul.f32 %v5318_v61, %v5249_v31  ;;  %v4307_v31 = vld [vmem:[#allocation20 + $0x50] sm:$0xff]  ;;  %v4255_v14 = vmul.f32 %v5318_v61, %v5247_v38 }
 0x4ad   :  { %v3694_v5 = vmul.f32 %v3686_v24, %v3630_v0  ;;  %4239 = vmatpush2.msra.mxu1 %v3923_v59 }
 0x4ae   :  { %4240 = vmatprep.subr.mxu1 %v3922_v51 }
 0x4af   :  { %4171 = vmatprep.mubr.f32.mxu0 %v3694_v5  ;;  %4241 = vmatpush2.msra.mxu1 %v3921_v55 }
 0x4b0   :  { %4172 = vmatmul.mubr.f32.vlgmr.msra.gmra.mxu0 %v3693_v6 }
 0x4b1   :  { %4501 = vmatpush3.msra.mxu0 %v4312_v10  ;;  %4393 = vmatprep.mubr.f32.mxu0 %v4256_v11  ;;  %v4296_v10 = vld [vmem:[#allocation19 + $0xf8] sm:$0xff]  ;;  %v4295_v11 = vld [vmem:[#allocation19 + $0xf0] sm:$0xff] }
 0x4b2   :  { %4502 = vmatprep.subr.mxu0 %v4327_v49  ;;  %v4280_v49 = vld [vmem:[#allocation19 + $0x78] sm:$0xff]  ;;  %4535 = vmatprep.subr.mxu1 %v4296_v10  ;;  %v4499_v10 = vld [vmem:[#allocation22] ss:$0 sm:$0xff] }
 0x4b3   :  { %4503 = vmatpush3.msra.mxu0 %v4311_v8  ;;  %v4279_v8 = vld [vmem:[#allocation19 + $0x70] sm:$0xff] }
 0x4b4   :  { %4504 = vmatprep.subr.mxu0 %v4326_v27  ;;  %v4294_v27 = vld [vmem:[#allocation19 + $0xe8] sm:$0xff] }
 0x4b5   :  { %4505 = vmatpush3.msra.mxu0 %v4310_v13  ;;  %v4278_v13 = vld [vmem:[#allocation19 + $0x68] sm:$0xff] }
 0x4b6   :  { %4506 = vmatprep.subr.mxu0 %v4325_v46  ;;  %v4293_v46 = vld [vmem:[#allocation19 + $0xe0] sm:$0xff] }
 0x4b7   :  { %4507 = vmatpush3.msra.mxu0 %v4309_v16  ;;  %v4277_v16 = vld [vmem:[#allocation19 + $0x60] sm:$0xff] }
 0x4b8   :  { %4508 = vmatprep.subr.mxu0 %v4324_v12  ;;  %v4292_v12 = vld [vmem:[#allocation19 + $0xd8] sm:$0xff] }
 0x4b9   :  { %4509 = vmatpush3.msra.mxu0 %v4308_v18  ;;  %v4276_v18 = vld [vmem:[#allocation19 + $0x58] sm:$0xff] }
 0x4ba   :  { %4510 = vmatprep.subr.mxu0 %v4323_v19  ;;  %v4291_v19 = vld [vmem:[#allocation19 + $0xd0] sm:$0xff] }
 0x4bb   :  { %4511 = vmatpush3.msra.mxu0 %v4307_v31  ;;  %v4275_v31 = vld [vmem:[#allocation19 + $0x50] sm:$0xff] }
 0x4bc   :  { %4512 = vmatprep.subr.mxu0 %v4322_v4  ;;  %v4290_v4 = vld [vmem:[#allocation19 + $0xc8] sm:$0xff] }
 0x4bd   :  { %4513 = vmatpush3.msra.mxu0 %v4306_v20  ;;  %v4274_v20 = vld [vmem:[#allocation19 + $0x48] sm:$0xff] }
 0x4be   :  { %4514 = vmatprep.subr.mxu0 %v4321_v41  ;;  %v4289_v41 = vld [vmem:[#allocation19 + $0xc0] sm:$0xff] }
 0x4bf   :  { %4515 = vmatpush3.msra.mxu0 %v4305_v39  ;;  %v3953_v39 = vld [vmem:[#allocation17] sm:$0x3] }
 0x4c0   :  { %4516 = vmatprep.subr.mxu0 %v4320_v22 }
 0x4c1   :  { %4517 = vmatpush3.msra.mxu0 %v4304_v21  ;;  %v3958_v21 = vrot.slane %v3953_v39, %v5103_v62 }
 0x4c2   :  { %4518 = vmatprep.subr.mxu0 %v4319_v3 }
 0x4c3   :  { %4519 = vmatpush3.msra.mxu0 %v4303_v63 }
 0x4c4   :  { %4520 = vmatprep.subr.mxu0 %v4318_v23  ;;  %v3962_v23 = vrot.slane %v3953_v39, %v5133_v60  ;;  %v4272_v60 = vld [vmem:[#allocation19 + $0x38] sm:$0xff] }
 0x4c5   :  { %4521 = vmatpush3.msra.mxu0 %v4302_v45 }
 0x4c6   :  { %4522 = vmatprep.subr.mxu0 %v4317_v1 }
 0x4c7   :  { %4523 = vmatpush3.msra.mxu0 %v4301_v25 }
 0x4c8   :  { %4524 = vmatprep.subr.mxu0 %v4316_v28 }
 0x4c9   :  { %4525 = vmatpush3.msra.mxu0 %v4300_v30 }
 0x4ca   :  { %4526 = vmatprep.subr.mxu0 %v4315_v32 }
 0x4cb   :  { %4527 = vmatpush3.msra.mxu0 %v4299_v17 }
 0x4cc   :  { %4528 = vmatprep.subr.mxu0 %v4314_v34 }
 0x4cd   :  { %4529 = vmatpush3.msra.mxu0 %v4298_v43 }
 0x4ce   :  { %4530 = vmatprep.subr.mxu0 %v4313_v40  ;;  %v3620_v44 = vpop.f32.mrf.mxu1 }
 0x4cf   :  { %v3621_v50 = vadd.f32 %v3620_v44, %v3550_v37  ;;  %4531 = vmatpush3.msra.mxu0 %v4297_v42  ;;  %v4288_v42 = vld [vmem:[#allocation19 + $0xb8] sm:$0xff]  ;;  %v4287_v44 = vld [vmem:[#allocation19 + $0xb0] sm:$0xff] }
 0x4d0   :  { %4394 = vmatmul.mubr.f32.vlgmr.msra.gmra.mxu0 %v4255_v14  ;;  %v3622_v48 = vpop.f32.mrf.mxu1  ;;  %v4271_v14 = vld [vmem:[#allocation19 + $0x30] sm:$0xff] }
 0x4d1   :  { %v3639_v52 = vmul.f32 0.044715, %v3621_v50  ;;  %v3623_v54 = vadd.f32 %v3622_v48, %v3552_v47  ;;  %v3631_v55 = vmul.f32 0.5, %v3621_v50  ;;  %v4286_v47 = vld [vmem:[#allocation19 + $0xa8] sm:$0xff]  ;;  %v4285_v48 = vld [vmem:[#allocation19 + $0xa0] sm:$0xff] }
 0x4d3   :  { %v3647_v26 = vmul.f32 %v3639_v52, %v3621_v50  ;;  %v3640_v53 = vmul.f32 0.044715, %v3623_v54  ;;  %v3632_v61 = vmul.f32 0.5, %v3623_v54  ;;  %v4269_v52 = vld [vmem:[#allocation19 + $0x20] sm:$0xff] }
 0x4d5   :  { %v3655_v29 = vmul.f32 %v3647_v26, %v3621_v50  ;;  %v3648_v56 = vmul.f32 %v3640_v53, %v3623_v54  ;;  %v4268_v26 = vld [vmem:[#allocation19 + $0x18] sm:$0xff]  ;;  %v4283_v53 = vld [vmem:[#allocation19 + $0x90] sm:$0xff] }
 0x4d7   :  { %v3663_v9 = vadd.f32 %v3655_v29, %v3621_v50  ;;  %v3656_v57 = vmul.f32 %v3648_v56, %v3623_v54  ;;  %v4270_v50 = vld [vmem:[#allocation19 + $0x28] sm:$0xff]  ;;  %v4267_v29 = vld [vmem:[#allocation19 + $0x10] sm:$0xff] }
 0x4d8   :  { %v4282_v56 = vld [vmem:[#allocation19 + $0x88] sm:$0xff] }
 0x4d9   :  { %v3664_v58 = vadd.f32 %v3656_v57, %v3623_v54  ;;  %v3671_v59 = vmul.f32 0.7978846, %v3663_v9  ;;  %v4284_v54 = vld [vmem:[#allocation19 + $0x98] sm:$0xff]  ;;  %v4266_v9 = vld [vmem:[#allocation19 + $0x8] sm:$0xff]  ;;  %v4281_v57 = vld [vmem:[#allocation19 + $0x80] sm:$0xff] }
 0x4db   :  { %v3672_v0 = vmul.f32 0.7978846, %v3664_v58  ;;  %4620 = vtanh.f32 %v3671_v59  ;;  %v4265_v58 = vld [vmem:[#allocation19] sm:$0xff] }
 0x4dd   :  { %4622 = vtanh.f32 %v3672_v0 }
 0x4e8   :  { %v4621_v24 = vpop.eup %4620 }
 0x4e9   :  { %v3687_v51 = vadd.f32 1.0, %v4621_v24 }
 0x4ea   :  { %v4623_v38 = vpop.eup %4622 }
 0x4eb   :  { %v3688_v2 = vadd.f32 1.0, %v4623_v38  ;;  %v3695_v6 = vmul.f32 %v3687_v51, %v3631_v55 }
 0x4ed   :  { %v3696_v5 = vmul.f32 %v3688_v2, %v3632_v61 }
 0x4ef   :  { %4242 = vmatprep.mubr.f32.mxu1 %v3696_v5  ;;  %v4031_v22 = vpop.f32.mrf.mxu0 }
 0x4f0   :  { %4243 = vmatmul.mubr.f32.vlgmr.msra.gmra.mxu1 %v3695_v6  ;;  %v4032_v1 = vadd.f32 %v4031_v22, %v3958_v21 }
 0x4f1   :  { %4536 = vmatpush3.msra.mxu1 %v4280_v49  ;;  %v4033_v3 = vpop.f32.mrf.mxu0 }
 0x4f2   :  { %4537 = vmatprep.subr.mxu1 %v4295_v11  ;;  %v4034_v28 = vadd.f32 %v4033_v3, %v3962_v23 }
 0x4f3   :  { %4538 = vmatpush3.msra.mxu1 %v4279_v8 }
 0x4f4   :  { %4539 = vmatprep.subr.mxu1 %v4294_v27 }
 0x4f5   :  { %4540 = vmatpush3.msra.mxu1 %v4278_v13 }
 0x4f6   :  { %4541 = vmatprep.subr.mxu1 %v4293_v46 }
 0x4f7   :  { %4542 = vmatpush3.msra.mxu1 %v4277_v16 }
 0x4f8   :  { %4543 = vmatprep.subr.mxu1 %v4292_v12 }
 0x4f9   :  { %4544 = vmatpush3.msra.mxu1 %v4276_v18 }
 0x4fa   :  { %4545 = vmatprep.subr.mxu1 %v4291_v19 }
 0x4fb   :  { %4546 = vmatpush3.msra.mxu1 %v4275_v31 }
 0x4fc   :  { %4547 = vmatprep.subr.mxu1 %v4290_v4 }
 0x4fd   :  { %4548 = vmatpush3.msra.mxu1 %v4274_v20 }
 0x4fe   :  { %4549 = vmatprep.subr.mxu1 %v4289_v41 }
 0x4ff   :  { %4550 = vmatpush3.msra.mxu1 %v4273_v35 }
 0x500   :  { %4551 = vmatprep.subr.mxu1 %v4288_v42 }
 0x501   :  { %4552 = vmatpush3.msra.mxu1 %v4272_v60 }
 0x502   :  { %4553 = vmatprep.subr.mxu1 %v4287_v44 }
 0x503   :  { %4554 = vmatpush3.msra.mxu1 %v4271_v14 }
 0x504   :  { %4555 = vmatprep.subr.mxu1 %v4286_v47 }
 0x505   :  { %4556 = vmatpush3.msra.mxu1 %v4270_v50 }
 0x506   :  { %4557 = vmatprep.subr.mxu1 %v4285_v48 }
 0x507   :  { %4558 = vmatpush3.msra.mxu1 %v4269_v52 }
 0x508   :  { %4559 = vmatprep.subr.mxu1 %v4284_v54 }
 0x509   :  { %4560 = vmatpush3.msra.mxu1 %v4268_v26 }
 0x50a   :  { %4561 = vmatprep.subr.mxu1 %v4283_v53 }
 0x50b   :  { %4562 = vmatpush3.msra.mxu1 %v4267_v29 }
 0x50c   :  { %4563 = vmatprep.subr.mxu1 %v4282_v56 }
 0x50d   :  { %4564 = vmatpush3.msra.mxu1 %v4266_v9 }
 0x50e   :  { %4565 = vmatprep.subr.mxu1 %v4281_v57 }
 0x50f   :  { %4566 = vmatpush3.msra.mxu1 %v4265_v58 }
 0x530   :  { %v4102_v63 = vpop.f32.mrf.mxu1 }
 0x531   :  { %v4103_v30 = vadd.f32 %v4102_v63, %v4032_v1 }
 0x532   :  { %v4104_v25 = vpop.f32.mrf.mxu1 }
 0x533   :  { %v4105_v7 = vadd.f32 %v4104_v25, %v4034_v28 }
 0x570   :  { %v4173_v45 = vpop.f32.mrf.mxu0 }
 0x571   :  { %v4174_v36 = vadd.f32 %v4173_v45, %v4103_v30 }
 0x572   :  { %v4175_v32 = vpop.f32.mrf.mxu0 }
 0x573   :  { %v4176_v17 = vadd.f32 %v4175_v32, %v4105_v7 }
 0x590   :  { %v4532_v51 = vpop.f32.mrf.mxu0 }
 0x592   :  { %v4533_v61 = vpop.f32.mrf.mxu0 }
 0x593   :  { %v4534_v5 = vadd.f32 %v4533_v61, %v4532_v51 }
 0x5b0   :  { %v4244_v33 = vpop.f32.mrf.mxu1 }
 0x5b1   :  { %v4245_v34 = vadd.f32 %v4244_v33, %v4174_v36 }
 0x5b2   :  { %v4246_v43 = vpop.f32.mrf.mxu1 }
 0x5b3   :  { %v4247_v37 = vadd.f32 %v4246_v43, %v4176_v17  ;;  %v4257_v15 = vmul.f32 %v4245_v34, %v4245_v34 }
 0x5b5   :  { %v4258_v40 = vmul.f32 %v4247_v37, %v4247_v37 }
 0x5b7   :  { %v4259_v62 = vadd.f32 %v4258_v40, %v4257_v15 }
 0x5b9   :  { %4260 = vadd.xlane.f32.xlu0 %v4259_v62 }
 0x642   :  { %v4261_v59 = vpop.xlane.xlu0 %4260 }
 0x643   :  { %4624 = vrsqrt.f32 %v4261_v59 }
 0x650   :  { %v4625_v0 = vpop.eup %4624 }
 0x651   :  { %v4264_v24 = vmul.f32 %v4625_v0, %v4247_v37  ;;  %v4263_v38 = vmul.f32 %v4625_v0, %v4245_v34 }
 0x653   :  { %4463 = vmatprep.mubr.f32.mxu1 %v4264_v24 }
 0x654   :  { %4464 = vmatmul.mubr.f32.vlgmr.msra.gmra.mxu1 %v4263_v38 }
 0x714   :  { %v4567_v2 = vpop.f32.mrf.mxu1 }
 0x716   :  { %v4568_v55 = vpop.f32.mrf.mxu1 }
 0x717   :  { %v4569_v6 = vadd.f32 %v4568_v55, %v4567_v2 }
 0x719   :  { %v4466_v49 = vadd.f32 %v4569_v6, %v4534_v5 }
 0x71b   :  { %v4476_v11 = vadd.f32 %v4499_v10, %v4466_v49 }
 0x71d   :  { %4477 = vst [vmem:[#allocation23] sm:$0xff] %v4476_v11 }
 0x71e   :  { %4912 = shalt.err (!%p4909_p13)
}
 0x71f   :  { %4487 = dma.vmem_to_hbm [thread:$0]  %s4485_s12, 128, %s5347_s13, [#allocation4]  }
 0x720   :  { %4935 = dma.done.wait [#allocation4], 128  }
 0x721   :  { %4936 = vsyncadd [#allocation4], 4294967168 }
 0x722   :  { %4491 = vsyncpa [#allocation3], 1 }
 0x723   :  { %4492 = vsyncpa [#allocation6], 1 }
 0x724   :  { %4493 = vsyncpa [#allocation9], 1 }
 0x725   :  { %4494 = vsyncpa [#allocation12], 1 }
 0x726   :  { %4495 = vsyncpa [#allocation15], 1 }
 0x727   :  { %4496 = vsyncpa [#allocation18], 1 }
 0x728   :  { %4497 = vsyncpa [#allocation21], 1 }
 0x729   :  { %4498 = vsyncpa [#allocation4], 1 }

</bundles_post_ra>
